<compile_context>
chip_gen: v5e
topology: v5e:2x2
jax: 0.10.0
libtpu: 0.0.40
codegen_flags: <defaults>
</compile_context>

<pallas_src>
import jax
import jax.numpy as jnp
from jax import lax
from jax.experimental import pallas as pl
from jax.experimental.pallas import tpu as pltpu


# ----------------------------- geometry constants ---------------------------
_K = 5                 # all three conv kernels are 5x5
_C1, _C2, _C3 = 6, 16, 120
_NTAP = _K * _K        # 25 taps per conv
_S2 = 25               # conv2 pooled map = 5x5 = conv3 receptive field


def _round_up(n, m):
    return ((n + m - 1) // m) * m


# ------------------------------- Pallas kernel -------------------------------

def _lenet5_kernel(p_ref, w1_ref, b1_ref, w2_ref, b2_ref, w3_ref, b3_ref,
                   w4_ref, b4_ref, w5_ref, b5_ref, o_ref):
    """Fully fused LeNet-5 forward.

    p_ref  : [25, 4*25*blk] bf16  expanded conv1 im2col (see builder below)
    w1_ref : [6, 25]   bf16       conv1 weights, cols (kh1, kw1)
    w2_ref : [25, 16, 6] bf16     conv2 weights per tap t=(kh2*5+kw2)
    w3_ref : [120, 400] bf16      conv3-as-dense, cols ordered (s, ci)
    w4_ref : [84, 120] bf16       fc1 (out, in)
    w5_ref : [nc, 84]  bf16       fc2 (out, in)
    b*_ref : [*, 1]    f32        biases (column vectors)
    o_ref  : [2*nc, B] f32        rows [0:nc] = logits, [nc:2nc] = probs
    """
    f32, bf16 = jnp.float32, jnp.bfloat16
    nc = o_ref.shape[0] // 2               # number of classes
    B = o_ref.shape[1]                     # batch
    blk = p_ref.shape[1] // (4 * _NTAP)    # lanes per conv2-tap block (128-pad)
    wslab = _NTAP * blk                    # lanes per conv1 pool-offset slab
    m2 = _S2 * B                           # valid lanes per conv2 pool slab

    # ---- conv1 -> tanh -> AvgPool2d(2) -------------------------------------
    # One wide MXU push over every expanded pixel column; the pool is the mean
    # of the four pool-offset slabs (lane-aligned slices of the result).
    t1 = jnp.tanh(jnp.dot(w1_ref[...], p_ref[...],
                          preferred_element_type=f32) + b1_ref[...])
    a1 = 0.25 * (t1[:, 0 * wslab:1 * wslab] + t1[:, 1 * wslab:2 * wslab] +
                 t1[:, 2 * wslab:3 * wslab] + t1[:, 3 * wslab:4 * wslab])
    a1 = a1.astype(bf16)                   # [6, 25*blk]

    # ---- conv2 -> tanh -> AvgPool2d(2) -------------------------------------
    # Direct convolution: sum over the 25 (kh,kw) taps of [16,6]@[6,blk]
    # matmuls; the expanded conv1 layout makes each tap a contiguous,
    # 128-aligned lane block so no in-kernel im2col is needed.
    z2 = jnp.dot(w2_ref[0], a1[:, 0:blk], preferred_element_type=f32)
    for t in range(1, _NTAP):
        z2 = z2 + jnp.dot(w2_ref[t], a1[:, t * blk:(t + 1) * blk],
                          preferred_element_type=f32)
    t2 = jnp.tanh(z2 + b2_ref[...])                                  # [16, blk]
    a2 = 0.25 * (t2[:, 0 * m2:1 * m2] + t2[:, 1 * m2:2 * m2] +
                 t2[:, 2 * m2:3 * m2] + t2[:, 3 * m2:4 * m2])        # [16, 25*B]

    # ---- conv3 (1x1 output == dense over 16*5*5) -> tanh --------------------
    # Stack the 25 per-position [16, B] column blocks into a [400, B] feature
    # matrix (rows ordered (s, ci) to match the host-permuted conv3 weights).
    x3 = jnp.concatenate([a2[:, s * B:(s + 1) * B] for s in range(_S2)], axis=0)
    h3 = jnp.tanh(jnp.dot(w3_ref[...], x3.astype(bf16),
                          preferred_element_type=f32) + b3_ref[...])  # [120, B]

    # ---- fc1 -> tanh -> fc2 -> softmax --------------------------------------
    h4 = jnp.tanh(jnp.dot(w4_ref[...], h3.astype(bf16),
                          preferred_element_type=f32) + b4_ref[...])  # [84, B]
    logits = jnp.dot(w5_ref[...], h4.astype(bf16),
                     preferred_element_type=f32) + b5_ref[...]        # [nc, B]

    m = jnp.max(logits, axis=0, keepdims=True)
    e = jnp.exp(logits - m)
    s = jnp.sum(e, axis=0, keepdims=True)
    probs = e * pl.reciprocal(s)           # exact reciprocal: sum(probs)==1

    # Single consolidated output store (one DMA instead of two).
    o_ref[...] = jnp.concatenate([logits, probs], axis=0)


# --------------------------- host-side patch builder -------------------------

def _pool_major_taps(a, k):
    """[..., H, W] -> [k*k, 2, 2, ..., Hp, Wp] with
    out[t, fy, fx, ..., yp, xp] = a[..., 2*yp + fy + t//k, 2*xp + fx + t%k],
    Hp = (H-k+1)//2.  Static slices + one transpose only (no gather)."""
    *lead, H, W = a.shape
    Ho, Wo = H - k + 1, W - k + 1
    Hp, Wp = Ho // 2, Wo // 2
    taps = [a[..., i:i + Ho, j:j + Wo] for i in range(k) for j in range(k)]
    t = jnp.stack(taps, axis=0).reshape((k * k, *lead, Hp, 2, Wp, 2))
    nl = len(lead)
    perm = (0, nl + 2, nl + 4, *range(1, nl + 1), nl + 1, nl + 3)
    return t.transpose(perm)


def _expanded_conv1_patches(x, blk):
    """conv1 im2col expanded to conv2's receptive-field layout.

    x: [B, 1, 32, 32] -> [25, 4*25*blk] bf16 with
      row = conv1 tap (kh1*5 + kw1)
      col = (f1*25 + (kh2*5+kw2))*blk + ((f2*25 + (y2*5+x2))*B + b)
    so one [6,25] @ patches matmul evaluates conv1 at every pixel any conv2
    tap / pool offset will read; conv2 then needs no in-kernel im2col.
    """
    B = x.shape[0]
    p1 = _pool_major_taps(x[:, 0].astype(jnp.bfloat16), _K)  # [25,2,2,B,14,14]
    p2 = _pool_major_taps(p1, _K)       # (t2, f2y, f2x, t1, f1y, f1x, b, y2, x2)
    p2 = p2.transpose(3, 4, 5, 0, 1, 2, 7, 8, 6)  # (t1,f1,t2,f2,y2,x2,b)
    p2 = p2.reshape(_NTAP, 4, _NTAP, 4 * _S2 * B)
    pad = blk - 4 * _S2 * B
    if pad:
        p2 = jnp.pad(p2, ((0, 0), (0, 0), (0, 0), (0, pad)))
    return p2.reshape(_NTAP, 4 * _NTAP * blk)


def _prep_kernel_weights(params):
    """Reshape / permute the PyTorch-layout parameters for the kernel."""
    bf16, f32 = jnp.bfloat16, jnp.float32
    w1 = params["w_c1"].reshape(_C1, _NTAP).astype(bf16)
    b1 = params["b_c1"].reshape(_C1, 1).astype(f32)
    w2 = (params["w_c2"].transpose(2, 3, 0, 1)
          .reshape(_NTAP, _C2, _C1).astype(bf16))          # [tap, co, ci]
    b2 = params["b_c2"].reshape(_C2, 1).astype(f32)
    w3 = (params["w_c3"].reshape(_C3, _C2, _S2).transpose(0, 2, 1)
          .reshape(_C3, _C2 * _S2).astype(bf16))           # cols (s, ci)
    b3 = params["b_c3"].reshape(_C3, 1).astype(f32)
    w4 = params["w_f1"].astype(bf16)                       # [84, 120]
    b4 = params["b_f1"].reshape(-1, 1).astype(f32)
    w5 = params["w_f2"].astype(bf16)                       # [nc, 84]
    b5 = params["b_f2"].reshape(-1, 1).astype(f32)
    return (w1, b1, w2, b2, w3, b3, w4, b4, w5, b5)


# ------------------------------ forward wrapper ------------------------------

def lenet5_forward(x, params):
    B = x.shape[0]
    nc = params["w_f2"].shape[0]
    blk = _round_up(4 * _S2 * B, 128)       # 128-pad each conv2-tap lane block
    patches = _expanded_conv1_patches(x, blk)              # [25, 100*blk] bf16
    weights = _prep_kernel_weights(params)

    ncols = patches.shape[1]
    flops = 2 * (_C1 * _NTAP * ncols + _NTAP * _C2 * _C1 * blk
                 + _C3 * _C2 * _S2 * B + 84 * _C3 * B + nc * 84 * B)
    transcendentals = _C1 * ncols + _C2 * blk + (_C3 + 84 + nc) * B
    bytes_accessed = (patches.size * patches.dtype.itemsize
                      + sum(w.size * w.dtype.itemsize for w in weights)
                      + 2 * nc * B * 4)

    vmem = pl.BlockSpec(memory_space=pltpu.MemorySpace.VMEM)
    out = pl.pallas_call(
        _lenet5_kernel,
        out_shape=jax.ShapeDtypeStruct((2 * nc, B), jnp.float32),
        in_specs=[vmem] * 11,
        out_specs=vmem,
        cost_estimate=pl.CostEstimate(flops=flops,
                                      transcendentals=transcendentals,
                                      bytes_accessed=bytes_accessed),
    )(patches, *weights)

    logits = out[:nc, :].T                  # [B, nc]
    probs = out[nc:, :].T                   # [B, nc]
    return logits, probs


# -------------------------------- parameters ---------------------------------

def init_params(key, n_classes):
    ks = jax.random.split(key, 10)

    def nrm(k, shape, scale):
        return scale * jax.random.normal(k, shape, dtype=jnp.float32)

    return {
        "w_c1": nrm(ks[0], (6, 1, 5, 5), 0.2),
        "b_c1": nrm(ks[1], (6,), 0.1),
        "w_c2": nrm(ks[2], (16, 6, 5, 5), 0.08),
        "b_c2": nrm(ks[3], (16,), 0.1),
        "w_c3": nrm(ks[4], (120, 16, 5, 5), 0.05),
        "b_c3": nrm(ks[5], (120,), 0.1),
        # PyTorch nn.Linear layout: weight is [out_features, in_features]
        "w_f1": nrm(ks[6], (84, 120), 0.09),
        "b_f1": nrm(ks[7], (84,), 0.1),
        "w_f2": nrm(ks[8], (n_classes, 84), 0.1),
        "b_f2": nrm(ks[9], (n_classes,), 0.1),
    }


# -------------------------- pure-XLA reference check -------------------------

def _reference_forward(x, params):
    dn = ("NCHW", "OIHW", "NCHW")
    prec = lax.Precision.HIGHEST

    def conv_tanh(a, w, b):
        a = lax.conv_general_dilated(a, w, (1, 1), "VALID",
                                     dimension_numbers=dn, precision=prec)
        return jnp.tanh(a + b.reshape(1, -1, 1, 1))

    def pool(a):
        return lax.reduce_window(a, 0.0, lax.add, (1, 1, 2, 2), (1, 1, 2, 2),
                                 "VALID") * 0.25

    a = pool(conv_tanh(x, params["w_c1"], params["b_c1"]))
    a = pool(conv_tanh(a, params["w_c2"], params["b_c2"]))
    a = conv_tanh(a, params["w_c3"], params["b_c3"])
    a = a.reshape(a.shape[0], -1)
    h = jnp.tanh(jnp.dot(a, params["w_f1"].T, precision=prec) + params["b_f1"])
    logits = jnp.dot(h, params["w_f2"].T, precision=prec) + params["b_f2"]
    return logits, jax.nn.softmax(logits, axis=1)


# ----------------------------------- main ------------------------------------

if __name__ == "__main__":
    n_classes = 10
    key = jax.random.PRNGKey(0)
    k_x, k_p = jax.random.split(key)
    # Classic LeNet-5 geometry: 1x32x32 inputs so the final conv sees 5x5.
    x = jax.random.normal(k_x, (2, 1, 32, 32), dtype=jnp.float32)
    params = init_params(k_p, n_classes)

    logits, probs = jax.jit(lenet5_forward)(x, params)
    jax.block_until_ready((logits, probs))

    assert logits.shape == (2, n_classes)
    assert probs.shape == (2, n_classes)
    assert bool(jnp.all(jnp.isfinite(logits)))
    # Softmax math (and its reciprocal) is exact f32, so this stays tight.
    assert bool(jnp.allclose(jnp.sum(probs, axis=1), 1.0, atol=1e-5))

    # Reference is f32/HIGHEST precision; the kernel uses bf16 MXU operands
    # with f32 accumulation, so allow a correspondingly loose tolerance.
    ref_logits, ref_probs = _reference_forward(x, params)
    assert bool(jnp.allclose(logits, ref_logits, atol=5e-2))
    assert bool(jnp.allclose(probs, ref_probs, atol=2e-2))

    print("KERNEL_OK")
</pallas_src>

<mosaic_0001>
module attributes {stable_mosaic.version = 11 : i64} {
  func.func @_lenet5_kernel(%arg0: memref<25x25600xbf16, #tpu.memory_space<vmem>>, %arg1: memref<6x25xbf16, #tpu.memory_space<vmem>>, %arg2: memref<6x1xf32, #tpu.memory_space<vmem>>, %arg3: memref<25x16x6xbf16, #tpu.memory_space<vmem>>, %arg4: memref<16x1xf32, #tpu.memory_space<vmem>>, %arg5: memref<120x400xbf16, #tpu.memory_space<vmem>>, %arg6: memref<120x1xf32, #tpu.memory_space<vmem>>, %arg7: memref<84x120xbf16, #tpu.memory_space<vmem>>, %arg8: memref<84x1xf32, #tpu.memory_space<vmem>>, %arg9: memref<10x84xbf16, #tpu.memory_space<vmem>>, %arg10: memref<10x1xf32, #tpu.memory_space<vmem>>, %arg11: memref<20x2xf32, #tpu.memory_space<vmem>>) attributes {dimension_semantics = [], scalar_prefetch = 0 : i64, scratch_operands = 0 : i64, tpu.core_type = #tpu.core_type<tc>} {
    %c0 = arith.constant 0 : index
    %c0_0 = arith.constant 0 : index
    %0 = vector.load %arg1[%c0, %c0_0] : memref<6x25xbf16, #tpu.memory_space<vmem>>, vector<6x25xbf16>
    %c0_1 = arith.constant 0 : index
    %c0_2 = arith.constant 0 : index
    %1 = vector.load %arg0[%c0_1, %c0_2] : memref<25x25600xbf16, #tpu.memory_space<vmem>>, vector<25x25600xbf16>
    %cst = arith.constant dense<0.000000e+00> : vector<6x25600xf32>
    %2 = tpu.matmul %0, %1, %cst {dimension_numbers = #tpu.dot_dimension_numbers<[1], [0], [0], [1], [0, 0, 1, 1], [], []>} : vector<6x25xbf16>, vector<25x25600xbf16>, vector<6x25600xf32> -> vector<6x25600xf32>
    %c0_3 = arith.constant 0 : index
    %c0_4 = arith.constant 0 : index
    %3 = vector.load %arg2[%c0_3, %c0_4] : memref<6x1xf32, #tpu.memory_space<vmem>>, vector<6x1xf32>
    %4 = vector.broadcast %3 : vector<6x1xf32> to vector<6x25600xf32>
    %5 = arith.addf %2, %4 : vector<6x25600xf32>
    %6 = math.tanh %5 : vector<6x25600xf32>
    %7 = vector.extract_strided_slice %6 {offsets = [0, 0], sizes = [6, 6400], strides = [1, 1]} : vector<6x25600xf32> to vector<6x6400xf32>
    %8 = vector.extract_strided_slice %6 {offsets = [0, 6400], sizes = [6, 6400], strides = [1, 1]} : vector<6x25600xf32> to vector<6x6400xf32>
    %9 = arith.addf %7, %8 : vector<6x6400xf32>
    %10 = vector.extract_strided_slice %6 {offsets = [0, 12800], sizes = [6, 6400], strides = [1, 1]} : vector<6x25600xf32> to vector<6x6400xf32>
    %11 = arith.addf %9, %10 : vector<6x6400xf32>
    %12 = vector.extract_strided_slice %6 {offsets = [0, 19200], sizes = [6, 6400], strides = [1, 1]} : vector<6x25600xf32> to vector<6x6400xf32>
    %13 = arith.addf %11, %12 : vector<6x6400xf32>
    %cst_5 = arith.constant 2.500000e-01 : f32
    %14 = vector.broadcast %cst_5 : f32 to vector<6x6400xf32>
    %15 = arith.mulf %14, %13 : vector<6x6400xf32>
    %16 = arith.truncf %15 : vector<6x6400xf32> to vector<6x6400xbf16>
    %c0_6 = arith.constant 0 : index
    %c0_7 = arith.constant 0 : index
    %c0_8 = arith.constant 0 : index
    %17 = vector.load %arg3[%c0_6, %c0_7, %c0_8] : memref<25x16x6xbf16, #tpu.memory_space<vmem>>, vector<1x16x6xbf16>
    %18 = vector.shape_cast %17 : vector<1x16x6xbf16> to vector<16x6xbf16>
    %19 = vector.extract_strided_slice %16 {offsets = [0, 0], sizes = [6, 256], strides = [1, 1]} : vector<6x6400xbf16> to vector<6x256xbf16>
    %cst_9 = arith.constant dense<0.000000e+00> : vector<16x256xf32>
    %20 = tpu.matmul %18, %19, %cst_9 {dimension_numbers = #tpu.dot_dimension_numbers<[1], [0], [0], [1], [0, 0, 1, 1], [], []>} : vector<16x6xbf16>, vector<6x256xbf16>, vector<16x256xf32> -> vector<16x256xf32>
    %c1 = arith.constant 1 : index
    %c0_10 = arith.constant 0 : index
    %c0_11 = arith.constant 0 : index
    %21 = vector.load %arg3[%c1, %c0_10, %c0_11] : memref<25x16x6xbf16, #tpu.memory_space<vmem>>, vector<1x16x6xbf16>
    %22 = vector.shape_cast %21 : vector<1x16x6xbf16> to vector<16x6xbf16>
    %23 = vector.extract_strided_slice %16 {offsets = [0, 256], sizes = [6, 256], strides = [1, 1]} : vector<6x6400xbf16> to vector<6x256xbf16>
    %cst_12 = arith.constant dense<0.000000e+00> : vector<16x256xf32>
    %24 = tpu.matmul %22, %23, %cst_12 {dimension_numbers = #tpu.dot_dimension_numbers<[1], [0], [0], [1], [0, 0, 1, 1], [], []>} : vector<16x6xbf16>, vector<6x256xbf16>, vector<16x256xf32> -> vector<16x256xf32>
    %25 = arith.addf %20, %24 : vector<16x256xf32>
    %c2 = arith.constant 2 : index
    %c0_13 = arith.constant 0 : index
    %c0_14 = arith.constant 0 : index
    %26 = vector.load %arg3[%c2, %c0_13, %c0_14] : memref<25x16x6xbf16, #tpu.memory_space<vmem>>, vector<1x16x6xbf16>
    %27 = vector.shape_cast %26 : vector<1x16x6xbf16> to vector<16x6xbf16>
    %28 = vector.extract_strided_slice %16 {offsets = [0, 512], sizes = [6, 256], strides = [1, 1]} : vector<6x6400xbf16> to vector<6x256xbf16>
    %cst_15 = arith.constant dense<0.000000e+00> : vector<16x256xf32>
    %29 = tpu.matmul %27, %28, %cst_15 {dimension_numbers = #tpu.dot_dimension_numbers<[1], [0], [0], [1], [0, 0, 1, 1], [], []>} : vector<16x6xbf16>, vector<6x256xbf16>, vector<16x256xf32> -> vector<16x256xf32>
    %30 = arith.addf %25, %29 : vector<16x256xf32>
    %c3 = arith.constant 3 : index
    %c0_16 = arith.constant 0 : index
    %c0_17 = arith.constant 0 : index
    %31 = vector.load %arg3[%c3, %c0_16, %c0_17] : memref<25x16x6xbf16, #tpu.memory_space<vmem>>, vector<1x16x6xbf16>
    %32 = vector.shape_cast %31 : vector<1x16x6xbf16> to vector<16x6xbf16>
    %33 = vector.extract_strided_slice %16 {offsets = [0, 768], sizes = [6, 256], strides = [1, 1]} : vector<6x6400xbf16> to vector<6x256xbf16>
    %cst_18 = arith.constant dense<0.000000e+00> : vector<16x256xf32>
    %34 = tpu.matmul %32, %33, %cst_18 {dimension_numbers = #tpu.dot_dimension_numbers<[1], [0], [0], [1], [0, 0, 1, 1], [], []>} : vector<16x6xbf16>, vector<6x256xbf16>, vector<16x256xf32> -> vector<16x256xf32>
    %35 = arith.addf %30, %34 : vector<16x256xf32>
    %c4 = arith.constant 4 : index
    %c0_19 = arith.constant 0 : index
    %c0_20 = arith.constant 0 : index
    %36 = vector.load %arg3[%c4, %c0_19, %c0_20] : memref<25x16x6xbf16, #tpu.memory_space<vmem>>, vector<1x16x6xbf16>
    %37 = vector.shape_cast %36 : vector<1x16x6xbf16> to vector<16x6xbf16>
    %38 = vector.extract_strided_slice %16 {offsets = [0, 1024], sizes = [6, 256], strides = [1, 1]} : vector<6x6400xbf16> to vector<6x256xbf16>
    %cst_21 = arith.constant dense<0.000000e+00> : vector<16x256xf32>
    %39 = tpu.matmul %37, %38, %cst_21 {dimension_numbers = #tpu.dot_dimension_numbers<[1], [0], [0], [1], [0, 0, 1, 1], [], []>} : vector<16x6xbf16>, vector<6x256xbf16>, vector<16x256xf32> -> vector<16x256xf32>
    %40 = arith.addf %35, %39 : vector<16x256xf32>
    %c5 = arith.constant 5 : index
    %c0_22 = arith.constant 0 : index
    %c0_23 = arith.constant 0 : index
    %41 = vector.load %arg3[%c5, %c0_22, %c0_23] : memref<25x16x6xbf16, #tpu.memory_space<vmem>>, vector<1x16x6xbf16>
    %42 = vector.shape_cast %41 : vector<1x16x6xbf16> to vector<16x6xbf16>
    %43 = vector.extract_strided_slice %16 {offsets = [0, 1280], sizes = [6, 256], strides = [1, 1]} : vector<6x6400xbf16> to vector<6x256xbf16>
    %cst_24 = arith.constant dense<0.000000e+00> : vector<16x256xf32>
    %44 = tpu.matmul %42, %43, %cst_24 {dimension_numbers = #tpu.dot_dimension_numbers<[1], [0], [0], [1], [0, 0, 1, 1], [], []>} : vector<16x6xbf16>, vector<6x256xbf16>, vector<16x256xf32> -> vector<16x256xf32>
    %45 = arith.addf %40, %44 : vector<16x256xf32>
    %c6 = arith.constant 6 : index
    %c0_25 = arith.constant 0 : index
    %c0_26 = arith.constant 0 : index
    %46 = vector.load %arg3[%c6, %c0_25, %c0_26] : memref<25x16x6xbf16, #tpu.memory_space<vmem>>, vector<1x16x6xbf16>
    %47 = vector.shape_cast %46 : vector<1x16x6xbf16> to vector<16x6xbf16>
    %48 = vector.extract_strided_slice %16 {offsets = [0, 1536], sizes = [6, 256], strides = [1, 1]} : vector<6x6400xbf16> to vector<6x256xbf16>
    %cst_27 = arith.constant dense<0.000000e+00> : vector<16x256xf32>
    %49 = tpu.matmul %47, %48, %cst_27 {dimension_numbers = #tpu.dot_dimension_numbers<[1], [0], [0], [1], [0, 0, 1, 1], [], []>} : vector<16x6xbf16>, vector<6x256xbf16>, vector<16x256xf32> -> vector<16x256xf32>
    %50 = arith.addf %45, %49 : vector<16x256xf32>
    %c7 = arith.constant 7 : index
    %c0_28 = arith.constant 0 : index
    %c0_29 = arith.constant 0 : index
    %51 = vector.load %arg3[%c7, %c0_28, %c0_29] : memref<25x16x6xbf16, #tpu.memory_space<vmem>>, vector<1x16x6xbf16>
    %52 = vector.shape_cast %51 : vector<1x16x6xbf16> to vector<16x6xbf16>
    %53 = vector.extract_strided_slice %16 {offsets = [0, 1792], sizes = [6, 256], strides = [1, 1]} : vector<6x6400xbf16> to vector<6x256xbf16>
    %cst_30 = arith.constant dense<0.000000e+00> : vector<16x256xf32>
    %54 = tpu.matmul %52, %53, %cst_30 {dimension_numbers = #tpu.dot_dimension_numbers<[1], [0], [0], [1], [0, 0, 1, 1], [], []>} : vector<16x6xbf16>, vector<6x256xbf16>, vector<16x256xf32> -> vector<16x256xf32>
    %55 = arith.addf %50, %54 : vector<16x256xf32>
    %c8 = arith.constant 8 : index
    %c0_31 = arith.constant 0 : index
    %c0_32 = arith.constant 0 : index
    %56 = vector.load %arg3[%c8, %c0_31, %c0_32] : memref<25x16x6xbf16, #tpu.memory_space<vmem>>, vector<1x16x6xbf16>
    %57 = vector.shape_cast %56 : vector<1x16x6xbf16> to vector<16x6xbf16>
    %58 = vector.extract_strided_slice %16 {offsets = [0, 2048], sizes = [6, 256], strides = [1, 1]} : vector<6x6400xbf16> to vector<6x256xbf16>
    %cst_33 = arith.constant dense<0.000000e+00> : vector<16x256xf32>
    %59 = tpu.matmul %57, %58, %cst_33 {dimension_numbers = #tpu.dot_dimension_numbers<[1], [0], [0], [1], [0, 0, 1, 1], [], []>} : vector<16x6xbf16>, vector<6x256xbf16>, vector<16x256xf32> -> vector<16x256xf32>
    %60 = arith.addf %55, %59 : vector<16x256xf32>
    %c9 = arith.constant 9 : index
    %c0_34 = arith.constant 0 : index
    %c0_35 = arith.constant 0 : index
    %61 = vector.load %arg3[%c9, %c0_34, %c0_35] : memref<25x16x6xbf16, #tpu.memory_space<vmem>>, vector<1x16x6xbf16>
    %62 = vector.shape_cast %61 : vector<1x16x6xbf16> to vector<16x6xbf16>
    %63 = vector.extract_strided_slice %16 {offsets = [0, 2304], sizes = [6, 256], strides = [1, 1]} : vector<6x6400xbf16> to vector<6x256xbf16>
    %cst_36 = arith.constant dense<0.000000e+00> : vector<16x256xf32>
    %64 = tpu.matmul %62, %63, %cst_36 {dimension_numbers = #tpu.dot_dimension_numbers<[1], [0], [0], [1], [0, 0, 1, 1], [], []>} : vector<16x6xbf16>, vector<6x256xbf16>, vector<16x256xf32> -> vector<16x256xf32>
    %65 = arith.addf %60, %64 : vector<16x256xf32>
    %c10 = arith.constant 10 : index
    %c0_37 = arith.constant 0 : index
    %c0_38 = arith.constant 0 : index
    %66 = vector.load %arg3[%c10, %c0_37, %c0_38] : memref<25x16x6xbf16, #tpu.memory_space<vmem>>, vector<1x16x6xbf16>
    %67 = vector.shape_cast %66 : vector<1x16x6xbf16> to vector<16x6xbf16>
    %68 = vector.extract_strided_slice %16 {offsets = [0, 2560], sizes = [6, 256], strides = [1, 1]} : vector<6x6400xbf16> to vector<6x256xbf16>
    %cst_39 = arith.constant dense<0.000000e+00> : vector<16x256xf32>
    %69 = tpu.matmul %67, %68, %cst_39 {dimension_numbers = #tpu.dot_dimension_numbers<[1], [0], [0], [1], [0, 0, 1, 1], [], []>} : vector<16x6xbf16>, vector<6x256xbf16>, vector<16x256xf32> -> vector<16x256xf32>
    %70 = arith.addf %65, %69 : vector<16x256xf32>
    %c11 = arith.constant 11 : index
    %c0_40 = arith.constant 0 : index
    %c0_41 = arith.constant 0 : index
    %71 = vector.load %arg3[%c11, %c0_40, %c0_41] : memref<25x16x6xbf16, #tpu.memory_space<vmem>>, vector<1x16x6xbf16>
    %72 = vector.shape_cast %71 : vector<1x16x6xbf16> to vector<16x6xbf16>
    %73 = vector.extract_strided_slice %16 {offsets = [0, 2816], sizes = [6, 256], strides = [1, 1]} : vector<6x6400xbf16> to vector<6x256xbf16>
    %cst_42 = arith.constant dense<0.000000e+00> : vector<16x256xf32>
    %74 = tpu.matmul %72, %73, %cst_42 {dimension_numbers = #tpu.dot_dimension_numbers<[1], [0], [0], [1], [0, 0, 1, 1], [], []>} : vector<16x6xbf16>, vector<6x256xbf16>, vector<16x256xf32> -> vector<16x256xf32>
    %75 = arith.addf %70, %74 : vector<16x256xf32>
    %c12 = arith.constant 12 : index
    %c0_43 = arith.constant 0 : index
    %c0_44 = arith.constant 0 : index
    %76 = vector.load %arg3[%c12, %c0_43, %c0_44] : memref<25x16x6xbf16, #tpu.memory_space<vmem>>, vector<1x16x6xbf16>
    %77 = vector.shape_cast %76 : vector<1x16x6xbf16> to vector<16x6xbf16>
    %78 = vector.extract_strided_slice %16 {offsets = [0, 3072], sizes = [6, 256], strides = [1, 1]} : vector<6x6400xbf16> to vector<6x256xbf16>
    %cst_45 = arith.constant dense<0.000000e+00> : vector<16x256xf32>
    %79 = tpu.matmul %77, %78, %cst_45 {dimension_numbers = #tpu.dot_dimension_numbers<[1], [0], [0], [1], [0, 0, 1, 1], [], []>} : vector<16x6xbf16>, vector<6x256xbf16>, vector<16x256xf32> -> vector<16x256xf32>
    %80 = arith.addf %75, %79 : vector<16x256xf32>
    %c13 = arith.constant 13 : index
    %c0_46 = arith.constant 0 : index
    %c0_47 = arith.constant 0 : index
    %81 = vector.load %arg3[%c13, %c0_46, %c0_47] : memref<25x16x6xbf16, #tpu.memory_space<vmem>>, vector<1x16x6xbf16>
    %82 = vector.shape_cast %81 : vector<1x16x6xbf16> to vector<16x6xbf16>
    %83 = vector.extract_strided_slice %16 {offsets = [0, 3328], sizes = [6, 256], strides = [1, 1]} : vector<6x6400xbf16> to vector<6x256xbf16>
    %cst_48 = arith.constant dense<0.000000e+00> : vector<16x256xf32>
    %84 = tpu.matmul %82, %83, %cst_48 {dimension_numbers = #tpu.dot_dimension_numbers<[1], [0], [0], [1], [0, 0, 1, 1], [], []>} : vector<16x6xbf16>, vector<6x256xbf16>, vector<16x256xf32> -> vector<16x256xf32>
    %85 = arith.addf %80, %84 : vector<16x256xf32>
    %c14 = arith.constant 14 : index
    %c0_49 = arith.constant 0 : index
    %c0_50 = arith.constant 0 : index
    %86 = vector.load %arg3[%c14, %c0_49, %c0_50] : memref<25x16x6xbf16, #tpu.memory_space<vmem>>, vector<1x16x6xbf16>
    %87 = vector.shape_cast %86 : vector<1x16x6xbf16> to vector<16x6xbf16>
    %88 = vector.extract_strided_slice %16 {offsets = [0, 3584], sizes = [6, 256], strides = [1, 1]} : vector<6x6400xbf16> to vector<6x256xbf16>
    %cst_51 = arith.constant dense<0.000000e+00> : vector<16x256xf32>
    %89 = tpu.matmul %87, %88, %cst_51 {dimension_numbers = #tpu.dot_dimension_numbers<[1], [0], [0], [1], [0, 0, 1, 1], [], []>} : vector<16x6xbf16>, vector<6x256xbf16>, vector<16x256xf32> -> vector<16x256xf32>
    %90 = arith.addf %85, %89 : vector<16x256xf32>
    %c15 = arith.constant 15 : index
    %c0_52 = arith.constant 0 : index
    %c0_53 = arith.constant 0 : index
    %91 = vector.load %arg3[%c15, %c0_52, %c0_53] : memref<25x16x6xbf16, #tpu.memory_space<vmem>>, vector<1x16x6xbf16>
    %92 = vector.shape_cast %91 : vector<1x16x6xbf16> to vector<16x6xbf16>
    %93 = vector.extract_strided_slice %16 {offsets = [0, 3840], sizes = [6, 256], strides = [1, 1]} : vector<6x6400xbf16> to vector<6x256xbf16>
    %cst_54 = arith.constant dense<0.000000e+00> : vector<16x256xf32>
    %94 = tpu.matmul %92, %93, %cst_54 {dimension_numbers = #tpu.dot_dimension_numbers<[1], [0], [0], [1], [0, 0, 1, 1], [], []>} : vector<16x6xbf16>, vector<6x256xbf16>, vector<16x256xf32> -> vector<16x256xf32>
    %95 = arith.addf %90, %94 : vector<16x256xf32>
    %c16 = arith.constant 16 : index
    %c0_55 = arith.constant 0 : index
    %c0_56 = arith.constant 0 : index
    %96 = vector.load %arg3[%c16, %c0_55, %c0_56] : memref<25x16x6xbf16, #tpu.memory_space<vmem>>, vector<1x16x6xbf16>
    %97 = vector.shape_cast %96 : vector<1x16x6xbf16> to vector<16x6xbf16>
    %98 = vector.extract_strided_slice %16 {offsets = [0, 4096], sizes = [6, 256], strides = [1, 1]} : vector<6x6400xbf16> to vector<6x256xbf16>
    %cst_57 = arith.constant dense<0.000000e+00> : vector<16x256xf32>
    %99 = tpu.matmul %97, %98, %cst_57 {dimension_numbers = #tpu.dot_dimension_numbers<[1], [0], [0], [1], [0, 0, 1, 1], [], []>} : vector<16x6xbf16>, vector<6x256xbf16>, vector<16x256xf32> -> vector<16x256xf32>
    %100 = arith.addf %95, %99 : vector<16x256xf32>
    %c17 = arith.constant 17 : index
    %c0_58 = arith.constant 0 : index
    %c0_59 = arith.constant 0 : index
    %101 = vector.load %arg3[%c17, %c0_58, %c0_59] : memref<25x16x6xbf16, #tpu.memory_space<vmem>>, vector<1x16x6xbf16>
    %102 = vector.shape_cast %101 : vector<1x16x6xbf16> to vector<16x6xbf16>
    %103 = vector.extract_strided_slice %16 {offsets = [0, 4352], sizes = [6, 256], strides = [1, 1]} : vector<6x6400xbf16> to vector<6x256xbf16>
    %cst_60 = arith.constant dense<0.000000e+00> : vector<16x256xf32>
    %104 = tpu.matmul %102, %103, %cst_60 {dimension_numbers = #tpu.dot_dimension_numbers<[1], [0], [0], [1], [0, 0, 1, 1], [], []>} : vector<16x6xbf16>, vector<6x256xbf16>, vector<16x256xf32> -> vector<16x256xf32>
    %105 = arith.addf %100, %104 : vector<16x256xf32>
    %c18 = arith.constant 18 : index
    %c0_61 = arith.constant 0 : index
    %c0_62 = arith.constant 0 : index
    %106 = vector.load %arg3[%c18, %c0_61, %c0_62] : memref<25x16x6xbf16, #tpu.memory_space<vmem>>, vector<1x16x6xbf16>
    %107 = vector.shape_cast %106 : vector<1x16x6xbf16> to vector<16x6xbf16>
    %108 = vector.extract_strided_slice %16 {offsets = [0, 4608], sizes = [6, 256], strides = [1, 1]} : vector<6x6400xbf16> to vector<6x256xbf16>
    %cst_63 = arith.constant dense<0.000000e+00> : vector<16x256xf32>
    %109 = tpu.matmul %107, %108, %cst_63 {dimension_numbers = #tpu.dot_dimension_numbers<[1], [0], [0], [1], [0, 0, 1, 1], [], []>} : vector<16x6xbf16>, vector<6x256xbf16>, vector<16x256xf32> -> vector<16x256xf32>
    %110 = arith.addf %105, %109 : vector<16x256xf32>
    %c19 = arith.constant 19 : index
    %c0_64 = arith.constant 0 : index
    %c0_65 = arith.constant 0 : index
    %111 = vector.load %arg3[%c19, %c0_64, %c0_65] : memref<25x16x6xbf16, #tpu.memory_space<vmem>>, vector<1x16x6xbf16>
    %112 = vector.shape_cast %111 : vector<1x16x6xbf16> to vector<16x6xbf16>
    %113 = vector.extract_strided_slice %16 {offsets = [0, 4864], sizes = [6, 256], strides = [1, 1]} : vector<6x6400xbf16> to vector<6x256xbf16>
    %cst_66 = arith.constant dense<0.000000e+00> : vector<16x256xf32>
    %114 = tpu.matmul %112, %113, %cst_66 {dimension_numbers = #tpu.dot_dimension_numbers<[1], [0], [0], [1], [0, 0, 1, 1], [], []>} : vector<16x6xbf16>, vector<6x256xbf16>, vector<16x256xf32> -> vector<16x256xf32>
    %115 = arith.addf %110, %114 : vector<16x256xf32>
    %c20 = arith.constant 20 : index
    %c0_67 = arith.constant 0 : index
    %c0_68 = arith.constant 0 : index
    %116 = vector.load %arg3[%c20, %c0_67, %c0_68] : memref<25x16x6xbf16, #tpu.memory_space<vmem>>, vector<1x16x6xbf16>
    %117 = vector.shape_cast %116 : vector<1x16x6xbf16> to vector<16x6xbf16>
    %118 = vector.extract_strided_slice %16 {offsets = [0, 5120], sizes = [6, 256], strides = [1, 1]} : vector<6x6400xbf16> to vector<6x256xbf16>
    %cst_69 = arith.constant dense<0.000000e+00> : vector<16x256xf32>
    %119 = tpu.matmul %117, %118, %cst_69 {dimension_numbers = #tpu.dot_dimension_numbers<[1], [0], [0], [1], [0, 0, 1, 1], [], []>} : vector<16x6xbf16>, vector<6x256xbf16>, vector<16x256xf32> -> vector<16x256xf32>
    %120 = arith.addf %115, %119 : vector<16x256xf32>
    %c21 = arith.constant 21 : index
    %c0_70 = arith.constant 0 : index
    %c0_71 = arith.constant 0 : index
    %121 = vector.load %arg3[%c21, %c0_70, %c0_71] : memref<25x16x6xbf16, #tpu.memory_space<vmem>>, vector<1x16x6xbf16>
    %122 = vector.shape_cast %121 : vector<1x16x6xbf16> to vector<16x6xbf16>
    %123 = vector.extract_strided_slice %16 {offsets = [0, 5376], sizes = [6, 256], strides = [1, 1]} : vector<6x6400xbf16> to vector<6x256xbf16>
    %cst_72 = arith.constant dense<0.000000e+00> : vector<16x256xf32>
    %124 = tpu.matmul %122, %123, %cst_72 {dimension_numbers = #tpu.dot_dimension_numbers<[1], [0], [0], [1], [0, 0, 1, 1], [], []>} : vector<16x6xbf16>, vector<6x256xbf16>, vector<16x256xf32> -> vector<16x256xf32>
    %125 = arith.addf %120, %124 : vector<16x256xf32>
    %c22 = arith.constant 22 : index
    %c0_73 = arith.constant 0 : index
    %c0_74 = arith.constant 0 : index
    %126 = vector.load %arg3[%c22, %c0_73, %c0_74] : memref<25x16x6xbf16, #tpu.memory_space<vmem>>, vector<1x16x6xbf16>
    %127 = vector.shape_cast %126 : vector<1x16x6xbf16> to vector<16x6xbf16>
    %128 = vector.extract_strided_slice %16 {offsets = [0, 5632], sizes = [6, 256], strides = [1, 1]} : vector<6x6400xbf16> to vector<6x256xbf16>
    %cst_75 = arith.constant dense<0.000000e+00> : vector<16x256xf32>
    %129 = tpu.matmul %127, %128, %cst_75 {dimension_numbers = #tpu.dot_dimension_numbers<[1], [0], [0], [1], [0, 0, 1, 1], [], []>} : vector<16x6xbf16>, vector<6x256xbf16>, vector<16x256xf32> -> vector<16x256xf32>
    %130 = arith.addf %125, %129 : vector<16x256xf32>
    %c23 = arith.constant 23 : index
    %c0_76 = arith.constant 0 : index
    %c0_77 = arith.constant 0 : index
    %131 = vector.load %arg3[%c23, %c0_76, %c0_77] : memref<25x16x6xbf16, #tpu.memory_space<vmem>>, vector<1x16x6xbf16>
    %132 = vector.shape_cast %131 : vector<1x16x6xbf16> to vector<16x6xbf16>
    %133 = vector.extract_strided_slice %16 {offsets = [0, 5888], sizes = [6, 256], strides = [1, 1]} : vector<6x6400xbf16> to vector<6x256xbf16>
    %cst_78 = arith.constant dense<0.000000e+00> : vector<16x256xf32>
    %134 = tpu.matmul %132, %133, %cst_78 {dimension_numbers = #tpu.dot_dimension_numbers<[1], [0], [0], [1], [0, 0, 1, 1], [], []>} : vector<16x6xbf16>, vector<6x256xbf16>, vector<16x256xf32> -> vector<16x256xf32>
    %135 = arith.addf %130, %134 : vector<16x256xf32>
    %c24 = arith.constant 24 : index
    %c0_79 = arith.constant 0 : index
    %c0_80 = arith.constant 0 : index
    %136 = vector.load %arg3[%c24, %c0_79, %c0_80] : memref<25x16x6xbf16, #tpu.memory_space<vmem>>, vector<1x16x6xbf16>
    %137 = vector.shape_cast %136 : vector<1x16x6xbf16> to vector<16x6xbf16>
    %138 = vector.extract_strided_slice %16 {offsets = [0, 6144], sizes = [6, 256], strides = [1, 1]} : vector<6x6400xbf16> to vector<6x256xbf16>
    %cst_81 = arith.constant dense<0.000000e+00> : vector<16x256xf32>
    %139 = tpu.matmul %137, %138, %cst_81 {dimension_numbers = #tpu.dot_dimension_numbers<[1], [0], [0], [1], [0, 0, 1, 1], [], []>} : vector<16x6xbf16>, vector<6x256xbf16>, vector<16x256xf32> -> vector<16x256xf32>
    %140 = arith.addf %135, %139 : vector<16x256xf32>
    %c0_82 = arith.constant 0 : index
    %c0_83 = arith.constant 0 : index
    %141 = vector.load %arg4[%c0_82, %c0_83] : memref<16x1xf32, #tpu.memory_space<vmem>>, vector<16x1xf32>
    %142 = vector.broadcast %141 : vector<16x1xf32> to vector<16x256xf32>
    %143 = arith.addf %140, %142 : vector<16x256xf32>
    %144 = math.tanh %143 : vector<16x256xf32>
    %145 = vector.extract_strided_slice %144 {offsets = [0, 0], sizes = [16, 50], strides = [1, 1]} : vector<16x256xf32> to vector<16x50xf32>
    %146 = vector.extract_strided_slice %144 {offsets = [0, 50], sizes = [16, 50], strides = [1, 1]} : vector<16x256xf32> to vector<16x50xf32>
    %147 = arith.addf %145, %146 : vector<16x50xf32>
    %148 = vector.extract_strided_slice %144 {offsets = [0, 100], sizes = [16, 50], strides = [1, 1]} : vector<16x256xf32> to vector<16x50xf32>
    %149 = arith.addf %147, %148 : vector<16x50xf32>
    %150 = vector.extract_strided_slice %144 {offsets = [0, 150], sizes = [16, 50], strides = [1, 1]} : vector<16x256xf32> to vector<16x50xf32>
    %151 = arith.addf %149, %150 : vector<16x50xf32>
    %cst_84 = arith.constant 2.500000e-01 : f32
    %152 = vector.broadcast %cst_84 : f32 to vector<16x50xf32>
    %153 = arith.mulf %152, %151 : vector<16x50xf32>
    %154 = vector.extract_strided_slice %153 {offsets = [0, 0], sizes = [16, 2], strides = [1, 1]} : vector<16x50xf32> to vector<16x2xf32>
    %155 = vector.extract_strided_slice %153 {offsets = [0, 2], sizes = [16, 2], strides = [1, 1]} : vector<16x50xf32> to vector<16x2xf32>
    %156 = vector.extract_strided_slice %153 {offsets = [0, 4], sizes = [16, 2], strides = [1, 1]} : vector<16x50xf32> to vector<16x2xf32>
    %157 = vector.extract_strided_slice %153 {offsets = [0, 6], sizes = [16, 2], strides = [1, 1]} : vector<16x50xf32> to vector<16x2xf32>
    %158 = vector.extract_strided_slice %153 {offsets = [0, 8], sizes = [16, 2], strides = [1, 1]} : vector<16x50xf32> to vector<16x2xf32>
    %159 = vector.extract_strided_slice %153 {offsets = [0, 10], sizes = [16, 2], strides = [1, 1]} : vector<16x50xf32> to vector<16x2xf32>
    %160 = vector.extract_strided_slice %153 {offsets = [0, 12], sizes = [16, 2], strides = [1, 1]} : vector<16x50xf32> to vector<16x2xf32>
    %161 = vector.extract_strided_slice %153 {offsets = [0, 14], sizes = [16, 2], strides = [1, 1]} : vector<16x50xf32> to vector<16x2xf32>
    %162 = vector.extract_strided_slice %153 {offsets = [0, 16], sizes = [16, 2], strides = [1, 1]} : vector<16x50xf32> to vector<16x2xf32>
    %163 = vector.extract_strided_slice %153 {offsets = [0, 18], sizes = [16, 2], strides = [1, 1]} : vector<16x50xf32> to vector<16x2xf32>
    %164 = vector.extract_strided_slice %153 {offsets = [0, 20], sizes = [16, 2], strides = [1, 1]} : vector<16x50xf32> to vector<16x2xf32>
    %165 = vector.extract_strided_slice %153 {offsets = [0, 22], sizes = [16, 2], strides = [1, 1]} : vector<16x50xf32> to vector<16x2xf32>
    %166 = vector.extract_strided_slice %153 {offsets = [0, 24], sizes = [16, 2], strides = [1, 1]} : vector<16x50xf32> to vector<16x2xf32>
    %167 = vector.extract_strided_slice %153 {offsets = [0, 26], sizes = [16, 2], strides = [1, 1]} : vector<16x50xf32> to vector<16x2xf32>
    %168 = vector.extract_strided_slice %153 {offsets = [0, 28], sizes = [16, 2], strides = [1, 1]} : vector<16x50xf32> to vector<16x2xf32>
    %169 = vector.extract_strided_slice %153 {offsets = [0, 30], sizes = [16, 2], strides = [1, 1]} : vector<16x50xf32> to vector<16x2xf32>
    %170 = vector.extract_strided_slice %153 {offsets = [0, 32], sizes = [16, 2], strides = [1, 1]} : vector<16x50xf32> to vector<16x2xf32>
    %171 = vector.extract_strided_slice %153 {offsets = [0, 34], sizes = [16, 2], strides = [1, 1]} : vector<16x50xf32> to vector<16x2xf32>
    %172 = vector.extract_strided_slice %153 {offsets = [0, 36], sizes = [16, 2], strides = [1, 1]} : vector<16x50xf32> to vector<16x2xf32>
    %173 = vector.extract_strided_slice %153 {offsets = [0, 38], sizes = [16, 2], strides = [1, 1]} : vector<16x50xf32> to vector<16x2xf32>
    %174 = vector.extract_strided_slice %153 {offsets = [0, 40], sizes = [16, 2], strides = [1, 1]} : vector<16x50xf32> to vector<16x2xf32>
    %175 = vector.extract_strided_slice %153 {offsets = [0, 42], sizes = [16, 2], strides = [1, 1]} : vector<16x50xf32> to vector<16x2xf32>
    %176 = vector.extract_strided_slice %153 {offsets = [0, 44], sizes = [16, 2], strides = [1, 1]} : vector<16x50xf32> to vector<16x2xf32>
    %177 = vector.extract_strided_slice %153 {offsets = [0, 46], sizes = [16, 2], strides = [1, 1]} : vector<16x50xf32> to vector<16x2xf32>
    %178 = vector.extract_strided_slice %153 {offsets = [0, 48], sizes = [16, 2], strides = [1, 1]} : vector<16x50xf32> to vector<16x2xf32>
    %179 = tpu.concatenate %154, %155, %156, %157, %158, %159, %160, %161, %162, %163, %164, %165, %166, %167, %168, %169 in 0 : vector<16x2xf32>, vector<16x2xf32>, vector<16x2xf32>, vector<16x2xf32>, vector<16x2xf32>, vector<16x2xf32>, vector<16x2xf32>, vector<16x2xf32>, vector<16x2xf32>, vector<16x2xf32>, vector<16x2xf32>, vector<16x2xf32>, vector<16x2xf32>, vector<16x2xf32>, vector<16x2xf32>, vector<16x2xf32> -> vector<256x2xf32>
    %180 = tpu.concatenate %170, %171, %172, %173, %174, %175, %176, %177, %178 in 0 : vector<16x2xf32>, vector<16x2xf32>, vector<16x2xf32>, vector<16x2xf32>, vector<16x2xf32>, vector<16x2xf32>, vector<16x2xf32>, vector<16x2xf32>, vector<16x2xf32> -> vector<144x2xf32>
    %181 = tpu.concatenate %179, %180 in 0 : vector<256x2xf32>, vector<144x2xf32> -> vector<400x2xf32>
    %c0_85 = arith.constant 0 : index
    %c0_86 = arith.constant 0 : index
    %182 = vector.load %arg5[%c0_85, %c0_86] : memref<120x400xbf16, #tpu.memory_space<vmem>>, vector<120x400xbf16>
    %183 = arith.truncf %181 : vector<400x2xf32> to vector<400x2xbf16>
    %cst_87 = arith.constant dense<0.000000e+00> : vector<120x2xf32>
    %184 = tpu.matmul %182, %183, %cst_87 {dimension_numbers = #tpu.dot_dimension_numbers<[1], [0], [0], [1], [0, 0, 1, 1], [], []>} : vector<120x400xbf16>, vector<400x2xbf16>, vector<120x2xf32> -> vector<120x2xf32>
    %c0_88 = arith.constant 0 : index
    %c0_89 = arith.constant 0 : index
    %185 = vector.load %arg6[%c0_88, %c0_89] : memref<120x1xf32, #tpu.memory_space<vmem>>, vector<120x1xf32>
    %186 = vector.broadcast %185 : vector<120x1xf32> to vector<120x2xf32>
    %187 = arith.addf %184, %186 : vector<120x2xf32>
    %188 = math.tanh %187 : vector<120x2xf32>
    %c0_90 = arith.constant 0 : index
    %c0_91 = arith.constant 0 : index
    %189 = vector.load %arg7[%c0_90, %c0_91] : memref<84x120xbf16, #tpu.memory_space<vmem>>, vector<84x120xbf16>
    %190 = arith.truncf %188 : vector<120x2xf32> to vector<120x2xbf16>
    %cst_92 = arith.constant dense<0.000000e+00> : vector<84x2xf32>
    %191 = tpu.matmul %189, %190, %cst_92 {dimension_numbers = #tpu.dot_dimension_numbers<[1], [0], [0], [1], [0, 0, 1, 1], [], []>} : vector<84x120xbf16>, vector<120x2xbf16>, vector<84x2xf32> -> vector<84x2xf32>
    %c0_93 = arith.constant 0 : index
    %c0_94 = arith.constant 0 : index
    %192 = vector.load %arg8[%c0_93, %c0_94] : memref<84x1xf32, #tpu.memory_space<vmem>>, vector<84x1xf32>
    %193 = vector.broadcast %192 : vector<84x1xf32> to vector<84x2xf32>
    %194 = arith.addf %191, %193 : vector<84x2xf32>
    %195 = math.tanh %194 : vector<84x2xf32>
    %c0_95 = arith.constant 0 : index
    %c0_96 = arith.constant 0 : index
    %196 = vector.load %arg9[%c0_95, %c0_96] : memref<10x84xbf16, #tpu.memory_space<vmem>>, vector<10x84xbf16>
    %197 = arith.truncf %195 : vector<84x2xf32> to vector<84x2xbf16>
    %cst_97 = arith.constant dense<0.000000e+00> : vector<10x2xf32>
    %198 = tpu.matmul %196, %197, %cst_97 {dimension_numbers = #tpu.dot_dimension_numbers<[1], [0], [0], [1], [0, 0, 1, 1], [], []>} : vector<10x84xbf16>, vector<84x2xbf16>, vector<10x2xf32> -> vector<10x2xf32>
    %c0_98 = arith.constant 0 : index
    %c0_99 = arith.constant 0 : index
    %199 = vector.load %arg10[%c0_98, %c0_99] : memref<10x1xf32, #tpu.memory_space<vmem>>, vector<10x1xf32>
    %200 = vector.broadcast %199 : vector<10x1xf32> to vector<10x2xf32>
    %201 = arith.addf %198, %200 : vector<10x2xf32>
    %cst_100 = arith.constant dense<0xFF800000> : vector<2xf32>
    %202 = vector.multi_reduction <maximumf>, %201, %cst_100 [0] : vector<10x2xf32> to vector<2xf32>
    %203 = vector.shape_cast %202 : vector<2xf32> to vector<1x2xf32>
    %204 = vector.broadcast %203 : vector<1x2xf32> to vector<10x2xf32>
    %205 = arith.subf %201, %204 : vector<10x2xf32>
    %206 = math.exp %205 : vector<10x2xf32>
    %cst_101 = arith.constant dense<0.000000e+00> : vector<2xf32>
    %207 = vector.multi_reduction <add>, %206, %cst_101 [0] : vector<10x2xf32> to vector<2xf32>
    %208 = vector.shape_cast %207 : vector<2xf32> to vector<1x2xf32>
    %209 = tpu.reciprocal %208 : vector<1x2xf32> -> vector<1x2xf32>
    %210 = vector.broadcast %209 : vector<1x2xf32> to vector<10x2xf32>
    %211 = arith.mulf %206, %210 : vector<10x2xf32>
    %212 = tpu.concatenate %201, %211 in 0 : vector<10x2xf32>, vector<10x2xf32> -> vector<20x2xf32>
    %c0_102 = arith.constant 0 : index
    %c0_103 = arith.constant 0 : index
    %213 = vector.load %arg11[%c0_102, %c0_103] : memref<20x2xf32, #tpu.memory_space<vmem>>, vector<20x2xf32>
    tpu.vector_store %arg11[%c0_102, %c0_103], %212 {strides = array<i32>} : memref<20x2xf32, #tpu.memory_space<vmem>>, vector<20x2xf32>,
    return
  }
}

</mosaic_0001>

<bundles_post_ra>
// kernel: lenet5_forward.1
= control target key start
LH: loop header
LB: loop body
LE: loop exit
PB: predicated region body
PF: predicated region fallthrough
CT: control target
= control target key end

     0   :  { %vm2250_vm0 = vcmask 1043456   ;;  %vm2251_vm1 = vcmask 1044480   ;;  %v11460_v2 = vmov 65535   ;;  %v11461_v8 = vmov 0   ;;  %s11464_s16 = smov 78   ;;  %s11465_s17 = smov 102   ;;  %s16212_s0 = inlined_call_operand.vmem [shape: bf16[25,25600], index: 0, kind: input, shape index: {}]   ;;  %s16213_s1 = inlined_call_operand.vmem [shape: bf16[6,25], index: 1, kind: input, shape index: {}]   ;;  %s16214_s2 = inlined_call_operand.vmem [shape: f32[6,1], index: 2, kind: input, shape index: {}]   ;;  %s16215_s4 = inlined_call_operand.vmem [shape: f32[16,1], index: 4, kind: input, shape index: {}]   ;;  %s16216_s3 = inlined_call_operand.vmem [shape: bf16[25,16,6], index: 3, kind: input, shape index: {}]   ;;  %s16217_s6 = inlined_call_operand.vmem [shape: f32[120,1], index: 6, kind: input, shape index: {}]   ;;  %s16218_s5 = inlined_call_operand.vmem [shape: bf16[120,400], index: 5, kind: input, shape index: {}]   ;;  %s16219_s8 = inlined_call_operand.vmem [shape: f32[84,1], index: 8, kind: input, shape index: {}]   ;;  %s16220_s10 = inlined_call_operand.vmem [shape: f32[10,1], index: 10, kind: input, shape index: {}]   ;;  %s16221_s7 = inlined_call_operand.vmem [shape: bf16[84,120], index: 7, kind: input, shape index: {}]   ;;  %s16222_s9 = inlined_call_operand.vmem [shape: bf16[10,84], index: 9, kind: input, shape index: {}]   ;;  %s16223_s11 = inlined_call_operand.vmem [shape: f32[20,2], index: 11, kind: output, shape index: {}]  }
   0x1   :  { %v9039_v0 = vld [vmem:[%s16212_s0 + $0x640] sm:$0xf]  ;;  %v2252_v3 = vsel %vm2250_vm0, 4294967295, %v11460_v2  ;;  %v10586_v6 = vld [vmem:[%s16212_s0 + $0x644] sm:$0xf]  ;;  %10866 = vset.pattern.permute.xlu0 %v11461_v8  ;;  %10867 = vset.pattern.permute.xlu1 %v11461_v8  ;;  %vm2246_vm2 = vcmask 203776  }
   0x2   :  { %v10686_v1 = vld [vmem:[%s16212_s0 + $0x95c] sm:$0x10]  ;;  %v11547_v5 = vsel %vm2251_vm1, %v2252_v3, 0  ;;  %v9041_v7 = vld [vmem:[%s16212_s0 + $0x960] sm:$0x10]  ;;  %10988 = vset.pattern.permute.xlu2 %v11461_v8  ;;  %vm5898_vm3 = vcmask 1042432  }
   0x3   :  { %v9040_v4 = vor.u32 %v10686_v1, %v9039_v0  ;;  %v9044_v9 = vor.u32 %v10586_v6, %v9041_v7  ;;  %v9047_v10 = vld [vmem:[%s16212_s0 + $0x648] sm:$0xf]  ;;  %v10591_v12 = vld [vmem:[%s16212_s0 + $0x66c] sm:$0xf]  ;;  %v8239_v16 = vld [vmem:[%s16212_s0] sm:$0xf] }
   0x4   :  { %v10687_v11 = vld [vmem:[%s16212_s0 + $0x964] sm:$0x10]  ;;  %v9081_v15 = vld [vmem:[%s16212_s0 + $0x988] sm:$0x10]  ;;  %v10486_v17 = vld [vmem:[%s16212_s0 + $0x31c] sm:$0xf0] }
   0x5   :  { %v2255_v13 = vand.u32 %v9040_v4, %v11547_v5  ;;  %v9048_v14 = vor.u32 %v10687_v11, %v9047_v10  ;;  %v2258_v18 = vand.u32 %v9044_v9, %v11547_v5  ;;  %v9084_v19 = vor.u32 %v10591_v12, %v9081_v15  ;;  %v10386_v20 = vld [vmem:[%s16212_s0 + $0x4] sm:$0xf]  ;;  %v8247_v22 = vld [vmem:[%s16212_s0 + $0x8] sm:$0xf]  ;;  %v10391_v26 = vld [vmem:[%s16212_s0 + $0x2c] sm:$0xf] }
   0x6   :  { %v8241_v21 = vld [vmem:[%s16212_s0 + $0x320] sm:$0xf0]  ;;  %v8240_v24 = vor.u32 %v10486_v17, %v8239_v16  ;;  %v10487_v25 = vld [vmem:[%s16212_s0 + $0x324] sm:$0xf0]  ;;  %v8281_v27 = vld [vmem:[%s16212_s0 + $0x348] sm:$0xf0] }
   0x7   :  { %2860 = vmatpush.bf16.msra.mxu0 %v2255_v13  ;;  %v2261_v23 = vand.u32 %v9048_v14, %v11547_v5  ;;  %2873 = vmatpush.bf16.msra.mxu1 %v2258_v18  ;;  %v2288_v28 = vand.u32 %v9084_v19, %v11547_v5  ;;  %v8244_v29 = vor.u32 %v10386_v20, %v8241_v21  ;;  %v10587_v30 = vld [vmem:[%s16212_s0 + $0x64c] sm:$0xf]  ;;  %v11604_v33 = vld [vmem:[%s16213_s1] sm:$0x7]  ;;  %v10588_v35 = vld [vmem:[%s16212_s0 + $0x654] sm:$0xf] }
   0x8   :  { %v9049_v31 = vld [vmem:[%s16212_s0 + $0x968] sm:$0x10]  ;;  %v8248_v32 = vor.u32 %v10487_v25, %v8247_v22  ;;  %v9057_v36 = vld [vmem:[%s16212_s0 + $0x970] sm:$0x10]  ;;  %v9063_v37 = vld [vmem:[%s16212_s0 + $0x658] sm:$0xf]  ;;  %v8284_v38 = vor.u32 %v10391_v26, %v8281_v27 }
   0x9   :  { %2886 = vmatpush.bf16.msra.mxu2 %v2261_v23  ;;  %v9052_v34 = vor.u32 %v10587_v30, %v9049_v31  ;;  %3003 = vmatpush.bf16.msra.mxu3 %v2288_v28  ;;  %v9060_v39 = vor.u32 %v10588_v35, %v9057_v36  ;;  %v10689_v40 = vld [vmem:[%s16212_s0 + $0x974] sm:$0x10]  ;;  %v10593_v41 = vld [vmem:[%s16212_s0 + $0x67c] sm:$0xf]  ;;  %v440_v46 = vld [vmem:[%s16214_s2] sm:$0x3f] }
   0xa   :  { %v9097_v42 = vld [vmem:[%s16212_s0 + $0x998] sm:$0x10]  ;;  %v9064_v44 = vor.u32 %v10689_v40, %v9063_v37  ;;  %v10387_v47 = vld [vmem:[%s16212_s0 + $0xc] sm:$0xf]  ;;  %443 = vperm.xlu0 %10866, %v440_v46   ;;  %v10388_v50 = vld [vmem:[%s16212_s0 + $0x14] sm:$0xf] }
   0xb   :  { %2861 = vmatpush.bf16.msra.mxu0 %v8240_v24  ;;  %v2264_v43 = vand.u32 %v9052_v34, %v11547_v5  ;;  %v9100_v45 = vor.u32 %v10593_v41, %v9097_v42  ;;  %v8249_v48 = vld [vmem:[%s16212_s0 + $0x328] sm:$0xf0]  ;;  %2874 = vmatpush.bf16.msra.mxu1 %v8244_v29  ;;  %v2270_v49 = vand.u32 %v9060_v39, %v11547_v5  ;;  %v8257_v51 = vld [vmem:[%s16212_s0 + $0x330] sm:$0xf0]  ;;  %v8263_v52 = vld [vmem:[%s16212_s0 + $0x18] sm:$0xf] }
   0xc   :  { %v2273_v53 = vand.u32 %v9064_v44, %v11547_v5  ;;  %v8252_v54 = vor.u32 %v10387_v47, %v8249_v48  ;;  %v10489_v55 = vld [vmem:[%s16212_s0 + $0x334] sm:$0xf0]  ;;  %v10393_v56 = vld [vmem:[%s16212_s0 + $0x3c] sm:$0xf]  ;;  %v9055_v59 = vld [vmem:[%s16212_s0 + $0x650] sm:$0xf]  ;;  %v8260_v3 = vor.u32 %v10388_v50, %v8257_v51 }
   0xd   :  { %2887 = vmatpush.bf16.msra.mxu2 %v8248_v32  ;;  %v8297_v57 = vld [vmem:[%s16212_s0 + $0x358] sm:$0xf0]  ;;  %3004 = vmatpush.bf16.msra.mxu3 %v8284_v38  ;;  %v2300_v58 = vand.u32 %v9100_v45, %v11547_v5  ;;  %v10688_v60 = vld [vmem:[%s16212_s0 + $0x96c] sm:$0x10]  ;;  %v8264_v62 = vor.u32 %v10489_v55, %v8263_v52  ;;  %v10590_v1 = vld [vmem:[%s16212_s0 + $0x664] sm:$0xf] }
   0xe   :  { %9837 = vmatmul.msk.bf16.vlgmr.msra.gmra.mxu0 %vm2246_vm2, %v11604_v33  ;;  %v10589_v61 = vld [vmem:[%s16212_s0 + $0x65c] sm:$0xf]  ;;  %9838 = vmatmul.msk.bf16.vlgmr.msra.gmra.mxu1 %vm2246_vm2, %v11604_v33  ;;  %v9056_v63 = vor.u32 %v10688_v60, %v9055_v59  ;;  %v9073_v2 = vld [vmem:[%s16212_s0 + $0x980] sm:$0x10]  ;;  %v10595_v7 = vld [vmem:[%s16212_s0 + $0x68c] sm:$0xf]  ;;  %v8300_v15 = vor.u32 %v10393_v56, %v8297_v57 }
   0xf   :  { %2899 = vmatpush.bf16.msrb.mxu0 %v2264_v43  ;;  %v9065_v0 = vld [vmem:[%s16212_s0 + $0x978] sm:$0x10]  ;;  %2925 = vmatpush.bf16.msrb.mxu1 %v2270_v49  ;;  %v9076_v6 = vor.u32 %v10590_v1, %v9073_v2  ;;  %v9113_v8 = vld [vmem:[%s16212_s0 + $0x9a8] sm:$0x10]  ;;  %v8255_v9 = vld [vmem:[%s16212_s0 + $0x10] sm:$0xf] }
  0x10   :  { %9839 = vmatmul.msk.bf16.vlgmr.msra.gmra.mxu2 %vm2246_vm2, %v11604_v33  ;;  %v9068_v4 = vor.u32 %v10589_v61, %v9065_v0  ;;  %9848 = vmatmul.msk.bf16.vlgmr.msra.gmra.mxu3 %vm2246_vm2, %v11604_v33  ;;  %v2267_v10 = vand.u32 %v9056_v63, %v11547_v5  ;;  %v9116_v11 = vor.u32 %v10595_v7, %v9113_v8  ;;  %v10488_v12 = vld [vmem:[%s16212_s0 + $0x32c] sm:$0xf0]  ;;  %v10389_v13 = vld [vmem:[%s16212_s0 + $0x1c] sm:$0xf]  ;;  %v10390_v18 = vld [vmem:[%s16212_s0 + $0x24] sm:$0xf] }
  0x11   :  { %2938 = vmatpush.bf16.msrb.mxu2 %v2273_v53  ;;  %v8265_v14 = vld [vmem:[%s16212_s0 + $0x338] sm:$0xf0]  ;;  %3055 = vmatpush.bf16.msrb.mxu3 %v2300_v58  ;;  %v2282_v17 = vand.u32 %v9076_v6, %v11547_v5  ;;  %v8273_v19 = vld [vmem:[%s16212_s0 + $0x340] sm:$0xf0]  ;;  %v8256_v21 = vor.u32 %v10488_v12, %v8255_v9  ;;  %v10395_v22 = vld [vmem:[%s16212_s0 + $0x4c] sm:$0xf] }
  0x12   :  { %v2276_v16 = vand.u32 %v9068_v4, %v11547_v5  ;;  %v2312_v20 = vand.u32 %v9116_v11, %v11547_v5  ;;  %v8268_v23 = vor.u32 %v10389_v13, %v8265_v14  ;;  %v8313_v24 = vld [vmem:[%s16212_s0 + $0x368] sm:$0xf0]  ;;  %v9071_v25 = vld [vmem:[%s16212_s0 + $0x660] sm:$0xf]  ;;  %v8276_v27 = vor.u32 %v10390_v18, %v8273_v19  ;;  %v10592_v28 = vld [vmem:[%s16212_s0 + $0x674] sm:$0xf] }
  0x13   :  { %2900 = vmatpush.bf16.msrb.mxu0 %v8252_v54  ;;  %2926 = vmatpush.bf16.msrb.mxu1 %v8260_v3  ;;  %v10690_v26 = vld [vmem:[%s16212_s0 + $0x97c] sm:$0x10]  ;;  %v9089_v29 = vld [vmem:[%s16212_s0 + $0x990] sm:$0x10]  ;;  %v9079_v30 = vld [vmem:[%s16212_s0 + $0x668] sm:$0xf]  ;;  %v8316_v32 = vor.u32 %v10395_v22, %v8313_v24 }
  0x14   :  { %v10691_v31 = vld [vmem:[%s16212_s0 + $0x984] sm:$0x10]  ;;  %v9072_v34 = vor.u32 %v10690_v26, %v9071_v25  ;;  %v10597_v35 = vld [vmem:[%s16212_s0 + $0x69c] sm:$0xf]  ;;  %v9092_v37 = vor.u32 %v10592_v28, %v9089_v29  ;;  %v8271_v42 = vld [vmem:[%s16212_s0 + $0x20] sm:$0xf] }
  0x15   :  { %2939 = vmatpush.bf16.msrb.mxu2 %v8264_v62  ;;  %3056 = vmatpush.bf16.msrb.mxu3 %v8300_v15  ;;  %v9129_v36 = vld [vmem:[%s16212_s0 + $0x9b8] sm:$0x10]  ;;  %v9080_v38 = vor.u32 %v10691_v31, %v9079_v30  ;;  %v10490_v43 = vld [vmem:[%s16212_s0 + $0x33c] sm:$0xf0]  ;;  %v10392_v45 = vld [vmem:[%s16212_s0 + $0x34] sm:$0xf] }
  0x16   :  { %v9132_v39 = vor.u32 %v10597_v35, %v9129_v36  ;;  %v2279_v40 = vand.u32 %v9072_v34, %v11547_v5  ;;  %v2294_v41 = vand.u32 %v9092_v37, %v11547_v5  ;;  %v8289_v46 = vld [vmem:[%s16212_s0 + $0x350] sm:$0xf0]  ;;  %v8279_v48 = vld [vmem:[%s16212_s0 + $0x28] sm:$0xf]  ;;  %v8272_v50 = vor.u32 %v10490_v43, %v8271_v42  ;;  %v10397_v51 = vld [vmem:[%s16212_s0 + $0x5c] sm:$0xf] }
  0x17   :  { %2912 = vmatpush.bf16.msra.mxu0 %v2267_v10  ;;  %2977 = vmatpush.bf16.msra.mxu1 %v2282_v17  ;;  %v2285_v44 = vand.u32 %v9080_v38, %v11547_v5  ;;  %v10491_v49 = vld [vmem:[%s16212_s0 + $0x344] sm:$0xf0]  ;;  %v8329_v52 = vld [vmem:[%s16212_s0 + $0x378] sm:$0xf0]  ;;  %v8292_v53 = vor.u32 %v10392_v45, %v8289_v46  ;;  %v9087_v56 = vld [vmem:[%s16212_s0 + $0x670] sm:$0xf] }
  0x18   :  { %v2324_v47 = vand.u32 %v9132_v39, %v11547_v5  ;;  %v8280_v54 = vor.u32 %v10491_v49, %v8279_v48  ;;  %v8332_v55 = vor.u32 %v10397_v51, %v8329_v52  ;;  %v10692_v57 = vld [vmem:[%s16212_s0 + $0x98c] sm:$0x10]  ;;  %v10594_v58 = vld [vmem:[%s16212_s0 + $0x684] sm:$0xf]  ;;  %v9095_v60 = vld [vmem:[%s16212_s0 + $0x678] sm:$0xf] }
  0x19   :  { %2951 = vmatpush.bf16.msra.mxu2 %v2276_v16  ;;  %3107 = vmatpush.bf16.msra.mxu3 %v2312_v20  ;;  %v9105_v59 = vld [vmem:[%s16212_s0 + $0x9a0] sm:$0x10]  ;;  %v10693_v61 = vld [vmem:[%s16212_s0 + $0x994] sm:$0x10]  ;;  %v9088_v62 = vor.u32 %v10692_v57, %v9087_v56  ;;  %v10599_v63 = vld [vmem:[%s16212_s0 + $0x6ac] sm:$0xf] }
  0x1a   :  { %v9145_v0 = vld [vmem:[%s16212_s0 + $0x9c8] sm:$0x10]  ;;  %v9108_v1 = vor.u32 %v10594_v58, %v9105_v59  ;;  %v9096_v2 = vor.u32 %v10693_v61, %v9095_v60  ;;  %v8287_v7 = vld [vmem:[%s16212_s0 + $0x30] sm:$0xf]  ;;  %v10394_v10 = vld [vmem:[%s16212_s0 + $0x44] sm:$0xf] }
  0x1b   :  { %2913 = vmatpush.bf16.msra.mxu0 %v8256_v21  ;;  %2978 = vmatpush.bf16.msra.mxu1 %v8276_v27  ;;  %v9148_v3 = vor.u32 %v10599_v63, %v9145_v0  ;;  %v2291_v4 = vand.u32 %v9088_v62, %v11547_v5  ;;  %v10492_v8 = vld [vmem:[%s16212_s0 + $0x34c] sm:$0xf0]  ;;  %v8305_v11 = vld [vmem:[%s16212_s0 + $0x360] sm:$0xf0]  ;;  %v8295_v13 = vld [vmem:[%s16212_s0 + $0x38] sm:$0xf] }
  0x1c   :  { %v2306_v6 = vand.u32 %v9108_v1, %v11547_v5  ;;  %v2297_v9 = vand.u32 %v9096_v2, %v11547_v5  ;;  %v10493_v14 = vld [vmem:[%s16212_s0 + $0x354] sm:$0xf0]  ;;  %v8288_v15 = vor.u32 %v10492_v8, %v8287_v7  ;;  %v10399_v16 = vld [vmem:[%s16212_s0 + $0x6c] sm:$0xf]  ;;  %v8308_v18 = vor.u32 %v10394_v10, %v8305_v11  ;;  %v9103_v21 = vld [vmem:[%s16212_s0 + $0x680] sm:$0xf] }
  0x1d   :  { %2952 = vmatpush.bf16.msra.mxu2 %v8268_v23  ;;  %3108 = vmatpush.bf16.msra.mxu3 %v8316_v32  ;;  %v2336_v12 = vand.u32 %v9148_v3, %v11547_v5  ;;  %v8345_v17 = vld [vmem:[%s16212_s0 + $0x388] sm:$0xf0]  ;;  %v8296_v19 = vor.u32 %v10493_v14, %v8295_v13  ;;  %v10694_v22 = vld [vmem:[%s16212_s0 + $0x99c] sm:$0x10]  ;;  %v10596_v23 = vld [vmem:[%s16212_s0 + $0x694] sm:$0xf] }
  0x1e   :  { %9840 = vmatmul.msk.bf16.vlgmr.msrb.gmra.mxu0 %vm2246_vm2, %v11604_v33  ;;  %9842 = vmatmul.msk.bf16.vlgmr.msrb.gmra.mxu1 %vm2246_vm2, %v11604_v33  ;;  %v8348_v20 = vor.u32 %v10399_v16, %v8345_v17  ;;  %v9121_v24 = vld [vmem:[%s16212_s0 + $0x9b0] sm:$0x10]  ;;  %v9111_v25 = vld [vmem:[%s16212_s0 + $0x688] sm:$0xf]  ;;  %v9104_v27 = vor.u32 %v10694_v22, %v9103_v21  ;;  %v10601_v28 = vld [vmem:[%s16212_s0 + $0x6bc] sm:$0xf] }
  0x1f   :  { %2964 = vmatpush.bf16.msrb.mxu0 %v2279_v40  ;;  %3029 = vmatpush.bf16.msrb.mxu1 %v2294_v41  ;;  %v10695_v26 = vld [vmem:[%s16212_s0 + $0x9a4] sm:$0x10]  ;;  %v9161_v29 = vld [vmem:[%s16212_s0 + $0x9d8] sm:$0x10]  ;;  %v9124_v30 = vor.u32 %v10596_v23, %v9121_v24  ;;  %v8303_v36 = vld [vmem:[%s16212_s0 + $0x40] sm:$0xf] }
  0x20   :  { %9843 = vmatmul.msk.bf16.vlgmr.msrb.gmra.mxu2 %vm2246_vm2, %v11604_v33  ;;  %9852 = vmatmul.msk.bf16.vlgmr.msrb.gmra.mxu3 %vm2246_vm2, %v11604_v33  ;;  %v9112_v31 = vor.u32 %v10695_v26, %v9111_v25  ;;  %v9164_v32 = vor.u32 %v10601_v28, %v9161_v29  ;;  %v2303_v34 = vand.u32 %v9104_v27, %v11547_v5  ;;  %v10494_v37 = vld [vmem:[%s16212_s0 + $0x35c] sm:$0xf0]  ;;  %v10396_v39 = vld [vmem:[%s16212_s0 + $0x54] sm:$0xf]  ;;  %v8311_v42 = vld [vmem:[%s16212_s0 + $0x48] sm:$0xf] }
  0x21   :  { %2990 = vmatpush.bf16.msrb.mxu2 %v2285_v44  ;;  %3159 = vmatpush.bf16.msrb.mxu3 %v2324_v47  ;;  %v2318_v35 = vand.u32 %v9124_v30, %v11547_v5  ;;  %v8321_v40 = vld [vmem:[%s16212_s0 + $0x370] sm:$0xf0]  ;;  %v10495_v43 = vld [vmem:[%s16212_s0 + $0x364] sm:$0xf0]  ;;  %v8304_v44 = vor.u32 %v10494_v37, %v8303_v36  ;;  %v10401_v45 = vld [vmem:[%s16212_s0 + $0x7c] sm:$0xf] }
  0x22   :  { %v2309_v38 = vand.u32 %v9112_v31, %v11547_v5  ;;  %v2348_v41 = vand.u32 %v9164_v32, %v11547_v5  ;;  %v8361_v46 = vld [vmem:[%s16212_s0 + $0x398] sm:$0xf0]  ;;  %v8324_v47 = vor.u32 %v10396_v39, %v8321_v40  ;;  %v8312_v48 = vor.u32 %v10495_v43, %v8311_v42  ;;  %v10696_v51 = vld [vmem:[%s16212_s0 + $0x9ac] sm:$0x10]  ;;  %v10598_v52 = vld [vmem:[%s16212_s0 + $0x6a4] sm:$0xf] }
  0x23   :  { %2965 = vmatpush.bf16.msrb.mxu0 %v8272_v50  ;;  %3030 = vmatpush.bf16.msrb.mxu1 %v8292_v53  ;;  %v8364_v49 = vor.u32 %v10401_v45, %v8361_v46  ;;  %v9119_v50 = vld [vmem:[%s16212_s0 + $0x690] sm:$0xf]  ;;  %v9137_v53 = vld [vmem:[%s16212_s0 + $0x9c0] sm:$0x10]  ;;  %v10603_v57 = vld [vmem:[%s16212_s0 + $0x6cc] sm:$0xf] }
  0x24   :  { %v9120_v56 = vor.u32 %v10696_v51, %v9119_v50  ;;  %v9177_v58 = vld [vmem:[%s16212_s0 + $0x9e8] sm:$0x10]  ;;  %v9140_v59 = vor.u32 %v10598_v52, %v9137_v53  ;;  %v8319_v0 = vld [vmem:[%s16212_s0 + $0x50] sm:$0xf]  ;;  %v10398_v3 = vld [vmem:[%s16212_s0 + $0x64] sm:$0xf] }
  0x25   :  { %2991 = vmatpush.bf16.msrb.mxu2 %v8280_v54  ;;  %3160 = vmatpush.bf16.msrb.mxu3 %v8332_v55  ;;  %v9127_v54 = vld [vmem:[%s16212_s0 + $0x698] sm:$0xf]  ;;  %v9180_v61 = vor.u32 %v10603_v57, %v9177_v58  ;;  %v10496_v1 = vld [vmem:[%s16212_s0 + $0x36c] sm:$0xf0]  ;;  %v10403_v10 = vld [vmem:[%s16212_s0 + $0x8c] sm:$0xf] }
  0x26   :  { %v10697_v55 = vld [vmem:[%s16212_s0 + $0x9b4] sm:$0x10]  ;;  %v2315_v62 = vand.u32 %v9120_v56, %v11547_v5  ;;  %v2330_v63 = vand.u32 %v9140_v59, %v11547_v5  ;;  %v8377_v11 = vld [vmem:[%s16212_s0 + $0x3a8] sm:$0xf0]  ;;  %v10698_v16 = vld [vmem:[%s16212_s0 + $0x9bc] sm:$0x10] }
  0x27   :  { %v9128_v60 = vor.u32 %v10697_v55, %v9127_v54  ;;  %v8327_v7 = vld [vmem:[%s16212_s0 + $0x58] sm:$0xf]  ;;  %v8380_v14 = vor.u32 %v10403_v10, %v8377_v11  ;;  %v10600_v17 = vld [vmem:[%s16212_s0 + $0x6b4] sm:$0xf]  ;;  %v10605_v22 = vld [vmem:[%s16212_s0 + $0x6dc] sm:$0xf] }
  0x28   :  { %v10497_v8 = vld [vmem:[%s16212_s0 + $0x374] sm:$0xf0]  ;;  %v9193_v23 = vld [vmem:[%s16212_s0 + $0x9f8] sm:$0x10]  ;;  %v8335_v29 = vld [vmem:[%s16212_s0 + $0x60] sm:$0xf] }
  0x29   :  { %v2321_v2 = vand.u32 %v9128_v60, %v11547_v5  ;;  %v8328_v13 = vor.u32 %v10497_v8, %v8327_v7  ;;  %v9196_v26 = vor.u32 %v10605_v22, %v9193_v23  ;;  %v10498_v30 = vld [vmem:[%s16212_s0 + $0x37c] sm:$0xf0]  ;;  %v10400_v32 = vld [vmem:[%s16212_s0 + $0x74] sm:$0xf]  ;;  %v8343_v36 = vld [vmem:[%s16212_s0 + $0x68] sm:$0xf] }
  0x2a   :  { %v10499_v37 = vld [vmem:[%s16212_s0 + $0x384] sm:$0xf0]  ;;  %v10405_v39 = vld [vmem:[%s16212_s0 + $0x9c] sm:$0xf]  ;;  %v10700_v45 = vld [vmem:[%s16212_s0 + $0x9cc] sm:$0x10] }
  0x2b   :  { %v8393_v40 = vld [vmem:[%s16212_s0 + $0x3b8] sm:$0xf0]  ;;  %v8344_v42 = vor.u32 %v10499_v37, %v8343_v36  ;;  %v10602_v46 = vld [vmem:[%s16212_s0 + $0x6c4] sm:$0xf]  ;;  %v10607_v51 = vld [vmem:[%s16212_s0 + $0x6ec] sm:$0xf] }
  0x2c   :  { %v8396_v43 = vor.u32 %v10405_v39, %v8393_v40  ;;  %v9209_v52 = vld [vmem:[%s16212_s0 + $0xa08] sm:$0x10]  ;;  %v8351_v58 = vld [vmem:[%s16212_s0 + $0x70] sm:$0xf]  ;;  %v10702_v10 = vld [vmem:[%s16212_s0 + $0x9dc] sm:$0x10] }
  0x2d   :  { %v9212_v55 = vor.u32 %v10607_v51, %v9209_v52  ;;  %v10500_v59 = vld [vmem:[%s16212_s0 + $0x38c] sm:$0xf0]  ;;  %v9175_v11 = vld [vmem:[%s16212_s0 + $0x6c8] sm:$0xf]  ;;  %v8367_v23 = vld [vmem:[%s16212_s0 + $0x80] sm:$0xf] }
  0x2e   :  { %9841 = vmatmul.msk.bf16.vlgmr.msra.gmra.mxu0 %vm2246_vm2, %v11604_v33  ;;  %9846 = vmatmul.msk.bf16.vlgmr.msra.gmra.mxu1 %vm2246_vm2, %v11604_v33  ;;  %v10704_v39 = vld [vmem:[%s16212_s0 + $0x9ec] sm:$0x10]  ;;  %v9191_v40 = vld [vmem:[%s16212_s0 + $0x6d8] sm:$0xf]  ;;  %vm5894_vm4 = vcmask 48128   ;;  %vm7262_vm5 = vcmask 228352  }
  0x2f   :  { %3016 = vmatpush.bf16.msra.mxu0 %v2291_v4  ;;  %3081 = vmatpush.bf16.msra.mxu1 %v2306_v6  ;;  %v8337_v4 = vld [vmem:[%s16212_s0 + $0x380] sm:$0xf0]  ;;  %v2360_v6 = vand.u32 %v9180_v61, %v11547_v5  ;;  %s11466_s18 = smov 100   ;;  %s11467_s19 = smov 98   ;;  %vm7716_vm6 = vcmask 130048   ;;  %vm8061_vm7 = vcmask 982016  }
  0x30   :  { %9844 = vmatmul.msk.bf16.vlgmr.msra.gmra.mxu2 %vm2246_vm2, %v11604_v33  ;;  %9856 = vmatmul.msk.bf16.vlgmr.msra.gmra.mxu3 %vm2246_vm2, %v11604_v33  ;;  %v10402_v61 = vld [vmem:[%s16212_s0 + $0x84] sm:$0xf]  ;;  %s11468_s2 = smov 108   ;;  %s11469_s20 = smov 104   ;;  %vm8161_vm8 = vcmask 1041408   ;;  %vm8157_vm9 = vcmask 687104  }
  0x31   :  { %3042 = vmatpush.bf16.msra.mxu2 %v2297_v9  ;;  %3211 = vmatpush.bf16.msra.mxu3 %v2336_v12  ;;  %v8320_v9 = vor.u32 %v10496_v1, %v8319_v0  ;;  %v8340_v12 = vor.u32 %v10398_v3, %v8337_v4  ;;  %v8359_v0 = vld [vmem:[%s16212_s0 + $0x78] sm:$0xf]  ;;  %v10407_v3 = vld [vmem:[%s16212_s0 + $0xac] sm:$0xf]  ;;  %s11470_s21 = smov 114   ;;  %s11471_s22 = smov 112  }
  0x32   :  { %v10501_v1 = vld [vmem:[%s16212_s0 + $0x394] sm:$0xf0]  ;;  %v8409_v4 = vld [vmem:[%s16212_s0 + $0x3c8] sm:$0xf0]  ;;  %s11472_s23 = smov 110   ;;  %s11473_s24 = smov 120  }
  0x33   :  { %3017 = vmatpush.bf16.msra.mxu0 %v8288_v15  ;;  %3082 = vmatpush.bf16.msra.mxu1 %v8308_v18  ;;  %v9135_v15 = vld [vmem:[%s16212_s0 + $0x6a0] sm:$0xf]  ;;  %v9153_v18 = vld [vmem:[%s16212_s0 + $0x9d0] sm:$0x10]  ;;  %v8360_v7 = vor.u32 %v10501_v1, %v8359_v0  ;;  %v8412_v8 = vor.u32 %v10407_v3, %v8409_v4  ;;  %v8441_v0 = vld [vmem:[%s16212_s0 + $0x3e8] sm:$0xf0] }
  0x34   :  { %v9136_v21 = vor.u32 %v10698_v16, %v9135_v15  ;;  %v9156_v24 = vor.u32 %v10600_v17, %v9153_v18  ;;  %v10609_v16 = vld [vmem:[%s16212_s0 + $0x6fc] sm:$0xf]  ;;  %s11474_s25 = smov 118   ;;  %s11475_s26 = smov 116   ;;  %vm8179_vm10 = vcmask 15360   ;;  %vm8181_vm11 = vcmask 9216  }
  0x35   :  { %3043 = vmatpush.bf16.msra.mxu2 %v8296_v19  ;;  %3212 = vmatpush.bf16.msra.mxu3 %v8348_v20  ;;  %v9143_v19 = vld [vmem:[%s16212_s0 + $0x6a8] sm:$0xf]  ;;  %v9225_v17 = vld [vmem:[%s16212_s0 + $0xa18] sm:$0x10]  ;;  %s11477_s27 = smov 124   ;;  %s11478_s28 = smov 122  }
  0x36   :  { %v10699_v20 = vld [vmem:[%s16212_s0 + $0x9c4] sm:$0x10]  ;;  %v2327_v27 = vand.u32 %v9136_v21, %v11547_v5  ;;  %v2342_v28 = vand.u32 %v9156_v24, %v11547_v5  ;;  %v10502_v24 = vld [vmem:[%s16212_s0 + $0x39c] sm:$0xf0]  ;;  %s11479_s29 = smov 96  }
  0x37   :  { %v9144_v25 = vor.u32 %v10699_v20, %v9143_v19  ;;  %v9228_v20 = vor.u32 %v10609_v16, %v9225_v17  ;;  %v10613_v16 = vld [vmem:[%s16212_s0 + $0x71c] sm:$0xf] }
  0x38   :  { %v9257_v17 = vld [vmem:[%s16212_s0 + $0xa38] sm:$0x10] }
  0x39   :  { %v2333_v31 = vand.u32 %v9144_v25, %v11547_v5 }
  0x3e   :  { %9845 = vmatmul.msk.bf16.vlgmr.msrb.gmra.mxu0 %vm2246_vm2, %v11604_v33  ;;  %9850 = vmatmul.msk.bf16.vlgmr.msrb.gmra.mxu1 %vm2246_vm2, %v11604_v33 }
  0x3f   :  { %3068 = vmatpush.bf16.msrb.mxu0 %v2303_v34  ;;  %3133 = vmatpush.bf16.msrb.mxu1 %v2318_v35  ;;  %v8353_v34 = vld [vmem:[%s16212_s0 + $0x390] sm:$0xf0]  ;;  %v2372_v35 = vand.u32 %v9196_v26, %v11547_v5 }
  0x40   :  { %9847 = vmatmul.msk.bf16.vlgmr.msrb.gmra.mxu2 %vm2246_vm2, %v11604_v33  ;;  %9860 = vmatmul.msk.bf16.vlgmr.msrb.gmra.mxu3 %vm2246_vm2, %v11604_v33  ;;  %v10404_v26 = vld [vmem:[%s16212_s0 + $0x94] sm:$0xf] }
  0x41   :  { %3094 = vmatpush.bf16.msrb.mxu2 %v2309_v38  ;;  %3263 = vmatpush.bf16.msrb.mxu3 %v2348_v41  ;;  %v8336_v38 = vor.u32 %v10498_v30, %v8335_v29  ;;  %v8356_v41 = vor.u32 %v10400_v32, %v8353_v34  ;;  %v8375_v29 = vld [vmem:[%s16212_s0 + $0x88] sm:$0xf]  ;;  %v10409_v32 = vld [vmem:[%s16212_s0 + $0xbc] sm:$0xf] }
  0x42   :  { %v10503_v30 = vld [vmem:[%s16212_s0 + $0x3a4] sm:$0xf0]  ;;  %v8425_v34 = vld [vmem:[%s16212_s0 + $0x3d8] sm:$0xf0] }
  0x43   :  { %3069 = vmatpush.bf16.msrb.mxu0 %v8304_v44  ;;  %3134 = vmatpush.bf16.msrb.mxu1 %v8324_v47  ;;  %v9151_v44 = vld [vmem:[%s16212_s0 + $0x6b0] sm:$0xf]  ;;  %v9169_v47 = vld [vmem:[%s16212_s0 + $0x9e0] sm:$0x10]  ;;  %v8376_v36 = vor.u32 %v10503_v30, %v8375_v29  ;;  %v8428_v37 = vor.u32 %v10409_v32, %v8425_v34  ;;  %v10408_v30 = vld [vmem:[%s16212_s0 + $0xb4] sm:$0xf] }
  0x44   :  { %v9152_v50 = vor.u32 %v10700_v45, %v9151_v44  ;;  %v9172_v53 = vor.u32 %v10602_v46, %v9169_v47  ;;  %v10611_v45 = vld [vmem:[%s16212_s0 + $0x70c] sm:$0xf]  ;;  %v8407_v34 = vld [vmem:[%s16212_s0 + $0xa8] sm:$0xf] }
  0x45   :  { %3095 = vmatpush.bf16.msrb.mxu2 %v8312_v48  ;;  %3264 = vmatpush.bf16.msrb.mxu3 %v8364_v49  ;;  %v9159_v48 = vld [vmem:[%s16212_s0 + $0x6b8] sm:$0xf]  ;;  %v9241_v46 = vld [vmem:[%s16212_s0 + $0xa28] sm:$0x10] }
  0x46   :  { %v10701_v49 = vld [vmem:[%s16212_s0 + $0x9d4] sm:$0x10]  ;;  %v2339_v56 = vand.u32 %v9152_v50, %v11547_v5  ;;  %v2354_v57 = vand.u32 %v9172_v53, %v11547_v5 }
  0x47   :  { %v9160_v54 = vor.u32 %v10701_v49, %v9159_v48  ;;  %v9244_v49 = vor.u32 %v10611_v45, %v9241_v46  ;;  %v9215_v46 = vld [vmem:[%s16212_s0 + $0x6f0] sm:$0xf] }
  0x49   :  { %v2345_v60 = vand.u32 %v9160_v54, %v11547_v5  ;;  %v8383_v54 = vld [vmem:[%s16212_s0 + $0x90] sm:$0xf] }
  0x4e   :  { %9849 = vmatmul.msk.bf16.vlgmr.msra.gmra.mxu0 %vm2246_vm2, %v11604_v33  ;;  %9854 = vmatmul.msk.bf16.vlgmr.msra.gmra.mxu1 %vm2246_vm2, %v11604_v33 }
  0x4f   :  { %3120 = vmatpush.bf16.msra.mxu0 %v2315_v62  ;;  %3185 = vmatpush.bf16.msra.mxu1 %v2330_v63  ;;  %v8369_v62 = vld [vmem:[%s16212_s0 + $0x3a0] sm:$0xf0]  ;;  %v2384_v63 = vand.u32 %v9212_v55, %v11547_v5  ;;  %v10504_v55 = vld [vmem:[%s16212_s0 + $0x3ac] sm:$0xf0] }
  0x50   :  { %9851 = vmatmul.msk.bf16.vlgmr.msra.gmra.mxu2 %vm2246_vm2, %v11604_v33  ;;  %9864 = vmatmul.msk.bf16.vlgmr.msra.gmra.mxu3 %vm2246_vm2, %v11604_v33 }
  0x51   :  { %3146 = vmatpush.bf16.msra.mxu2 %v2321_v2  ;;  %3315 = vmatpush.bf16.msra.mxu3 %v2360_v6  ;;  %v8352_v2 = vor.u32 %v10500_v59, %v8351_v58  ;;  %v8372_v6 = vor.u32 %v10402_v61, %v8369_v62  ;;  %v8401_v58 = vld [vmem:[%s16212_s0 + $0x3c0] sm:$0xf0]  ;;  %v2408_v59 = vand.u32 %v9244_v49, %v11547_v5  ;;  %v10505_v61 = vld [vmem:[%s16212_s0 + $0x3b4] sm:$0xf0] }
  0x52   :  { %v8384_v62 = vor.u32 %v10504_v55, %v8383_v54  ;;  %v10709_v49 = vld [vmem:[%s16212_s0 + $0xa14] sm:$0x10]  ;;  %v10615_v55 = vld [vmem:[%s16212_s0 + $0x72c] sm:$0xf] }
  0x53   :  { %3121 = vmatpush.bf16.msra.mxu0 %v8320_v9  ;;  %3186 = vmatpush.bf16.msra.mxu1 %v8340_v12  ;;  %v9167_v9 = vld [vmem:[%s16212_s0 + $0x6c0] sm:$0xf]  ;;  %v10703_v12 = vld [vmem:[%s16212_s0 + $0x9e4] sm:$0x10] }
  0x54   :  { %v9168_v15 = vor.u32 %v10702_v10, %v9167_v9  ;;  %v9176_v19 = vor.u32 %v10703_v12, %v9175_v11  ;;  %v9199_v9 = vld [vmem:[%s16212_s0 + $0x6e0] sm:$0xf]  ;;  %v9207_v11 = vld [vmem:[%s16212_s0 + $0x6e8] sm:$0xf] }
  0x55   :  { %3147 = vmatpush.bf16.msra.mxu2 %v8328_v13  ;;  %3316 = vmatpush.bf16.msra.mxu3 %v8380_v14  ;;  %v10604_v13 = vld [vmem:[%s16212_s0 + $0x6d4] sm:$0xf]  ;;  %v10706_v10 = vld [vmem:[%s16212_s0 + $0x9fc] sm:$0x10]  ;;  %v10707_v12 = vld [vmem:[%s16212_s0 + $0xa04] sm:$0x10] }
  0x56   :  { %v9185_v14 = vld [vmem:[%s16212_s0 + $0x9f0] sm:$0x10]  ;;  %v2351_v21 = vand.u32 %v9168_v15, %v11547_v5  ;;  %v2357_v25 = vand.u32 %v9176_v19, %v11547_v5  ;;  %v9200_v15 = vor.u32 %v10706_v10, %v9199_v9  ;;  %v9208_v19 = vor.u32 %v10707_v12, %v9207_v11  ;;  %v8433_v9 = vld [vmem:[%s16212_s0 + $0x3e0] sm:$0xf0]  ;;  %v8423_v11 = vld [vmem:[%s16212_s0 + $0xb8] sm:$0xf] }
  0x57   :  { %v9188_v18 = vor.u32 %v10604_v13, %v9185_v14  ;;  %v10608_v13 = vld [vmem:[%s16212_s0 + $0x6f4] sm:$0xf]  ;;  %v10509_v12 = vld [vmem:[%s16212_s0 + $0x3d4] sm:$0xf0] }
  0x58   :  { %v9217_v14 = vld [vmem:[%s16212_s0 + $0xa10] sm:$0x10]  ;;  %v2381_v29 = vand.u32 %v9208_v19, %v11547_v5 }
  0x59   :  { %v2366_v22 = vand.u32 %v9188_v18, %v11547_v5  ;;  %v9220_v18 = vor.u32 %v10608_v13, %v9217_v14  ;;  %v10415_v14 = vld [vmem:[%s16212_s0 + $0xec] sm:$0xf] }
  0x5e   :  { %9853 = vmatmul.msk.bf16.vlgmr.msrb.gmra.mxu0 %vm2246_vm2, %v11604_v33  ;;  %9858 = vmatmul.msk.bf16.vlgmr.msrb.gmra.mxu1 %vm2246_vm2, %v11604_v33 }
  0x5f   :  { %3172 = vmatpush.bf16.msrb.mxu0 %v2327_v27  ;;  %3237 = vmatpush.bf16.msrb.mxu1 %v2342_v28  ;;  %v8385_v27 = vld [vmem:[%s16212_s0 + $0x3b0] sm:$0xf0]  ;;  %v2396_v28 = vand.u32 %v9228_v20, %v11547_v5  ;;  %v9260_v20 = vor.u32 %v10613_v16, %v9257_v17  ;;  %v8424_v17 = vor.u32 %v10509_v12, %v8423_v11  ;;  %v10614_v11 = vld [vmem:[%s16212_s0 + $0x724] sm:$0xf] }
  0x60   :  { %9855 = vmatmul.msk.bf16.vlgmr.msrb.gmra.mxu2 %vm2246_vm2, %v11604_v33  ;;  %9868 = vmatmul.msk.bf16.vlgmr.msrb.gmra.mxu3 %vm2246_vm2, %v11604_v33  ;;  %v9265_v12 = vld [vmem:[%s16212_s0 + $0xa40] sm:$0x10] }
  0x61   :  { %3198 = vmatpush.bf16.msrb.mxu2 %v2333_v31  ;;  %3367 = vmatpush.bf16.msrb.mxu3 %v2372_v35  ;;  %v8368_v31 = vor.u32 %v10502_v24, %v8367_v23  ;;  %v8388_v35 = vor.u32 %v10404_v26, %v8385_v27  ;;  %v2375_v23 = vand.u32 %v9200_v15, %v11547_v5  ;;  %v8399_v27 = vld [vmem:[%s16212_s0 + $0xa0] sm:$0xf]  ;;  %v8473_v15 = vld [vmem:[%s16212_s0 + $0x408] sm:$0xf0] }
  0x62   :  { %v2390_v26 = vand.u32 %v9220_v18, %v11547_v5  ;;  %v2420_v32 = vand.u32 %v9260_v20, %v11547_v5  ;;  %v8476_v18 = vor.u32 %v10415_v14, %v8473_v15  ;;  %v10619_v14 = vld [vmem:[%s16212_s0 + $0x74c] sm:$0xf] }
  0x63   :  { %3173 = vmatpush.bf16.msrb.mxu0 %v8336_v38  ;;  %3238 = vmatpush.bf16.msrb.mxu1 %v8356_v41  ;;  %v9183_v38 = vld [vmem:[%s16212_s0 + $0x6d0] sm:$0xf]  ;;  %v10705_v41 = vld [vmem:[%s16212_s0 + $0x9f4] sm:$0x10]  ;;  %v9305_v15 = vld [vmem:[%s16212_s0 + $0xa68] sm:$0x10] }
  0x64   :  { %v9184_v44 = vor.u32 %v10704_v39, %v9183_v38  ;;  %v9192_v48 = vor.u32 %v10705_v41, %v9191_v40  ;;  %v8457_v38 = vld [vmem:[%s16212_s0 + $0x3f8] sm:$0xf0] }
  0x65   :  { %3199 = vmatpush.bf16.msrb.mxu2 %v8344_v42  ;;  %3368 = vmatpush.bf16.msrb.mxu3 %v8396_v43  ;;  %v10606_v42 = vld [vmem:[%s16212_s0 + $0x6e4] sm:$0xf] }
  0x66   :  { %v9201_v43 = vld [vmem:[%s16212_s0 + $0xa00] sm:$0x10]  ;;  %v2363_v51 = vand.u32 %v9184_v44, %v11547_v5 }
  0x67   :  { %v9204_v47 = vor.u32 %v10606_v42, %v9201_v43 }
  0x69   :  { %v2378_v53 = vand.u32 %v9204_v47, %v11547_v5  ;;  %v10708_v47 = vld [vmem:[%s16212_s0 + $0xa0c] sm:$0x10] }
  0x6a   :  { %v9216_v54 = vor.u32 %v10708_v47, %v9215_v46  ;;  %v10510_v46 = vld [vmem:[%s16212_s0 + $0x3dc] sm:$0xf0] }
  0x6e   :  { %9857 = vmatmul.msk.bf16.vlgmr.msra.gmra.mxu0 %vm2246_vm2, %v11604_v33  ;;  %9862 = vmatmul.msk.bf16.vlgmr.msra.gmra.mxu1 %vm2246_vm2, %v11604_v33 }
  0x6f   :  { %3224 = vmatpush.bf16.msra.mxu0 %v2339_v56  ;;  %3289 = vmatpush.bf16.msra.mxu1 %v2354_v57  ;;  %v2369_v56 = vand.u32 %v9192_v48, %v11547_v5  ;;  %v10406_v57 = vld [vmem:[%s16212_s0 + $0xa4] sm:$0xf]  ;;  %v9223_v48 = vld [vmem:[%s16212_s0 + $0x6f8] sm:$0xf] }
  0x70   :  { %9859 = vmatmul.msk.bf16.vlgmr.msra.gmra.mxu2 %vm2246_vm2, %v11604_v33  ;;  %9872 = vmatmul.msk.bf16.vlgmr.msra.gmra.mxu3 %vm2246_vm2, %v11604_v33  ;;  %v8404_v1 = vor.u32 %v10406_v57, %v8401_v58  ;;  %v9224_v58 = vor.u32 %v10709_v49, %v9223_v48  ;;  %v10412_v48 = vld [vmem:[%s16212_s0 + $0xd4] sm:$0xf] }
  0x71   :  { %3250 = vmatpush.bf16.msra.mxu2 %v2345_v60  ;;  %3419 = vmatpush.bf16.msra.mxu3 %v2384_v63  ;;  %v8391_v60 = vld [vmem:[%s16212_s0 + $0x98] sm:$0xf]  ;;  %v10411_v63 = vld [vmem:[%s16212_s0 + $0xcc] sm:$0xf]  ;;  %v8449_v49 = vld [vmem:[%s16212_s0 + $0x3f0] sm:$0xf0] }
  0x72   :  { %v8444_v3 = vor.u32 %v10411_v63, %v8441_v0 }
  0x73   :  { %3225 = vmatpush.bf16.msra.mxu0 %v8352_v2  ;;  %3290 = vmatpush.bf16.msra.mxu1 %v8372_v6  ;;  %v8392_v2 = vor.u32 %v10505_v61, %v8391_v60 }
  0x75   :  { %3251 = vmatpush.bf16.msra.mxu2 %v8360_v7  ;;  %3420 = vmatpush.bf16.msra.mxu3 %v8412_v8 }
  0x7e   :  { %9861 = vmatmul.msk.bf16.vlgmr.msrb.gmra.mxu0 %vm2246_vm2, %v11604_v33  ;;  %9866 = vmatmul.msk.bf16.vlgmr.msrb.gmra.mxu1 %vm2246_vm2, %v11604_v33 }
  0x7f   :  { %3276 = vmatpush.bf16.msrb.mxu0 %v2351_v21  ;;  %3341 = vmatpush.bf16.msrb.mxu1 %v2366_v22 }
  0x80   :  { %9863 = vmatmul.msk.bf16.vlgmr.msrb.gmra.mxu2 %vm2246_vm2, %v11604_v33  ;;  %9876 = vmatmul.msk.bf16.vlgmr.msrb.gmra.mxu3 %vm2246_vm2, %v11604_v33 }
  0x81   :  { %3302 = vmatpush.bf16.msrb.mxu2 %v2357_v25  ;;  %3471 = vmatpush.bf16.msrb.mxu3 %v2396_v28  ;;  %v10506_v28 = vld [vmem:[%s16212_s0 + $0x3bc] sm:$0xf0] }
  0x83   :  { %3277 = vmatpush.bf16.msrb.mxu0 %v8368_v31  ;;  %3342 = vmatpush.bf16.msrb.mxu1 %v8388_v35  ;;  %v8417_v31 = vld [vmem:[%s16212_s0 + $0x3d0] sm:$0xf0]  ;;  %v10507_v35 = vld [vmem:[%s16212_s0 + $0x3c4] sm:$0xf0] }
  0x84   :  { %v8420_v39 = vor.u32 %v10408_v30, %v8417_v31  ;;  %v8408_v40 = vor.u32 %v10507_v35, %v8407_v34  ;;  %v10617_v31 = vld [vmem:[%s16212_s0 + $0x73c] sm:$0xf] }
  0x85   :  { %3303 = vmatpush.bf16.msrb.mxu2 %v8376_v36  ;;  %3472 = vmatpush.bf16.msrb.mxu3 %v8428_v37  ;;  %v8400_v36 = vor.u32 %v10506_v28, %v8399_v27  ;;  %v10413_v37 = vld [vmem:[%s16212_s0 + $0xdc] sm:$0xf]  ;;  %v10711_v27 = vld [vmem:[%s16212_s0 + $0xa24] sm:$0x10]  ;;  %v10612_v28 = vld [vmem:[%s16212_s0 + $0x714] sm:$0xf] }
  0x86   :  { %v8460_v41 = vor.u32 %v10413_v37, %v8457_v38 }
  0x8b   :  { %v12159_v50 = vpop.f32.mrf.mxu0  ;;  %v12162_v52 = vpop.f32.mrf.mxu1 }
  0x8e   :  { %9865 = vmatmul.msk.bf16.vlgmr.msra.gmra.mxu0 %vm2246_vm2, %v11604_v33  ;;  %9870 = vmatmul.msk.bf16.vlgmr.msra.gmra.mxu1 %vm2246_vm2, %v11604_v33 }
  0x8f   :  { %3328 = vmatpush.bf16.msra.mxu0 %v2363_v51  ;;  %3393 = vmatpush.bf16.msra.mxu1 %v2378_v53  ;;  %v10610_v51 = vld [vmem:[%s16212_s0 + $0x704] sm:$0xf] }
  0x90   :  { %9867 = vmatmul.msk.bf16.vlgmr.msra.gmra.mxu2 %vm2246_vm2, %v11604_v33  ;;  %9880 = vmatmul.msk.bf16.vlgmr.msra.gmra.mxu3 %vm2246_vm2, %v11604_v33  ;;  %v9233_v53 = vld [vmem:[%s16212_s0 + $0xa20] sm:$0x10] }
  0x91   :  { %3354 = vmatpush.bf16.msra.mxu2 %v2369_v56  ;;  %3523 = vmatpush.bf16.msra.mxu3 %v2408_v59  ;;  %v9273_v56 = vld [vmem:[%s16212_s0 + $0xa48] sm:$0x10]  ;;  %v9236_v57 = vor.u32 %v10610_v51, %v9233_v53  ;;  %v12385_v51 = vld [vmem:[%s16213_s1] sm:$0x7] }
  0x92   :  { %v9276_v59 = vor.u32 %v10615_v55, %v9273_v56  ;;  %v10511_v55 = vld [vmem:[%s16212_s0 + $0x3e4] sm:$0xf0] }
  0x93   :  { %v12199_v4 = vpop.f32.mrf.mxu2  ;;  %v2865_v6 = vpop.f32.mrf.mxu0  ;;  %3329 = vmatpush.bf16.msra.mxu0 %v8384_v62  ;;  %3394 = vmatpush.bf16.msra.mxu1 %v8404_v1  ;;  %v2387_v62 = vand.u32 %v9216_v54, %v11547_v5  ;;  %v2402_v1 = vand.u32 %v9236_v57, %v11547_v5  ;;  %v8439_v54 = vld [vmem:[%s16212_s0 + $0xc8] sm:$0xf]  ;;  %v10417_v57 = vld [vmem:[%s16212_s0 + $0xfc] sm:$0xf] }
  0x94   :  { %v12201_v7 = vpop.f32.mrf.mxu3  ;;  %v2878_v8 = vpop.f32.mrf.mxu1  ;;  %v2393_v6 = vand.u32 %v9224_v58, %v11547_v5  ;;  %v2432_v10 = vand.u32 %v9276_v59, %v11547_v5  ;;  %v8489_v58 = vld [vmem:[%s16212_s0 + $0x418] sm:$0xf0]  ;;  %v8452_v59 = vor.u32 %v10412_v48, %v8449_v49 }
  0x95   :  { %3355 = vmatpush.bf16.msra.mxu2 %v8392_v2  ;;  %3524 = vmatpush.bf16.msra.mxu3 %v8444_v3  ;;  %v8415_v2 = vld [vmem:[%s16212_s0 + $0xb0] sm:$0xf]  ;;  %v10410_v8 = vld [vmem:[%s16212_s0 + $0xc4] sm:$0xf] }
  0x96   :  { %v10508_v3 = vld [vmem:[%s16212_s0 + $0x3cc] sm:$0xf0]  ;;  %v8436_v16 = vor.u32 %v10410_v8, %v8433_v9  ;;  %v9255_v9 = vld [vmem:[%s16212_s0 + $0x718] sm:$0xf] }
  0x97   :  { %v8416_v13 = vor.u32 %v10508_v3, %v8415_v2  ;;  %v10712_v8 = vld [vmem:[%s16212_s0 + $0xa2c] sm:$0x10] }
  0x9b   :  { %v2891_v21 = vpop.f32.mrf.mxu2  ;;  %v12227_v22 = vpop.f32.mrf.mxu0 }
  0x9c   :  { %v3008_v24 = vpop.f32.mrf.mxu3  ;;  %v12230_v25 = vpop.f32.mrf.mxu1 }
  0x9d   :  { %v9231_v24 = vld [vmem:[%s16212_s0 + $0x700] sm:$0xf] }
  0x9e   :  { %9869 = vmatmul.msk.bf16.vlgmr.msrb.gmra.mxu0 %vm2246_vm2, %v11604_v33  ;;  %9874 = vmatmul.msk.bf16.vlgmr.msrb.gmra.mxu1 %vm2246_vm2, %v11604_v33 }
  0x9f   :  { %3380 = vmatpush.bf16.msrb.mxu0 %v2375_v23  ;;  %3445 = vmatpush.bf16.msrb.mxu1 %v2390_v26  ;;  %v9239_v26 = vld [vmem:[%s16212_s0 + $0x708] sm:$0xf] }
  0xa0   :  { %9871 = vmatmul.msk.bf16.vlgmr.msrb.gmra.mxu2 %vm2246_vm2, %v11604_v33  ;;  %9884 = vmatmul.msk.bf16.vlgmr.msrb.gmra.mxu3 %vm2246_vm2, %v11604_v33  ;;  %v9240_v35 = vor.u32 %v10711_v27, %v9239_v26 }
  0xa1   :  { %3406 = vmatpush.bf16.msrb.mxu2 %v2381_v29  ;;  %3575 = vmatpush.bf16.msrb.mxu3 %v2420_v32  ;;  %v9249_v29 = vld [vmem:[%s16212_s0 + $0xa30] sm:$0x10]  ;;  %v9289_v32 = vld [vmem:[%s16212_s0 + $0xa58] sm:$0x10] }
  0xa2   :  { %v9252_v34 = vor.u32 %v10612_v28, %v9249_v29  ;;  %v2405_v47 = vand.u32 %v9240_v35, %v11547_v5  ;;  %v8447_v28 = vld [vmem:[%s16212_s0 + $0xd0] sm:$0xf]  ;;  %v8455_v35 = vld [vmem:[%s16212_s0 + $0xd8] sm:$0xf] }
  0xa3   :  { %v12267_v42 = vpop.f32.mrf.mxu2  ;;  %v2904_v43 = vpop.f32.mrf.mxu0  ;;  %3381 = vmatpush.bf16.msrb.mxu0 %v8400_v36  ;;  %3446 = vmatpush.bf16.msrb.mxu1 %v8420_v39  ;;  %v9292_v36 = vor.u32 %v10617_v31, %v9289_v32  ;;  %v10512_v29 = vld [vmem:[%s16212_s0 + $0x3ec] sm:$0xf0]  ;;  %v10414_v31 = vld [vmem:[%s16212_s0 + $0xe4] sm:$0xf] }
  0xa4   :  { %v12269_v44 = vpop.f32.mrf.mxu3  ;;  %v2930_v45 = vpop.f32.mrf.mxu1  ;;  %v2414_v43 = vand.u32 %v9252_v34, %v11547_v5  ;;  %v8465_v32 = vld [vmem:[%s16212_s0 + $0x400] sm:$0xf0] }
  0xa5   :  { %3407 = vmatpush.bf16.msrb.mxu2 %v8408_v40  ;;  %3576 = vmatpush.bf16.msrb.mxu3 %v8460_v41  ;;  %v8431_v45 = vld [vmem:[%s16212_s0 + $0xc0] sm:$0xf]  ;;  %v2444_v53 = vand.u32 %v9292_v36, %v11547_v5  ;;  %v10513_v36 = vld [vmem:[%s16212_s0 + $0x3f4] sm:$0xf0] }
  0xa6   :  { %v8432_v56 = vor.u32 %v10510_v46, %v8431_v45  ;;  %v8456_v45 = vor.u32 %v10513_v36, %v8455_v35 }
  0xab   :  { %v2943_v60 = vpop.f32.mrf.mxu2  ;;  %v12295_v61 = vpop.f32.mrf.mxu0 }
  0xac   :  { %v3060_v63 = vpop.f32.mrf.mxu3  ;;  %v12298_v0 = vpop.f32.mrf.mxu1  ;;  %v8440_v60 = vor.u32 %v10511_v55, %v8439_v54  ;;  %v9263_v54 = vld [vmem:[%s16212_s0 + $0x720] sm:$0xf] }
  0xad   :  { %v10714_v55 = vld [vmem:[%s16212_s0 + $0xa3c] sm:$0x10] }
  0xae   :  { %9873 = vmatmul.msk.bf16.vlgmr.msra.gmra.mxu0 %vm2246_vm2, %v11604_v33  ;;  %9878 = vmatmul.msk.bf16.vlgmr.msra.gmra.mxu1 %vm2246_vm2, %v11604_v33 }
  0xaf   :  { %3432 = vmatpush.bf16.msra.mxu0 %v2387_v62  ;;  %3497 = vmatpush.bf16.msra.mxu1 %v2402_v1  ;;  %v8492_v62 = vor.u32 %v10417_v57, %v8489_v58  ;;  %v10715_v57 = vld [vmem:[%s16212_s0 + $0xa44] sm:$0x10]  ;;  %v10616_v58 = vld [vmem:[%s16212_s0 + $0x734] sm:$0xf] }
  0xb0   :  { %9875 = vmatmul.msk.bf16.vlgmr.msra.gmra.mxu2 %vm2246_vm2, %v11604_v33  ;;  %9888 = vmatmul.msk.bf16.vlgmr.msra.gmra.mxu3 %vm2246_vm2, %v11604_v33  ;;  %v10710_v33 = vld [vmem:[%s16212_s0 + $0xa1c] sm:$0x10] }
  0xb1   :  { %3458 = vmatpush.bf16.msra.mxu2 %v2393_v6  ;;  %3627 = vmatpush.bf16.msra.mxu3 %v2432_v10  ;;  %v9232_v30 = vor.u32 %v10710_v33, %v9231_v24  ;;  %v9247_v6 = vld [vmem:[%s16212_s0 + $0x710] sm:$0xf]  ;;  %v10713_v10 = vld [vmem:[%s16212_s0 + $0xa34] sm:$0x10] }
  0xb3   :  { %v12335_v19 = vpop.f32.mrf.mxu2  ;;  %v2917_v20 = vpop.f32.mrf.mxu0  ;;  %3433 = vmatpush.bf16.msra.mxu0 %v8416_v13  ;;  %3498 = vmatpush.bf16.msra.mxu1 %v8436_v16  ;;  %v2399_v39 = vand.u32 %v9232_v30, %v11547_v5  ;;  %v9248_v13 = vor.u32 %v10712_v8, %v9247_v6  ;;  %v9268_v16 = vor.u32 %v10614_v11, %v9265_v12 }
  0xb4   :  { %v12337_v21 = vpop.f32.mrf.mxu3  ;;  %v2982_v23 = vpop.f32.mrf.mxu1 }
  0xb5   :  { %3459 = vmatpush.bf16.msra.mxu2 %v8424_v17  ;;  %3628 = vmatpush.bf16.msra.mxu3 %v8476_v18  ;;  %v9256_v17 = vor.u32 %v10713_v10, %v9255_v9  ;;  %v9308_v18 = vor.u32 %v10619_v14, %v9305_v15  ;;  %v2411_v24 = vand.u32 %v9248_v13, %v11547_v5  ;;  %v8463_v15 = vld [vmem:[%s16212_s0 + $0xe0] sm:$0xf] }
  0xb6   :  { %v2426_v27 = vand.u32 %v9268_v16, %v11547_v5  ;;  %v10514_v16 = vld [vmem:[%s16212_s0 + $0x3fc] sm:$0xf0] }
  0xb7   :  { %v2417_v30 = vand.u32 %v9256_v17, %v11547_v5  ;;  %v2456_v34 = vand.u32 %v9308_v18, %v11547_v5  ;;  %v10416_v18 = vld [vmem:[%s16212_s0 + $0xf4] sm:$0xf] }
  0xbb   :  { %v2956_v37 = vpop.f32.mrf.mxu2  ;;  %v12363_v38 = vpop.f32.mrf.mxu0 }
  0xbc   :  { %v3112_v40 = vpop.f32.mrf.mxu3  ;;  %v12366_v41 = vpop.f32.mrf.mxu1  ;;  %v8448_v37 = vor.u32 %v10512_v29, %v8447_v28  ;;  %v8464_v28 = vor.u32 %v10514_v16, %v8463_v15  ;;  %v10421_v29 = vld [vmem:[%s16212_s0 + $0x11c] sm:$0xf]  ;;  %v8497_v15 = vld [vmem:[%s16212_s0 + $0x420] sm:$0xf0] }
  0xbd   :  { %v8505_v40 = vld [vmem:[%s16212_s0 + $0x428] sm:$0xf0] }
  0xbe   :  { %9877 = vmatmul.msk.bf16.vlgmr.msrb.gmra.mxu0 %vm2246_vm2, %v12385_v51  ;;  %9882 = vmatmul.msk.bf16.vlgmr.msrb.gmra.mxu1 %vm2246_vm2, %v12385_v51 }
  0xbf   :  { %3484 = vmatpush.bf16.msrb.mxu0 %v2399_v39  ;;  %3549 = vmatpush.bf16.msrb.mxu1 %v2414_v43  ;;  %v10419_v39 = vld [vmem:[%s16212_s0 + $0x10c] sm:$0xf]  ;;  %v8468_v43 = vor.u32 %v10414_v31, %v8465_v32 }
  0xc0   :  { %9879 = vmatmul.msk.bf16.vlgmr.msrb.gmra.mxu2 %vm2246_vm2, %v12385_v51  ;;  %9892 = vmatmul.msk.bf16.vlgmr.msrb.gmra.mxu3 %vm2246_vm2, %v12385_v51  ;;  %v8508_v46 = vor.u32 %v10419_v39, %v8505_v40  ;;  %v9279_v40 = vld [vmem:[%s16212_s0 + $0x730] sm:$0xf] }
  0xc1   :  { %3510 = vmatpush.bf16.msrb.mxu2 %v2405_v47  ;;  %3679 = vmatpush.bf16.msrb.mxu3 %v2444_v53 }
  0xc3   :  { %v12408_v63 = vpop.f32.mrf.mxu2  ;;  %v2969_v1 = vpop.f32.mrf.mxu0  ;;  %3485 = vmatpush.bf16.msrb.mxu0 %v8432_v56  ;;  %3550 = vmatpush.bf16.msrb.mxu1 %v8452_v59  ;;  %v9271_v56 = vld [vmem:[%s16212_s0 + $0x728] sm:$0xf]  ;;  %v9281_v59 = vld [vmem:[%s16212_s0 + $0xa50] sm:$0x10] }
  0xc4   :  { %v12410_v2 = vpop.f32.mrf.mxu3  ;;  %v3034_v3 = vpop.f32.mrf.mxu1  ;;  %v9321_v1 = vld [vmem:[%s16212_s0 + $0xa78] sm:$0x10]  ;;  %v9272_v6 = vor.u32 %v10715_v57, %v9271_v56  ;;  %v9337_v56 = vld [vmem:[%s16212_s0 + $0xa88] sm:$0x10] }
  0xc5   :  { %3511 = vmatpush.bf16.msrb.mxu2 %v8440_v60  ;;  %3680 = vmatpush.bf16.msrb.mxu3 %v8492_v62  ;;  %v9264_v60 = vor.u32 %v10714_v55, %v9263_v54  ;;  %v10621_v62 = vld [vmem:[%s16212_s0 + $0x75c] sm:$0xf]  ;;  %v9284_v3 = vor.u32 %v10616_v58, %v9281_v59  ;;  %v10623_v55 = vld [vmem:[%s16212_s0 + $0x76c] sm:$0xf] }
  0xc6   :  { %v9324_v8 = vor.u32 %v10621_v62, %v9321_v1  ;;  %v2429_v17 = vand.u32 %v9272_v6, %v11547_v5  ;;  %v9340_v59 = vor.u32 %v10623_v55, %v9337_v56 }
  0xc7   :  { %v2423_v11 = vand.u32 %v9264_v60, %v11547_v5  ;;  %v2438_v14 = vand.u32 %v9284_v3, %v11547_v5 }
  0xc8   :  { %v2480_v16 = vand.u32 %v9340_v59, %v11547_v5 }
  0xcb   :  { %v2995_v20 = vpop.f32.mrf.mxu2  ;;  %v12436_v23 = vpop.f32.mrf.mxu0 }
  0xcc   :  { %v3164_v33 = vpop.f32.mrf.mxu3  ;;  %v12439_v26 = vpop.f32.mrf.mxu1  ;;  %v8481_v20 = vld [vmem:[%s16212_s0 + $0x410] sm:$0xf0] }
  0xcd   :  { %v8471_v33 = vld [vmem:[%s16212_s0 + $0xe8] sm:$0xf]  ;;  %v8484_v31 = vor.u32 %v10416_v18, %v8481_v20  ;;  %v10517_v18 = vld [vmem:[%s16212_s0 + $0x414] sm:$0xf0] }
  0xce   :  { %9881 = vmatmul.msk.bf16.vlgmr.msra.gmra.mxu0 %vm2246_vm2, %v12385_v51  ;;  %9886 = vmatmul.msk.bf16.vlgmr.msra.gmra.mxu1 %vm2246_vm2, %v12385_v51 }
  0xcf   :  { %3536 = vmatpush.bf16.msra.mxu0 %v2411_v24  ;;  %3601 = vmatpush.bf16.msra.mxu1 %v2426_v27  ;;  %v2468_v24 = vand.u32 %v9324_v8, %v11547_v5  ;;  %v10515_v27 = vld [vmem:[%s16212_s0 + $0x404] sm:$0xf0] }
  0xd0   :  { %9883 = vmatmul.msk.bf16.vlgmr.msra.gmra.mxu2 %vm2246_vm2, %v12385_v51  ;;  %9896 = vmatmul.msk.bf16.vlgmr.msra.gmra.mxu3 %vm2246_vm2, %v12385_v51  ;;  %v8472_v32 = vor.u32 %v10515_v27, %v8471_v33  ;;  %v8537_v33 = vld [vmem:[%s16212_s0 + $0x448] sm:$0xf0] }
  0xd1   :  { %3562 = vmatpush.bf16.msra.mxu2 %v2417_v30  ;;  %3731 = vmatpush.bf16.msra.mxu3 %v2456_v34  ;;  %v8521_v30 = vld [vmem:[%s16212_s0 + $0x438] sm:$0xf0] }
  0xd2   :  { %v8524_v34 = vor.u32 %v10421_v29, %v8521_v30 }
  0xd3   :  { %v12476_v47 = vpop.f32.mrf.mxu2  ;;  %v3021_v48 = vpop.f32.mrf.mxu0  ;;  %3537 = vmatpush.bf16.msra.mxu0 %v8448_v37  ;;  %3602 = vmatpush.bf16.msra.mxu1 %v8468_v43  ;;  %v10716_v43 = vld [vmem:[%s16212_s0 + $0xa4c] sm:$0x10] }
  0xd4   :  { %v12478_v49 = vpop.f32.mrf.mxu3  ;;  %v3086_v53 = vpop.f32.mrf.mxu1  ;;  %v10618_v48 = vld [vmem:[%s16212_s0 + $0x744] sm:$0xf]  ;;  %v9280_v54 = vor.u32 %v10716_v43, %v9279_v40  ;;  %v9303_v40 = vld [vmem:[%s16212_s0 + $0x748] sm:$0xf] }
  0xd5   :  { %3563 = vmatpush.bf16.msra.mxu2 %v8456_v45  ;;  %3732 = vmatpush.bf16.msra.mxu3 %v8508_v46  ;;  %v9287_v45 = vld [vmem:[%s16212_s0 + $0x738] sm:$0xf]  ;;  %v9297_v53 = vld [vmem:[%s16212_s0 + $0xa60] sm:$0x10]  ;;  %v10719_v43 = vld [vmem:[%s16212_s0 + $0xa64] sm:$0x10] }
  0xd6   :  { %v10717_v46 = vld [vmem:[%s16212_s0 + $0xa54] sm:$0x10]  ;;  %v9300_v57 = vor.u32 %v10618_v48, %v9297_v53  ;;  %v2435_v1 = vand.u32 %v9280_v54, %v11547_v5  ;;  %v10625_v53 = vld [vmem:[%s16212_s0 + $0x77c] sm:$0xf]  ;;  %v9304_v56 = vor.u32 %v10719_v43, %v9303_v40  ;;  %v9311_v40 = vld [vmem:[%s16212_s0 + $0x750] sm:$0xf] }
  0xd7   :  { %v9288_v58 = vor.u32 %v10717_v46, %v9287_v45  ;;  %v10620_v45 = vld [vmem:[%s16212_s0 + $0x754] sm:$0xf]  ;;  %v9353_v54 = vld [vmem:[%s16212_s0 + $0xa98] sm:$0x10]  ;;  %v10720_v43 = vld [vmem:[%s16212_s0 + $0xa6c] sm:$0x10] }
  0xd8   :  { %v2450_v8 = vand.u32 %v9300_v57, %v11547_v5  ;;  %v9313_v46 = vld [vmem:[%s16212_s0 + $0xa70] sm:$0x10]  ;;  %v9356_v57 = vor.u32 %v10625_v53, %v9353_v54  ;;  %v9329_v53 = vld [vmem:[%s16212_s0 + $0xa80] sm:$0x10]  ;;  %v9312_v54 = vor.u32 %v10720_v43, %v9311_v40 }
  0xd9   :  { %v9316_v55 = vor.u32 %v10620_v45, %v9313_v46  ;;  %v9319_v45 = vld [vmem:[%s16212_s0 + $0x758] sm:$0xf] }
  0xda   :  { %v10721_v46 = vld [vmem:[%s16212_s0 + $0xa74] sm:$0x10] }
  0xdb   :  { %v3047_v9 = vpop.f32.mrf.mxu2  ;;  %v12504_v10 = vpop.f32.mrf.mxu0 }
  0xdc   :  { %v3216_v12 = vpop.f32.mrf.mxu3  ;;  %v12507_v13 = vpop.f32.mrf.mxu1  ;;  %v8479_v9 = vld [vmem:[%s16212_s0 + $0xf0] sm:$0xf] }
  0xdd   :  { %v2441_v12 = vand.u32 %v9288_v58, %v11547_v5 }
  0xde   :  { %9885 = vmatmul.msk.bf16.vlgmr.msrb.gmra.mxu0 %vm2246_vm2, %v12385_v51  ;;  %9890 = vmatmul.msk.bf16.vlgmr.msrb.gmra.mxu1 %vm2246_vm2, %v12385_v51 }
  0xdf   :  { %3588 = vmatpush.bf16.msrb.mxu0 %v2423_v11  ;;  %3653 = vmatpush.bf16.msrb.mxu1 %v2438_v14  ;;  %v10516_v11 = vld [vmem:[%s16212_s0 + $0x40c] sm:$0xf0]  ;;  %v10418_v14 = vld [vmem:[%s16212_s0 + $0x104] sm:$0xf] }
  0xe0   :  { %9887 = vmatmul.msk.bf16.vlgmr.msrb.gmra.mxu2 %vm2246_vm2, %v12385_v51  ;;  %9900 = vmatmul.msk.bf16.vlgmr.msrb.gmra.mxu3 %vm2246_vm2, %v12385_v51  ;;  %v8480_v20 = vor.u32 %v10516_v11, %v8479_v9  ;;  %v8500_v27 = vor.u32 %v10418_v14, %v8497_v15  ;;  %v8495_v9 = vld [vmem:[%s16212_s0 + $0x100] sm:$0xf]  ;;  %v10420_v14 = vld [vmem:[%s16212_s0 + $0x114] sm:$0xf] }
  0xe1   :  { %3614 = vmatpush.bf16.msrb.mxu2 %v2429_v17  ;;  %3783 = vmatpush.bf16.msrb.mxu3 %v2468_v24  ;;  %v8487_v17 = vld [vmem:[%s16212_s0 + $0xf8] sm:$0xf]  ;;  %v10423_v24 = vld [vmem:[%s16212_s0 + $0x12c] sm:$0xf]  ;;  %v10518_v11 = vld [vmem:[%s16212_s0 + $0x41c] sm:$0xf0] }
  0xe2   :  { %v8540_v29 = vor.u32 %v10423_v24, %v8537_v33  ;;  %v8513_v15 = vld [vmem:[%s16212_s0 + $0x430] sm:$0xf0]  ;;  %v10425_v24 = vld [vmem:[%s16212_s0 + $0x13c] sm:$0xf] }
  0xe3   :  { %v12544_v35 = vpop.f32.mrf.mxu2  ;;  %v3073_v36 = vpop.f32.mrf.mxu0  ;;  %3589 = vmatpush.bf16.msrb.mxu0 %v8464_v28  ;;  %3654 = vmatpush.bf16.msrb.mxu1 %v8484_v31  ;;  %v8488_v28 = vor.u32 %v10517_v18, %v8487_v17  ;;  %v8503_v17 = vld [vmem:[%s16212_s0 + $0x108] sm:$0xf]  ;;  %v8553_v33 = vld [vmem:[%s16212_s0 + $0x458] sm:$0xf0] }
  0xe4   :  { %v12546_v37 = vpop.f32.mrf.mxu3  ;;  %v3138_v39 = vpop.f32.mrf.mxu1  ;;  %v9295_v36 = vld [vmem:[%s16212_s0 + $0x740] sm:$0xf]  ;;  %v10519_v18 = vld [vmem:[%s16212_s0 + $0x424] sm:$0xf0] }
  0xe5   :  { %3615 = vmatpush.bf16.msrb.mxu2 %v8472_v32  ;;  %3784 = vmatpush.bf16.msrb.mxu3 %v8524_v34  ;;  %v10718_v39 = vld [vmem:[%s16212_s0 + $0xa5c] sm:$0x10] }
  0xe6   :  { %v9296_v48 = vor.u32 %v10718_v39, %v9295_v36 }
  0xeb   :  { %v3099_v60 = vpop.f32.mrf.mxu2  ;;  %v12572_v62 = vpop.f32.mrf.mxu0 }
  0xec   :  { %v3268_v3 = vpop.f32.mrf.mxu3  ;;  %v12575_v6 = vpop.f32.mrf.mxu1  ;;  %v2447_v60 = vand.u32 %v9296_v48, %v11547_v5  ;;  %v10622_v48 = vld [vmem:[%s16212_s0 + $0x764] sm:$0xf] }
  0xee   :  { %9889 = vmatmul.msk.bf16.vlgmr.msra.gmra.mxu0 %vm2246_vm2, %v12385_v51  ;;  %9894 = vmatmul.msk.bf16.vlgmr.msra.gmra.mxu1 %vm2246_vm2, %v12385_v51 }
  0xef   :  { %3640 = vmatpush.bf16.msra.mxu0 %v2435_v1  ;;  %3705 = vmatpush.bf16.msra.mxu1 %v2450_v8  ;;  %v2462_v8 = vand.u32 %v9316_v55, %v11547_v5  ;;  %v10627_v55 = vld [vmem:[%s16212_s0 + $0x78c] sm:$0xf] }
  0xf0   :  { %9891 = vmatmul.msk.bf16.vlgmr.msra.gmra.mxu2 %vm2246_vm2, %v12385_v51  ;;  %9904 = vmatmul.msk.bf16.vlgmr.msra.gmra.mxu3 %vm2246_vm2, %v12385_v51 }
  0xf1   :  { %3666 = vmatpush.bf16.msra.mxu2 %v2441_v12  ;;  %3835 = vmatpush.bf16.msra.mxu3 %v2480_v16  ;;  %v2453_v12 = vand.u32 %v9304_v56, %v11547_v5  ;;  %v2492_v16 = vand.u32 %v9356_v57, %v11547_v5  ;;  %v9369_v56 = vld [vmem:[%s16212_s0 + $0xaa8] sm:$0x10]  ;;  %v9332_v57 = vor.u32 %v10622_v48, %v9329_v53 }
  0xf3   :  { %v12612_v30 = vpop.f32.mrf.mxu2  ;;  %v3125_v31 = vpop.f32.mrf.mxu0  ;;  %3641 = vmatpush.bf16.msra.mxu0 %v8480_v20  ;;  %3706 = vmatpush.bf16.msra.mxu1 %v8500_v27  ;;  %v8496_v20 = vor.u32 %v10518_v11, %v8495_v9  ;;  %v8516_v27 = vor.u32 %v10420_v14, %v8513_v15  ;;  %v2459_v9 = vand.u32 %v9312_v54, %v11547_v5  ;;  %v8511_v15 = vld [vmem:[%s16212_s0 + $0x110] sm:$0xf]  ;;  %v9327_v54 = vld [vmem:[%s16212_s0 + $0x760] sm:$0xf] }
  0xf4   :  { %v12614_v32 = vpop.f32.mrf.mxu3  ;;  %v3190_v34 = vpop.f32.mrf.mxu1  ;;  %v2474_v14 = vand.u32 %v9332_v57, %v11547_v5  ;;  %v10723_v57 = vld [vmem:[%s16212_s0 + $0xa84] sm:$0x10] }
  0xf5   :  { %3667 = vmatpush.bf16.msra.mxu2 %v8488_v28  ;;  %3836 = vmatpush.bf16.msra.mxu3 %v8540_v29  ;;  %v8504_v28 = vor.u32 %v10519_v18, %v8503_v17  ;;  %v8556_v29 = vor.u32 %v10425_v24, %v8553_v33  ;;  %v10422_v18 = vld [vmem:[%s16212_s0 + $0x124] sm:$0xf]  ;;  %v8519_v33 = vld [vmem:[%s16212_s0 + $0x118] sm:$0xf] }
  0xfb   :  { %v3151_v58 = vpop.f32.mrf.mxu2  ;;  %v12640_v59 = vpop.f32.mrf.mxu0 }
  0xfc   :  { %v3320_v1 = vpop.f32.mrf.mxu3  ;;  %v12643_v3 = vpop.f32.mrf.mxu1  ;;  %v9320_v58 = vor.u32 %v10721_v46, %v9319_v45 }
  0xfe   :  { %9893 = vmatmul.msk.bf16.vlgmr.msrb.gmra.mxu0 %vm2246_vm2, %v12385_v51  ;;  %9898 = vmatmul.msk.bf16.vlgmr.msrb.gmra.mxu1 %vm2246_vm2, %v12385_v51  ;;  %v2465_v17 = vand.u32 %v9320_v58, %v11547_v5  ;;  %v10624_v58 = vld [vmem:[%s16212_s0 + $0x774] sm:$0xf] }
  0xff   :  { %3692 = vmatpush.bf16.msrb.mxu0 %v2447_v60  ;;  %3757 = vmatpush.bf16.msrb.mxu1 %v2462_v8  ;;  %v9372_v60 = vor.u32 %v10627_v55, %v9369_v56  ;;  %v10722_v55 = vld [vmem:[%s16212_s0 + $0xa7c] sm:$0x10]  ;;  %v9335_v56 = vld [vmem:[%s16212_s0 + $0x768] sm:$0xf] }
 0x100   :  { %9895 = vmatmul.msk.bf16.vlgmr.msrb.gmra.mxu2 %vm2246_vm2, %v12385_v51  ;;  %9908 = vmatmul.msk.bf16.vlgmr.msrb.gmra.mxu3 %vm2246_vm2, %v12385_v51 }
 0x101   :  { %3718 = vmatpush.bf16.msrb.mxu2 %v2453_v12  ;;  %3887 = vmatpush.bf16.msrb.mxu3 %v2492_v16  ;;  %v10520_v16 = vld [vmem:[%s16212_s0 + $0x42c] sm:$0xf0]  ;;  %v2504_v24 = vand.u32 %v9372_v60, %v11547_v5  ;;  %v9345_v60 = vld [vmem:[%s16212_s0 + $0xa90] sm:$0x10] }
 0x103   :  { %v12680_v31 = vpop.f32.mrf.mxu2  ;;  %v3177_v34 = vpop.f32.mrf.mxu0  ;;  %3693 = vmatpush.bf16.msrb.mxu0 %v8496_v20  ;;  %3758 = vmatpush.bf16.msrb.mxu1 %v8516_v27  ;;  %v8529_v20 = vld [vmem:[%s16212_s0 + $0x440] sm:$0xf0]  ;;  %v10521_v27 = vld [vmem:[%s16212_s0 + $0x434] sm:$0xf0] }
 0x104   :  { %v12682_v36 = vpop.f32.mrf.mxu3  ;;  %v3242_v39 = vpop.f32.mrf.mxu1  ;;  %v8569_v34 = vld [vmem:[%s16212_s0 + $0x468] sm:$0xf0]  ;;  %v8520_v40 = vor.u32 %v10521_v27, %v8519_v33 }
 0x105   :  { %3719 = vmatpush.bf16.msrb.mxu2 %v8504_v28  ;;  %3888 = vmatpush.bf16.msrb.mxu3 %v8556_v29  ;;  %v8512_v28 = vor.u32 %v10520_v16, %v8511_v15  ;;  %v10427_v29 = vld [vmem:[%s16212_s0 + $0x14c] sm:$0xf]  ;;  %v8532_v39 = vor.u32 %v10422_v18, %v8529_v20  ;;  %v9336_v15 = vor.u32 %v10723_v57, %v9335_v56  ;;  %v8585_v56 = vld [vmem:[%s16212_s0 + $0x478] sm:$0xf0] }
 0x106   :  { %v8572_v43 = vor.u32 %v10427_v29, %v8569_v34  ;;  %v10522_v29 = vld [vmem:[%s16212_s0 + $0x43c] sm:$0xf0] }
 0x107   :  { %v2477_v34 = vand.u32 %v9336_v15, %v11547_v5  ;;  %v9343_v15 = vld [vmem:[%s16212_s0 + $0x770] sm:$0xf] }
 0x10b   :  { %v3203_v1 = vpop.f32.mrf.mxu2  ;;  %v12708_v8 = vpop.f32.mrf.mxu0 }
 0x10c   :  { %v3372_v11 = vpop.f32.mrf.mxu3  ;;  %v12711_v12 = vpop.f32.mrf.mxu1  ;;  %v9328_v1 = vor.u32 %v10722_v55, %v9327_v54  ;;  %v10429_v55 = vld [vmem:[%s16212_s0 + $0x15c] sm:$0xf] }
 0x10d   :  { %v9385_v11 = vld [vmem:[%s16212_s0 + $0xab8] sm:$0x10] }
 0x10e   :  { %9897 = vmatmul.msk.bf16.vlgmr.msra.gmra.mxu0 %vm2246_vm2, %v12385_v51  ;;  %9902 = vmatmul.msk.bf16.vlgmr.msra.gmra.mxu1 %vm2246_vm2, %v12385_v51  ;;  %v2471_v20 = vand.u32 %v9328_v1, %v11547_v5 }
 0x10f   :  { %3744 = vmatpush.bf16.msra.mxu0 %v2459_v9  ;;  %3809 = vmatpush.bf16.msra.mxu1 %v2474_v14  ;;  %v10629_v9 = vld [vmem:[%s16212_s0 + $0x79c] sm:$0xf]  ;;  %v9348_v14 = vor.u32 %v10624_v58, %v9345_v60  ;;  %v8588_v60 = vor.u32 %v10429_v55, %v8585_v56 }
 0x110   :  { %9899 = vmatmul.msk.bf16.vlgmr.msra.gmra.mxu2 %vm2246_vm2, %v12385_v51  ;;  %9912 = vmatmul.msk.bf16.vlgmr.msra.gmra.mxu3 %vm2246_vm2, %v12385_v51  ;;  %v9388_v16 = vor.u32 %v10629_v9, %v9385_v11 }
 0x111   :  { %3770 = vmatpush.bf16.msra.mxu2 %v2465_v17  ;;  %3939 = vmatpush.bf16.msra.mxu3 %v2504_v24  ;;  %v2486_v27 = vand.u32 %v9348_v14, %v11547_v5 }
 0x113   :  { %v12748_v45 = vpop.f32.mrf.mxu2  ;;  %v3229_v46 = vpop.f32.mrf.mxu0  ;;  %3745 = vmatpush.bf16.msra.mxu0 %v8512_v28  ;;  %3810 = vmatpush.bf16.msra.mxu1 %v8532_v39  ;;  %v8527_v28 = vld [vmem:[%s16212_s0 + $0x120] sm:$0xf]  ;;  %v10424_v39 = vld [vmem:[%s16212_s0 + $0x134] sm:$0xf] }
 0x114   :  { %v12750_v48 = vpop.f32.mrf.mxu3  ;;  %v3294_v53 = vpop.f32.mrf.mxu1  ;;  %v8535_v46 = vld [vmem:[%s16212_s0 + $0x128] sm:$0xf]  ;;  %v8528_v54 = vor.u32 %v10522_v29, %v8527_v28  ;;  %v10631_v29 = vld [vmem:[%s16212_s0 + $0x7ac] sm:$0xf] }
 0x115   :  { %3771 = vmatpush.bf16.msra.mxu2 %v8520_v40  ;;  %3940 = vmatpush.bf16.msra.mxu3 %v8572_v43  ;;  %v8545_v40 = vld [vmem:[%s16212_s0 + $0x450] sm:$0xf0]  ;;  %v2516_v43 = vand.u32 %v9388_v16, %v11547_v5  ;;  %v10523_v53 = vld [vmem:[%s16212_s0 + $0x444] sm:$0xf0]  ;;  %v10724_v16 = vld [vmem:[%s16212_s0 + $0xa8c] sm:$0x10] }
 0x116   :  { %v8548_v57 = vor.u32 %v10424_v39, %v8545_v40  ;;  %v8536_v58 = vor.u32 %v10523_v53, %v8535_v46  ;;  %v9344_v28 = vor.u32 %v10724_v16, %v9343_v15  ;;  %v8561_v15 = vld [vmem:[%s16212_s0 + $0x460] sm:$0xf0] }
 0x11b   :  { %v3255_v17 = vpop.f32.mrf.mxu2  ;;  %v12776_v18 = vpop.f32.mrf.mxu0 }
 0x11c   :  { %v3424_v24 = vpop.f32.mrf.mxu3  ;;  %v12779_v33 = vpop.f32.mrf.mxu1  ;;  %v9351_v17 = vld [vmem:[%s16212_s0 + $0x778] sm:$0xf] }
 0x11d   :  { %v10626_v24 = vld [vmem:[%s16212_s0 + $0x784] sm:$0xf] }
 0x11e   :  { %9901 = vmatmul.msk.bf16.vlgmr.msrb.gmra.mxu0 %vm2246_vm2, %v12385_v51  ;;  %9906 = vmatmul.msk.bf16.vlgmr.msrb.gmra.mxu1 %vm2246_vm2, %v12385_v51 }
 0x11f   :  { %3796 = vmatpush.bf16.msrb.mxu0 %v2471_v20  ;;  %3861 = vmatpush.bf16.msrb.mxu1 %v2486_v27  ;;  %v10725_v20 = vld [vmem:[%s16212_s0 + $0xa94] sm:$0x10]  ;;  %v9361_v27 = vld [vmem:[%s16212_s0 + $0xaa0] sm:$0x10] }
 0x120   :  { %9903 = vmatmul.msk.bf16.vlgmr.msrb.gmra.mxu2 %vm2246_vm2, %v12385_v51  ;;  %9916 = vmatmul.msk.bf16.vlgmr.msrb.gmra.mxu3 %vm2246_vm2, %v12385_v51  ;;  %v9364_v39 = vor.u32 %v10626_v24, %v9361_v27  ;;  %v9352_v40 = vor.u32 %v10725_v20, %v9351_v17  ;;  %v8551_v17 = vld [vmem:[%s16212_s0 + $0x138] sm:$0xf]  ;;  %v10431_v27 = vld [vmem:[%s16212_s0 + $0x16c] sm:$0xf] }
 0x121   :  { %3822 = vmatpush.bf16.msrb.mxu2 %v2477_v34  ;;  %3991 = vmatpush.bf16.msrb.mxu3 %v2516_v43  ;;  %v9401_v34 = vld [vmem:[%s16212_s0 + $0xac8] sm:$0x10]  ;;  %v10525_v20 = vld [vmem:[%s16212_s0 + $0x454] sm:$0xf0] }
 0x122   :  { %v9404_v43 = vor.u32 %v10631_v29, %v9401_v34  ;;  %v12882_v34 = vpop.permute.xlu0 %443 }
 0x123   :  { %v12816_v1 = vpop.f32.mrf.mxu2  ;;  %v3281_v9 = vpop.f32.mrf.mxu0  ;;  %3797 = vmatpush.bf16.msrb.mxu0 %v8528_v54  ;;  %3862 = vmatpush.bf16.msrb.mxu1 %v8548_v57  ;;  %v2483_v54 = vand.u32 %v9344_v28, %v11547_v5  ;;  %v2498_v57 = vand.u32 %v9364_v39, %v11547_v5  ;;  %v8601_v28 = vld [vmem:[%s16212_s0 + $0x488] sm:$0xf0]  ;;  %v8552_v39 = vor.u32 %v10525_v20, %v8551_v17  ;;  %v10633_v20 = vld [vmem:[%s16212_s0 + $0x7bc] sm:$0xf] }
 0x124   :  { %v12818_v11 = vpop.f32.mrf.mxu3  ;;  %v3346_v14 = vpop.f32.mrf.mxu1  ;;  %v2489_v9 = vand.u32 %v9352_v40, %v11547_v5  ;;  %v2528_v16 = vand.u32 %v9404_v43, %v11547_v5  ;;  %v2877_v40 = vadd.f32 %v12162_v52, %v12882_v34  ;;  %v8604_v43 = vor.u32 %v10431_v27, %v8601_v28  ;;  %v10726_v52 = vld [vmem:[%s16212_s0 + $0xa9c] sm:$0x10] }
 0x125   :  { %16224 = vst [vmem:[#allocation2_spill] sm:$0xff] %v12818_v11  ;;  %3823 = vmatpush.bf16.msrb.mxu2 %v8536_v58  ;;  %3992 = vmatpush.bf16.msrb.mxu3 %v8588_v60  ;;  %v8543_v58 = vld [vmem:[%s16212_s0 + $0x130] sm:$0xf]  ;;  %v10426_v14 = vld [vmem:[%s16212_s0 + $0x144] sm:$0xf] }
 0x126   :  { %v10524_v60 = vld [vmem:[%s16212_s0 + $0x44c] sm:$0xf0]  ;;  %v8564_v29 = vor.u32 %v10426_v14, %v8561_v15  ;;  %10989 = vtanh.f32 %v2877_v40  ;;  %v10727_v14 = vld [vmem:[%s16212_s0 + $0xaa4] sm:$0x10]  ;;  %v10628_v15 = vld [vmem:[%s16212_s0 + $0x794] sm:$0xf] }
 0x127   :  { %v8544_v24 = vor.u32 %v10524_v60, %v8543_v58  ;;  %v9359_v60 = vld [vmem:[%s16212_s0 + $0x780] sm:$0xf] }
 0x128   :  { %v9360_v17 = vor.u32 %v10726_v52, %v9359_v60  ;;  %v8559_v60 = vld [vmem:[%s16212_s0 + $0x140] sm:$0xf] }
 0x129   :  { %v10526_v52 = vld [vmem:[%s16212_s0 + $0x45c] sm:$0xf0] }
 0x12b   :  { %v3307_v46 = vpop.f32.mrf.mxu2  ;;  %v12844_v53 = vpop.f32.mrf.mxu0 }
 0x12c   :  { %v3476_v55 = vpop.f32.mrf.mxu3  ;;  %v12847_v56 = vpop.f32.mrf.mxu1 }
 0x12e   :  { %9905 = vmatmul.msk.bf16.vlgmr.msra.gmra.mxu0 %vm2246_vm2, %v12385_v51  ;;  %9910 = vmatmul.msk.bf16.vlgmr.msra.gmra.mxu1 %vm2246_vm2, %v12385_v51 }
 0x12f   :  { %3848 = vmatpush.bf16.msra.mxu0 %v2483_v54  ;;  %3913 = vmatpush.bf16.msra.mxu1 %v2498_v57 }
 0x130   :  { %9907 = vmatmul.msk.bf16.vlgmr.msra.gmra.mxu2 %vm2246_vm2, %v12385_v51  ;;  %9920 = vmatmul.msk.bf16.vlgmr.msra.gmra.mxu3 %vm2246_vm2, %v12385_v51 }
 0x131   :  { %3874 = vmatpush.bf16.msra.mxu2 %v2489_v9  ;;  %4043 = vmatpush.bf16.msra.mxu3 %v2528_v16  ;;  %v9367_v9 = vld [vmem:[%s16212_s0 + $0x788] sm:$0xf]  ;;  %v9377_v16 = vld [vmem:[%s16212_s0 + $0xab0] sm:$0x10] }
 0x132   :  { %v9380_v27 = vor.u32 %v10628_v15, %v9377_v16  ;;  %v9368_v28 = vor.u32 %v10727_v14, %v9367_v9  ;;  %v10428_v15 = vld [vmem:[%s16212_s0 + $0x154] sm:$0xf] }
 0x133   :  { %v12888_v46 = vpop.f32.mrf.mxu2  ;;  %v3333_v54 = vpop.f32.mrf.mxu0  ;;  %3849 = vmatpush.bf16.msra.mxu0 %v8544_v24  ;;  %3914 = vmatpush.bf16.msra.mxu1 %v8564_v29  ;;  %v9417_v24 = vld [vmem:[%s16212_s0 + $0xad8] sm:$0x10]  ;;  %v8577_v16 = vld [vmem:[%s16212_s0 + $0x470] sm:$0xf0] }
 0x134   :  { %v3526_v55 = vpop.f32.mrf.mxu3  ;;  %v3398_v58 = vpop.f32.mrf.mxu1  ;;  %v9420_v29 = vor.u32 %v10633_v20, %v9417_v24  ;;  %v2501_v14 = vand.u32 %v9368_v28, %v11547_v5  ;;  %v8567_v24 = vld [vmem:[%s16212_s0 + $0x148] sm:$0xf]  ;;  %v8560_v28 = vor.u32 %v10526_v52, %v8559_v60 }
 0x135   :  { %v3527_v57 = vadd.f32 %v3526_v55, %v12882_v34  ;;  %3875 = vmatpush.bf16.msra.mxu2 %v8552_v39  ;;  %4044 = vmatpush.bf16.msra.mxu3 %v8604_v43  ;;  %v2495_v43 = vand.u32 %v9360_v17, %v11547_v5  ;;  %v10990_v54 = vpop.eup %10989 }
 0x136   :  { %v2540_v20 = vand.u32 %v9420_v29, %v11547_v5  ;;  %v8617_v29 = vld [vmem:[%s16212_s0 + $0x498] sm:$0xf0] }
 0x137   :  { %10991 = vtanh.f32 %v3527_v57  ;;  %v2510_v57 = vand.u32 %v9380_v27, %v11547_v5  ;;  %v10527_v27 = vld [vmem:[%s16212_s0 + $0x464] sm:$0xf0] }
 0x13b   :  { %v3359_v39 = vpop.f32.mrf.mxu2  ;;  %v12915_v40 = vpop.f32.mrf.mxu0 }
 0x13c   :  { %v3528_v55 = vpop.f32.mrf.mxu3  ;;  %v12918_v58 = vpop.f32.mrf.mxu1  ;;  %v10433_v39 = vld [vmem:[%s16212_s0 + $0x17c] sm:$0xf] }
 0x13d   :  { %v10992_v9 = vpop.eup %10991  ;;  %v8568_v55 = vor.u32 %v10527_v27, %v8567_v24  ;;  %v8620_v60 = vor.u32 %v10433_v39, %v8617_v29  ;;  %v10635_v24 = vld [vmem:[%s16212_s0 + $0x7cc] sm:$0xf] }
 0x13e   :  { %v12934_v17 = vadd.f32 %v10992_v9, %v10990_v54  ;;  %9909 = vmatmul.msk.bf16.vlgmr.msrb.gmra.mxu0 %vm2246_vm2, %v12385_v51  ;;  %9914 = vmatmul.msk.bf16.vlgmr.msrb.gmra.mxu1 %vm2246_vm2, %v12385_v51  ;;  %v8580_v54 = vor.u32 %v10428_v15, %v8577_v16  ;;  %v9383_v15 = vld [vmem:[%s16212_s0 + $0x798] sm:$0xf]  ;;  %v10630_v16 = vld [vmem:[%s16212_s0 + $0x7a4] sm:$0xf]  ;;  %v9433_v27 = vld [vmem:[%s16212_s0 + $0xae8] sm:$0x10] }
 0x13f   :  { %3900 = vmatpush.bf16.msrb.mxu0 %v2495_v43  ;;  %3965 = vmatpush.bf16.msrb.mxu1 %v2510_v57  ;;  %v2929_v43 = vadd.f32 %v12230_v25, %v12882_v34  ;;  %v10728_v25 = vld [vmem:[%s16212_s0 + $0xaac] sm:$0x10]  ;;  %v9436_v29 = vor.u32 %v10635_v24, %v9433_v27 }
 0x140   :  { %16225 = vst [vmem:[#allocation3_spill] sm:$0xff] %v12934_v17  ;;  %9911 = vmatmul.msk.bf16.vlgmr.msrb.gmra.mxu2 %vm2246_vm2, %v12385_v51  ;;  %9924 = vmatmul.msk.bf16.vlgmr.msrb.gmra.mxu3 %vm2246_vm2, %v12385_v51 }
 0x141   :  { %3926 = vmatpush.bf16.msrb.mxu2 %v2501_v14  ;;  %4095 = vmatpush.bf16.msrb.mxu3 %v2540_v20  ;;  %v9375_v14 = vld [vmem:[%s16212_s0 + $0x790] sm:$0xf]  ;;  %10993 = vtanh.f32 %v2929_v43  ;;  %v2552_v27 = vand.u32 %v9436_v29, %v11547_v5  ;;  %v8633_v29 = vld [vmem:[%s16212_s0 + $0x4a8] sm:$0xf0] }
 0x142   :  { %v9376_v20 = vor.u32 %v10728_v25, %v9375_v14  ;;  %v8575_v25 = vld [vmem:[%s16212_s0 + $0x150] sm:$0xf] }
 0x143   :  { %v12959_v52 = vpop.f32.mrf.mxu2  ;;  %v3385_v9 = vpop.f32.mrf.mxu0  ;;  %3901 = vmatpush.bf16.msrb.mxu0 %v8560_v28  ;;  %3966 = vmatpush.bf16.msrb.mxu1 %v8580_v54 }
 0x144   :  { %16226 = vst [vmem:[#allocation4_spill] sm:$0xff] %v12959_v52  ;;  %v3578_v17 = vpop.f32.mrf.mxu3  ;;  %v3450_v11 = vpop.f32.mrf.mxu1  ;;  %v2507_v43 = vand.u32 %v9376_v20, %v11547_v5  ;;  %v8593_v20 = vld [vmem:[%s16212_s0 + $0x480] sm:$0xf0] }
 0x145   :  { %v3579_v57 = vadd.f32 %v3578_v17, %v12882_v34  ;;  %3927 = vmatpush.bf16.msrb.mxu2 %v8568_v55  ;;  %4096 = vmatpush.bf16.msrb.mxu3 %v8620_v60  ;;  %v10729_v11 = vld [vmem:[%s16212_s0 + $0xab4] sm:$0x10]  ;;  %v9393_v17 = vld [vmem:[%s16212_s0 + $0xac0] sm:$0x10] }
 0x146   :  { %v9396_v28 = vor.u32 %v10630_v16, %v9393_v17  ;;  %v9384_v39 = vor.u32 %v10729_v11, %v9383_v15  ;;  %v10528_v15 = vld [vmem:[%s16212_s0 + $0x46c] sm:$0xf0]  ;;  %v10430_v17 = vld [vmem:[%s16212_s0 + $0x164] sm:$0xf] }
 0x147   :  { %10995 = vtanh.f32 %v3579_v57  ;;  %v10994_v60 = vpop.eup %10993 }
 0x148   :  { %v2522_v14 = vand.u32 %v9396_v28, %v11547_v5  ;;  %v2513_v16 = vand.u32 %v9384_v39, %v11547_v5  ;;  %v8583_v28 = vld [vmem:[%s16212_s0 + $0x158] sm:$0xf] }
 0x149   :  { %v10529_v39 = vld [vmem:[%s16212_s0 + $0x474] sm:$0xf0] }
 0x14b   :  { %v3411_v54 = vpop.f32.mrf.mxu2  ;;  %v12986_v55 = vpop.f32.mrf.mxu0 }
 0x14c   :  { %16227 = vst [vmem:[#allocation5_spill] sm:$0xff] %v12986_v55  ;;  %v3580_v9 = vpop.f32.mrf.mxu3  ;;  %v12989_v57 = vpop.f32.mrf.mxu1  ;;  %v8576_v54 = vor.u32 %v10528_v15, %v8575_v25 }
 0x14d   :  { %v10996_v11 = vpop.eup %10995  ;;  %v8596_v9 = vor.u32 %v10430_v17, %v8593_v20  ;;  %v9399_v17 = vld [vmem:[%s16212_s0 + $0x7a8] sm:$0xf]  ;;  %v9409_v20 = vld [vmem:[%s16212_s0 + $0xad0] sm:$0x10] }
 0x14e   :  { %v13005_v24 = vadd.f32 %v10996_v11, %v10994_v60  ;;  %9913 = vmatmul.msk.bf16.vlgmr.msra.gmra.mxu0 %vm2246_vm2, %v12385_v51  ;;  %9918 = vmatmul.msk.bf16.vlgmr.msra.gmra.mxu1 %vm2246_vm2, %v12385_v51  ;;  %v10435_v60 = vld [vmem:[%s16212_s0 + $0x18c] sm:$0xf]  ;;  %v8584_v11 = vor.u32 %v10529_v39, %v8583_v28  ;;  %v9449_v28 = vld [vmem:[%s16212_s0 + $0xaf8] sm:$0x10] }
 0x14f   :  { %3952 = vmatpush.bf16.msra.mxu0 %v2507_v43  ;;  %4017 = vmatpush.bf16.msra.mxu1 %v2522_v14  ;;  %v2981_v43 = vadd.f32 %v12298_v0, %v12882_v34  ;;  %v8636_v25 = vor.u32 %v10435_v60, %v8633_v29  ;;  %v10730_v0 = vld [vmem:[%s16212_s0 + $0xabc] sm:$0x10]  ;;  %v2903_v60 = vadd.f32 %v12227_v22, %v12882_v34 }
 0x150   :  { %16228 = vst [vmem:[#allocation6_spill] sm:$0xff] %v13005_v24  ;;  %9915 = vmatmul.msk.bf16.vlgmr.msra.gmra.mxu2 %vm2246_vm2, %v12385_v51  ;;  %9928 = vmatmul.msk.bf16.vlgmr.msra.gmra.mxu3 %vm2246_vm2, %v12385_v51 }
 0x151   :  { %3978 = vmatpush.bf16.msra.mxu2 %v2513_v16  ;;  %4147 = vmatpush.bf16.msra.mxu3 %v2552_v27  ;;  %v9391_v16 = vld [vmem:[%s16212_s0 + $0x7a0] sm:$0xf]  ;;  %10997 = vtanh.f32 %v2981_v43  ;;  %v10637_v27 = vld [vmem:[%s16212_s0 + $0x7dc] sm:$0xf] }
 0x152   :  { %v9452_v29 = vor.u32 %v10637_v27, %v9449_v28 }
 0x153   :  { %v13030_v15 = vpop.f32.mrf.mxu2  ;;  %v3437_v24 = vpop.f32.mrf.mxu0  ;;  %3953 = vmatpush.bf16.msra.mxu0 %v8576_v54  ;;  %4018 = vmatpush.bf16.msra.mxu1 %v8596_v9 }
 0x154   :  { %16229 = vst [vmem:[#allocation7_spill] sm:$0xff] %v13030_v15  ;;  %v3630_v55 = vpop.f32.mrf.mxu3  ;;  %v3502_v52 = vpop.f32.mrf.mxu1  ;;  %v9392_v24 = vor.u32 %v10730_v0, %v9391_v16  ;;  %v8591_v15 = vld [vmem:[%s16212_s0 + $0x160] sm:$0xf]  ;;  %v2564_v28 = vand.u32 %v9452_v29, %v11547_v5  ;;  %v8649_v29 = vld [vmem:[%s16212_s0 + $0x4b8] sm:$0xf0] }
 0x155   :  { %v3631_v14 = vadd.f32 %v3630_v55, %v12882_v34  ;;  %3979 = vmatpush.bf16.msra.mxu2 %v8584_v11  ;;  %4148 = vmatpush.bf16.msra.mxu3 %v8636_v25  ;;  %v10731_v52 = vld [vmem:[%s16212_s0 + $0xac4] sm:$0x10]  ;;  %v10632_v55 = vld [vmem:[%s16212_s0 + $0x7b4] sm:$0xf] }
 0x156   :  { %v9412_v39 = vor.u32 %v10632_v55, %v9409_v20  ;;  %v9400_v54 = vor.u32 %v10731_v52, %v9399_v17  ;;  %v2519_v43 = vand.u32 %v9392_v24, %v11547_v5  ;;  %v10530_v17 = vld [vmem:[%s16212_s0 + $0x47c] sm:$0xf0]  ;;  %v10432_v20 = vld [vmem:[%s16212_s0 + $0x174] sm:$0xf] }
 0x157   :  { %10999 = vtanh.f32 %v3631_v14  ;;  %v10998_v25 = vpop.eup %10997  ;;  %v8609_v24 = vld [vmem:[%s16212_s0 + $0x490] sm:$0xf0] }
 0x158   :  { %v2534_v0 = vand.u32 %v9412_v39, %v11547_v5  ;;  %v2525_v55 = vand.u32 %v9400_v54, %v11547_v5  ;;  %11001 = vtanh.f32 %v2903_v60  ;;  %v8599_v39 = vld [vmem:[%s16212_s0 + $0x168] sm:$0xf]  ;;  %v8592_v60 = vor.u32 %v10530_v17, %v8591_v15 }
 0x159   :  { %v10531_v54 = vld [vmem:[%s16212_s0 + $0x484] sm:$0xf0]  ;;  %v3033_v15 = vadd.f32 %v12366_v41, %v12882_v34 }
 0x15b   :  { %v3463_v9 = vpop.f32.mrf.mxu2  ;;  %v13059_v11 = vpop.f32.mrf.mxu0 }
 0x15c   :  { %16230 = vst [vmem:[#allocation8_spill] sm:$0xff] %v13059_v11  ;;  %v3632_v14 = vpop.f32.mrf.mxu3  ;;  %v3552_v16 = vpop.f32.mrf.mxu1  ;;  %v10437_v9 = vld [vmem:[%s16212_s0 + $0x19c] sm:$0xf] }
 0x15d   :  { %v11000_v22 = vpop.eup %10999  ;;  %v3553_v52 = vadd.f32 %v3552_v16, %v12882_v34  ;;  %v13101_v14 = vld [vmem:[%s16213_s1] sm:$0x7] }
 0x15e   :  { %v13077_v27 = vadd.f32 %v11000_v22, %v10998_v25  ;;  %9917 = vmatmul.msk.bf16.vlgmr.msrb.gmra.mxu0 %vm2246_vm2, %v12385_v51  ;;  %9922 = vmatmul.msk.bf16.vlgmr.msrb.gmra.mxu1 %vm2246_vm2, %v12385_v51  ;;  %v2864_v25 = vadd.f32 %v12159_v50, %v12882_v34  ;;  %v8612_v51 = vor.u32 %v10432_v20, %v8609_v24  ;;  %v11002_v22 = vpop.eup %11001  ;;  %v10732_v24 = vld [vmem:[%s16212_s0 + $0xacc] sm:$0x10] }
 0x15f   :  { %11003 = vtanh.f32 %v3553_v52  ;;  %4004 = vmatpush.bf16.msrb.mxu0 %v2519_v43  ;;  %4069 = vmatpush.bf16.msrb.mxu1 %v2534_v0  ;;  %v8600_v43 = vor.u32 %v10531_v54, %v8599_v39  ;;  %v8652_v50 = vor.u32 %v10437_v9, %v8649_v29  ;;  %v10634_v54 = vld [vmem:[%s16212_s0 + $0x7c4] sm:$0xf]  ;;  %v10639_v29 = vld [vmem:[%s16212_s0 + $0x7ec] sm:$0xf] }
 0x160   :  { %16231 = vst [vmem:[#allocation9_spill] sm:$0xff] %v13077_v27  ;;  %9919 = vmatmul.msk.bf16.vlgmr.msrb.gmra.mxu2 %vm2246_vm2, %v13101_v14  ;;  %9932 = vmatmul.msk.bf16.vlgmr.msrb.gmra.mxu3 %vm2246_vm2, %v13101_v14  ;;  %11005 = vtanh.f32 %v2864_v25  ;;  %v9465_v25 = vld [vmem:[%s16212_s0 + $0xb08] sm:$0x10] }
 0x161   :  { %4030 = vmatpush.bf16.msrb.mxu2 %v2525_v55  ;;  %4199 = vmatpush.bf16.msrb.mxu3 %v2564_v28  ;;  %11007 = vtanh.f32 %v3033_v15  ;;  %v9407_v55 = vld [vmem:[%s16212_s0 + $0x7b0] sm:$0xf]  ;;  %v9415_v28 = vld [vmem:[%s16212_s0 + $0x7b8] sm:$0xf] }
 0x162   :  { %v9408_v9 = vor.u32 %v10732_v24, %v9407_v55 }
 0x163   :  { %v3513_v16 = vpop.f32.mrf.mxu2  ;;  %v3489_v17 = vpop.f32.mrf.mxu0  ;;  %4005 = vmatpush.bf16.msrb.mxu0 %v8592_v60  ;;  %4070 = vmatpush.bf16.msrb.mxu1 %v8612_v51  ;;  %v9425_v60 = vld [vmem:[%s16212_s0 + $0xae0] sm:$0x10]  ;;  %v2890_v51 = vadd.f32 %v12199_v4, %v12882_v34 }
 0x164   :  { %v3514_v52 = vadd.f32 %v3513_v16, %v12882_v34  ;;  %v3682_v27 = vpop.f32.mrf.mxu3  ;;  %v3554_v0 = vpop.f32.mrf.mxu1  ;;  %v9428_v15 = vor.u32 %v10634_v54, %v9425_v60  ;;  %v9468_v17 = vor.u32 %v10639_v29, %v9465_v25  ;;  %v10434_v29 = vld [vmem:[%s16212_s0 + $0x184] sm:$0xf] }
 0x165   :  { %v11004_v20 = vpop.eup %11003  ;;  %v3683_v41 = vadd.f32 %v3682_v27, %v12882_v34  ;;  %4031 = vmatpush.bf16.msrb.mxu2 %v8600_v43  ;;  %4200 = vmatpush.bf16.msrb.mxu3 %v8652_v50  ;;  %v10733_v27 = vld [vmem:[%s16212_s0 + $0xad4] sm:$0x10]  ;;  %v2955_v43 = vadd.f32 %v12335_v19, %v12882_v34  ;;  %v8607_v19 = vld [vmem:[%s16212_s0 + $0x170] sm:$0xf]  ;;  %v8625_v25 = vld [vmem:[%s16212_s0 + $0x4a0] sm:$0xf0] }
 0x166   :  { %v13120_v39 = vadd.f32 %v11004_v20, %v11002_v22  ;;  %11009 = vtanh.f32 %v3514_v52  ;;  %v9416_v50 = vor.u32 %v10733_v27, %v9415_v28  ;;  %v11006_v16 = vpop.eup %11005  ;;  %v2531_v20 = vand.u32 %v9408_v9, %v11547_v5  ;;  %v10532_v28 = vld [vmem:[%s16212_s0 + $0x48c] sm:$0xf0] }
 0x167   :  { %11011 = vtanh.f32 %v3683_v41  ;;  %v11008_v22 = vpop.eup %11007  ;;  %v2546_v4 = vand.u32 %v9428_v15, %v11547_v5  ;;  %v2576_v15 = vand.u32 %v9468_v17, %v11547_v5  ;;  %v8665_v17 = vld [vmem:[%s16212_s0 + $0x4c8] sm:$0xf0] }
 0x168   :  { %11013 = vtanh.f32 %v2890_v51  ;;  %v2537_v9 = vand.u32 %v9416_v50, %v11547_v5  ;;  %v8608_v50 = vor.u32 %v10532_v28, %v8607_v19 }
 0x169   :  { %11015 = vtanh.f32 %v2955_v43  ;;  %v10533_v43 = vld [vmem:[%s16212_s0 + $0x494] sm:$0xf0] }
 0x16b   :  { %v3515_v52 = vpop.f32.mrf.mxu2  ;;  %v3539_v0 = vpop.f32.mrf.mxu0 }
 0x16c   :  { %v11010_v41 = vpop.eup %11009  ;;  %v3684_v55 = vpop.f32.mrf.mxu3  ;;  %v3540_v24 = vadd.f32 %v3539_v0, %v12882_v34  ;;  %v8628_v52 = vor.u32 %v10434_v29, %v8625_v25  ;;  %v3085_v0 = vadd.f32 %v12439_v26, %v12882_v34  ;;  %v9423_v25 = vld [vmem:[%s16212_s0 + $0x7c0] sm:$0xf] }
 0x16d   :  { %v3604_v11 = vpop.f32.mrf.mxu1  ;;  %v11012_v27 = vpop.eup %11011  ;;  %v13150_v54 = vadd.f32 %v11010_v41, %v11006_v16  ;;  %v10439_v16 = vld [vmem:[%s16212_s0 + $0x1ac] sm:$0xf] }
 0x16e   :  { %v3605_v60 = vadd.f32 %v3604_v11, %v12882_v34  ;;  %v13160_v51 = vadd.f32 %v11012_v27, %v11008_v22  ;;  %11017 = vtanh.f32 %v3540_v24  ;;  %9921 = vmatmul.msk.bf16.vlgmr.msra.gmra.mxu0 %vm2246_vm2, %v13101_v14  ;;  %v8615_v11 = vld [vmem:[%s16212_s0 + $0x178] sm:$0xf]  ;;  %9926 = vmatmul.msk.bf16.vlgmr.msra.gmra.mxu1 %vm2246_vm2, %v13101_v14  ;;  %v2916_v22 = vadd.f32 %v12295_v61, %v12882_v34  ;;  %v11014_v41 = vpop.eup %11013 }
 0x16f   :  { %4056 = vmatpush.bf16.msra.mxu0 %v2531_v20  ;;  %4121 = vmatpush.bf16.msra.mxu1 %v2546_v4  ;;  %v8616_v20 = vor.u32 %v10533_v43, %v8615_v11  ;;  %v8668_v55 = vor.u32 %v10439_v16, %v8665_v17  ;;  %v11016_v24 = vpop.eup %11015  ;;  %v9431_v11 = vld [vmem:[%s16212_s0 + $0x7c8] sm:$0xf]  ;;  %v10636_v16 = vld [vmem:[%s16212_s0 + $0x7d4] sm:$0xf] }
 0x170   :  { %11019 = vtanh.f32 %v3605_v60  ;;  %9923 = vmatmul.msk.bf16.vlgmr.msra.gmra.mxu2 %vm2246_vm2, %v13101_v14  ;;  %9936 = vmatmul.msk.bf16.vlgmr.msra.gmra.mxu3 %vm2246_vm2, %v13101_v14  ;;  %v9441_v17 = vld [vmem:[%s16212_s0 + $0xaf0] sm:$0x10] }
 0x171   :  { %4082 = vmatpush.bf16.msra.mxu2 %v2537_v9  ;;  %4251 = vmatpush.bf16.msra.mxu3 %v2576_v15  ;;  %11021 = vtanh.f32 %v2916_v22  ;;  %v10734_v15 = vld [vmem:[%s16212_s0 + $0xadc] sm:$0x10] }
 0x172   :  { %11023 = vtanh.f32 %v3085_v0  ;;  %v9424_v22 = vor.u32 %v10734_v15, %v9423_v25  ;;  %v9481_v0 = vld [vmem:[%s16212_s0 + $0xb18] sm:$0x10] }
 0x173   :  { %v3565_v19 = vpop.f32.mrf.mxu2  ;;  %v3541_v28 = vpop.f32.mrf.mxu0  ;;  %4057 = vmatpush.bf16.msra.mxu0 %v8608_v50  ;;  %4122 = vmatpush.bf16.msra.mxu1 %v8628_v52  ;;  %v10735_v50 = vld [vmem:[%s16212_s0 + $0xae4] sm:$0x10]  ;;  %v10641_v52 = vld [vmem:[%s16212_s0 + $0x7fc] sm:$0xf] }
 0x174   :  { %v11018_v61 = vpop.eup %11017  ;;  %v3566_v4 = vadd.f32 %v3565_v19, %v12882_v34  ;;  %v3734_v27 = vpop.f32.mrf.mxu3  ;;  %v9484_v28 = vor.u32 %v10641_v52, %v9481_v0  ;;  %v10436_v52 = vld [vmem:[%s16212_s0 + $0x194] sm:$0xf] }
 0x175   :  { %v3606_v60 = vpop.f32.mrf.mxu1  ;;  %v13188_v29 = vadd.f32 %v11018_v61, %v11014_v41  ;;  %v3735_v9 = vadd.f32 %v3734_v27, %v12882_v34  ;;  %4083 = vmatpush.bf16.msra.mxu2 %v8616_v20  ;;  %4252 = vmatpush.bf16.msra.mxu3 %v8668_v55  ;;  %v3007_v20 = vadd.f32 %v12201_v7, %v12882_v34  ;;  %v8641_v0 = vld [vmem:[%s16212_s0 + $0x4b0] sm:$0xf0] }
 0x176   :  { %v11020_v26 = vpop.eup %11019  ;;  %11025 = vtanh.f32 %v3566_v4  ;;  %v9444_v41 = vor.u32 %v10636_v16, %v9441_v17  ;;  %v2942_v55 = vadd.f32 %v12267_v42, %v12882_v34  ;;  %v2543_v60 = vand.u32 %v9424_v22, %v11547_v5  ;;  %v8623_v42 = vld [vmem:[%s16212_s0 + $0x180] sm:$0xf] }
 0x177   :  { %v13200_v43 = vadd.f32 %v11020_v26, %v11016_v24  ;;  %11027 = vtanh.f32 %v3735_v9  ;;  %v9432_v24 = vor.u32 %v10735_v50, %v9431_v11  ;;  %v11022_v19 = vpop.eup %11021  ;;  %v10534_v11 = vld [vmem:[%s16212_s0 + $0x49c] sm:$0xf0] }
 0x178   :  { %v11024_v61 = vpop.eup %11023  ;;  %11029 = vtanh.f32 %v3007_v20  ;;  %v2558_v7 = vand.u32 %v9444_v41, %v11547_v5  ;;  %v2588_v41 = vand.u32 %v9484_v28, %v11547_v5  ;;  %v8681_v28 = vld [vmem:[%s16212_s0 + $0x4d8] sm:$0xf0] }
 0x179   :  { %11031 = vtanh.f32 %v2942_v55  ;;  %v2549_v22 = vand.u32 %v9432_v24, %v11547_v5  ;;  %v8631_v55 = vld [vmem:[%s16212_s0 + $0x188] sm:$0xf] }
 0x17a   :  { %v10535_v24 = vld [vmem:[%s16212_s0 + $0x4a4] sm:$0xf0] }
 0x17b   :  { %v3567_v4 = vpop.f32.mrf.mxu2  ;;  %v3591_v27 = vpop.f32.mrf.mxu0 }
 0x17c   :  { %v11026_v26 = vpop.eup %11025  ;;  %v3736_v9 = vpop.f32.mrf.mxu3  ;;  %v3592_v25 = vadd.f32 %v3591_v27, %v12882_v34  ;;  %v2968_v4 = vadd.f32 %v12363_v38, %v12882_v34  ;;  %v8644_v27 = vor.u32 %v10436_v52, %v8641_v0  ;;  %v9439_v0 = vld [vmem:[%s16212_s0 + $0x7d0] sm:$0xf] }
 0x17d   :  { %v3656_v15 = vpop.f32.mrf.mxu1  ;;  %v11028_v50 = vpop.eup %11027  ;;  %v13230_v16 = vadd.f32 %v11026_v26, %v11022_v19  ;;  %v8624_v19 = vor.u32 %v10534_v11, %v8623_v42  ;;  %v8632_v26 = vor.u32 %v10535_v24, %v8631_v55  ;;  %v9447_v55 = vld [vmem:[%s16212_s0 + $0x7d8] sm:$0xf] }
 0x17e   :  { %v3657_v17 = vadd.f32 %v3656_v15, %v12882_v34  ;;  %v13240_v20 = vadd.f32 %v11028_v50, %v11024_v61  ;;  %11033 = vtanh.f32 %v3592_v25  ;;  %9925 = vmatmul.msk.bf16.vlgmr.msrb.gmra.mxu0 %vm2246_vm2, %v13101_v14  ;;  %9930 = vmatmul.msk.bf16.vlgmr.msrb.gmra.mxu1 %vm2246_vm2, %v13101_v14  ;;  %v10441_v61 = vld [vmem:[%s16212_s0 + $0x1bc] sm:$0xf]  ;;  %v11030_v9 = vpop.eup %11029 }
 0x17f   :  { %4108 = vmatpush.bf16.msrb.mxu0 %v2543_v60  ;;  %4173 = vmatpush.bf16.msrb.mxu1 %v2558_v7  ;;  %v3137_v60 = vadd.f32 %v12507_v13, %v12882_v34  ;;  %v8684_v25 = vor.u32 %v10441_v61, %v8681_v28  ;;  %v11032_v15 = vpop.eup %11031  ;;  %v10638_v61 = vld [vmem:[%s16212_s0 + $0x7e4] sm:$0xf] }
 0x180   :  { %11035 = vtanh.f32 %v3657_v17  ;;  %9927 = vmatmul.msk.bf16.vlgmr.msrb.gmra.mxu2 %vm2246_vm2, %v13101_v14  ;;  %9940 = vmatmul.msk.bf16.vlgmr.msrb.gmra.mxu3 %vm2246_vm2, %v13101_v14  ;;  %v9457_v28 = vld [vmem:[%s16212_s0 + $0xb00] sm:$0x10] }
 0x181   :  { %4134 = vmatpush.bf16.msrb.mxu2 %v2549_v22  ;;  %4303 = vmatpush.bf16.msrb.mxu3 %v2588_v41  ;;  %11037 = vtanh.f32 %v2968_v4  ;;  %v10736_v41 = vld [vmem:[%s16212_s0 + $0xaec] sm:$0x10] }
 0x182   :  { %11039 = vtanh.f32 %v3137_v60  ;;  %v9440_v4 = vor.u32 %v10736_v41, %v9439_v0  ;;  %v9497_v60 = vld [vmem:[%s16212_s0 + $0xb28] sm:$0x10] }
 0x183   :  { %v3617_v42 = vpop.f32.mrf.mxu2  ;;  %v3593_v11 = vpop.f32.mrf.mxu0  ;;  %4109 = vmatpush.bf16.msrb.mxu0 %v8624_v19  ;;  %4174 = vmatpush.bf16.msrb.mxu1 %v8644_v27  ;;  %v10737_v19 = vld [vmem:[%s16212_s0 + $0xaf4] sm:$0x10]  ;;  %v10643_v27 = vld [vmem:[%s16212_s0 + $0x80c] sm:$0xf] }
 0x184   :  { %v11034_v38 = vpop.eup %11033  ;;  %v3618_v7 = vadd.f32 %v3617_v42, %v12882_v34  ;;  %v3786_v50 = vpop.f32.mrf.mxu3  ;;  %v9500_v11 = vor.u32 %v10643_v27, %v9497_v60  ;;  %v10438_v27 = vld [vmem:[%s16212_s0 + $0x1a4] sm:$0xf] }
 0x185   :  { %v3658_v17 = vpop.f32.mrf.mxu1  ;;  %v13268_v52 = vadd.f32 %v11034_v38, %v11032_v15  ;;  %v3787_v22 = vadd.f32 %v3786_v50, %v12882_v34  ;;  %4135 = vmatpush.bf16.msrb.mxu2 %v8632_v26  ;;  %4304 = vmatpush.bf16.msrb.mxu3 %v8684_v25  ;;  %v3059_v26 = vadd.f32 %v12269_v44, %v12882_v34  ;;  %v8657_v60 = vld [vmem:[%s16212_s0 + $0x4c0] sm:$0xf0] }
 0x186   :  { %v11036_v13 = vpop.eup %11035  ;;  %11041 = vtanh.f32 %v3618_v7  ;;  %v2994_v25 = vadd.f32 %v12408_v63, %v12882_v34  ;;  %v9448_v15 = vor.u32 %v10737_v19, %v9447_v55  ;;  %v2555_v17 = vand.u32 %v9440_v4, %v11547_v5  ;;  %v8639_v63 = vld [vmem:[%s16212_s0 + $0x190] sm:$0xf] }
 0x187   :  { %v13280_v24 = vadd.f32 %v11036_v13, %v11030_v9  ;;  %11043 = vtanh.f32 %v3787_v22  ;;  %v9460_v9 = vor.u32 %v10638_v61, %v9457_v28  ;;  %v11038_v42 = vpop.eup %11037  ;;  %v10536_v55 = vld [vmem:[%s16212_s0 + $0x4ac] sm:$0xf0] }
 0x188   :  { %v11040_v38 = vpop.eup %11039  ;;  %11045 = vtanh.f32 %v3059_v26  ;;  %v2561_v4 = vand.u32 %v9448_v15, %v11547_v5  ;;  %v10537_v15 = vld [vmem:[%s16212_s0 + $0x4b4] sm:$0xf0] }
 0x189   :  { %v2570_v44 = vand.u32 %v9460_v9, %v11547_v5  ;;  %11047 = vtanh.f32 %v2994_v25  ;;  %v2600_v9 = vand.u32 %v9500_v11, %v11547_v5  ;;  %v8647_v25 = vld [vmem:[%s16212_s0 + $0x198] sm:$0xf]  ;;  %v8697_v11 = vld [vmem:[%s16212_s0 + $0x4e8] sm:$0xf0] }
 0x18b   :  { %v3619_v7 = vpop.f32.mrf.mxu2  ;;  %v3643_v50 = vpop.f32.mrf.mxu0 }
 0x18c   :  { %v11042_v13 = vpop.eup %11041  ;;  %v3788_v22 = vpop.f32.mrf.mxu3  ;;  %v3644_v0 = vadd.f32 %v3643_v50, %v12882_v34  ;;  %v3020_v7 = vadd.f32 %v12436_v23, %v12882_v34  ;;  %v8660_v50 = vor.u32 %v10438_v27, %v8657_v60  ;;  %v9455_v60 = vld [vmem:[%s16212_s0 + $0x7e0] sm:$0xf] }
 0x18d   :  { %v3708_v41 = vpop.f32.mrf.mxu1  ;;  %v11044_v19 = vpop.eup %11043  ;;  %v13310_v61 = vadd.f32 %v11042_v13, %v11038_v42  ;;  %v8640_v42 = vor.u32 %v10536_v55, %v8639_v63  ;;  %v8648_v13 = vor.u32 %v10537_v15, %v8647_v25  ;;  %v9463_v25 = vld [vmem:[%s16212_s0 + $0x7e8] sm:$0xf] }
 0x18e   :  { %v3709_v28 = vadd.f32 %v3708_v41, %v12882_v34  ;;  %v13320_v26 = vadd.f32 %v11044_v19, %v11040_v38  ;;  %11049 = vtanh.f32 %v3644_v0  ;;  %9929 = vmatmul.msk.bf16.vlgmr.msra.gmra.mxu0 %vm2246_vm2, %v13101_v14  ;;  %9934 = vmatmul.msk.bf16.vlgmr.msra.gmra.mxu1 %vm2246_vm2, %v13101_v14  ;;  %v10443_v38 = vld [vmem:[%s16212_s0 + $0x1cc] sm:$0xf]  ;;  %v11046_v22 = vpop.eup %11045 }
 0x18f   :  { %4160 = vmatpush.bf16.msra.mxu0 %v2555_v17  ;;  %4225 = vmatpush.bf16.msra.mxu1 %v2570_v44  ;;  %v3189_v17 = vadd.f32 %v12575_v6, %v12882_v34  ;;  %v8700_v0 = vor.u32 %v10443_v38, %v8697_v11  ;;  %v11048_v41 = vpop.eup %11047  ;;  %v10640_v38 = vld [vmem:[%s16212_s0 + $0x7f4] sm:$0xf] }
 0x190   :  { %11051 = vtanh.f32 %v3709_v28  ;;  %9931 = vmatmul.msk.bf16.vlgmr.msra.gmra.mxu2 %vm2246_vm2, %v13101_v14  ;;  %9944 = vmatmul.msk.bf16.vlgmr.msra.gmra.mxu3 %vm2246_vm2, %v13101_v14  ;;  %v9473_v11 = vld [vmem:[%s16212_s0 + $0xb10] sm:$0x10] }
 0x191   :  { %4186 = vmatpush.bf16.msra.mxu2 %v2561_v4  ;;  %4355 = vmatpush.bf16.msra.mxu3 %v2600_v9  ;;  %11053 = vtanh.f32 %v3020_v7  ;;  %v10738_v9 = vld [vmem:[%s16212_s0 + $0xafc] sm:$0x10] }
 0x192   :  { %11055 = vtanh.f32 %v3189_v17  ;;  %v9456_v7 = vor.u32 %v10738_v9, %v9455_v60  ;;  %v9513_v17 = vld [vmem:[%s16212_s0 + $0xb38] sm:$0x10] }
 0x193   :  { %v3669_v63 = vpop.f32.mrf.mxu2  ;;  %v3645_v55 = vpop.f32.mrf.mxu0  ;;  %4161 = vmatpush.bf16.msra.mxu0 %v8640_v42  ;;  %4226 = vmatpush.bf16.msra.mxu1 %v8660_v50  ;;  %v10739_v42 = vld [vmem:[%s16212_s0 + $0xb04] sm:$0x10]  ;;  %v10645_v50 = vld [vmem:[%s16212_s0 + $0x81c] sm:$0xf] }
 0x194   :  { %v11050_v23 = vpop.eup %11049  ;;  %v3670_v44 = vadd.f32 %v3669_v63, %v12882_v34  ;;  %v3838_v19 = vpop.f32.mrf.mxu3  ;;  %v9516_v55 = vor.u32 %v10645_v50, %v9513_v17  ;;  %v10440_v50 = vld [vmem:[%s16212_s0 + $0x1b4] sm:$0xf] }
 0x195   :  { %v3710_v28 = vpop.f32.mrf.mxu1  ;;  %v13348_v27 = vadd.f32 %v11050_v23, %v11048_v41  ;;  %v3839_v4 = vadd.f32 %v3838_v19, %v12882_v34  ;;  %4187 = vmatpush.bf16.msra.mxu2 %v8648_v13  ;;  %4356 = vmatpush.bf16.msra.mxu3 %v8700_v0  ;;  %v3111_v13 = vadd.f32 %v12337_v21, %v12882_v34  ;;  %v8673_v17 = vld [vmem:[%s16212_s0 + $0x4d0] sm:$0xf0] }
 0x196   :  { %v11052_v6 = vpop.eup %11051  ;;  %11057 = vtanh.f32 %v3670_v44  ;;  %v3046_v0 = vadd.f32 %v12476_v47, %v12882_v34  ;;  %v9464_v41 = vor.u32 %v10739_v42, %v9463_v25  ;;  %v2567_v28 = vand.u32 %v9456_v7, %v11547_v5  ;;  %v8655_v47 = vld [vmem:[%s16212_s0 + $0x1a0] sm:$0xf] }
 0x197   :  { %v13360_v15 = vadd.f32 %v11052_v6, %v11046_v22  ;;  %11059 = vtanh.f32 %v3839_v4  ;;  %v9476_v22 = vor.u32 %v10640_v38, %v9473_v11  ;;  %v11054_v63 = vpop.eup %11053  ;;  %v10538_v25 = vld [vmem:[%s16212_s0 + $0x4bc] sm:$0xf0] }
 0x198   :  { %v11056_v23 = vpop.eup %11055  ;;  %11061 = vtanh.f32 %v3111_v13  ;;  %v2573_v7 = vand.u32 %v9464_v41, %v11547_v5  ;;  %v10539_v41 = vld [vmem:[%s16212_s0 + $0x4c4] sm:$0xf0] }
 0x199   :  { %v2582_v21 = vand.u32 %v9476_v22, %v11547_v5  ;;  %11063 = vtanh.f32 %v3046_v0  ;;  %v2612_v22 = vand.u32 %v9516_v55, %v11547_v5  ;;  %v8663_v0 = vld [vmem:[%s16212_s0 + $0x1a8] sm:$0xf]  ;;  %v8713_v55 = vld [vmem:[%s16212_s0 + $0x4f8] sm:$0xf0] }
 0x19b   :  { %v3671_v44 = vpop.f32.mrf.mxu2  ;;  %v3695_v19 = vpop.f32.mrf.mxu0 }
 0x19c   :  { %v11058_v6 = vpop.eup %11057  ;;  %v3840_v4 = vpop.f32.mrf.mxu3  ;;  %v3696_v60 = vadd.f32 %v3695_v19, %v12882_v34  ;;  %v3072_v44 = vadd.f32 %v12504_v10, %v12882_v34  ;;  %v8676_v19 = vor.u32 %v10440_v50, %v8673_v17  ;;  %v9471_v17 = vld [vmem:[%s16212_s0 + $0x7f0] sm:$0xf] }
 0x19d   :  { %v3760_v9 = vpop.f32.mrf.mxu1  ;;  %v11060_v42 = vpop.eup %11059  ;;  %v13390_v38 = vadd.f32 %v11058_v6, %v11054_v63  ;;  %v8656_v63 = vor.u32 %v10538_v25, %v8655_v47  ;;  %v8664_v6 = vor.u32 %v10539_v41, %v8663_v0  ;;  %v9479_v0 = vld [vmem:[%s16212_s0 + $0x7f8] sm:$0xf] }
 0x19e   :  { %v3761_v11 = vadd.f32 %v3760_v9, %v12882_v34  ;;  %v13400_v13 = vadd.f32 %v11060_v42, %v11056_v23  ;;  %11065 = vtanh.f32 %v3696_v60  ;;  %9933 = vmatmul.msk.bf16.vlgmr.msrb.gmra.mxu0 %vm2246_vm2, %v13101_v14  ;;  %9938 = vmatmul.msk.bf16.vlgmr.msrb.gmra.mxu1 %vm2246_vm2, %v13101_v14  ;;  %v10445_v23 = vld [vmem:[%s16212_s0 + $0x1dc] sm:$0xf]  ;;  %v11062_v4 = vpop.eup %11061 }
 0x19f   :  { %4212 = vmatpush.bf16.msrb.mxu0 %v2567_v28  ;;  %4277 = vmatpush.bf16.msrb.mxu1 %v2582_v21  ;;  %v3241_v28 = vadd.f32 %v12643_v3, %v12882_v34  ;;  %v8716_v60 = vor.u32 %v10445_v23, %v8713_v55  ;;  %v11064_v9 = vpop.eup %11063  ;;  %v10642_v23 = vld [vmem:[%s16212_s0 + $0x804] sm:$0xf] }
 0x1a0   :  { %11067 = vtanh.f32 %v3761_v11  ;;  %9935 = vmatmul.msk.bf16.vlgmr.msrb.gmra.mxu2 %vm2246_vm2, %v13101_v14  ;;  %9948 = vmatmul.msk.bf16.vlgmr.msrb.gmra.mxu3 %vm2246_vm2, %v13101_v14  ;;  %v9489_v55 = vld [vmem:[%s16212_s0 + $0xb20] sm:$0x10] }
 0x1a1   :  { %4238 = vmatpush.bf16.msrb.mxu2 %v2573_v7  ;;  %4407 = vmatpush.bf16.msrb.mxu3 %v2612_v22  ;;  %11069 = vtanh.f32 %v3072_v44  ;;  %v10740_v22 = vld [vmem:[%s16212_s0 + $0xb0c] sm:$0x10] }
 0x1a2   :  { %11071 = vtanh.f32 %v3241_v28  ;;  %v9472_v44 = vor.u32 %v10740_v22, %v9471_v17  ;;  %v9529_v28 = vld [vmem:[%s16212_s0 + $0xb48] sm:$0x10] }
 0x1a3   :  { %v3721_v47 = vpop.f32.mrf.mxu2  ;;  %v3697_v25 = vpop.f32.mrf.mxu0  ;;  %4213 = vmatpush.bf16.msrb.mxu0 %v8656_v63  ;;  %4278 = vmatpush.bf16.msrb.mxu1 %v8676_v19  ;;  %v10741_v63 = vld [vmem:[%s16212_s0 + $0xb14] sm:$0x10]  ;;  %v10647_v19 = vld [vmem:[%s16212_s0 + $0x82c] sm:$0xf] }
 0x1a4   :  { %v11066_v10 = vpop.eup %11065  ;;  %v3722_v21 = vadd.f32 %v3721_v47, %v12882_v34  ;;  %v3890_v42 = vpop.f32.mrf.mxu3  ;;  %v9532_v25 = vor.u32 %v10647_v19, %v9529_v28  ;;  %v10442_v19 = vld [vmem:[%s16212_s0 + $0x1c4] sm:$0xf] }
 0x1a5   :  { %v3762_v11 = vpop.f32.mrf.mxu1  ;;  %v13428_v50 = vadd.f32 %v11066_v10, %v11064_v9  ;;  %v3891_v7 = vadd.f32 %v3890_v42, %v12882_v34  ;;  %4239 = vmatpush.bf16.msrb.mxu2 %v8664_v6  ;;  %4408 = vmatpush.bf16.msrb.mxu3 %v8716_v60  ;;  %v3163_v6 = vadd.f32 %v12410_v2, %v12882_v34  ;;  %v8689_v28 = vld [vmem:[%s16212_s0 + $0x4e0] sm:$0xf0] }
 0x1a6   :  { %v11068_v3 = vpop.eup %11067  ;;  %11073 = vtanh.f32 %v3722_v21  ;;  %v3098_v60 = vadd.f32 %v12544_v35, %v12882_v34  ;;  %v9480_v9 = vor.u32 %v10741_v63, %v9479_v0  ;;  %v2579_v11 = vand.u32 %v9472_v44, %v11547_v5  ;;  %v8671_v35 = vld [vmem:[%s16212_s0 + $0x1b0] sm:$0xf] }
 0x1a7   :  { %v13440_v41 = vadd.f32 %v11068_v3, %v11062_v4  ;;  %11075 = vtanh.f32 %v3891_v7  ;;  %v9492_v4 = vor.u32 %v10642_v23, %v9489_v55  ;;  %v11070_v47 = vpop.eup %11069  ;;  %v10540_v0 = vld [vmem:[%s16212_s0 + $0x4cc] sm:$0xf0] }
 0x1a8   :  { %v11072_v10 = vpop.eup %11071  ;;  %11077 = vtanh.f32 %v3163_v6  ;;  %v2585_v44 = vand.u32 %v9480_v9, %v11547_v5  ;;  %v10541_v9 = vld [vmem:[%s16212_s0 + $0x4d4] sm:$0xf0] }
 0x1a9   :  { %v2594_v2 = vand.u32 %v9492_v4, %v11547_v5  ;;  %11079 = vtanh.f32 %v3098_v60  ;;  %v2624_v4 = vand.u32 %v9532_v25, %v11547_v5  ;;  %v8679_v60 = vld [vmem:[%s16212_s0 + $0x1b8] sm:$0xf]  ;;  %v8729_v25 = vld [vmem:[%s16212_s0 + $0x508] sm:$0xf0] }
 0x1ab   :  { %v3723_v21 = vpop.f32.mrf.mxu2  ;;  %v3747_v42 = vpop.f32.mrf.mxu0 }
 0x1ac   :  { %v11074_v3 = vpop.eup %11073  ;;  %v3892_v7 = vpop.f32.mrf.mxu3  ;;  %v3748_v17 = vadd.f32 %v3747_v42, %v12882_v34  ;;  %v3124_v21 = vadd.f32 %v12572_v62, %v12882_v34  ;;  %v8692_v42 = vor.u32 %v10442_v19, %v8689_v28  ;;  %v9487_v28 = vld [vmem:[%s16212_s0 + $0x800] sm:$0xf] }
 0x1ad   :  { %v3812_v22 = vpop.f32.mrf.mxu1  ;;  %v11076_v63 = vpop.eup %11075  ;;  %v13470_v23 = vadd.f32 %v11074_v3, %v11070_v47  ;;  %v8672_v47 = vor.u32 %v10540_v0, %v8671_v35  ;;  %v8680_v3 = vor.u32 %v10541_v9, %v8679_v60  ;;  %v9495_v60 = vld [vmem:[%s16212_s0 + $0x808] sm:$0xf] }
 0x1ae   :  { %v3813_v55 = vadd.f32 %v3812_v22, %v12882_v34  ;;  %v13480_v6 = vadd.f32 %v11076_v63, %v11072_v10  ;;  %11081 = vtanh.f32 %v3748_v17  ;;  %9937 = vmatmul.msk.bf16.vlgmr.msra.gmra.mxu0 %vm2246_vm2, %v13101_v14  ;;  %9942 = vmatmul.msk.bf16.vlgmr.msra.gmra.mxu1 %vm2246_vm2, %v13101_v14  ;;  %v10447_v10 = vld [vmem:[%s16212_s0 + $0x1ec] sm:$0xf]  ;;  %v11078_v7 = vpop.eup %11077 }
 0x1af   :  { %4264 = vmatpush.bf16.msra.mxu0 %v2579_v11  ;;  %4329 = vmatpush.bf16.msra.mxu1 %v2594_v2  ;;  %v3293_v11 = vadd.f32 %v12711_v12, %v12882_v34  ;;  %v8732_v17 = vor.u32 %v10447_v10, %v8729_v25  ;;  %v11080_v22 = vpop.eup %11079  ;;  %v10644_v10 = vld [vmem:[%s16212_s0 + $0x814] sm:$0xf] }
 0x1b0   :  { %11083 = vtanh.f32 %v3813_v55  ;;  %9939 = vmatmul.msk.bf16.vlgmr.msra.gmra.mxu2 %vm2246_vm2, %v13101_v14  ;;  %9952 = vmatmul.msk.bf16.vlgmr.msra.gmra.mxu3 %vm2246_vm2, %v13101_v14  ;;  %v9505_v25 = vld [vmem:[%s16212_s0 + $0xb30] sm:$0x10] }
 0x1b1   :  { %4290 = vmatpush.bf16.msra.mxu2 %v2585_v44  ;;  %4459 = vmatpush.bf16.msra.mxu3 %v2624_v4  ;;  %11085 = vtanh.f32 %v3124_v21  ;;  %v10742_v4 = vld [vmem:[%s16212_s0 + $0xb1c] sm:$0x10] }
 0x1b2   :  { %11087 = vtanh.f32 %v3293_v11  ;;  %v9488_v21 = vor.u32 %v10742_v4, %v9487_v28  ;;  %v9545_v11 = vld [vmem:[%s16212_s0 + $0xb58] sm:$0x10] }
 0x1b3   :  { %v3773_v35 = vpop.f32.mrf.mxu2  ;;  %v3749_v0 = vpop.f32.mrf.mxu0  ;;  %4265 = vmatpush.bf16.msra.mxu0 %v8672_v47  ;;  %4330 = vmatpush.bf16.msra.mxu1 %v8692_v42  ;;  %v10743_v47 = vld [vmem:[%s16212_s0 + $0xb24] sm:$0x10]  ;;  %v10649_v42 = vld [vmem:[%s16212_s0 + $0x83c] sm:$0xf] }
 0x1b4   :  { %v11082_v62 = vpop.eup %11081  ;;  %v3774_v2 = vadd.f32 %v3773_v35, %v12882_v34  ;;  %v3942_v63 = vpop.f32.mrf.mxu3  ;;  %v9548_v0 = vor.u32 %v10649_v42, %v9545_v11  ;;  %v10444_v42 = vld [vmem:[%s16212_s0 + $0x1d4] sm:$0xf] }
 0x1b5   :  { %v3814_v55 = vpop.f32.mrf.mxu1  ;;  %v13508_v19 = vadd.f32 %v11082_v62, %v11080_v22  ;;  %v3943_v44 = vadd.f32 %v3942_v63, %v12882_v34  ;;  %4291 = vmatpush.bf16.msra.mxu2 %v8680_v3  ;;  %4460 = vmatpush.bf16.msra.mxu3 %v8732_v17  ;;  %v3215_v3 = vadd.f32 %v12478_v49, %v12882_v34  ;;  %v8705_v11 = vld [vmem:[%s16212_s0 + $0x4f0] sm:$0xf0] }
 0x1b6   :  { %v11084_v12 = vpop.eup %11083  ;;  %11089 = vtanh.f32 %v3774_v2  ;;  %v3150_v17 = vadd.f32 %v12612_v30, %v12882_v34  ;;  %v9496_v22 = vor.u32 %v10743_v47, %v9495_v60  ;;  %v2591_v55 = vand.u32 %v9488_v21, %v11547_v5  ;;  %v8687_v30 = vld [vmem:[%s16212_s0 + $0x1c0] sm:$0xf] }
 0x1b7   :  { %v13520_v9 = vadd.f32 %v11084_v12, %v11078_v7  ;;  %11091 = vtanh.f32 %v3943_v44  ;;  %v9508_v7 = vor.u32 %v10644_v10, %v9505_v25  ;;  %v11086_v35 = vpop.eup %11085  ;;  %v10542_v60 = vld [vmem:[%s16212_s0 + $0x4dc] sm:$0xf0] }
 0x1b8   :  { %v11088_v62 = vpop.eup %11087  ;;  %11093 = vtanh.f32 %v3215_v3  ;;  %v2597_v21 = vand.u32 %v9496_v22, %v11547_v5  ;;  %v10543_v22 = vld [vmem:[%s16212_s0 + $0x4e4] sm:$0xf0] }
 0x1b9   :  { %v2606_v49 = vand.u32 %v9508_v7, %v11547_v5  ;;  %11095 = vtanh.f32 %v3150_v17  ;;  %v2636_v7 = vand.u32 %v9548_v0, %v11547_v5  ;;  %v8695_v17 = vld [vmem:[%s16212_s0 + $0x1c8] sm:$0xf]  ;;  %v8745_v0 = vld [vmem:[%s16212_s0 + $0x518] sm:$0xf0] }
 0x1bb   :  { %v3775_v2 = vpop.f32.mrf.mxu2  ;;  %v3799_v63 = vpop.f32.mrf.mxu0 }
 0x1bc   :  { %v11090_v12 = vpop.eup %11089  ;;  %v3944_v44 = vpop.f32.mrf.mxu3  ;;  %v3800_v28 = vadd.f32 %v3799_v63, %v12882_v34  ;;  %v3176_v2 = vadd.f32 %v12640_v59, %v12882_v34  ;;  %v8708_v63 = vor.u32 %v10444_v42, %v8705_v11  ;;  %v10744_v11 = vld [vmem:[%s16212_s0 + $0xb2c] sm:$0x10] }
 0x1bd   :  { %v3864_v4 = vpop.f32.mrf.mxu1  ;;  %v11092_v47 = vpop.eup %11091  ;;  %v13550_v10 = vadd.f32 %v11090_v12, %v11086_v35  ;;  %v8688_v35 = vor.u32 %v10542_v60, %v8687_v30  ;;  %v8696_v12 = vor.u32 %v10543_v22, %v8695_v17  ;;  %v10745_v22 = vld [vmem:[%s16212_s0 + $0xb34] sm:$0x10] }
 0x1be   :  { %v3865_v25 = vadd.f32 %v3864_v4, %v12882_v34  ;;  %v13560_v3 = vadd.f32 %v11092_v47, %v11088_v62  ;;  %11097 = vtanh.f32 %v3800_v28  ;;  %9941 = vmatmul.msk.bf16.vlgmr.msrb.gmra.mxu0 %vm2246_vm2, %v13101_v14  ;;  %9946 = vmatmul.msk.bf16.vlgmr.msrb.gmra.mxu1 %vm2246_vm2, %v13101_v14  ;;  %v10449_v62 = vld [vmem:[%s16212_s0 + $0x1fc] sm:$0xf]  ;;  %v11094_v44 = vpop.eup %11093 }
 0x1bf   :  { %4316 = vmatpush.bf16.msrb.mxu0 %v2591_v55  ;;  %4381 = vmatpush.bf16.msrb.mxu1 %v2606_v49  ;;  %v3345_v55 = vadd.f32 %v12779_v33, %v12882_v34  ;;  %v8748_v28 = vor.u32 %v10449_v62, %v8745_v0  ;;  %v11096_v4 = vpop.eup %11095  ;;  %v9521_v62 = vld [vmem:[%s16212_s0 + $0xb40] sm:$0x10] }
 0x1c0   :  { %11099 = vtanh.f32 %v3865_v25  ;;  %9943 = vmatmul.msk.bf16.vlgmr.msrb.gmra.mxu2 %vm2246_vm2, %v13101_v14  ;;  %9956 = vmatmul.msk.bf16.vlgmr.msrb.gmra.mxu3 %vm2246_vm2, %v13101_v14 }
 0x1c1   :  { %4342 = vmatpush.bf16.msrb.mxu2 %v2597_v21  ;;  %4511 = vmatpush.bf16.msrb.mxu3 %v2636_v7  ;;  %11101 = vtanh.f32 %v3176_v2  ;;  %v9503_v21 = vld [vmem:[%s16212_s0 + $0x810] sm:$0xf]  ;;  %v9511_v7 = vld [vmem:[%s16212_s0 + $0x818] sm:$0xf]  ;;  %v10651_v2 = vld [vmem:[%s16212_s0 + $0x84c] sm:$0xf] }
 0x1c2   :  { %11103 = vtanh.f32 %v3345_v55  ;;  %v9504_v0 = vor.u32 %v10744_v11, %v9503_v21  ;;  %v3267_v55 = vadd.f32 %v12546_v37, %v12882_v34  ;;  %v10544_v11 = vld [vmem:[%s16212_s0 + $0x4ec] sm:$0xf0] }
 0x1c3   :  { %v3825_v30 = vpop.f32.mrf.mxu2  ;;  %v3801_v60 = vpop.f32.mrf.mxu0  ;;  %4317 = vmatpush.bf16.msrb.mxu0 %v8688_v35  ;;  %4382 = vmatpush.bf16.msrb.mxu1 %v8708_v63  ;;  %v10646_v35 = vld [vmem:[%s16212_s0 + $0x824] sm:$0xf]  ;;  %v9561_v63 = vld [vmem:[%s16212_s0 + $0xb68] sm:$0x10] }
 0x1c4   :  { %v11098_v59 = vpop.eup %11097  ;;  %v3826_v49 = vadd.f32 %v3825_v30, %v12882_v34  ;;  %v3994_v47 = vpop.f32.mrf.mxu3  ;;  %v9564_v30 = vor.u32 %v10651_v2, %v9561_v63  ;;  %v8721_v2 = vld [vmem:[%s16212_s0 + $0x500] sm:$0xf0] }
 0x1c5   :  { %v3866_v25 = vpop.f32.mrf.mxu1  ;;  %v13588_v42 = vadd.f32 %v11098_v59, %v11096_v4  ;;  %v3995_v14 = vadd.f32 %v3994_v47, %v12882_v34  ;;  %4343 = vmatpush.bf16.msrb.mxu2 %v8696_v12  ;;  %4512 = vmatpush.bf16.msrb.mxu3 %v8748_v28  ;;  %v9524_v12 = vor.u32 %v10646_v35, %v9521_v62 }
 0x1c6   :  { %v11100_v33 = vpop.eup %11099  ;;  %11105 = vtanh.f32 %v3826_v49  ;;  %v9512_v28 = vor.u32 %v10745_v22, %v9511_v7  ;;  %v2603_v47 = vand.u32 %v9504_v0, %v11547_v5  ;;  %v10446_v0 = vld [vmem:[%s16212_s0 + $0x1e4] sm:$0xf] }
 0x1c7   :  { %v13600_v17 = vadd.f32 %v11100_v33, %v11094_v44  ;;  %11107 = vtanh.f32 %v3995_v14  ;;  %v3202_v44 = vadd.f32 %v12680_v31, %v12882_v34  ;;  %v11102_v4 = vpop.eup %11101  ;;  %v2618_v37 = vand.u32 %v9524_v12, %v11547_v5  ;;  %v8703_v31 = vld [vmem:[%s16212_s0 + $0x1d0] sm:$0xf] }
 0x1c8   :  { %v11104_v60 = vpop.eup %11103  ;;  %11109 = vtanh.f32 %v3267_v55  ;;  %v2609_v62 = vand.u32 %v9512_v28, %v11547_v5  ;;  %v13645_v55 = vld [vmem:[%s16213_s1] sm:$0x7]  ;;  %v2648_v12 = vand.u32 %v9564_v30, %v11547_v5  ;;  %v10545_v28 = vld [vmem:[%s16212_s0 + $0x4f4] sm:$0xf0]  ;;  %v8761_v30 = vld [vmem:[%s16212_s0 + $0x528] sm:$0xf0] }
 0x1c9   :  { %11111 = vtanh.f32 %v3202_v44  ;;  %v8711_v44 = vld [vmem:[%s16212_s0 + $0x1d8] sm:$0xf] }
 0x1cb   :  { %v3827_v59 = vpop.f32.mrf.mxu2  ;;  %v3851_v49 = vpop.f32.mrf.mxu0 }
 0x1cc   :  { %v11106_v25 = vpop.eup %11105  ;;  %v3996_v33 = vpop.f32.mrf.mxu3  ;;  %v3852_v14 = vadd.f32 %v3851_v49, %v12882_v34  ;;  %v3228_v59 = vadd.f32 %v12708_v8, %v12882_v34  ;;  %v8724_v49 = vor.u32 %v10446_v0, %v8721_v2  ;;  %v9519_v2 = vld [vmem:[%s16212_s0 + $0x820] sm:$0xf] }
 0x1cd   :  { %v3916_v21 = vpop.f32.mrf.mxu1  ;;  %v11108_v7 = vpop.eup %11107  ;;  %v13630_v22 = vadd.f32 %v11106_v25, %v11102_v4  ;;  %v8704_v4 = vor.u32 %v10544_v11, %v8703_v31  ;;  %v8712_v25 = vor.u32 %v10545_v28, %v8711_v44  ;;  %v9527_v44 = vld [vmem:[%s16212_s0 + $0x828] sm:$0xf] }
 0x1ce   :  { %v3917_v35 = vadd.f32 %v3916_v21, %v12882_v34  ;;  %v13640_v63 = vadd.f32 %v11108_v7, %v11104_v60  ;;  %11113 = vtanh.f32 %v3852_v14  ;;  %9945 = vmatmul.msk.bf16.vlgmr.msra.gmra.mxu0 %vm2246_vm2, %v13645_v55  ;;  %9950 = vmatmul.msk.bf16.vlgmr.msra.gmra.mxu1 %vm2246_vm2, %v13645_v55  ;;  %v10451_v60 = vld [vmem:[%s16212_s0 + $0x20c] sm:$0xf]  ;;  %v11110_v33 = vpop.eup %11109 }
 0x1cf   :  { %4368 = vmatpush.bf16.msra.mxu0 %v2603_v47  ;;  %4433 = vmatpush.bf16.msra.mxu1 %v2618_v37  ;;  %v3397_v47 = vadd.f32 %v12847_v56, %v12882_v34  ;;  %v8764_v14 = vor.u32 %v10451_v60, %v8761_v30  ;;  %v11112_v21 = vpop.eup %11111  ;;  %v10648_v60 = vld [vmem:[%s16212_s0 + $0x834] sm:$0xf] }
 0x1d0   :  { %11115 = vtanh.f32 %v3917_v35  ;;  %9947 = vmatmul.msk.bf16.vlgmr.msra.gmra.mxu2 %vm2246_vm2, %v13645_v55  ;;  %9960 = vmatmul.msk.bf16.vlgmr.msra.gmra.mxu3 %vm2246_vm2, %v13645_v55  ;;  %v9537_v30 = vld [vmem:[%s16212_s0 + $0xb50] sm:$0x10] }
 0x1d1   :  { %4394 = vmatpush.bf16.msra.mxu2 %v2609_v62  ;;  %4563 = vmatpush.bf16.msra.mxu3 %v2648_v12  ;;  %11117 = vtanh.f32 %v3228_v59  ;;  %v10746_v12 = vld [vmem:[%s16212_s0 + $0xb3c] sm:$0x10] }
 0x1d2   :  { %11119 = vtanh.f32 %v3397_v47  ;;  %v9520_v59 = vor.u32 %v10746_v12, %v9519_v2  ;;  %v9577_v47 = vld [vmem:[%s16212_s0 + $0xb78] sm:$0x10] }
 0x1d3   :  { %v3877_v31 = vpop.f32.mrf.mxu2  ;;  %v3853_v11 = vpop.f32.mrf.mxu0  ;;  %4369 = vmatpush.bf16.msra.mxu0 %v8704_v4  ;;  %4434 = vmatpush.bf16.msra.mxu1 %v8724_v49  ;;  %v10747_v4 = vld [vmem:[%s16212_s0 + $0xb44] sm:$0x10]  ;;  %v10653_v49 = vld [vmem:[%s16212_s0 + $0x85c] sm:$0xf] }
 0x1d4   :  { %v11114_v8 = vpop.eup %11113  ;;  %v3878_v37 = vadd.f32 %v3877_v31, %v12882_v34  ;;  %v4046_v7 = vpop.f32.mrf.mxu3  ;;  %v9580_v11 = vor.u32 %v10653_v49, %v9577_v47  ;;  %v10448_v49 = vld [vmem:[%s16212_s0 + $0x1f4] sm:$0xf] }
 0x1d5   :  { %v3918_v35 = vpop.f32.mrf.mxu1  ;;  %v13673_v0 = vadd.f32 %v11114_v8, %v11112_v21  ;;  %v4047_v62 = vadd.f32 %v4046_v7, %v12882_v34  ;;  %4395 = vmatpush.bf16.msra.mxu2 %v8712_v25  ;;  %4564 = vmatpush.bf16.msra.mxu3 %v8764_v14  ;;  %v3319_v25 = vadd.f32 %v12614_v32, %v12882_v34  ;;  %v8737_v47 = vld [vmem:[%s16212_s0 + $0x510] sm:$0xf0] }
 0x1d6   :  { %v11116_v56 = vpop.eup %11115  ;;  %11121 = vtanh.f32 %v3878_v37  ;;  %v3254_v14 = vadd.f32 %v12748_v45, %v12882_v34  ;;  %v9528_v21 = vor.u32 %v10747_v4, %v9527_v44  ;;  %v2615_v35 = vand.u32 %v9520_v59, %v11547_v5  ;;  %v8719_v45 = vld [vmem:[%s16212_s0 + $0x1e0] sm:$0xf] }
 0x1d7   :  { %v13685_v28 = vadd.f32 %v11116_v56, %v11110_v33  ;;  %11123 = vtanh.f32 %v4047_v62  ;;  %v9540_v33 = vor.u32 %v10648_v60, %v9537_v30  ;;  %v11118_v31 = vpop.eup %11117  ;;  %v10546_v44 = vld [vmem:[%s16212_s0 + $0x4fc] sm:$0xf0] }
 0x1d8   :  { %v11120_v8 = vpop.eup %11119  ;;  %11125 = vtanh.f32 %v3319_v25  ;;  %v2621_v59 = vand.u32 %v9528_v21, %v11547_v5  ;;  %v10547_v21 = vld [vmem:[%s16212_s0 + $0x504] sm:$0xf0] }
 0x1d9   :  { %v2630_v32 = vand.u32 %v9540_v33, %v11547_v5  ;;  %11127 = vtanh.f32 %v3254_v14  ;;  %v2660_v33 = vand.u32 %v9580_v11, %v11547_v5  ;;  %v8727_v14 = vld [vmem:[%s16212_s0 + $0x1e8] sm:$0xf]  ;;  %v8777_v11 = vld [vmem:[%s16212_s0 + $0x538] sm:$0xf0] }
 0x1db   :  { %v3879_v37 = vpop.f32.mrf.mxu2  ;;  %v3903_v7 = vpop.f32.mrf.mxu0 }
 0x1dc   :  { %v11122_v56 = vpop.eup %11121  ;;  %v4048_v62 = vpop.f32.mrf.mxu3  ;;  %v3904_v2 = vadd.f32 %v3903_v7, %v12882_v34  ;;  %v3280_v37 = vadd.f32 %v12776_v18, %v12882_v34  ;;  %v8740_v7 = vor.u32 %v10448_v49, %v8737_v47  ;;  %v9535_v47 = vld [vmem:[%s16212_s0 + $0x830] sm:$0xf] }
 0x1dd   :  { %v3968_v12 = vpop.f32.mrf.mxu1  ;;  %v11124_v4 = vpop.eup %11123  ;;  %v13715_v60 = vadd.f32 %v11122_v56, %v11118_v31  ;;  %v8720_v31 = vor.u32 %v10546_v44, %v8719_v45  ;;  %v8728_v56 = vor.u32 %v10547_v21, %v8727_v14  ;;  %v9543_v14 = vld [vmem:[%s16212_s0 + $0x838] sm:$0xf] }
 0x1de   :  { %v3969_v30 = vadd.f32 %v3968_v12, %v12882_v34  ;;  %v13725_v25 = vadd.f32 %v11124_v4, %v11120_v8  ;;  %11129 = vtanh.f32 %v3904_v2  ;;  %9949 = vmatmul.msk.bf16.vlgmr.msrb.gmra.mxu0 %vm2246_vm2, %v13645_v55  ;;  %9954 = vmatmul.msk.bf16.vlgmr.msrb.gmra.mxu1 %vm2246_vm2, %v13645_v55  ;;  %v10453_v8 = vld [vmem:[%s16212_s0 + $0x21c] sm:$0xf]  ;;  %v11126_v62 = vpop.eup %11125 }
 0x1df   :  { %4420 = vmatpush.bf16.msrb.mxu0 %v2615_v35  ;;  %4485 = vmatpush.bf16.msrb.mxu1 %v2630_v32  ;;  %v3449_v35 = vadd.f32 %v12918_v58, %v12882_v34  ;;  %v8780_v2 = vor.u32 %v10453_v8, %v8777_v11  ;;  %v11128_v12 = vpop.eup %11127  ;;  %v10650_v8 = vld [vmem:[%s16212_s0 + $0x844] sm:$0xf] }
 0x1e0   :  { %11131 = vtanh.f32 %v3969_v30  ;;  %9951 = vmatmul.msk.bf16.vlgmr.msrb.gmra.mxu2 %vm2246_vm2, %v13645_v55  ;;  %9964 = vmatmul.msk.bf16.vlgmr.msrb.gmra.mxu3 %vm2246_vm2, %v13645_v55  ;;  %v9553_v11 = vld [vmem:[%s16212_s0 + $0xb60] sm:$0x10] }
 0x1e1   :  { %4446 = vmatpush.bf16.msrb.mxu2 %v2621_v59  ;;  %4615 = vmatpush.bf16.msrb.mxu3 %v2660_v33  ;;  %11133 = vtanh.f32 %v3280_v37  ;;  %v10748_v33 = vld [vmem:[%s16212_s0 + $0xb4c] sm:$0x10] }
 0x1e2   :  { %11135 = vtanh.f32 %v3449_v35  ;;  %v9536_v37 = vor.u32 %v10748_v33, %v9535_v47  ;;  %v9593_v35 = vld [vmem:[%s16212_s0 + $0xb88] sm:$0x10] }
 0x1e3   :  { %v3929_v45 = vpop.f32.mrf.mxu2  ;;  %v3905_v44 = vpop.f32.mrf.mxu0  ;;  %4421 = vmatpush.bf16.msrb.mxu0 %v8720_v31  ;;  %4486 = vmatpush.bf16.msrb.mxu1 %v8740_v7  ;;  %v10749_v31 = vld [vmem:[%s16212_s0 + $0xb54] sm:$0x10]  ;;  %v10655_v7 = vld [vmem:[%s16212_s0 + $0x86c] sm:$0xf] }
 0x1e4   :  { %v11130_v18 = vpop.eup %11129  ;;  %v3930_v32 = vadd.f32 %v3929_v45, %v12882_v34  ;;  %v4098_v4 = vpop.f32.mrf.mxu3  ;;  %v9596_v44 = vor.u32 %v10655_v7, %v9593_v35  ;;  %v10450_v7 = vld [vmem:[%s16212_s0 + $0x204] sm:$0xf] }
 0x1e5   :  { %v3970_v30 = vpop.f32.mrf.mxu1  ;;  %v13753_v49 = vadd.f32 %v11130_v18, %v11128_v12  ;;  %v4099_v59 = vadd.f32 %v4098_v4, %v12882_v34  ;;  %4447 = vmatpush.bf16.msrb.mxu2 %v8728_v56  ;;  %4616 = vmatpush.bf16.msrb.mxu3 %v8780_v2  ;;  %v3371_v56 = vadd.f32 %v12682_v36, %v12882_v34  ;;  %v8753_v35 = vld [vmem:[%s16212_s0 + $0x520] sm:$0xf0] }
 0x1e6   :  { %v11132_v58 = vpop.eup %11131  ;;  %11137 = vtanh.f32 %v3930_v32  ;;  %v3306_v2 = vadd.f32 %v12816_v1, %v12882_v34  ;;  %v9544_v12 = vor.u32 %v10749_v31, %v9543_v14  ;;  %v2627_v30 = vand.u32 %v9536_v37, %v11547_v5  ;;  %v8735_v1 = vld [vmem:[%s16212_s0 + $0x1f0] sm:$0xf] }
 0x1e7   :  { %v13765_v21 = vadd.f32 %v11132_v58, %v11126_v62  ;;  %11139 = vtanh.f32 %v4099_v59  ;;  %v9556_v62 = vor.u32 %v10650_v8, %v9553_v11  ;;  %v11134_v45 = vpop.eup %11133  ;;  %v10548_v14 = vld [vmem:[%s16212_s0 + $0x50c] sm:$0xf0] }
 0x1e8   :  { %v11136_v18 = vpop.eup %11135  ;;  %11141 = vtanh.f32 %v3371_v56  ;;  %v2633_v37 = vand.u32 %v9544_v12, %v11547_v5  ;;  %v10549_v12 = vld [vmem:[%s16212_s0 + $0x514] sm:$0xf0] }
 0x1e9   :  { %v2642_v36 = vand.u32 %v9556_v62, %v11547_v5  ;;  %11143 = vtanh.f32 %v3306_v2  ;;  %v2672_v62 = vand.u32 %v9596_v44, %v11547_v5  ;;  %v8743_v2 = vld [vmem:[%s16212_s0 + $0x1f8] sm:$0xf]  ;;  %v8793_v44 = vld [vmem:[%s16212_s0 + $0x548] sm:$0xf0] }
 0x1eb   :  { %v3931_v32 = vpop.f32.mrf.mxu2  ;;  %v3955_v4 = vpop.f32.mrf.mxu0 }
 0x1ec   :  { %v11138_v58 = vpop.eup %11137  ;;  %v4100_v59 = vpop.f32.mrf.mxu3  ;;  %v3956_v47 = vadd.f32 %v3955_v4, %v12882_v34  ;;  %v3332_v32 = vadd.f32 %v12844_v53, %v12882_v34  ;;  %v8756_v4 = vor.u32 %v10450_v7, %v8753_v35  ;;  %v9551_v35 = vld [vmem:[%s16212_s0 + $0x840] sm:$0xf] }
 0x1ed   :  { %v4020_v33 = vpop.f32.mrf.mxu1  ;;  %v11140_v31 = vpop.eup %11139  ;;  %v13795_v8 = vadd.f32 %v11138_v58, %v11134_v45  ;;  %v8736_v45 = vor.u32 %v10548_v14, %v8735_v1  ;;  %v8744_v58 = vor.u32 %v10549_v12, %v8743_v2  ;;  %v9559_v2 = vld [vmem:[%s16212_s0 + $0x848] sm:$0xf] }
 0x1ee   :  { %v4021_v11 = vadd.f32 %v4020_v33, %v12882_v34  ;;  %v13805_v56 = vadd.f32 %v11140_v31, %v11136_v18  ;;  %11145 = vtanh.f32 %v3956_v47  ;;  %9953 = vmatmul.msk.bf16.vlgmr.msra.gmra.mxu0 %vm2246_vm2, %v13645_v55  ;;  %9958 = vmatmul.msk.bf16.vlgmr.msra.gmra.mxu1 %vm2246_vm2, %v13645_v55  ;;  %v10455_v18 = vld [vmem:[%s16212_s0 + $0x22c] sm:$0xf]  ;;  %v11142_v59 = vpop.eup %11141 }
 0x1ef   :  { %4472 = vmatpush.bf16.msra.mxu0 %v2627_v30  ;;  %4537 = vmatpush.bf16.msra.mxu1 %v2642_v36  ;;  %v3501_v30 = vadd.f32 %v12989_v57, %v12882_v34  ;;  %v8796_v47 = vor.u32 %v10455_v18, %v8793_v44  ;;  %v11144_v33 = vpop.eup %11143  ;;  %v10652_v18 = vld [vmem:[%s16212_s0 + $0x854] sm:$0xf] }
 0x1f0   :  { %16232 = vst [vmem:[#allocation10_spill] sm:$0xff] %v13805_v56  ;;  %11147 = vtanh.f32 %v4021_v11  ;;  %9955 = vmatmul.msk.bf16.vlgmr.msra.gmra.mxu2 %vm2246_vm2, %v13645_v55  ;;  %9968 = vmatmul.msk.bf16.vlgmr.msra.gmra.mxu3 %vm2246_vm2, %v13645_v55  ;;  %v9569_v44 = vld [vmem:[%s16212_s0 + $0xb70] sm:$0x10] }
 0x1f1   :  { %4498 = vmatpush.bf16.msra.mxu2 %v2633_v37  ;;  %4667 = vmatpush.bf16.msra.mxu3 %v2672_v62  ;;  %11149 = vtanh.f32 %v3332_v32  ;;  %v10750_v62 = vld [vmem:[%s16212_s0 + $0xb5c] sm:$0x10] }
 0x1f2   :  { %11151 = vtanh.f32 %v3501_v30  ;;  %v9552_v32 = vor.u32 %v10750_v62, %v9551_v35  ;;  %v9609_v30 = vld [vmem:[%s16212_s0 + $0xb98] sm:$0x10] }
 0x1f3   :  { %v3981_v1 = vpop.f32.mrf.mxu2  ;;  %v3957_v14 = vpop.f32.mrf.mxu0  ;;  %4473 = vmatpush.bf16.msra.mxu0 %v8736_v45  ;;  %4538 = vmatpush.bf16.msra.mxu1 %v8756_v4  ;;  %v10751_v45 = vld [vmem:[%s16212_s0 + $0xb64] sm:$0x10]  ;;  %v10657_v4 = vld [vmem:[%s16212_s0 + $0x87c] sm:$0xf] }
 0x1f4   :  { %v11146_v53 = vpop.eup %11145  ;;  %v3982_v36 = vadd.f32 %v3981_v1, %v12882_v34  ;;  %v4150_v31 = vpop.f32.mrf.mxu3  ;;  %v9612_v14 = vor.u32 %v10657_v4, %v9609_v30  ;;  %v10452_v4 = vld [vmem:[%s16212_s0 + $0x214] sm:$0xf] }
 0x1f5   :  { %v4022_v11 = vpop.f32.mrf.mxu1  ;;  %v13833_v7 = vadd.f32 %v11146_v53, %v11144_v33  ;;  %v4151_v37 = vadd.f32 %v4150_v31, %v12882_v34  ;;  %4499 = vmatpush.bf16.msra.mxu2 %v8744_v58  ;;  %4668 = vmatpush.bf16.msra.mxu3 %v8796_v47  ;;  %v3423_v58 = vadd.f32 %v12750_v48, %v12882_v34  ;;  %v8769_v30 = vld [vmem:[%s16212_s0 + $0x530] sm:$0xf0] }
 0x1f6   :  { %v11148_v57 = vpop.eup %11147  ;;  %11153 = vtanh.f32 %v3982_v36  ;;  %v3358_v47 = vadd.f32 %v12888_v46, %v12882_v34  ;;  %v9560_v33 = vor.u32 %v10751_v45, %v9559_v2  ;;  %v2639_v11 = vand.u32 %v9552_v32, %v11547_v5  ;;  %v8751_v46 = vld [vmem:[%s16212_s0 + $0x200] sm:$0xf] }
 0x1f7   :  { %v13845_v12 = vadd.f32 %v11148_v57, %v11142_v59  ;;  %11155 = vtanh.f32 %v4151_v37  ;;  %v9572_v59 = vor.u32 %v10652_v18, %v9569_v44  ;;  %v11150_v1 = vpop.eup %11149  ;;  %v10550_v2 = vld [vmem:[%s16212_s0 + $0x51c] sm:$0xf0] }
 0x1f8   :  { %v11152_v53 = vpop.eup %11151  ;;  %11157 = vtanh.f32 %v3423_v58  ;;  %v2645_v32 = vand.u32 %v9560_v33, %v11547_v5  ;;  %v10551_v33 = vld [vmem:[%s16212_s0 + $0x524] sm:$0xf0] }
 0x1f9   :  { %v2654_v48 = vand.u32 %v9572_v59, %v11547_v5  ;;  %11159 = vtanh.f32 %v3358_v47  ;;  %v2684_v59 = vand.u32 %v9612_v14, %v11547_v5  ;;  %v8759_v47 = vld [vmem:[%s16212_s0 + $0x208] sm:$0xf]  ;;  %v8809_v14 = vld [vmem:[%s16212_s0 + $0x558] sm:$0xf0] }
 0x1fb   :  { %v3983_v36 = vpop.f32.mrf.mxu2  ;;  %v4007_v31 = vpop.f32.mrf.mxu0 }
 0x1fc   :  { %v11154_v57 = vpop.eup %11153  ;;  %v4152_v37 = vpop.f32.mrf.mxu3  ;;  %v4008_v35 = vadd.f32 %v4007_v31, %v12882_v34  ;;  %v8772_v36 = vor.u32 %v10452_v4, %v8769_v30  ;;  %v3384_v31 = vadd.f32 %v12915_v40, %v12882_v34  ;;  %v9567_v30 = vld [vmem:[%s16212_s0 + $0x850] sm:$0xf] }
 0x1fd   :  { %v4072_v62 = vpop.f32.mrf.mxu1  ;;  %v11156_v45 = vpop.eup %11155  ;;  %v13875_v18 = vadd.f32 %v11154_v57, %v11150_v1  ;;  %v8752_v1 = vor.u32 %v10550_v2, %v8751_v46 }
 0x1fe   :  { %v4073_v44 = vadd.f32 %v4072_v62, %v12882_v34  ;;  %v13885_v58 = vadd.f32 %v11156_v45, %v11152_v53  ;;  %11161 = vtanh.f32 %v4008_v35  ;;  %9957 = vmatmul.msk.bf16.vlgmr.msrb.gmra.mxu0 %vm2246_vm2, %v13645_v55  ;;  %9962 = vmatmul.msk.bf16.vlgmr.msrb.gmra.mxu1 %vm2246_vm2, %v13645_v55  ;;  %v10457_v53 = vld [vmem:[%s16212_s0 + $0x23c] sm:$0xf]  ;;  %v11158_v57 = vpop.eup %11157 }
 0x1ff   :  { %4524 = vmatpush.bf16.msrb.mxu0 %v2639_v11  ;;  %4589 = vmatpush.bf16.msrb.mxu1 %v2654_v48  ;;  %v8760_v11 = vor.u32 %v10551_v33, %v8759_v47  ;;  %v8812_v37 = vor.u32 %v10457_v53, %v8809_v14  ;;  %v11160_v35 = vpop.eup %11159  ;;  %v9575_v47 = vld [vmem:[%s16212_s0 + $0x858] sm:$0xf]  ;;  %v10654_v53 = vld [vmem:[%s16212_s0 + $0x864] sm:$0xf] }
 0x200   :  { %16233 = vst [vmem:[#allocation11_spill] sm:$0xff] %v13885_v58  ;;  %11163 = vtanh.f32 %v4073_v44  ;;  %9959 = vmatmul.msk.bf16.vlgmr.msrb.gmra.mxu2 %vm2246_vm2, %v13645_v55  ;;  %9972 = vmatmul.msk.bf16.vlgmr.msrb.gmra.mxu3 %vm2246_vm2, %v13645_v55  ;;  %v9585_v14 = vld [vmem:[%s16212_s0 + $0xb80] sm:$0x10] }
 0x201   :  { %4550 = vmatpush.bf16.msrb.mxu2 %v2645_v32  ;;  %4719 = vmatpush.bf16.msrb.mxu3 %v2684_v59  ;;  %11165 = vtanh.f32 %v3384_v31  ;;  %v10752_v59 = vld [vmem:[%s16212_s0 + $0xb6c] sm:$0x10]  ;;  %v10659_v31 = vld [vmem:[%s16212_s0 + $0x88c] sm:$0xf] }
 0x203   :  { %v4033_v62 = vpop.f32.mrf.mxu2  ;;  %v4009_v46 = vpop.f32.mrf.mxu0  ;;  %4525 = vmatpush.bf16.msrb.mxu0 %v8752_v1  ;;  %4590 = vmatpush.bf16.msrb.mxu1 %v8772_v36  ;;  %v10753_v1 = vld [vmem:[%s16212_s0 + $0xb74] sm:$0x10]  ;;  %v9568_v36 = vor.u32 %v10752_v59, %v9567_v30 }
 0x204   :  { %v11162_v2 = vpop.eup %11161  ;;  %v4034_v45 = vadd.f32 %v4033_v62, %v12882_v34  ;;  %v4202_v48 = vpop.f32.mrf.mxu3  ;;  %v16236_v62 = vld [vmem:[#allocation4_spill] sm:$0xff] }
 0x205   :  { %v4074_v44 = vpop.f32.mrf.mxu1  ;;  %v13911_v40 = vadd.f32 %v11162_v2, %v11160_v35  ;;  %v4203_v32 = vadd.f32 %v4202_v48, %v12882_v34  ;;  %4551 = vmatpush.bf16.msrb.mxu2 %v8760_v11  ;;  %4720 = vmatpush.bf16.msrb.mxu3 %v8812_v37  ;;  %v9625_v11 = vld [vmem:[%s16212_s0 + $0xba8] sm:$0x10]  ;;  %v9588_v35 = vor.u32 %v10654_v53, %v9585_v14  ;;  %v8767_v53 = vld [vmem:[%s16212_s0 + $0x210] sm:$0xf] }
 0x206   :  { %v11164_v4 = vpop.eup %11163  ;;  %11167 = vtanh.f32 %v4034_v45  ;;  %v3410_v46 = vadd.f32 %v16236_v62, %v12882_v34  ;;  %v9576_v2 = vor.u32 %v10753_v1, %v9575_v47  ;;  %v9628_v45 = vor.u32 %v10659_v31, %v9625_v11  ;;  %v10552_v47 = vld [vmem:[%s16212_s0 + $0x52c] sm:$0xf0]  ;;  %v10454_v11 = vld [vmem:[%s16212_s0 + $0x224] sm:$0xf]  ;;  %v10553_v62 = vld [vmem:[%s16212_s0 + $0x534] sm:$0xf0] }
 0x207   :  { %16234 = vst [vmem:[#allocation12_spill] sm:$0xff] %v13911_v40  ;;  %v13923_v33 = vadd.f32 %v11164_v4, %v11158_v57  ;;  %11169 = vtanh.f32 %v4203_v32  ;;  %v16235_v57 = vld [vmem:[#allocation2_spill] sm:$0xff]  ;;  %v11166_v48 = vpop.eup %11165  ;;  %v2651_v32 = vand.u32 %v9568_v36, %v11547_v5  ;;  %v2666_v40 = vand.u32 %v9588_v35, %v11547_v5 }
 0x208   :  { %v3475_v37 = vadd.f32 %v16235_v57, %v12882_v34  ;;  %v2657_v31 = vand.u32 %v9576_v2, %v11547_v5  ;;  %v8785_v57 = vld [vmem:[%s16212_s0 + $0x540] sm:$0xf0]  ;;  %v2696_v35 = vand.u32 %v9628_v45, %v11547_v5  ;;  %v16238_v45 = vld [vmem:[#allocation5_spill] sm:$0xff] }
 0x209   :  { %v8788_v2 = vor.u32 %v10454_v11, %v8785_v57 }
 0x20a   :  { %11171 = vtanh.f32 %v3475_v37 }
 0x20b   :  { %v4035_v44 = vpop.f32.mrf.mxu2  ;;  %v4059_v4 = vpop.f32.mrf.mxu0  ;;  %11173 = vtanh.f32 %v3410_v46  ;;  %v8825_v46 = vld [vmem:[%s16212_s0 + $0x568] sm:$0xf0] }
 0x20c   :  { %v11168_v30 = vpop.eup %11167  ;;  %v4204_v59 = vpop.f32.mrf.mxu3  ;;  %v4060_v58 = vadd.f32 %v4059_v4, %v12882_v34 }
 0x20d   :  { %v4124_v56 = vpop.f32.mrf.mxu1  ;;  %v11170_v1 = vpop.eup %11169  ;;  %v13953_v14 = vadd.f32 %v11168_v30, %v11166_v48  ;;  %v3436_v48 = vadd.f32 %v16238_v45, %v12882_v34 }
 0x20e   :  { %v4125_v36 = vadd.f32 %v4124_v56, %v12882_v34  ;;  %v13964_v37 = vadd.f32 %v11170_v1, %v13120_v39  ;;  %11175 = vtanh.f32 %v4060_v58  ;;  %9961 = vmatmul.msk.bf16.vlgmr.msra.gmra.mxu0 %vm2246_vm2, %v13645_v55  ;;  %v8775_v56 = vld [vmem:[%s16212_s0 + $0x218] sm:$0xf]  ;;  %9966 = vmatmul.msk.bf16.vlgmr.msra.gmra.mxu1 %vm2246_vm2, %v13645_v55  ;;  %v8768_v39 = vor.u32 %v10552_v47, %v8767_v53  ;;  %v10459_v58 = vld [vmem:[%s16212_s0 + $0x24c] sm:$0xf] }
 0x20f   :  { %4576 = vmatpush.bf16.msra.mxu0 %v2651_v32  ;;  %4641 = vmatpush.bf16.msra.mxu1 %v2666_v40  ;;  %v8776_v44 = vor.u32 %v10553_v62, %v8775_v56  ;;  %v8828_v32 = vor.u32 %v10459_v58, %v8825_v46  ;;  %v10754_v56 = vld [vmem:[%s16212_s0 + $0xb7c] sm:$0x10]  ;;  %v9591_v62 = vld [vmem:[%s16212_s0 + $0x868] sm:$0xf]  ;;  %v10656_v46 = vld [vmem:[%s16212_s0 + $0x874] sm:$0xf] }
 0x210   :  { %16237 = vst [vmem:[#allocation2_spill] sm:$0xff] %v13964_v37  ;;  %11177 = vtanh.f32 %v4125_v36  ;;  %9963 = vmatmul.msk.bf16.vlgmr.msra.gmra.mxu2 %vm2246_vm2, %v13645_v55  ;;  %9976 = vmatmul.msk.bf16.vlgmr.msra.gmra.mxu3 %vm2246_vm2, %v13645_v55  ;;  %v11172_v4 = vpop.eup %11171  ;;  %v10755_v58 = vld [vmem:[%s16212_s0 + $0xb84] sm:$0x10] }
 0x211   :  { %4602 = vmatpush.bf16.msra.mxu2 %v2657_v31  ;;  %4771 = vmatpush.bf16.msra.mxu3 %v2696_v35  ;;  %v11174_v30 = vpop.eup %11173  ;;  %11179 = vtanh.f32 %v3436_v48  ;;  %v9583_v35 = vld [vmem:[%s16212_s0 + $0x860] sm:$0xf]  ;;  %v10661_v48 = vld [vmem:[%s16212_s0 + $0x89c] sm:$0xf] }
 0x212   :  { %v9584_v45 = vor.u32 %v10754_v56, %v9583_v35 }
 0x213   :  { %v4085_v59 = vpop.f32.mrf.mxu2  ;;  %v4061_v53 = vpop.f32.mrf.mxu0  ;;  %4577 = vmatpush.bf16.msra.mxu0 %v8768_v39  ;;  %4642 = vmatpush.bf16.msra.mxu1 %v8788_v2  ;;  %v9601_v2 = vld [vmem:[%s16212_s0 + $0xb90] sm:$0x10] }
 0x214   :  { %v11176_v47 = vpop.eup %11175  ;;  %v4086_v1 = vadd.f32 %v4085_v59, %v12882_v34  ;;  %v4254_v40 = vpop.f32.mrf.mxu3  ;;  %v9592_v59 = vor.u32 %v10755_v58, %v9591_v62  ;;  %v10554_v62 = vld [vmem:[%s16212_s0 + $0x53c] sm:$0xf0] }
 0x215   :  { %v4126_v36 = vpop.f32.mrf.mxu1  ;;  %v13990_v57 = vadd.f32 %v11176_v47, %v11174_v30  ;;  %v4255_v31 = vadd.f32 %v4254_v40, %v12882_v34  ;;  %4603 = vmatpush.bf16.msra.mxu2 %v8776_v44  ;;  %4772 = vmatpush.bf16.msra.mxu3 %v8828_v32  ;;  %v9641_v44 = vld [vmem:[%s16212_s0 + $0xbb8] sm:$0x10]  ;;  %v16239_v32 = vld [vmem:[#allocation7_spill] sm:$0xff] }
 0x216   :  { %v11178_v11 = vpop.eup %11177  ;;  %11181 = vtanh.f32 %v4086_v1  ;;  %v3462_v30 = vadd.f32 %v16239_v32, %v12882_v34  ;;  %v9644_v53 = vor.u32 %v10661_v48, %v9641_v44  ;;  %v2663_v36 = vand.u32 %v9584_v45, %v11547_v5  ;;  %v10456_v44 = vld [vmem:[%s16212_s0 + $0x234] sm:$0xf] }
 0x217   :  { %v14002_v39 = vadd.f32 %v11178_v11, %v11172_v4  ;;  %11183 = vtanh.f32 %v4255_v31  ;;  %v9604_v4 = vor.u32 %v10656_v46, %v9601_v2  ;;  %v11180_v47 = vpop.eup %11179  ;;  %v8783_v46 = vld [vmem:[%s16212_s0 + $0x220] sm:$0xf]  ;;  %v2669_v48 = vand.u32 %v9592_v59, %v11547_v5  ;;  %v8791_v59 = vld [vmem:[%s16212_s0 + $0x228] sm:$0xf] }
 0x218   :  { %11185 = vtanh.f32 %v3462_v30  ;;  %v2708_v30 = vand.u32 %v9644_v53, %v11547_v5  ;;  %v8841_v53 = vld [vmem:[%s16212_s0 + $0x578] sm:$0xf0] }
 0x219   :  { %v2678_v37 = vand.u32 %v9604_v4, %v11547_v5  ;;  %v8801_v4 = vld [vmem:[%s16212_s0 + $0x550] sm:$0xf0] }
 0x21b   :  { %v4087_v1 = vpop.f32.mrf.mxu2  ;;  %v4111_v40 = vpop.f32.mrf.mxu0 }
 0x21c   :  { %v11182_v11 = vpop.eup %11181  ;;  %v4256_v31 = vpop.f32.mrf.mxu3  ;;  %v4112_v35 = vadd.f32 %v4111_v40, %v12882_v34  ;;  %v10461_v1 = vld [vmem:[%s16212_s0 + $0x25c] sm:$0xf]  ;;  %v8804_v40 = vor.u32 %v10456_v44, %v8801_v4 }
 0x21d   :  { %v4176_v56 = vpop.f32.mrf.mxu1  ;;  %v11184_v58 = vpop.eup %11183  ;;  %v14030_v2 = vadd.f32 %v11182_v11, %v11180_v47  ;;  %v10555_v47 = vld [vmem:[%s16212_s0 + $0x544] sm:$0xf0]  ;;  %v16241_v11 = vld [vmem:[#allocation8_spill] sm:$0xff] }
 0x21e   :  { %v4177_v45 = vadd.f32 %v4176_v56, %v12882_v34  ;;  %v14041_v32 = vadd.f32 %v11184_v58, %v13200_v43  ;;  %11187 = vtanh.f32 %v4112_v35  ;;  %9965 = vmatmul.msk.bf16.vlgmr.msrb.gmra.mxu0 %vm2246_vm2, %v13645_v55  ;;  %9970 = vmatmul.msk.bf16.vlgmr.msrb.gmra.mxu1 %vm2246_vm2, %v13645_v55  ;;  %v8784_v43 = vor.u32 %v10554_v62, %v8783_v46  ;;  %v11186_v56 = vpop.eup %11185 }
 0x21f   :  { %4628 = vmatpush.bf16.msrb.mxu0 %v2663_v36  ;;  %4693 = vmatpush.bf16.msrb.mxu1 %v2678_v37  ;;  %v3488_v31 = vadd.f32 %v16241_v11, %v12882_v34  ;;  %v8792_v36 = vor.u32 %v10555_v47, %v8791_v59  ;;  %v8844_v35 = vor.u32 %v10461_v1, %v8841_v53  ;;  %v9607_v59 = vld [vmem:[%s16212_s0 + $0x878] sm:$0xf]  ;;  %v16242_v47 = vld [vmem:[#allocation3_spill] sm:$0xff]  ;;  %v10658_v1 = vld [vmem:[%s16212_s0 + $0x884] sm:$0xf] }
 0x220   :  { %16240 = vst [vmem:[#allocation4_spill] sm:$0xff] %v14041_v32  ;;  %11189 = vtanh.f32 %v4177_v45  ;;  %9967 = vmatmul.msk.bf16.vlgmr.msrb.gmra.mxu2 %vm2246_vm2, %v13645_v55  ;;  %9980 = vmatmul.msk.bf16.vlgmr.msrb.gmra.mxu3 %vm2246_vm2, %v13645_v55  ;;  %v9617_v53 = vld [vmem:[%s16212_s0 + $0xba0] sm:$0x10] }
 0x221   :  { %4654 = vmatpush.bf16.msrb.mxu2 %v2669_v48  ;;  %4823 = vmatpush.bf16.msrb.mxu3 %v2708_v30  ;;  %11191 = vtanh.f32 %v3488_v31  ;;  %v9599_v48 = vld [vmem:[%s16212_s0 + $0x870] sm:$0xf]  ;;  %v10663_v31 = vld [vmem:[%s16212_s0 + $0x8ac] sm:$0xf] }
 0x222   :  { %v10756_v30 = vld [vmem:[%s16212_s0 + $0xb8c] sm:$0x10] }
 0x223   :  { %v4137_v46 = vpop.f32.mrf.mxu2  ;;  %v4113_v62 = vpop.f32.mrf.mxu0  ;;  %4629 = vmatpush.bf16.msrb.mxu0 %v8784_v43  ;;  %4694 = vmatpush.bf16.msrb.mxu1 %v8804_v40  ;;  %v9600_v40 = vor.u32 %v10756_v30, %v9599_v48 }
 0x224   :  { %v11188_v58 = vpop.eup %11187  ;;  %v4138_v45 = vadd.f32 %v4137_v46, %v12882_v34  ;;  %v4306_v32 = vpop.f32.mrf.mxu3 }
 0x225   :  { %v4178_v37 = vpop.f32.mrf.mxu1  ;;  %v14067_v4 = vadd.f32 %v11188_v58, %v11186_v56  ;;  %v4307_v11 = vadd.f32 %v4306_v32, %v12882_v34  ;;  %4655 = vmatpush.bf16.msrb.mxu2 %v8792_v36  ;;  %4824 = vmatpush.bf16.msrb.mxu3 %v8844_v35  ;;  %v10757_v32 = vld [vmem:[%s16212_s0 + $0xb94] sm:$0x10]  ;;  %v9657_v36 = vld [vmem:[%s16212_s0 + $0xbc8] sm:$0x10]  ;;  %v9620_v35 = vor.u32 %v10658_v1, %v9617_v53 }
 0x226   :  { %v11190_v44 = vpop.eup %11189  ;;  %11193 = vtanh.f32 %v4138_v45  ;;  %v9608_v56 = vor.u32 %v10757_v32, %v9607_v59  ;;  %v9660_v46 = vor.u32 %v10663_v31, %v9657_v36  ;;  %v2675_v37 = vand.u32 %v9600_v40, %v11547_v5  ;;  %v10556_v59 = vld [vmem:[%s16212_s0 + $0x54c] sm:$0xf0]  ;;  %v10458_v31 = vld [vmem:[%s16212_s0 + $0x244] sm:$0xf] }
 0x227   :  { %v14080_v43 = vadd.f32 %v11190_v44, %v16242_v47  ;;  %11195 = vtanh.f32 %v4307_v11  ;;  %v11192_v62 = vpop.eup %11191  ;;  %v2690_v30 = vand.u32 %v9620_v35, %v11547_v5  ;;  %v8817_v36 = vld [vmem:[%s16212_s0 + $0x560] sm:$0xf0] }
 0x228   :  { %v2681_v40 = vand.u32 %v9608_v56, %v11547_v5  ;;  %v8807_v56 = vld [vmem:[%s16212_s0 + $0x238] sm:$0xf] }
 0x229   :  { %16243 = vst [vmem:[#allocation5_spill] sm:$0xff] %v14080_v43  ;;  %v8799_v43 = vld [vmem:[%s16212_s0 + $0x230] sm:$0xf] }
 0x22b   :  { %v4139_v58 = vpop.f32.mrf.mxu2  ;;  %v4163_v45 = vpop.f32.mrf.mxu0 }
 0x22c   :  { %v11194_v44 = vpop.eup %11193  ;;  %v4308_v47 = vpop.f32.mrf.mxu3  ;;  %v4164_v11 = vadd.f32 %v4163_v45, %v12882_v34  ;;  %v10557_v58 = vld [vmem:[%s16212_s0 + $0x554] sm:$0xf0]  ;;  %v10463_v45 = vld [vmem:[%s16212_s0 + $0x26c] sm:$0xf] }
 0x22d   :  { %v4228_v48 = vpop.f32.mrf.mxu1  ;;  %v11196_v32 = vpop.eup %11195  ;;  %v14106_v1 = vadd.f32 %v11194_v44, %v11192_v62  ;;  %v2720_v62 = vand.u32 %v9660_v46, %v11547_v5  ;;  %v8857_v46 = vld [vmem:[%s16212_s0 + $0x588] sm:$0xf0]  ;;  %v8820_v44 = vor.u32 %v10458_v31, %v8817_v36  ;;  %v8808_v47 = vor.u32 %v10557_v58, %v8807_v56  ;;  %v10758_v36 = vld [vmem:[%s16212_s0 + $0xb9c] sm:$0x10] }
 0x22e   :  { %v4229_v53 = vadd.f32 %v4228_v48, %v12882_v34  ;;  %v14117_v35 = vadd.f32 %v11196_v32, %v13280_v24  ;;  %11197 = vtanh.f32 %v4164_v11  ;;  %9969 = vmatmul.msk.bf16.vlgmr.msra.gmra.mxu0 %vm2246_vm2, %v13645_v55  ;;  %9974 = vmatmul.msk.bf16.vlgmr.msra.gmra.mxu1 %vm2246_vm2, %v13645_v55  ;;  %v8800_v24 = vor.u32 %v10556_v59, %v8799_v43  ;;  %v16245_v56 = vld [vmem:[#allocation6_spill] sm:$0xff] }
 0x22f   :  { %4680 = vmatpush.bf16.msra.mxu0 %v2675_v37  ;;  %4745 = vmatpush.bf16.msra.mxu1 %v2690_v30  ;;  %v8860_v43 = vor.u32 %v10463_v45, %v8857_v46  ;;  %v9633_v45 = vld [vmem:[%s16212_s0 + $0xbb0] sm:$0x10] }
 0x230   :  { %16244 = vst [vmem:[#allocation7_spill] sm:$0xff] %v14117_v35  ;;  %11199 = vtanh.f32 %v4229_v53  ;;  %9971 = vmatmul.msk.bf16.vlgmr.msra.gmra.mxu2 %vm2246_vm2, %v13645_v55  ;;  %9984 = vmatmul.msk.bf16.vlgmr.msra.gmra.mxu3 %vm2246_vm2, %v13645_v55 }
 0x231   :  { %4706 = vmatpush.bf16.msra.mxu2 %v2681_v40  ;;  %4875 = vmatpush.bf16.msra.mxu3 %v2720_v62  ;;  %v9615_v40 = vld [vmem:[%s16212_s0 + $0x880] sm:$0xf]  ;;  %v9623_v62 = vld [vmem:[%s16212_s0 + $0x888] sm:$0xf] }
 0x232   :  { %v9616_v46 = vor.u32 %v10758_v36, %v9615_v40 }
 0x233   :  { %v4189_v37 = vpop.f32.mrf.mxu2  ;;  %v4165_v11 = vpop.f32.mrf.mxu0  ;;  %4681 = vmatpush.bf16.msra.mxu0 %v8800_v24  ;;  %4746 = vmatpush.bf16.msra.mxu1 %v8820_v44  ;;  %v10660_v24 = vld [vmem:[%s16212_s0 + $0x894] sm:$0xf]  ;;  %v9673_v44 = vld [vmem:[%s16212_s0 + $0xbd8] sm:$0x10] }
 0x234   :  { %v11198_v48 = vpop.eup %11197  ;;  %v4190_v59 = vadd.f32 %v4189_v37, %v12882_v34  ;;  %v4358_v32 = vpop.f32.mrf.mxu3 }
 0x235   :  { %v4230_v53 = vpop.f32.mrf.mxu1  ;;  %v14142_v30 = vadd.f32 %v11198_v48, %v13150_v54  ;;  %v4359_v31 = vadd.f32 %v4358_v32, %v12882_v34  ;;  %4707 = vmatpush.bf16.msra.mxu2 %v8808_v47  ;;  %4876 = vmatpush.bf16.msra.mxu3 %v8860_v43  ;;  %v10759_v54 = vld [vmem:[%s16212_s0 + $0xba4] sm:$0x10]  ;;  %v9636_v47 = vor.u32 %v10660_v24, %v9633_v45 }
 0x236   :  { %v11200_v35 = vpop.eup %11199  ;;  %11201 = vtanh.f32 %v4190_v59  ;;  %v9624_v43 = vor.u32 %v10759_v54, %v9623_v62  ;;  %v2687_v59 = vand.u32 %v9616_v46, %v11547_v5  ;;  %v10558_v62 = vld [vmem:[%s16212_s0 + $0x55c] sm:$0xf0] }
 0x237   :  { %v14155_v58 = vadd.f32 %v11200_v35, %v16245_v56  ;;  %11203 = vtanh.f32 %v4359_v31  ;;  %v10665_v35 = vld [vmem:[%s16212_s0 + $0x8bc] sm:$0xf]  ;;  %v2702_v36 = vand.u32 %v9636_v47, %v11547_v5  ;;  %v8815_v56 = vld [vmem:[%s16212_s0 + $0x240] sm:$0xf] }
 0x238   :  { %v9676_v37 = vor.u32 %v10665_v35, %v9673_v44  ;;  %v2693_v46 = vand.u32 %v9624_v43, %v11547_v5  ;;  %v10460_v35 = vld [vmem:[%s16212_s0 + $0x254] sm:$0xf]  ;;  %v8823_v43 = vld [vmem:[%s16212_s0 + $0x248] sm:$0xf] }
 0x239   :  { %v8833_v44 = vld [vmem:[%s16212_s0 + $0x570] sm:$0xf0] }
 0x23b   :  { %v4191_v11 = vpop.f32.mrf.mxu2  ;;  %v4215_v48 = vpop.f32.mrf.mxu0 }
 0x23c   :  { %v11202_v32 = vpop.eup %11201  ;;  %v4360_v53 = vpop.f32.mrf.mxu3  ;;  %v4216_v31 = vadd.f32 %v4215_v48, %v12882_v34  ;;  %v10559_v11 = vld [vmem:[%s16212_s0 + $0x564] sm:$0xf0]  ;;  %v10465_v48 = vld [vmem:[%s16212_s0 + $0x27c] sm:$0xf] }
 0x23d   :  { %v4280_v40 = vpop.f32.mrf.mxu1  ;;  %v11204_v54 = vpop.eup %11203  ;;  %v14182_v24 = vadd.f32 %v11202_v32, %v13188_v29  ;;  %v2732_v29 = vand.u32 %v9676_v37, %v11547_v5  ;;  %v8873_v37 = vld [vmem:[%s16212_s0 + $0x598] sm:$0xf0]  ;;  %v14215_v32 = vld [vmem:[%s16213_s1] sm:$0x7] }
 0x23e   :  { %v4281_v45 = vadd.f32 %v4280_v40, %v12882_v34  ;;  %v14193_v47 = vadd.f32 %v11204_v54, %v13360_v15  ;;  %11205 = vtanh.f32 %v4216_v31  ;;  %9973 = vmatmul.msk.bf16.vlgmr.msrb.gmra.mxu0 %vm2246_vm2, %v13645_v55  ;;  %9978 = vmatmul.msk.bf16.vlgmr.msrb.gmra.mxu1 %vm2246_vm2, %v13645_v55  ;;  %v8816_v15 = vor.u32 %v10558_v62, %v8815_v56 }
 0x23f   :  { %4732 = vmatpush.bf16.msrb.mxu0 %v2687_v59  ;;  %4797 = vmatpush.bf16.msrb.mxu1 %v2702_v36  ;;  %v8836_v55 = vor.u32 %v10460_v35, %v8833_v44  ;;  %v8824_v59 = vor.u32 %v10559_v11, %v8823_v43  ;;  %v8876_v53 = vor.u32 %v10465_v48, %v8873_v37  ;;  %v10760_v44 = vld [vmem:[%s16212_s0 + $0xbac] sm:$0x10]  ;;  %v16247_v43 = vld [vmem:[#allocation9_spill] sm:$0xff]  ;;  %v9649_v48 = vld [vmem:[%s16212_s0 + $0xbc0] sm:$0x10] }
 0x240   :  { %16246 = vst [vmem:[#allocation8_spill] sm:$0xff] %v14193_v47  ;;  %11207 = vtanh.f32 %v4281_v45  ;;  %9975 = vmatmul.msk.bf16.vlgmr.msrb.gmra.mxu2 %vm2246_vm2, %v14215_v32  ;;  %9988 = vmatmul.msk.bf16.vlgmr.msrb.gmra.mxu3 %vm2246_vm2, %v14215_v32 }
 0x241   :  { %4758 = vmatpush.bf16.msrb.mxu2 %v2693_v46  ;;  %4927 = vmatpush.bf16.msrb.mxu3 %v2732_v29  ;;  %v9631_v46 = vld [vmem:[%s16212_s0 + $0x890] sm:$0xf]  ;;  %v9639_v29 = vld [vmem:[%s16212_s0 + $0x898] sm:$0xf] }
 0x242   :  { %v9632_v37 = vor.u32 %v10760_v44, %v9631_v46 }
 0x243   :  { %v4241_v31 = vpop.f32.mrf.mxu2  ;;  %v4217_v40 = vpop.f32.mrf.mxu0  ;;  %4733 = vmatpush.bf16.msrb.mxu0 %v8816_v15  ;;  %4798 = vmatpush.bf16.msrb.mxu1 %v8836_v55  ;;  %v10662_v15 = vld [vmem:[%s16212_s0 + $0x8a4] sm:$0xf]  ;;  %v9689_v55 = vld [vmem:[%s16212_s0 + $0xbe8] sm:$0x10] }
 0x244   :  { %v11206_v56 = vpop.eup %11205  ;;  %v4242_v62 = vadd.f32 %v4241_v31, %v12882_v34  ;;  %v4410_v54 = vpop.f32.mrf.mxu3 }
 0x245   :  { %v4282_v45 = vpop.f32.mrf.mxu1  ;;  %v14223_v36 = vadd.f32 %v11206_v56, %v13230_v16  ;;  %v4411_v35 = vadd.f32 %v4410_v54, %v12882_v34  ;;  %4759 = vmatpush.bf16.msrb.mxu2 %v8824_v59  ;;  %4928 = vmatpush.bf16.msrb.mxu3 %v8876_v53  ;;  %v10761_v16 = vld [vmem:[%s16212_s0 + $0xbb4] sm:$0x10]  ;;  %v9652_v59 = vor.u32 %v10662_v15, %v9649_v48 }
 0x246   :  { %v11208_v47 = vpop.eup %11207  ;;  %11209 = vtanh.f32 %v4242_v62  ;;  %v9640_v53 = vor.u32 %v10761_v16, %v9639_v29  ;;  %v2699_v62 = vand.u32 %v9632_v37, %v11547_v5  ;;  %v10560_v29 = vld [vmem:[%s16212_s0 + $0x56c] sm:$0xf0] }
 0x247   :  { %v14236_v11 = vadd.f32 %v11208_v47, %v16247_v43  ;;  %11211 = vtanh.f32 %v4411_v35  ;;  %v10667_v47 = vld [vmem:[%s16212_s0 + $0x8cc] sm:$0xf]  ;;  %v2714_v44 = vand.u32 %v9652_v59, %v11547_v5  ;;  %v8831_v43 = vld [vmem:[%s16212_s0 + $0x250] sm:$0xf] }
 0x248   :  { %v9692_v31 = vor.u32 %v10667_v47, %v9689_v55  ;;  %v2705_v37 = vand.u32 %v9640_v53, %v11547_v5  ;;  %v10462_v47 = vld [vmem:[%s16212_s0 + $0x264] sm:$0xf]  ;;  %v8839_v53 = vld [vmem:[%s16212_s0 + $0x258] sm:$0xf] }
 0x249   :  { %v8849_v55 = vld [vmem:[%s16212_s0 + $0x580] sm:$0xf0] }
 0x24b   :  { %v4243_v40 = vpop.f32.mrf.mxu2  ;;  %v4267_v56 = vpop.f32.mrf.mxu0 }
 0x24c   :  { %v11210_v54 = vpop.eup %11209  ;;  %v4412_v45 = vpop.f32.mrf.mxu3  ;;  %v4268_v35 = vadd.f32 %v4267_v56, %v12882_v34  ;;  %v10561_v40 = vld [vmem:[%s16212_s0 + $0x574] sm:$0xf0]  ;;  %v10467_v56 = vld [vmem:[%s16212_s0 + $0x28c] sm:$0xf] }
 0x24d   :  { %v4332_v46 = vpop.f32.mrf.mxu1  ;;  %v11212_v16 = vpop.eup %11211  ;;  %v14263_v15 = vadd.f32 %v11210_v54, %v13268_v52  ;;  %v2744_v52 = vand.u32 %v9692_v31, %v11547_v5  ;;  %v8889_v31 = vld [vmem:[%s16212_s0 + $0x5a8] sm:$0xf0]  ;;  %v8852_v54 = vor.u32 %v10462_v47, %v8849_v55  ;;  %v8840_v45 = vor.u32 %v10561_v40, %v8839_v53  ;;  %v10762_v55 = vld [vmem:[%s16212_s0 + $0xbbc] sm:$0x10]  ;;  %v10664_v40 = vld [vmem:[%s16212_s0 + $0x8b4] sm:$0xf] }
 0x24e   :  { %v4333_v48 = vadd.f32 %v4332_v46, %v12882_v34  ;;  %v14274_v59 = vadd.f32 %v11212_v16, %v13440_v41  ;;  %11213 = vtanh.f32 %v4268_v35  ;;  %9977 = vmatmul.msk.bf16.vlgmr.msra.gmra.mxu0 %vm2246_vm2, %v14215_v32  ;;  %9982 = vmatmul.msk.bf16.vlgmr.msra.gmra.mxu1 %vm2246_vm2, %v14215_v32  ;;  %v8832_v41 = vor.u32 %v10560_v29, %v8831_v43 }
 0x24f   :  { %4784 = vmatpush.bf16.msra.mxu0 %v2699_v62  ;;  %4849 = vmatpush.bf16.msra.mxu1 %v2714_v44  ;;  %v8892_v62 = vor.u32 %v10467_v56, %v8889_v31 }
 0x250   :  { %16248 = vst [vmem:[#allocation3_spill] sm:$0xff] %v14274_v59  ;;  %11215 = vtanh.f32 %v4333_v48  ;;  %9979 = vmatmul.msk.bf16.vlgmr.msra.gmra.mxu2 %vm2246_vm2, %v14215_v32  ;;  %9992 = vmatmul.msk.bf16.vlgmr.msra.gmra.mxu3 %vm2246_vm2, %v14215_v32 }
 0x251   :  { %4810 = vmatpush.bf16.msra.mxu2 %v2705_v37  ;;  %4979 = vmatpush.bf16.msra.mxu3 %v2744_v52  ;;  %v9647_v37 = vld [vmem:[%s16212_s0 + $0x8a0] sm:$0xf]  ;;  %v9655_v52 = vld [vmem:[%s16212_s0 + $0x8a8] sm:$0xf] }
 0x252   :  { %v9648_v56 = vor.u32 %v10762_v55, %v9647_v37  ;;  %v8847_v37 = vld [vmem:[%s16212_s0 + $0x260] sm:$0xf] }
 0x253   :  { %v4293_v35 = vpop.f32.mrf.mxu2  ;;  %v4269_v46 = vpop.f32.mrf.mxu0  ;;  %4785 = vmatpush.bf16.msra.mxu0 %v8832_v41  ;;  %4850 = vmatpush.bf16.msra.mxu1 %v8852_v54  ;;  %v9665_v41 = vld [vmem:[%s16212_s0 + $0xbd0] sm:$0x10]  ;;  %v10562_v55 = vld [vmem:[%s16212_s0 + $0x57c] sm:$0xf0] }
 0x254   :  { %v11214_v43 = vpop.eup %11213  ;;  %v4294_v29 = vadd.f32 %v4293_v35, %v12882_v34  ;;  %v4462_v16 = vpop.f32.mrf.mxu3  ;;  %v9668_v31 = vor.u32 %v10664_v40, %v9665_v41  ;;  %v2711_v46 = vand.u32 %v9648_v56, %v11547_v5  ;;  %v10464_v56 = vld [vmem:[%s16212_s0 + $0x274] sm:$0xf] }
 0x255   :  { %v4334_v48 = vpop.f32.mrf.mxu1  ;;  %v14299_v44 = vadd.f32 %v11214_v43, %v13310_v61  ;;  %v4463_v47 = vadd.f32 %v4462_v16, %v12882_v34  ;;  %4811 = vmatpush.bf16.msra.mxu2 %v8840_v45  ;;  %4980 = vmatpush.bf16.msra.mxu3 %v8892_v62  ;;  %v10763_v61 = vld [vmem:[%s16212_s0 + $0xbc4] sm:$0x10] }
 0x256   :  { %v11216_v59 = vpop.eup %11215  ;;  %11217 = vtanh.f32 %v4294_v29  ;;  %v9656_v54 = vor.u32 %v10763_v61, %v9655_v52 }
 0x257   :  { %v14312_v53 = vadd.f32 %v11216_v59, %v13160_v51  ;;  %11219 = vtanh.f32 %v4463_v47  ;;  %v10669_v51 = vld [vmem:[%s16212_s0 + $0x8dc] sm:$0xf]  ;;  %v2726_v47 = vand.u32 %v9668_v31, %v11547_v5  ;;  %v8855_v31 = vld [vmem:[%s16212_s0 + $0x268] sm:$0xf] }
 0x258   :  { %v9705_v59 = vld [vmem:[%s16212_s0 + $0xbf8] sm:$0x10]  ;;  %v2717_v41 = vand.u32 %v9656_v54, %v11547_v5  ;;  %v10563_v54 = vld [vmem:[%s16212_s0 + $0x584] sm:$0xf0] }
 0x259   :  { %v9708_v45 = vor.u32 %v10669_v51, %v9705_v59  ;;  %v8865_v51 = vld [vmem:[%s16212_s0 + $0x590] sm:$0xf0] }
 0x25b   :  { %v4295_v62 = vpop.f32.mrf.mxu2  ;;  %v4319_v35 = vpop.f32.mrf.mxu0 }
 0x25c   :  { %v11218_v43 = vpop.eup %11217  ;;  %v4464_v29 = vpop.f32.mrf.mxu3  ;;  %v4320_v16 = vadd.f32 %v4319_v35, %v12882_v34  ;;  %v10469_v62 = vld [vmem:[%s16212_s0 + $0x29c] sm:$0xf]  ;;  %v8868_v35 = vor.u32 %v10464_v56, %v8865_v51  ;;  %v10764_v51 = vld [vmem:[%s16212_s0 + $0xbcc] sm:$0x10] }
 0x25d   :  { %v4384_v48 = vpop.f32.mrf.mxu1  ;;  %v11220_v52 = vpop.eup %11219  ;;  %v14339_v61 = vadd.f32 %v11218_v43, %v13348_v27  ;;  %v2756_v27 = vand.u32 %v9708_v45, %v11547_v5  ;;  %v8905_v45 = vld [vmem:[%s16212_s0 + $0x5b8] sm:$0xf0]  ;;  %v8856_v43 = vor.u32 %v10563_v54, %v8855_v31  ;;  %v10666_v54 = vld [vmem:[%s16212_s0 + $0x8c4] sm:$0xf] }
 0x25e   :  { %v4385_v40 = vadd.f32 %v4384_v48, %v12882_v34  ;;  %v14350_v59 = vadd.f32 %v11220_v52, %v13520_v9  ;;  %11221 = vtanh.f32 %v4320_v16  ;;  %9981 = vmatmul.msk.bf16.vlgmr.msrb.gmra.mxu0 %vm2246_vm2, %v14215_v32  ;;  %9986 = vmatmul.msk.bf16.vlgmr.msrb.gmra.mxu1 %vm2246_vm2, %v14215_v32  ;;  %v8848_v9 = vor.u32 %v10562_v55, %v8847_v37 }
 0x25f   :  { %4836 = vmatpush.bf16.msrb.mxu0 %v2711_v46  ;;  %4901 = vmatpush.bf16.msrb.mxu1 %v2726_v47  ;;  %v8908_v46 = vor.u32 %v10469_v62, %v8905_v45  ;;  %v9721_v45 = vld [vmem:[%s16212_s0 + $0xc08] sm:$0x10] }
 0x260   :  { %11223 = vtanh.f32 %v4385_v40  ;;  %9983 = vmatmul.msk.bf16.vlgmr.msrb.gmra.mxu2 %vm2246_vm2, %v14215_v32  ;;  %9996 = vmatmul.msk.bf16.vlgmr.msrb.gmra.mxu3 %vm2246_vm2, %v14215_v32 }
 0x261   :  { %4862 = vmatpush.bf16.msrb.mxu2 %v2717_v41  ;;  %5031 = vmatpush.bf16.msrb.mxu3 %v2756_v27  ;;  %v9663_v41 = vld [vmem:[%s16212_s0 + $0x8b0] sm:$0xf]  ;;  %v9671_v27 = vld [vmem:[%s16212_s0 + $0x8b8] sm:$0xf] }
 0x262   :  { %v9664_v62 = vor.u32 %v10764_v51, %v9663_v41  ;;  %v8863_v41 = vld [vmem:[%s16212_s0 + $0x270] sm:$0xf] }
 0x263   :  { %v4345_v29 = vpop.f32.mrf.mxu2  ;;  %v4321_v16 = vpop.f32.mrf.mxu0  ;;  %4837 = vmatpush.bf16.msrb.mxu0 %v8848_v9  ;;  %4902 = vmatpush.bf16.msrb.mxu1 %v8868_v35  ;;  %v9681_v9 = vld [vmem:[%s16212_s0 + $0xbe0] sm:$0x10]  ;;  %v10564_v51 = vld [vmem:[%s16212_s0 + $0x58c] sm:$0xf0] }
 0x264   :  { %v11222_v48 = vpop.eup %11221  ;;  %v4346_v37 = vadd.f32 %v4345_v29, %v12882_v34  ;;  %v4514_v55 = vpop.f32.mrf.mxu3  ;;  %v9684_v35 = vor.u32 %v10666_v54, %v9681_v9 }
 0x265   :  { %v4386_v52 = vpop.f32.mrf.mxu1  ;;  %v14375_v47 = vadd.f32 %v11222_v48, %v13390_v38  ;;  %v4515_v56 = vadd.f32 %v4514_v55, %v12882_v34  ;;  %4863 = vmatpush.bf16.msrb.mxu2 %v8856_v43  ;;  %5032 = vmatpush.bf16.msrb.mxu3 %v8908_v46  ;;  %v10765_v38 = vld [vmem:[%s16212_s0 + $0xbd4] sm:$0x10]  ;;  %v2723_v48 = vand.u32 %v9664_v62, %v11547_v5  ;;  %v10466_v62 = vld [vmem:[%s16212_s0 + $0x284] sm:$0xf] }
 0x266   :  { %v11224_v40 = vpop.eup %11223  ;;  %11225 = vtanh.f32 %v4346_v37  ;;  %v9672_v43 = vor.u32 %v10765_v38, %v9671_v27 }
 0x267   :  { %v14388_v31 = vadd.f32 %v11224_v40, %v13240_v20  ;;  %11227 = vtanh.f32 %v4515_v56  ;;  %v10671_v20 = vld [vmem:[%s16212_s0 + $0x8ec] sm:$0xf]  ;;  %v2738_v56 = vand.u32 %v9684_v35, %v11547_v5  ;;  %v8871_v35 = vld [vmem:[%s16212_s0 + $0x278] sm:$0xf] }
 0x268   :  { %v9724_v46 = vor.u32 %v10671_v20, %v9721_v45  ;;  %v2729_v9 = vand.u32 %v9672_v43, %v11547_v5  ;;  %v8881_v20 = vld [vmem:[%s16212_s0 + $0x5a0] sm:$0xf0]  ;;  %v10565_v43 = vld [vmem:[%s16212_s0 + $0x594] sm:$0xf0] }
 0x26b   :  { %v4347_v29 = vpop.f32.mrf.mxu2  ;;  %v4371_v16 = vpop.f32.mrf.mxu0 }
 0x26c   :  { %v11226_v37 = vpop.eup %11225  ;;  %v4516_v55 = vpop.f32.mrf.mxu3  ;;  %v4372_v52 = vadd.f32 %v4371_v16, %v12882_v34  ;;  %v10471_v29 = vld [vmem:[%s16212_s0 + $0x2ac] sm:$0xf]  ;;  %v8884_v16 = vor.u32 %v10466_v62, %v8881_v20  ;;  %v10766_v20 = vld [vmem:[%s16212_s0 + $0xbdc] sm:$0x10] }
 0x26d   :  { %v4436_v40 = vpop.f32.mrf.mxu1  ;;  %v11228_v27 = vpop.eup %11227  ;;  %v14415_v38 = vadd.f32 %v11226_v37, %v13428_v50  ;;  %v2768_v50 = vand.u32 %v9724_v46, %v11547_v5  ;;  %v8921_v46 = vld [vmem:[%s16212_s0 + $0x5c8] sm:$0xf0]  ;;  %v8872_v37 = vor.u32 %v10565_v43, %v8871_v35  ;;  %v10668_v43 = vld [vmem:[%s16212_s0 + $0x8d4] sm:$0xf] }
 0x26e   :  { %v4437_v54 = vadd.f32 %v4436_v40, %v12882_v34  ;;  %v14426_v45 = vadd.f32 %v11228_v27, %v13600_v17  ;;  %11229 = vtanh.f32 %v4372_v52  ;;  %9985 = vmatmul.msk.bf16.vlgmr.msra.gmra.mxu0 %vm2246_vm2, %v14215_v32  ;;  %9990 = vmatmul.msk.bf16.vlgmr.msra.gmra.mxu1 %vm2246_vm2, %v14215_v32  ;;  %v8864_v17 = vor.u32 %v10564_v51, %v8863_v41 }
 0x26f   :  { %4888 = vmatpush.bf16.msra.mxu0 %v2723_v48  ;;  %4953 = vmatpush.bf16.msra.mxu1 %v2738_v56  ;;  %v8924_v48 = vor.u32 %v10471_v29, %v8921_v46  ;;  %v9737_v46 = vld [vmem:[%s16212_s0 + $0xc18] sm:$0x10] }
 0x270   :  { %11231 = vtanh.f32 %v4437_v54  ;;  %9987 = vmatmul.msk.bf16.vlgmr.msra.gmra.mxu2 %vm2246_vm2, %v14215_v32  ;;  %10000 = vmatmul.msk.bf16.vlgmr.msra.gmra.mxu3 %vm2246_vm2, %v14215_v32 }
 0x271   :  { %4914 = vmatpush.bf16.msra.mxu2 %v2729_v9  ;;  %5083 = vmatpush.bf16.msra.mxu3 %v2768_v50  ;;  %v9679_v9 = vld [vmem:[%s16212_s0 + $0x8c0] sm:$0xf]  ;;  %v9687_v50 = vld [vmem:[%s16212_s0 + $0x8c8] sm:$0xf] }
 0x272   :  { %v9680_v29 = vor.u32 %v10766_v20, %v9679_v9  ;;  %v8879_v9 = vld [vmem:[%s16212_s0 + $0x280] sm:$0xf] }
 0x273   :  { %v4397_v55 = vpop.f32.mrf.mxu2  ;;  %v4373_v52 = vpop.f32.mrf.mxu0  ;;  %4889 = vmatpush.bf16.msra.mxu0 %v8864_v17  ;;  %4954 = vmatpush.bf16.msra.mxu1 %v8884_v16  ;;  %v9697_v17 = vld [vmem:[%s16212_s0 + $0xbf0] sm:$0x10]  ;;  %v10566_v20 = vld [vmem:[%s16212_s0 + $0x59c] sm:$0xf0] }
 0x274   :  { %v11230_v40 = vpop.eup %11229  ;;  %v4398_v41 = vadd.f32 %v4397_v55, %v12882_v34  ;;  %v4566_v51 = vpop.f32.mrf.mxu3  ;;  %v9700_v16 = vor.u32 %v10668_v43, %v9697_v17 }
 0x275   :  { %v4438_v27 = vpop.f32.mrf.mxu1  ;;  %v14451_v56 = vadd.f32 %v11230_v40, %v13470_v23  ;;  %v4567_v62 = vadd.f32 %v4566_v51, %v12882_v34  ;;  %4915 = vmatpush.bf16.msra.mxu2 %v8872_v37  ;;  %5084 = vmatpush.bf16.msra.mxu3 %v8924_v48  ;;  %v10767_v23 = vld [vmem:[%s16212_s0 + $0xbe4] sm:$0x10]  ;;  %v2735_v40 = vand.u32 %v9680_v29, %v11547_v5  ;;  %v10468_v29 = vld [vmem:[%s16212_s0 + $0x294] sm:$0xf] }
 0x276   :  { %v11232_v54 = vpop.eup %11231  ;;  %11233 = vtanh.f32 %v4398_v41  ;;  %v9688_v37 = vor.u32 %v10767_v23, %v9687_v50 }
 0x277   :  { %v14464_v35 = vadd.f32 %v11232_v54, %v13320_v26  ;;  %11235 = vtanh.f32 %v4567_v62  ;;  %v10673_v26 = vld [vmem:[%s16212_s0 + $0x8fc] sm:$0xf]  ;;  %v2750_v62 = vand.u32 %v9700_v16, %v11547_v5  ;;  %v8887_v16 = vld [vmem:[%s16212_s0 + $0x288] sm:$0xf] }
 0x278   :  { %v9740_v48 = vor.u32 %v10673_v26, %v9737_v46  ;;  %v2741_v17 = vand.u32 %v9688_v37, %v11547_v5  ;;  %v8897_v26 = vld [vmem:[%s16212_s0 + $0x5b0] sm:$0xf0]  ;;  %v10567_v37 = vld [vmem:[%s16212_s0 + $0x5a4] sm:$0xf0] }
 0x27b   :  { %v4399_v55 = vpop.f32.mrf.mxu2  ;;  %v4423_v52 = vpop.f32.mrf.mxu0 }
 0x27c   :  { %v11234_v41 = vpop.eup %11233  ;;  %v4568_v51 = vpop.f32.mrf.mxu3  ;;  %v4424_v27 = vadd.f32 %v4423_v52, %v12882_v34  ;;  %v10473_v55 = vld [vmem:[%s16212_s0 + $0x2bc] sm:$0xf]  ;;  %v8900_v52 = vor.u32 %v10468_v29, %v8897_v26  ;;  %v10768_v26 = vld [vmem:[%s16212_s0 + $0xbec] sm:$0x10] }
 0x27d   :  { %v4488_v54 = vpop.f32.mrf.mxu1  ;;  %v11236_v50 = vpop.eup %11235  ;;  %v14491_v23 = vadd.f32 %v11234_v41, %v13508_v19  ;;  %v2780_v19 = vand.u32 %v9740_v48, %v11547_v5  ;;  %v8937_v48 = vld [vmem:[%s16212_s0 + $0x5d8] sm:$0xf0]  ;;  %v8888_v41 = vor.u32 %v10567_v37, %v8887_v16  ;;  %v10670_v37 = vld [vmem:[%s16212_s0 + $0x8e4] sm:$0xf] }
 0x27e   :  { %v4489_v43 = vadd.f32 %v4488_v54, %v12882_v34  ;;  %v14502_v46 = vadd.f32 %v11236_v50, %v13685_v28  ;;  %11237 = vtanh.f32 %v4424_v27  ;;  %9989 = vmatmul.msk.bf16.vlgmr.msrb.gmra.mxu0 %vm2246_vm2, %v14215_v32  ;;  %9994 = vmatmul.msk.bf16.vlgmr.msrb.gmra.mxu1 %vm2246_vm2, %v14215_v32  ;;  %v8880_v28 = vor.u32 %v10566_v20, %v8879_v9 }
 0x27f   :  { %4940 = vmatpush.bf16.msrb.mxu0 %v2735_v40  ;;  %5005 = vmatpush.bf16.msrb.mxu1 %v2750_v62  ;;  %v8940_v40 = vor.u32 %v10473_v55, %v8937_v48  ;;  %v9753_v48 = vld [vmem:[%s16212_s0 + $0xc28] sm:$0x10] }
 0x280   :  { %11239 = vtanh.f32 %v4489_v43  ;;  %9991 = vmatmul.msk.bf16.vlgmr.msrb.gmra.mxu2 %vm2246_vm2, %v14215_v32  ;;  %10004 = vmatmul.msk.bf16.vlgmr.msrb.gmra.mxu3 %vm2246_vm2, %v14215_v32 }
 0x281   :  { %4966 = vmatpush.bf16.msrb.mxu2 %v2741_v17  ;;  %5135 = vmatpush.bf16.msrb.mxu3 %v2780_v19  ;;  %v9695_v17 = vld [vmem:[%s16212_s0 + $0x8d0] sm:$0xf]  ;;  %v9703_v19 = vld [vmem:[%s16212_s0 + $0x8d8] sm:$0xf] }
 0x282   :  { %v9696_v55 = vor.u32 %v10768_v26, %v9695_v17  ;;  %v8895_v17 = vld [vmem:[%s16212_s0 + $0x290] sm:$0xf] }
 0x283   :  { %v4449_v51 = vpop.f32.mrf.mxu2  ;;  %v4425_v27 = vpop.f32.mrf.mxu0  ;;  %4941 = vmatpush.bf16.msrb.mxu0 %v8880_v28  ;;  %5006 = vmatpush.bf16.msrb.mxu1 %v8900_v52  ;;  %v9713_v28 = vld [vmem:[%s16212_s0 + $0xc00] sm:$0x10]  ;;  %v10568_v26 = vld [vmem:[%s16212_s0 + $0x5ac] sm:$0xf0] }
 0x284   :  { %v11238_v54 = vpop.eup %11237  ;;  %v4450_v9 = vadd.f32 %v4449_v51, %v12882_v34  ;;  %v4618_v20 = vpop.f32.mrf.mxu3  ;;  %v9716_v52 = vor.u32 %v10670_v37, %v9713_v28 }
 0x285   :  { %v4490_v50 = vpop.f32.mrf.mxu1  ;;  %v14527_v62 = vadd.f32 %v11238_v54, %v13550_v10  ;;  %v4619_v29 = vadd.f32 %v4618_v20, %v12882_v34  ;;  %4967 = vmatpush.bf16.msrb.mxu2 %v8888_v41  ;;  %5136 = vmatpush.bf16.msrb.mxu3 %v8940_v40  ;;  %v10769_v10 = vld [vmem:[%s16212_s0 + $0xbf4] sm:$0x10]  ;;  %v2747_v54 = vand.u32 %v9696_v55, %v11547_v5  ;;  %v10470_v55 = vld [vmem:[%s16212_s0 + $0x2a4] sm:$0xf] }
 0x286   :  { %v11240_v43 = vpop.eup %11239  ;;  %11241 = vtanh.f32 %v4450_v9  ;;  %v9704_v41 = vor.u32 %v10769_v10, %v9703_v19 }
 0x287   :  { %v14540_v16 = vadd.f32 %v11240_v43, %v13400_v13  ;;  %11243 = vtanh.f32 %v4619_v29  ;;  %v10675_v13 = vld [vmem:[%s16212_s0 + $0x90c] sm:$0xf]  ;;  %v2762_v29 = vand.u32 %v9716_v52, %v11547_v5  ;;  %v8903_v52 = vld [vmem:[%s16212_s0 + $0x298] sm:$0xf] }
 0x288   :  { %v9756_v40 = vor.u32 %v10675_v13, %v9753_v48  ;;  %v2753_v28 = vand.u32 %v9704_v41, %v11547_v5  ;;  %v8913_v13 = vld [vmem:[%s16212_s0 + $0x5c0] sm:$0xf0]  ;;  %v10569_v41 = vld [vmem:[%s16212_s0 + $0x5b4] sm:$0xf0] }
 0x28b   :  { %v4451_v51 = vpop.f32.mrf.mxu2  ;;  %v4475_v27 = vpop.f32.mrf.mxu0 }
 0x28c   :  { %v11242_v9 = vpop.eup %11241  ;;  %v4620_v20 = vpop.f32.mrf.mxu3  ;;  %v4476_v50 = vadd.f32 %v4475_v27, %v12882_v34  ;;  %v10475_v51 = vld [vmem:[%s16212_s0 + $0x2cc] sm:$0xf]  ;;  %v8916_v27 = vor.u32 %v10470_v55, %v8913_v13  ;;  %v9711_v13 = vld [vmem:[%s16212_s0 + $0x8e0] sm:$0xf] }
 0x28d   :  { %v4540_v43 = vpop.f32.mrf.mxu1  ;;  %v11244_v19 = vpop.eup %11243  ;;  %v14567_v10 = vadd.f32 %v11242_v9, %v13588_v42  ;;  %v2792_v42 = vand.u32 %v9756_v40, %v11547_v5  ;;  %v8953_v40 = vld [vmem:[%s16212_s0 + $0x5e8] sm:$0xf0]  ;;  %v8904_v9 = vor.u32 %v10569_v41, %v8903_v52  ;;  %v7222_v20 = vld [vmem:[%s16215_s4] sm:$0xff]  ;;  %v9719_v52 = vld [vmem:[%s16212_s0 + $0x8e8] sm:$0xf] }
 0x28e   :  { %v4541_v37 = vadd.f32 %v4540_v43, %v12882_v34  ;;  %v14578_v48 = vadd.f32 %v11244_v19, %v13765_v21  ;;  %11245 = vtanh.f32 %v4476_v50  ;;  %9993 = vmatmul.msk.bf16.vlgmr.msra.gmra.mxu0 %vm2246_vm2, %v14215_v32  ;;  %9998 = vmatmul.msk.bf16.vlgmr.msra.gmra.mxu1 %vm2246_vm2, %v14215_v32  ;;  %v8896_v21 = vor.u32 %v10568_v26, %v8895_v17 }
 0x28f   :  { %4992 = vmatpush.bf16.msra.mxu0 %v2747_v54  ;;  %5057 = vmatpush.bf16.msra.mxu1 %v2762_v29  ;;  %v8956_v54 = vor.u32 %v10475_v51, %v8953_v40  ;;  %v9729_v51 = vld [vmem:[%s16212_s0 + $0xc10] sm:$0x10] }
 0x290   :  { %11247 = vtanh.f32 %v4541_v37  ;;  %9995 = vmatmul.msk.bf16.vlgmr.msra.gmra.mxu2 %vm2246_vm2, %v14215_v32  ;;  %10008 = vmatmul.msk.bf16.vlgmr.msra.gmra.mxu3 %vm2246_vm2, %v14215_v32 }
 0x291   :  { %5018 = vmatpush.bf16.msra.mxu2 %v2753_v28  ;;  %5187 = vmatpush.bf16.msra.mxu3 %v2792_v42  ;;  %v10770_v42 = vld [vmem:[%s16212_s0 + $0xbfc] sm:$0x10] }
 0x292   :  { %7226 = vperm.xlu0 %10866, %v7222_v20   ;;  %v9712_v40 = vor.u32 %v10770_v42, %v9711_v13  ;;  %v8911_v13 = vld [vmem:[%s16212_s0 + $0x2a0] sm:$0xf] }
 0x293   :  { %v4501_v50 = vpop.f32.mrf.mxu2  ;;  %v4477_v43 = vpop.f32.mrf.mxu0  ;;  %4993 = vmatpush.bf16.msra.mxu0 %v8896_v21  ;;  %5058 = vmatpush.bf16.msra.mxu1 %v8916_v27  ;;  %v10672_v21 = vld [vmem:[%s16212_s0 + $0x8f4] sm:$0xf]  ;;  %v9769_v27 = vld [vmem:[%s16212_s0 + $0xc38] sm:$0x10]  ;;  %v10570_v42 = vld [vmem:[%s16212_s0 + $0x5bc] sm:$0xf0] }
 0x294   :  { %v11246_v17 = vpop.eup %11245  ;;  %v4502_v26 = vadd.f32 %v4501_v50, %v12882_v34  ;;  %v4670_v29 = vpop.f32.mrf.mxu3 }
 0x295   :  { %v4542_v19 = vpop.f32.mrf.mxu1  ;;  %v14606_v28 = vadd.f32 %v11246_v17, %v13630_v22  ;;  %v4671_v55 = vadd.f32 %v4670_v29, %v12882_v34  ;;  %5019 = vmatpush.bf16.msra.mxu2 %v8904_v9  ;;  %5188 = vmatpush.bf16.msra.mxu3 %v8956_v54  ;;  %v10771_v22 = vld [vmem:[%s16212_s0 + $0xc04] sm:$0x10]  ;;  %v9732_v9 = vor.u32 %v10672_v21, %v9729_v51 }
 0x296   :  { %v11248_v37 = vpop.eup %11247  ;;  %11249 = vtanh.f32 %v4502_v26  ;;  %v9720_v54 = vor.u32 %v10771_v22, %v9719_v52  ;;  %v2759_v17 = vand.u32 %v9712_v40, %v11547_v5  ;;  %v10472_v40 = vld [vmem:[%s16212_s0 + $0x2b4] sm:$0xf] }
 0x297   :  { %v14619_v41 = vadd.f32 %v11248_v37, %v13480_v6  ;;  %11251 = vtanh.f32 %v4671_v55  ;;  %v10677_v6 = vld [vmem:[%s16212_s0 + $0x91c] sm:$0xf]  ;;  %v2774_v55 = vand.u32 %v9732_v9, %v11547_v5  ;;  %v8919_v9 = vld [vmem:[%s16212_s0 + $0x2a8] sm:$0xf] }
 0x298   :  { %v9772_v20 = vor.u32 %v10677_v6, %v9769_v27  ;;  %v2765_v51 = vand.u32 %v9720_v54, %v11547_v5  ;;  %v8929_v6 = vld [vmem:[%s16212_s0 + $0x5d0] sm:$0xf0]  ;;  %v10571_v54 = vld [vmem:[%s16212_s0 + $0x5c4] sm:$0xf0] }
 0x29b   :  { %v4503_v50 = vpop.f32.mrf.mxu2  ;;  %v4527_v43 = vpop.f32.mrf.mxu0 }
 0x29c   :  { %v11250_v26 = vpop.eup %11249  ;;  %v4672_v29 = vpop.f32.mrf.mxu3  ;;  %v4528_v19 = vadd.f32 %v4527_v43, %v12882_v34  ;;  %v10477_v50 = vld [vmem:[%s16212_s0 + $0x2dc] sm:$0xf]  ;;  %v8932_v43 = vor.u32 %v10472_v40, %v8929_v6  ;;  %v10772_v6 = vld [vmem:[%s16212_s0 + $0xc0c] sm:$0x10] }
 0x29d   :  { %v4592_v37 = vpop.f32.mrf.mxu1  ;;  %v11252_v52 = vpop.eup %11251  ;;  %v14646_v22 = vadd.f32 %v11250_v26, %v13673_v0  ;;  %v2804_v0 = vand.u32 %v9772_v20, %v11547_v5  ;;  %v8969_v20 = vld [vmem:[%s16212_s0 + $0x5f8] sm:$0xf0]  ;;  %v8920_v26 = vor.u32 %v10571_v54, %v8919_v9  ;;  %v10674_v54 = vld [vmem:[%s16212_s0 + $0x904] sm:$0xf] }
 0x29e   :  { %v4593_v21 = vadd.f32 %v4592_v37, %v12882_v34  ;;  %v14657_v27 = vadd.f32 %v11252_v52, %v13845_v12  ;;  %11253 = vtanh.f32 %v4528_v19  ;;  %9997 = vmatmul.msk.bf16.vlgmr.msrb.gmra.mxu0 %vm2246_vm2, %v14215_v32  ;;  %10002 = vmatmul.msk.bf16.vlgmr.msrb.gmra.mxu1 %vm2246_vm2, %v14215_v32  ;;  %v8912_v12 = vor.u32 %v10570_v42, %v8911_v13 }
 0x29f   :  { %5044 = vmatpush.bf16.msrb.mxu0 %v2759_v17  ;;  %5109 = vmatpush.bf16.msrb.mxu1 %v2774_v55  ;;  %v8972_v17 = vor.u32 %v10477_v50, %v8969_v20  ;;  %v9785_v20 = vld [vmem:[%s16212_s0 + $0xc48] sm:$0x10] }
 0x2a0   :  { %11255 = vtanh.f32 %v4593_v21  ;;  %9999 = vmatmul.msk.bf16.vlgmr.msrb.gmra.mxu2 %vm2246_vm2, %v14215_v32  ;;  %10012 = vmatmul.msk.bf16.vlgmr.msrb.gmra.mxu3 %vm2246_vm2, %v14215_v32 }
 0x2a1   :  { %5070 = vmatpush.bf16.msrb.mxu2 %v2765_v51  ;;  %5239 = vmatpush.bf16.msrb.mxu3 %v2804_v0  ;;  %v9727_v51 = vld [vmem:[%s16212_s0 + $0x8f0] sm:$0xf]  ;;  %v9735_v0 = vld [vmem:[%s16212_s0 + $0x8f8] sm:$0xf] }
 0x2a2   :  { %v9728_v50 = vor.u32 %v10772_v6, %v9727_v51  ;;  %v8927_v51 = vld [vmem:[%s16212_s0 + $0x2b0] sm:$0xf] }
 0x2a3   :  { %v4553_v29 = vpop.f32.mrf.mxu2  ;;  %v4529_v19 = vpop.f32.mrf.mxu0  ;;  %5045 = vmatpush.bf16.msrb.mxu0 %v8912_v12  ;;  %5110 = vmatpush.bf16.msrb.mxu1 %v8932_v43  ;;  %v9745_v12 = vld [vmem:[%s16212_s0 + $0xc20] sm:$0x10]  ;;  %v10572_v6 = vld [vmem:[%s16212_s0 + $0x5cc] sm:$0xf0] }
 0x2a4   :  { %v11254_v37 = vpop.eup %11253  ;;  %v4554_v13 = vadd.f32 %v4553_v29, %v12882_v34  ;;  %v4722_v42 = vpop.f32.mrf.mxu3  ;;  %v9748_v43 = vor.u32 %v10674_v54, %v9745_v12 }
 0x2a5   :  { %v4594_v52 = vpop.f32.mrf.mxu1  ;;  %v14682_v55 = vadd.f32 %v11254_v37, %v13715_v60  ;;  %v4723_v40 = vadd.f32 %v4722_v42, %v12882_v34  ;;  %5071 = vmatpush.bf16.msrb.mxu2 %v8920_v26  ;;  %5240 = vmatpush.bf16.msrb.mxu3 %v8972_v17  ;;  %v10773_v60 = vld [vmem:[%s16212_s0 + $0xc14] sm:$0x10]  ;;  %v2771_v37 = vand.u32 %v9728_v50, %v11547_v5  ;;  %v10474_v50 = vld [vmem:[%s16212_s0 + $0x2c4] sm:$0xf] }
 0x2a6   :  { %v11256_v21 = vpop.eup %11255  ;;  %11257 = vtanh.f32 %v4554_v13  ;;  %v9736_v26 = vor.u32 %v10773_v60, %v9735_v0 }
 0x2a7   :  { %v14695_v9 = vadd.f32 %v11256_v21, %v13560_v3  ;;  %11259 = vtanh.f32 %v4723_v40  ;;  %v10679_v3 = vld [vmem:[%s16212_s0 + $0x92c] sm:$0xf]  ;;  %v2786_v40 = vand.u32 %v9748_v43, %v11547_v5  ;;  %v8935_v43 = vld [vmem:[%s16212_s0 + $0x2b8] sm:$0xf] }
 0x2a8   :  { %v9788_v17 = vor.u32 %v10679_v3, %v9785_v20  ;;  %v2777_v12 = vand.u32 %v9736_v26, %v11547_v5  ;;  %v8945_v3 = vld [vmem:[%s16212_s0 + $0x5e0] sm:$0xf0]  ;;  %v10573_v26 = vld [vmem:[%s16212_s0 + $0x5d4] sm:$0xf0] }
 0x2ab   :  { %v4555_v29 = vpop.f32.mrf.mxu2  ;;  %v4579_v19 = vpop.f32.mrf.mxu0 }
 0x2ac   :  { %v11258_v13 = vpop.eup %11257  ;;  %v4724_v42 = vpop.f32.mrf.mxu3  ;;  %v4580_v52 = vadd.f32 %v4579_v19, %v12882_v34  ;;  %v10479_v29 = vld [vmem:[%s16212_s0 + $0x2ec] sm:$0xf]  ;;  %v8948_v19 = vor.u32 %v10474_v50, %v8945_v3  ;;  %v10774_v3 = vld [vmem:[%s16212_s0 + $0xc1c] sm:$0x10] }
 0x2ad   :  { %v4644_v21 = vpop.f32.mrf.mxu1  ;;  %v11260_v0 = vpop.eup %11259  ;;  %v14722_v60 = vadd.f32 %v11258_v13, %v13753_v49  ;;  %v2816_v49 = vand.u32 %v9788_v17, %v11547_v5  ;;  %v8985_v17 = vld [vmem:[%s16212_s0 + $0x608] sm:$0xf0]  ;;  %v8936_v13 = vor.u32 %v10573_v26, %v8935_v43  ;;  %v10676_v26 = vld [vmem:[%s16212_s0 + $0x914] sm:$0xf] }
 0x2ae   :  { %v4645_v54 = vadd.f32 %v4644_v21, %v12882_v34  ;;  %v14733_v20 = vadd.f32 %v11260_v0, %v13923_v33  ;;  %11261 = vtanh.f32 %v4580_v52  ;;  %10001 = vmatmul.msk.bf16.vlgmr.msra.gmra.mxu0 %vm2246_vm2, %v14215_v32  ;;  %10006 = vmatmul.msk.bf16.vlgmr.msra.gmra.mxu1 %vm2246_vm2, %v14215_v32  ;;  %v8928_v33 = vor.u32 %v10572_v6, %v8927_v51 }
 0x2af   :  { %5096 = vmatpush.bf16.msra.mxu0 %v2771_v37  ;;  %5161 = vmatpush.bf16.msra.mxu1 %v2786_v40  ;;  %v8988_v37 = vor.u32 %v10479_v29, %v8985_v17  ;;  %v9801_v17 = vld [vmem:[%s16212_s0 + $0xc58] sm:$0x10] }
 0x2b0   :  { %16249 = vst [vmem:[#allocation6_spill] sm:$0xff] %v14733_v20  ;;  %11263 = vtanh.f32 %v4645_v54  ;;  %10003 = vmatmul.msk.bf16.vlgmr.msra.gmra.mxu2 %vm2246_vm2, %v14215_v32  ;;  %10016 = vmatmul.msk.bf16.vlgmr.msra.gmra.mxu3 %vm2246_vm2, %v14215_v32 }
 0x2b1   :  { %5122 = vmatpush.bf16.msra.mxu2 %v2777_v12  ;;  %5291 = vmatpush.bf16.msra.mxu3 %v2816_v49  ;;  %v9743_v12 = vld [vmem:[%s16212_s0 + $0x900] sm:$0xf]  ;;  %v9751_v49 = vld [vmem:[%s16212_s0 + $0x908] sm:$0xf] }
 0x2b2   :  { %v9744_v29 = vor.u32 %v10774_v3, %v9743_v12  ;;  %v8943_v12 = vld [vmem:[%s16212_s0 + $0x2c0] sm:$0xf] }
 0x2b3   :  { %v4605_v42 = vpop.f32.mrf.mxu2  ;;  %v4581_v52 = vpop.f32.mrf.mxu0  ;;  %5097 = vmatpush.bf16.msra.mxu0 %v8928_v33  ;;  %5162 = vmatpush.bf16.msra.mxu1 %v8948_v19  ;;  %v9761_v33 = vld [vmem:[%s16212_s0 + $0xc30] sm:$0x10]  ;;  %v10574_v3 = vld [vmem:[%s16212_s0 + $0x5dc] sm:$0xf0] }
 0x2b4   :  { %v11262_v21 = vpop.eup %11261  ;;  %v4606_v51 = vadd.f32 %v4605_v42, %v12882_v34  ;;  %v4774_v6 = vpop.f32.mrf.mxu3  ;;  %v9764_v19 = vor.u32 %v10676_v26, %v9761_v33 }
 0x2b5   :  { %v4646_v0 = vpop.f32.mrf.mxu1  ;;  %v14758_v40 = vadd.f32 %v11262_v21, %v13795_v8  ;;  %v4775_v50 = vadd.f32 %v4774_v6, %v12882_v34  ;;  %5123 = vmatpush.bf16.msra.mxu2 %v8936_v13  ;;  %5292 = vmatpush.bf16.msra.mxu3 %v8988_v37  ;;  %v10775_v8 = vld [vmem:[%s16212_s0 + $0xc24] sm:$0x10]  ;;  %v2783_v21 = vand.u32 %v9744_v29, %v11547_v5  ;;  %v10476_v29 = vld [vmem:[%s16212_s0 + $0x2d4] sm:$0xf] }
 0x2b6   :  { %v11264_v54 = vpop.eup %11263  ;;  %11265 = vtanh.f32 %v4606_v51  ;;  %v9752_v13 = vor.u32 %v10775_v8, %v9751_v49 }
 0x2b7   :  { %v14771_v43 = vadd.f32 %v11264_v54, %v13640_v63  ;;  %11267 = vtanh.f32 %v4775_v50  ;;  %v10681_v63 = vld [vmem:[%s16212_s0 + $0x93c] sm:$0xf]  ;;  %v2798_v50 = vand.u32 %v9764_v19, %v11547_v5  ;;  %v8951_v19 = vld [vmem:[%s16212_s0 + $0x2c8] sm:$0xf] }
 0x2b8   :  { %v9804_v37 = vor.u32 %v10681_v63, %v9801_v17  ;;  %v2789_v33 = vand.u32 %v9752_v13, %v11547_v5  ;;  %v8961_v63 = vld [vmem:[%s16212_s0 + $0x5f0] sm:$0xf0]  ;;  %v10575_v13 = vld [vmem:[%s16212_s0 + $0x5e4] sm:$0xf0] }
 0x2bb   :  { %v4607_v42 = vpop.f32.mrf.mxu2  ;;  %v4631_v52 = vpop.f32.mrf.mxu0 }
 0x2bc   :  { %v11266_v51 = vpop.eup %11265  ;;  %v4776_v6 = vpop.f32.mrf.mxu3  ;;  %v4632_v0 = vadd.f32 %v4631_v52, %v12882_v34  ;;  %v10481_v42 = vld [vmem:[%s16212_s0 + $0x2fc] sm:$0xf]  ;;  %v14831_v52 = vld [vmem:[%s16213_s1] sm:$0x7]  ;;  %s11476_s1 = smov 126  }
 0x2bd   :  { %v4696_v54 = vpop.f32.mrf.mxu1  ;;  %v11268_v49 = vpop.eup %11267  ;;  %v14798_v8 = vadd.f32 %v11266_v51, %v13833_v7  ;;  %v2828_v7 = vand.u32 %v9804_v37, %v11547_v5  ;;  %v9001_v37 = vld [vmem:[%s16212_s0 + $0x618] sm:$0xf0] }
 0x2be   :  { %v4697_v26 = vadd.f32 %v4696_v54, %v12882_v34  ;;  %v14809_v17 = vadd.f32 %v11268_v49, %v14002_v39  ;;  %11269 = vtanh.f32 %v4632_v0  ;;  %10005 = vmatmul.msk.bf16.vlgmr.msrb.gmra.mxu0 %vm2246_vm2, %v14215_v32  ;;  %10010 = vmatmul.msk.bf16.vlgmr.msrb.gmra.mxu1 %vm2246_vm2, %v14215_v32  ;;  %v8944_v39 = vor.u32 %v10574_v3, %v8943_v12 }
 0x2bf   :  { %5148 = vmatpush.bf16.msrb.mxu0 %v2783_v21  ;;  %5213 = vmatpush.bf16.msrb.mxu1 %v2798_v50  ;;  %v8964_v32 = vor.u32 %v10476_v29, %v8961_v63  ;;  %v8952_v21 = vor.u32 %v10575_v13, %v8951_v19  ;;  %v9004_v51 = vor.u32 %v10481_v42, %v9001_v37  ;;  %v10776_v29 = vld [vmem:[%s16212_s0 + $0xc2c] sm:$0x10]  ;;  %v9767_v63 = vld [vmem:[%s16212_s0 + $0x918] sm:$0xf]  ;;  %v10678_v19 = vld [vmem:[%s16212_s0 + $0x924] sm:$0xf] }
 0x2c0   :  { %16250 = vst [vmem:[#allocation9_spill] sm:$0xff] %v14809_v17  ;;  %11271 = vtanh.f32 %v4697_v26  ;;  %10007 = vmatmul.msk.bf16.vlgmr.msrb.gmra.mxu2 %vm2246_vm2, %v14831_v52  ;;  %10020 = vmatmul.msk.bf16.vlgmr.msrb.gmra.mxu3 %vm2246_vm2, %v14831_v52  ;;  %v9777_v13 = vld [vmem:[%s16212_s0 + $0xc40] sm:$0x10]  ;;  %v9817_v42 = vld [vmem:[%s16212_s0 + $0xc68] sm:$0x10] }
 0x2c1   :  { %5174 = vmatpush.bf16.msrb.mxu2 %v2789_v33  ;;  %5343 = vmatpush.bf16.msrb.mxu3 %v2828_v7  ;;  %v9759_v33 = vld [vmem:[%s16212_s0 + $0x910] sm:$0xf]  ;;  %v9780_v37 = vor.u32 %v10678_v19, %v9777_v13 }
 0x2c3   :  { %v4657_v6 = vpop.f32.mrf.mxu2  ;;  %v4633_v0 = vpop.f32.mrf.mxu0  ;;  %5149 = vmatpush.bf16.msrb.mxu0 %v8944_v39  ;;  %5214 = vmatpush.bf16.msrb.mxu1 %v8964_v32  ;;  %v9760_v39 = vor.u32 %v10776_v29, %v9759_v33  ;;  %v2810_v33 = vand.u32 %v9780_v37, %v11547_v5  ;;  %v8959_v29 = vld [vmem:[%s16212_s0 + $0x2d0] sm:$0xf] }
 0x2c4   :  { %v11270_v54 = vpop.eup %11269  ;;  %v4658_v12 = vadd.f32 %v4657_v6, %v12882_v34  ;;  %v14838_v3 = vpop.f32.mrf.mxu3 }
 0x2c5   :  { %v4698_v49 = vpop.f32.mrf.mxu1  ;;  %v14841_v50 = vadd.f32 %v11270_v54, %v13875_v18  ;;  %5175 = vmatpush.bf16.msrb.mxu2 %v8952_v21  ;;  %5344 = vmatpush.bf16.msrb.mxu3 %v9004_v51  ;;  %v10777_v18 = vld [vmem:[%s16212_s0 + $0xc34] sm:$0x10]  ;;  %v2795_v0 = vand.u32 %v9760_v39, %v11547_v5 }
 0x2c6   :  { %v11272_v26 = vpop.eup %11271  ;;  %11273 = vtanh.f32 %v4658_v12  ;;  %v9768_v32 = vor.u32 %v10777_v18, %v9767_v63  ;;  %v10576_v63 = vld [vmem:[%s16212_s0 + $0x5ec] sm:$0xf0] }
 0x2c7   :  { %v14853_v7 = vadd.f32 %v11272_v26, %v13725_v25  ;;  %v10683_v25 = vld [vmem:[%s16212_s0 + $0x94c] sm:$0xf]  ;;  %v16251_v18 = vld [vmem:[#allocation12_spill] sm:$0xff] }
 0x2c8   :  { %v9820_v21 = vor.u32 %v10683_v25, %v9817_v42  ;;  %v2801_v39 = vand.u32 %v9768_v32, %v11547_v5  ;;  %v10478_v25 = vld [vmem:[%s16212_s0 + $0x2e4] sm:$0xf]  ;;  %v10577_v32 = vld [vmem:[%s16212_s0 + $0x5f4] sm:$0xf0] }
 0x2c9   :  { %v8977_v42 = vld [vmem:[%s16212_s0 + $0x600] sm:$0xf0] }
 0x2ca   :  { %v2840_v37 = vand.u32 %v9820_v21, %v11547_v5  ;;  %v9017_v21 = vld [vmem:[%s16212_s0 + $0x628] sm:$0xf0] }
 0x2cb   :  { %v4659_v51 = vpop.f32.mrf.mxu2  ;;  %v4683_v6 = vpop.f32.mrf.mxu0 }
 0x2cc   :  { %v11274_v54 = vpop.eup %11273  ;;  %v4828_v12 = vpop.f32.mrf.mxu3  ;;  %v4684_v49 = vadd.f32 %v4683_v6, %v12882_v34  ;;  %v8967_v51 = vld [vmem:[%s16212_s0 + $0x2d8] sm:$0xf]  ;;  %v8960_v6 = vor.u32 %v10576_v63, %v8959_v29 }
 0x2cd   :  { %v4748_v26 = vpop.f32.mrf.mxu1  ;;  %v14880_v19 = vadd.f32 %v11274_v54, %v16251_v18  ;;  %v10483_v54 = vld [vmem:[%s16212_s0 + $0x30c] sm:$0xf]  ;;  %v8980_v12 = vor.u32 %v10478_v25, %v8977_v42  ;;  %v10778_v25 = vld [vmem:[%s16212_s0 + $0xc3c] sm:$0x10]  ;;  %v9783_v42 = vld [vmem:[%s16212_s0 + $0x928] sm:$0xf] }
 0x2ce   :  { %v4749_v13 = vadd.f32 %v4748_v26, %v12882_v34  ;;  %11275 = vtanh.f32 %v4684_v49  ;;  %10009 = vmatmul.msk.bf16.vlgmr.msra.gmra.mxu0 %vm2246_vm2, %v14831_v52  ;;  %10014 = vmatmul.msk.bf16.vlgmr.msra.gmra.mxu1 %vm2246_vm2, %v14831_v52  ;;  %v8968_v49 = vor.u32 %v10577_v32, %v8967_v51  ;;  %v10680_v51 = vld [vmem:[%s16212_s0 + $0x934] sm:$0xf] }
 0x2cf   :  { %5200 = vmatpush.bf16.msra.mxu0 %v2795_v0  ;;  %5265 = vmatpush.bf16.msra.mxu1 %v2810_v33  ;;  %v9020_v0 = vor.u32 %v10483_v54, %v9017_v21  ;;  %v9793_v32 = vld [vmem:[%s16212_s0 + $0xc50] sm:$0x10]  ;;  %v9833_v54 = vld [vmem:[%s16212_s0 + $0xc78] sm:$0x10] }
 0x2d0   :  { %11277 = vtanh.f32 %v4749_v13  ;;  %10011 = vmatmul.msk.bf16.vlgmr.msra.gmra.mxu2 %vm2246_vm2, %v14831_v52  ;;  %10024 = vmatmul.msk.bf16.vlgmr.msra.gmra.mxu3 %vm2246_vm2, %v14831_v52  ;;  %v9796_v21 = vor.u32 %v10680_v51, %v9793_v32 }
 0x2d1   :  { %5226 = vmatpush.bf16.msra.mxu2 %v2801_v39  ;;  %5395 = vmatpush.bf16.msra.mxu3 %v2840_v37  ;;  %v9775_v39 = vld [vmem:[%s16212_s0 + $0x920] sm:$0xf] }
 0x2d2   :  { %v16252_v37 = vld [vmem:[#allocation10_spill] sm:$0xff] }
 0x2d3   :  { %v4709_v26 = vpop.f32.mrf.mxu2  ;;  %v4685_v29 = vpop.f32.mrf.mxu0  ;;  %5201 = vmatpush.bf16.msra.mxu0 %v8960_v6  ;;  %5266 = vmatpush.bf16.msra.mxu1 %v8980_v12  ;;  %v9776_v6 = vor.u32 %v10778_v25, %v9775_v39  ;;  %v2822_v25 = vand.u32 %v9796_v21, %v11547_v5  ;;  %v10579_v21 = vld [vmem:[%s16212_s0 + $0x604] sm:$0xf0] }
 0x2d4   :  { %v11276_v63 = vpop.eup %11275  ;;  %v4710_v18 = vadd.f32 %v4709_v26, %v12882_v34  ;;  %v14912_v13 = vpop.f32.mrf.mxu3 }
 0x2d5   :  { %v4750_v17 = vpop.f32.mrf.mxu1  ;;  %v14915_v33 = vadd.f32 %v11276_v63, %v13953_v14  ;;  %5227 = vmatpush.bf16.msra.mxu2 %v8968_v49  ;;  %5396 = vmatpush.bf16.msra.mxu3 %v9020_v0  ;;  %v10779_v14 = vld [vmem:[%s16212_s0 + $0xc44] sm:$0x10]  ;;  %v2807_v29 = vand.u32 %v9776_v6, %v11547_v5  ;;  %v10480_v6 = vld [vmem:[%s16212_s0 + $0x2f4] sm:$0xf] }
 0x2d6   :  { %v11278_v20 = vpop.eup %11277  ;;  %11279 = vtanh.f32 %v4710_v18  ;;  %v9784_v12 = vor.u32 %v10779_v14, %v9783_v42  ;;  %v10578_v42 = vld [vmem:[%s16212_s0 + $0x5fc] sm:$0xf0] }
 0x2d7   :  { %v14927_v17 = vadd.f32 %v11278_v20, %v16252_v37  ;;  %v10685_v20 = vld [vmem:[%s16212_s0 + $0x95c] sm:$0xf] }
 0x2d8   :  { %v9836_v49 = vor.u32 %v10685_v20, %v9833_v54  ;;  %v2813_v32 = vand.u32 %v9784_v12, %v11547_v5  ;;  %v8993_v20 = vld [vmem:[%s16212_s0 + $0x610] sm:$0xf0] }
 0x2d9   :  { %16253 = vst [vmem:[#allocation12_spill] sm:$0xff] %v14927_v17  ;;  %v8975_v17 = vld [vmem:[%s16212_s0 + $0x2e0] sm:$0xf] }
 0x2da   :  { %v2852_v54 = vand.u32 %v9836_v49, %v11547_v5  ;;  %v8976_v12 = vor.u32 %v10578_v42, %v8975_v17  ;;  %v9033_v49 = vld [vmem:[%s16212_s0 + $0x638] sm:$0xf0] }
 0x2db   :  { %v4711_v0 = vpop.f32.mrf.mxu2  ;;  %v4735_v26 = vpop.f32.mrf.mxu0 }
 0x2dc   :  { %v11280_v63 = vpop.eup %11279  ;;  %v4880_v18 = vpop.f32.mrf.mxu3  ;;  %v4736_v37 = vadd.f32 %v4735_v26, %v12882_v34  ;;  %v10485_v0 = vld [vmem:[%s16212_s0 + $0x31c] sm:$0xf]  ;;  %v8996_v26 = vor.u32 %v10480_v6, %v8993_v20  ;;  %v9809_v20 = vld [vmem:[%s16212_s0 + $0xc60] sm:$0x10] }
 0x2dd   :  { %v4800_v39 = vpop.f32.mrf.mxu1  ;;  %v14954_v14 = vadd.f32 %v11280_v63, %v13990_v57  ;;  %v8983_v57 = vld [vmem:[%s16212_s0 + $0x2e8] sm:$0xf]  ;;  %v9036_v17 = vor.u32 %v10485_v0, %v9033_v49  ;;  %v10781_v0 = vld [vmem:[%s16212_s0 + $0xc54] sm:$0x10] }
 0x2de   :  { %v4801_v51 = vadd.f32 %v4800_v39, %v12882_v34  ;;  %11281 = vtanh.f32 %v4736_v37  ;;  %10013 = vmatmul.msk.bf16.vlgmr.msrb.gmra.mxu0 %vm2246_vm2, %v14831_v52  ;;  %10018 = vmatmul.msk.bf16.vlgmr.msrb.gmra.mxu1 %vm2246_vm2, %v14831_v52  ;;  %v8984_v63 = vor.u32 %v10579_v21, %v8983_v57  ;;  %v10780_v57 = vld [vmem:[%s16212_s0 + $0xc4c] sm:$0x10]  ;;  %v16255_v21 = vld [vmem:[#allocation11_spill] sm:$0xff] }
 0x2df   :  { %5252 = vmatpush.bf16.msrb.mxu0 %v2807_v29  ;;  %5317 = vmatpush.bf16.msrb.mxu1 %v2822_v25  ;;  %v10682_v25 = vld [vmem:[%s16212_s0 + $0x944] sm:$0xf] }
 0x2e0   :  { %11283 = vtanh.f32 %v4801_v51  ;;  %10015 = vmatmul.msk.bf16.vlgmr.msrb.gmra.mxu2 %vm2246_vm2, %v14831_v52  ;;  %10028 = vmatmul.msk.bf16.vlgmr.msrb.gmra.mxu3 %vm2246_vm2, %v14831_v52 }
 0x2e1   :  { %5278 = vmatpush.bf16.msrb.mxu2 %v2813_v32  ;;  %5447 = vmatpush.bf16.msrb.mxu3 %v2852_v54  ;;  %v9791_v54 = vld [vmem:[%s16212_s0 + $0x930] sm:$0xf] }
 0x2e2   :  { %v9792_v49 = vor.u32 %v10780_v57, %v9791_v54  ;;  %v10482_v57 = vld [vmem:[%s16212_s0 + $0x304] sm:$0xf] }
 0x2e3   :  { %v4761_v29 = vpop.f32.mrf.mxu2  ;;  %v4737_v18 = vpop.f32.mrf.mxu0  ;;  %5253 = vmatpush.bf16.msrb.mxu0 %v8976_v12  ;;  %5318 = vmatpush.bf16.msrb.mxu1 %v8996_v26  ;;  %v9812_v26 = vor.u32 %v10682_v25, %v9809_v20  ;;  %v10580_v25 = vld [vmem:[%s16212_s0 + $0x60c] sm:$0xf0] }
 0x2e4   :  { %v11282_v37 = vpop.eup %11281  ;;  %v4762_v39 = vadd.f32 %v4761_v29, %v12882_v34  ;;  %v14986_v42 = vpop.f32.mrf.mxu3 }
 0x2e5   :  { %v4802_v51 = vpop.f32.mrf.mxu1  ;;  %v14992_v32 = vadd.f32 %v11282_v37, %v14030_v2  ;;  %5279 = vmatpush.bf16.msrb.mxu2 %v8984_v63  ;;  %5448 = vmatpush.bf16.msrb.mxu3 %v9036_v17  ;;  %v9799_v2 = vld [vmem:[%s16212_s0 + $0x938] sm:$0xf]  ;;  %v2819_v37 = vand.u32 %v9792_v49, %v11547_v5 }
 0x2e6   :  { %v11284_v6 = vpop.eup %11283  ;;  %11285 = vtanh.f32 %v4762_v39  ;;  %v9800_v63 = vor.u32 %v10781_v0, %v9799_v2  ;;  %v9009_v2 = vld [vmem:[%s16212_s0 + $0x620] sm:$0xf0]  ;;  %v4827_v0 = vadd.f32 %v14838_v3, %v12882_v34  ;;  %v10581_v49 = vld [vmem:[%s16212_s0 + $0x614] sm:$0xf0] }
 0x2e7   :  { %16254 = vst [vmem:[#allocation10_spill] sm:$0xff] %v14992_v32  ;;  %v15004_v12 = vadd.f32 %v11284_v6, %v16255_v21  ;;  %v2834_v21 = vand.u32 %v9812_v26, %v11547_v5  ;;  %v9012_v3 = vor.u32 %v10482_v57, %v9009_v2  ;;  %v9825_v57 = vld [vmem:[%s16212_s0 + $0xc70] sm:$0x10] }
 0x2e8   :  { %v2825_v54 = vand.u32 %v9800_v63, %v11547_v5 }
 0x2e9   :  { %16256 = vst [vmem:[#allocation11_spill] sm:$0xff] %v15004_v12  ;;  %v8991_v12 = vld [vmem:[%s16212_s0 + $0x2f0] sm:$0xf] }
 0x2ea   :  { %v8992_v26 = vor.u32 %v10580_v25, %v8991_v12 }
 0x2eb   :  { %v4763_v29 = vpop.f32.mrf.mxu2  ;;  %v4787_v18 = vpop.f32.mrf.mxu0 }
 0x2ec   :  { %v11286_v51 = vpop.eup %11285  ;;  %v4932_v6 = vpop.f32.mrf.mxu3  ;;  %v4788_v39 = vadd.f32 %v4787_v18, %v12882_v34 }
 0x2ed   :  { %v4852_v17 = vpop.f32.mrf.mxu1  ;;  %v15022_v20 = vadd.f32 %v11286_v51, %v14067_v4  ;;  %v8999_v4 = vld [vmem:[%s16212_s0 + $0x2f8] sm:$0xf] }
 0x2ee   :  { %11287 = vtanh.f32 %v4788_v39  ;;  %10017 = vmatmul.msk.bf16.vlgmr.msra.gmra.mxu0 %vm2246_vm2, %v14831_v52  ;;  %10022 = vmatmul.msk.bf16.vlgmr.msra.gmra.mxu1 %vm2246_vm2, %v14831_v52  ;;  %v9000_v63 = vor.u32 %v10581_v49, %v8999_v4  ;;  %v4853_v2 = vadd.f32 %v4852_v17, %v12882_v34 }
 0x2ef   :  { %16257 = vst [vmem:[#allocation13_spill] sm:$0xff] %v15022_v20  ;;  %5304 = vmatpush.bf16.msra.mxu0 %v2819_v37  ;;  %5369 = vmatpush.bf16.msra.mxu1 %v2834_v21  ;;  %11289 = vtanh.f32 %v4827_v0  ;;  %v9807_v37 = vld [vmem:[%s16212_s0 + $0x940] sm:$0xf]  ;;  %v9815_v0 = vld [vmem:[%s16212_s0 + $0x948] sm:$0xf] }
 0x2f0   :  { %10019 = vmatmul.msk.bf16.vlgmr.msra.gmra.mxu2 %vm2246_vm2, %v14831_v52  ;;  %10032 = vmatmul.msk.bf16.vlgmr.msra.gmra.mxu3 %vm2246_vm2, %v14831_v52  ;;  %v10782_v21 = vld [vmem:[%s16212_s0 + $0xc5c] sm:$0x10] }
 0x2f1   :  { %5330 = vmatpush.bf16.msra.mxu2 %v2825_v54  ;;  %v10684_v54 = vld [vmem:[%s16212_s0 + $0x954] sm:$0xf]  ;;  %v9808_v4 = vor.u32 %v10782_v21, %v9807_v37  ;;  %v9007_v37 = vld [vmem:[%s16212_s0 + $0x300] sm:$0xf] }
 0x2f2   :  { %v10582_v21 = vld [vmem:[%s16212_s0 + $0x61c] sm:$0xf0] }
 0x2f3   :  { %v4813_v29 = vpop.f32.mrf.mxu2  ;;  %v4789_v18 = vpop.f32.mrf.mxu0  ;;  %5305 = vmatpush.bf16.msra.mxu0 %v8992_v26  ;;  %5370 = vmatpush.bf16.msra.mxu1 %v9012_v3  ;;  %v9828_v26 = vor.u32 %v10684_v54, %v9825_v57  ;;  %v2831_v17 = vand.u32 %v9808_v4, %v11547_v5  ;;  %v10484_v57 = vld [vmem:[%s16212_s0 + $0x314] sm:$0xf]  ;;  %v10583_v4 = vld [vmem:[%s16212_s0 + $0x624] sm:$0xf0] }
 0x2f4   :  { %v11288_v51 = vpop.eup %11287  ;;  %v4814_v6 = vadd.f32 %v4813_v29, %v12882_v34  ;;  %v15048_v39 = vpop.f32.mrf.mxu3 }
 0x2f5   :  { %v4854_v12 = vpop.f32.mrf.mxu1  ;;  %v15057_v25 = vadd.f32 %v11288_v51, %v14106_v1  ;;  %5331 = vmatpush.bf16.msra.mxu2 %v9000_v63  ;;  %v10783_v1 = vld [vmem:[%s16212_s0 + $0xc64] sm:$0x10]  ;;  %v11290_v49 = vpop.eup %11289  ;;  %v16259_v63 = vld [vmem:[#allocation5_spill] sm:$0xff]  ;;  %v2846_v32 = vand.u32 %v9828_v26, %v11547_v5 }
 0x2f6   :  { %11291 = vtanh.f32 %v4814_v6  ;;  %v9816_v3 = vor.u32 %v10783_v1, %v9815_v0  ;;  %v5755_v29 = vadd.f32 %v11290_v49, %v16259_v63  ;;  %v4879_v1 = vadd.f32 %v14912_v13, %v12882_v34 }
 0x2f7   :  { %16258 = vst [vmem:[#allocation14_spill] sm:$0xff] %v15057_v25  ;;  %11293 = vtanh.f32 %v4853_v2  ;;  %v9025_v2 = vld [vmem:[%s16212_s0 + $0x630] sm:$0xf0] }
 0x2f8   :  { %v2837_v0 = vand.u32 %v9816_v3, %v11547_v5  ;;  %v5805_v49 = vmul.f32 0.25, %v5755_v29  ;;  %v9008_v3 = vor.u32 %v10582_v21, %v9007_v37  ;;  %v16260_v29 = vld [vmem:[#allocation2_spill] sm:$0xff] }
 0x2fb   :  { %v4815_v18 = vpop.f32.mrf.mxu2  ;;  %v4839_v51 = vpop.f32.mrf.mxu0 }
 0x2fc   :  { %v11292_v6 = vpop.eup %11291  ;;  %v4984_v12 = vpop.f32.mrf.mxu3  ;;  %v4840_v25 = vadd.f32 %v4839_v51, %v12882_v34 }
 0x2fd   :  { %v4904_v20 = vpop.f32.mrf.mxu1  ;;  %v5754_v54 = vadd.f32 %v11292_v6, %v14142_v30  ;;  %v9015_v30 = vld [vmem:[%s16212_s0 + $0x308] sm:$0xf]  ;;  %v11294_v13 = vpop.eup %11293 }
 0x2fe   :  { %11295 = vtanh.f32 %v4840_v25  ;;  %10021 = vmatmul.msk.bf16.vlgmr.msrb.gmra.mxu0 %vm2246_vm2, %v14831_v52  ;;  %10026 = vmatmul.msk.bf16.vlgmr.msrb.gmra.mxu1 %vm2246_vm2, %v14831_v52  ;;  %v9028_v25 = vor.u32 %v10484_v57, %v9025_v2  ;;  %v9016_v18 = vor.u32 %v10583_v4, %v9015_v30  ;;  %v5757_v51 = vadd.f32 %v11294_v13, %v16260_v29  ;;  %v9823_v57 = vld [vmem:[%s16212_s0 + $0x950] sm:$0xf]  ;;  %v9831_v4 = vld [vmem:[%s16212_s0 + $0x958] sm:$0xf] }
 0x2ff   :  { %v5804_v26 = vmul.f32 0.25, %v5754_v54  ;;  %5356 = vmatpush.bf16.msrb.mxu0 %v2831_v17  ;;  %5421 = vmatpush.bf16.msrb.mxu1 %v2846_v32  ;;  %11297 = vtanh.f32 %v4879_v1  ;;  %v10784_v2 = vld [vmem:[%s16212_s0 + $0xc6c] sm:$0x10]  ;;  %v4905_v30 = vadd.f32 %v4904_v20, %v12882_v34 }
 0x300   :  { %10023 = vmatmul.msk.bf16.vlgmr.msrb.gmra.mxu2 %vm2246_vm2, %v14831_v52  ;;  %10036 = vmatmul.msk.bf16.vlgmr.msrb.gmra.mxu3 %vm2246_vm2, %v14831_v52 }
 0x301   :  { %v15106_v63 = vpack.c.bf16 %v5805_v49, %v5804_v26  ;;  %5382 = vmatpush.bf16.msrb.mxu2 %v2837_v0  ;;  %v10785_v49 = vld [vmem:[%s16212_s0 + $0xc74] sm:$0x10]  ;;  %v5807_v26 = vmul.f32 0.25, %v5757_v51 }
 0x303   :  { %v4865_v6 = vpop.f32.mrf.mxu2  ;;  %v4841_v12 = vpop.f32.mrf.mxu0  ;;  %v5940_v17 = vunpack.c.h.b16 %v15106_v63  ;;  %5357 = vmatpush.bf16.msrb.mxu0 %v9008_v3  ;;  %5422 = vmatpush.bf16.msrb.mxu1 %v9028_v25  ;;  %v9824_v25 = vor.u32 %v10784_v2, %v9823_v57  ;;  %v9023_v57 = vld [vmem:[%s16212_s0 + $0x310] sm:$0xf] }
 0x304   :  { %v11296_v37 = vpop.eup %11295  ;;  %v4866_v21 = vadd.f32 %v4865_v6, %v12882_v34  ;;  %v15111_v32 = vpop.f32.mrf.mxu3  ;;  %v10584_v2 = vld [vmem:[%s16212_s0 + $0x62c] sm:$0xf0] }
 0x305   :  { %v4906_v54 = vpop.f32.mrf.mxu1  ;;  %v5756_v0 = vadd.f32 %v11296_v37, %v14182_v24  ;;  %v5942_v1 = vpack.c.b16 %v5940_v17, %v5940_v17  ;;  %5383 = vmatpush.bf16.msrb.mxu2 %v9016_v18  ;;  %v11298_v29 = vpop.eup %11297  ;;  %v9832_v18 = vor.u32 %v10785_v49, %v9831_v4  ;;  %v2843_v37 = vand.u32 %v9824_v25, %v11547_v5  ;;  %v15142_v4 = vld [vmem:[%s16216_s3] sm:$0xff] }
 0x306   :  { %11299 = vtanh.f32 %v4866_v21  ;;  %v5759_v20 = vadd.f32 %v11298_v29, %v14155_v58  ;;  %v4931_v49 = vadd.f32 %v14986_v42, %v12882_v34 }
 0x307   :  { %v5806_v3 = vmul.f32 0.25, %v5756_v0  ;;  %v5950_v13 = vsel %vm5898_vm3, %v5942_v1, 0  ;;  %11301 = vtanh.f32 %v4905_v30  ;;  %v2849_v30 = vand.u32 %v9832_v18, %v11547_v5  ;;  %v10585_v5 = vld [vmem:[%s16212_s0 + $0x634] sm:$0xf0] }
 0x308   :  { %5973 = vmatpush.bf16.msra.mxu3 %v5950_v13  ;;  %v9024_v13 = vor.u32 %v10584_v2, %v9023_v57 }
 0x309   :  { %v5855_v24 = vpack.c.bf16 %v5807_v26, %v5806_v3  ;;  %v9031_v26 = vld [vmem:[%s16212_s0 + $0x318] sm:$0xf] }
 0x30a   :  { %v9032_v29 = vor.u32 %v10585_v5, %v9031_v26  ;;  %v5939_v5 = vunpack.c.l.b16 %v15106_v63 }
 0x30b   :  { %v4867_v6 = vpop.f32.mrf.mxu2  ;;  %v4891_v12 = vpop.f32.mrf.mxu0  ;;  %v5891_v17 = vunpack.c.h.b16 %v5855_v24 }
 0x30c   :  { %v11300_v21 = vpop.eup %11299  ;;  %v5036_v54 = vpop.f32.mrf.mxu3  ;;  %v4892_v51 = vadd.f32 %v4891_v12, %v12882_v34 }
 0x30d   :  { %v4956_v0 = vpop.f32.mrf.mxu1  ;;  %v5758_v58 = vadd.f32 %v11300_v21, %v14223_v36  ;;  %v5893_v1 = vpack.c.b16 %v5891_v17, %v5891_v17  ;;  %v5809_v36 = vmul.f32 0.25, %v5759_v20  ;;  %v11302_v25 = vpop.eup %11301  ;;  %v16261_v20 = vld [vmem:[#allocation4_spill] sm:$0xff] }
 0x30e   :  { %11303 = vtanh.f32 %v4892_v51  ;;  %10025 = vmatmul.msk.bf16.vlgmr.msra.gmra.mxu0 %vm2246_vm2, %v14831_v52  ;;  %10030 = vmatmul.msk.bf16.vlgmr.msra.gmra.mxu1 %vm2246_vm2, %v14831_v52  ;;  %v5761_v6 = vadd.f32 %v11302_v25, %v16261_v20  ;;  %v4957_v2 = vadd.f32 %v4956_v0, %v12882_v34 }
 0x30f   :  { %v5808_v3 = vmul.f32 0.25, %v5758_v58  ;;  %v5903_v42 = vsel %vm5898_vm3, %v5893_v1, 0  ;;  %5408 = vmatpush.bf16.msra.mxu0 %v2843_v37  ;;  %11305 = vtanh.f32 %v4931_v49  ;;  %v5890_v58 = vunpack.c.l.b16 %v5855_v24 }
 0x310   :  { %10027 = vmatmul.msk.bf16.vlgmr.msra.gmra.mxu2 %vm2246_vm2, %v14831_v52  ;;  %5926 = vmatpush.bf16.msra.mxu1 %v5903_v42  ;;  %v5811_v1 = vmul.f32 0.25, %v5761_v6 }
 0x311   :  { %5434 = vmatpush.bf16.msra.mxu2 %v2849_v30  ;;  %v15159_v18 = vpack.c.bf16 %v5809_v36, %v5808_v3  ;;  %10050 = vmatmul.msk.bf16.vlgmr.msra.gmra.mxu3 %vm5894_vm4, %v15142_v4  ;;  %v5892_v3 = vpack.c.b16 %v5890_v58, %v5890_v58  ;;  %v15192_v58 = vld [vmem:[%s16216_s3 + $0x18] sm:$0xff] }
 0x313   :  { %v4917_v12 = vpop.f32.mrf.mxu2  ;;  %v4893_v17 = vpop.f32.mrf.mxu0  ;;  %5409 = vmatpush.bf16.msra.mxu0 %v9024_v13  ;;  %v5990_v49 = vunpack.c.h.b16 %v15159_v18 }
 0x314   :  { %v11304_v37 = vpop.eup %11303  ;;  %v4918_v21 = vadd.f32 %v4917_v12, %v12882_v34  ;;  %v15165_v54 = vpop.f32.mrf.mxu3  ;;  %v5941_v12 = vpack.c.b16 %v5939_v5, %v5939_v5 }
 0x315   :  { %v4958_v51 = vpop.f32.mrf.mxu1  ;;  %v5760_v57 = vadd.f32 %v11304_v37, %v14263_v15  ;;  %5435 = vmatpush.bf16.msra.mxu2 %v9032_v29  ;;  %v11306_v26 = vpop.eup %11305  ;;  %v5992_v25 = vpack.c.b16 %v5990_v49, %v5990_v49  ;;  %v4983_v37 = vadd.f32 %v15048_v39, %v12882_v34 }
 0x316   :  { %11307 = vtanh.f32 %v4918_v21  ;;  %v5763_v42 = vadd.f32 %v11306_v26, %v14236_v11  ;;  %v5900_v11 = vsel %vm5898_vm3, %v5892_v3, 0  ;;  %v5947_v39 = vsel %vm5898_vm3, %v5941_v12, 0 }
 0x317   :  { %v5810_v30 = vmul.f32 0.25, %v5760_v57  ;;  %11309 = vtanh.f32 %v4957_v2  ;;  %v6000_v57 = vsel %vm5898_vm3, %v5992_v25, 0 }
 0x318   :  { %v5813_v21 = vmul.f32 0.25, %v5763_v42 }
 0x319   :  { %v15171_v36 = vpack.c.bf16 %v5811_v1, %v5810_v30  ;;  %v16262_v30 = vld [vmem:[#allocation7_spill] sm:$0xff] }
 0x31b   :  { %v4919_v13 = vpop.f32.mrf.mxu2  ;;  %v4943_v15 = vpop.f32.mrf.mxu0  ;;  %v6044_v0 = vunpack.c.h.b16 %v15171_v36 }
 0x31c   :  { %v11308_v29 = vpop.eup %11307  ;;  %v5088_v24 = vpop.f32.mrf.mxu3  ;;  %v4944_v20 = vadd.f32 %v4943_v15, %v12882_v34 }
 0x31d   :  { %v5008_v6 = vpop.f32.mrf.mxu1  ;;  %v5762_v17 = vadd.f32 %v11308_v29, %v14299_v44  ;;  %v6046_v63 = vpack.c.b16 %v6044_v0, %v6044_v0  ;;  %v11310_v2 = vpop.eup %11309  ;;  %v5989_v29 = vunpack.c.l.b16 %v15159_v18 }
 0x31e   :  { %11311 = vtanh.f32 %v4944_v20  ;;  %10029 = vmatmul.msk.bf16.vlgmr.msrb.gmra.mxu0 %vm2246_vm2, %v14831_v52  ;;  %10034 = vmatmul.msk.bf16.vlgmr.msrb.gmra.mxu1 %vm2246_vm2, %v14831_v52  ;;  %v5765_v49 = vadd.f32 %v11310_v2, %v16262_v30  ;;  %v5009_v0 = vadd.f32 %v5008_v6, %v12882_v34  ;;  %v15213_v6 = vld [vmem:[%s16216_s3 + $0x8] sm:$0xff] }
 0x31f   :  { %v5812_v51 = vmul.f32 0.25, %v5762_v17  ;;  %5912 = vmatpush.bf16.msrb.mxu0 %v5900_v11  ;;  %v6054_v44 = vsel %vm5898_vm3, %v6046_v63, 0  ;;  %6023 = vmatpush.bf16.msrb.mxu1 %v6000_v57  ;;  %11313 = vtanh.f32 %v4983_v37  ;;  %v6043_v63 = vunpack.c.l.b16 %v15171_v36 }
 0x320   :  { %10031 = vmatmul.msk.bf16.vlgmr.msrb.gmra.mxu2 %vm2246_vm2, %v14831_v52  ;;  %6077 = vmatpush.bf16.msrb.mxu3 %v6054_v44  ;;  %v5815_v24 = vmul.f32 0.25, %v5765_v49  ;;  %v5991_v11 = vpack.c.b16 %v5989_v29, %v5989_v29 }
 0x321   :  { %5959 = vmatpush.bf16.msrb.mxu2 %v5947_v39  ;;  %v15194_v1 = vpack.c.bf16 %v5813_v21, %v5812_v51  ;;  %v6045_v30 = vpack.c.b16 %v6043_v63, %v6043_v63 }
 0x323   :  { %v4969_v26 = vpop.f32.mrf.mxu2  ;;  %v4945_v5 = vpop.f32.mrf.mxu0  ;;  %10066 = vmatmul.msk.bf16.vlgmr.msrb.gmra.mxu3 %vm5894_vm4, %v15192_v58  ;;  %v6098_v12 = vunpack.c.h.b16 %v15194_v1 }
 0x324   :  { %v11312_v3 = vpop.eup %11311  ;;  %v4970_v42 = vadd.f32 %v4969_v26, %v12882_v34  ;;  %v15198_v13 = vpop.f32.mrf.mxu3  ;;  %v5997_v5 = vsel %vm5898_vm3, %v5991_v11, 0 }
 0x325   :  { %v5010_v15 = vpop.f32.mrf.mxu1  ;;  %v5764_v25 = vadd.f32 %v11312_v3, %v14339_v61  ;;  %v11314_v17 = vpop.eup %11313  ;;  %v6100_v18 = vpack.c.b16 %v6098_v12, %v6098_v12 }
 0x326   :  { %11315 = vtanh.f32 %v4970_v42  ;;  %v5767_v21 = vadd.f32 %v11314_v17, %v14312_v53  ;;  %v5035_v53 = vadd.f32 %v15111_v32, %v12882_v34  ;;  %v6051_v32 = vsel %vm5898_vm3, %v6045_v30, 0 }
 0x327   :  { %v5814_v20 = vmul.f32 0.25, %v5764_v25  ;;  %11317 = vtanh.f32 %v5009_v0  ;;  %v6108_v15 = vsel %vm5898_vm3, %v6100_v18, 0  ;;  %v15233_v0 = vld [vmem:[%s16216_s3 + $0x28] sm:$0xff]  ;;  %v6097_v18 = vunpack.c.l.b16 %v15194_v1 }
 0x328   :  { %v5817_v3 = vmul.f32 0.25, %v5767_v21 }
 0x329   :  { %v15207_v37 = vpack.c.bf16 %v5815_v24, %v5814_v20  ;;  %v16263_v24 = vld [vmem:[#allocation8_spill] sm:$0xff] }
 0x32b   :  { %v4971_v51 = vpop.f32.mrf.mxu2  ;;  %v4995_v61 = vpop.f32.mrf.mxu0  ;;  %v6152_v57 = vunpack.c.h.b16 %v15207_v37  ;;  %v6151_v30 = vunpack.c.l.b16 %v15207_v37 }
 0x32c   :  { %v11316_v44 = vpop.eup %11315  ;;  %v5140_v2 = vpop.f32.mrf.mxu3  ;;  %v4996_v36 = vadd.f32 %v4995_v61, %v12882_v34 }
 0x32d   :  { %v5060_v39 = vpop.f32.mrf.mxu1  ;;  %v5766_v49 = vadd.f32 %v11316_v44, %v14375_v47  ;;  %v6154_v26 = vpack.c.b16 %v6152_v57, %v6152_v57  ;;  %v11318_v25 = vpop.eup %11317 }
 0x32e   :  { %11319 = vtanh.f32 %v4996_v36  ;;  %10033 = vmatmul.msk.bf16.vlgmr.msra.gmra.mxu0 %vm2246_vm2, %v14831_v52  ;;  %10044 = vmatmul.msk.bf16.vlgmr.msra.gmra.mxu1 %vm5894_vm4, %v15213_v6  ;;  %v5769_v20 = vadd.f32 %v11318_v25, %v16263_v24  ;;  %v5061_v61 = vadd.f32 %v5060_v39, %v12882_v34  ;;  %v15254_v39 = vld [vmem:[%s16216_s3 + $0x10] sm:$0xff]  ;;  %v6153_v25 = vpack.c.b16 %v6151_v30, %v6151_v30 }
 0x32f   :  { %v5816_v42 = vmul.f32 0.25, %v5766_v49  ;;  %6009 = vmatpush.bf16.msra.mxu0 %v5997_v5  ;;  %v6162_v47 = vsel %vm5898_vm3, %v6154_v26, 0  ;;  %6131 = vmatpush.bf16.msra.mxu1 %v6108_v15  ;;  %11321 = vtanh.f32 %v5035_v53  ;;  %v6099_v26 = vpack.c.b16 %v6097_v18, %v6097_v18 }
 0x330   :  { %10035 = vmatmul.msk.bf16.vlgmr.msra.gmra.mxu2 %vm2246_vm2, %v14831_v52  ;;  %6185 = vmatpush.bf16.msra.mxu3 %v6162_v47  ;;  %v5819_v57 = vmul.f32 0.25, %v5769_v20 }
 0x331   :  { %6063 = vmatpush.bf16.msra.mxu2 %v6051_v32  ;;  %v15235_v29 = vpack.c.bf16 %v5817_v3, %v5816_v42  ;;  %v6105_v20 = vsel %vm5898_vm3, %v6099_v26, 0 }
 0x333   :  { %v5021_v12 = vpop.f32.mrf.mxu2  ;;  %v4997_v17 = vpop.f32.mrf.mxu0  ;;  %10082 = vmatmul.msk.bf16.vlgmr.msra.gmra.mxu3 %vm5894_vm4, %v15233_v0  ;;  %v6206_v2 = vunpack.c.h.b16 %v15235_v29 }
 0x334   :  { %v11320_v63 = vpop.eup %11319  ;;  %v5022_v52 = vadd.f32 %v5021_v12, %v12882_v34  ;;  %v15239_v11 = vpop.f32.mrf.mxu3 }
 0x335   :  { %v5062_v21 = vpop.f32.mrf.mxu1  ;;  %v5768_v51 = vadd.f32 %v11320_v63, %v14415_v38  ;;  %v11322_v36 = vpop.eup %11321  ;;  %v6208_v1 = vpack.c.b16 %v6206_v2, %v6206_v2 }
 0x336   :  { %11323 = vtanh.f32 %v5022_v52  ;;  %v5771_v53 = vadd.f32 %v11322_v36, %v14388_v31  ;;  %v5087_v31 = vadd.f32 %v15165_v54, %v12882_v34  ;;  %v6159_v54 = vsel %vm5898_vm3, %v6153_v25, 0 }
 0x337   :  { %v5818_v44 = vmul.f32 0.25, %v5768_v51  ;;  %11325 = vtanh.f32 %v5061_v61  ;;  %v6216_v63 = vsel %vm5898_vm3, %v6208_v1, 0  ;;  %v16264_v51 = vld [vmem:[#allocation3_spill] sm:$0xff] }
 0x338   :  { %v5821_v12 = vmul.f32 0.25, %v5771_v53  ;;  %v6205_v53 = vunpack.c.l.b16 %v15235_v29 }
 0x339   :  { %v15248_v49 = vpack.c.bf16 %v5819_v57, %v5818_v44 }
 0x33b   :  { %v5023_v5 = vpop.f32.mrf.mxu2  ;;  %v5047_v38 = vpop.f32.mrf.mxu0  ;;  %v6260_v3 = vunpack.c.h.b16 %v15248_v49 }
 0x33c   :  { %v11324_v42 = vpop.eup %11323  ;;  %v5192_v15 = vpop.f32.mrf.mxu3  ;;  %v5048_v37 = vadd.f32 %v5047_v38, %v12882_v34 }
 0x33d   :  { %v5112_v47 = vpop.f32.mrf.mxu1  ;;  %v5770_v32 = vadd.f32 %v11324_v42, %v14451_v56  ;;  %v6262_v24 = vpack.c.b16 %v6260_v3, %v6260_v3  ;;  %v11326_v52 = vpop.eup %11325  ;;  %v6259_v42 = vunpack.c.l.b16 %v15248_v49 }
 0x33e   :  { %11327 = vtanh.f32 %v5048_v37  ;;  %10043 = vmatmul.msk.bf16.vlgmr.msrb.gmra.mxu0 %vm5894_vm4, %v15213_v6  ;;  %10058 = vmatmul.msk.bf16.vlgmr.msrb.gmra.mxu1 %vm5894_vm4, %v15254_v39  ;;  %v15274_v6 = vld [vmem:[%s16216_s3 + $0x38] sm:$0xff]  ;;  %v5773_v61 = vadd.f32 %v11326_v52, %v16264_v51  ;;  %v5113_v26 = vadd.f32 %v5112_v47, %v12882_v34  ;;  %v6207_v37 = vpack.c.b16 %v6205_v53, %v6205_v53  ;;  %v15295_v47 = vld [vmem:[%s16216_s3 + $0x20] sm:$0xff] }
 0x33f   :  { %v5820_v17 = vmul.f32 0.25, %v5770_v32  ;;  %6117 = vmatpush.bf16.msrb.mxu0 %v6105_v20  ;;  %v6270_v56 = vsel %vm5898_vm3, %v6262_v24, 0  ;;  %6239 = vmatpush.bf16.msrb.mxu1 %v6216_v63  ;;  %11329 = vtanh.f32 %v5087_v31 }
 0x340   :  { %10049 = vmatmul.msk.bf16.vlgmr.msrb.gmra.mxu2 %vm5894_vm4, %v15142_v4  ;;  %6293 = vmatpush.bf16.msrb.mxu3 %v6270_v56  ;;  %v5823_v5 = vmul.f32 0.25, %v5773_v61  ;;  %v6213_v52 = vsel %vm5898_vm3, %v6207_v37, 0 }
 0x341   :  { %6171 = vmatpush.bf16.msrb.mxu2 %v6159_v54  ;;  %v15276_v21 = vpack.c.bf16 %v5821_v12, %v5820_v17  ;;  %v6261_v17 = vpack.c.b16 %v6259_v42, %v6259_v42 }
 0x343   :  { %v5073_v18 = vpop.f32.mrf.mxu2  ;;  %v5049_v57 = vpop.f32.mrf.mxu0  ;;  %10098 = vmatmul.msk.bf16.vlgmr.msrb.gmra.mxu3 %vm5894_vm4, %v15274_v6  ;;  %v6314_v1 = vunpack.c.h.b16 %v15276_v21 }
 0x344   :  { %v11328_v44 = vpop.eup %11327  ;;  %v5074_v4 = vadd.f32 %v5073_v18, %v12882_v34  ;;  %v15280_v2 = vpop.f32.mrf.mxu3 }
 0x345   :  { %v5114_v36 = vpop.f32.mrf.mxu1  ;;  %v5772_v30 = vadd.f32 %v11328_v44, %v14491_v23  ;;  %v11330_v3 = vpop.eup %11329  ;;  %v6316_v29 = vpack.c.b16 %v6314_v1, %v6314_v1  ;;  %v6313_v1 = vunpack.c.l.b16 %v15276_v21 }
 0x346   :  { %11331 = vtanh.f32 %v5074_v4  ;;  %v5775_v25 = vadd.f32 %v11330_v3, %v14464_v35  ;;  %v5139_v35 = vadd.f32 %v15198_v13, %v12882_v34  ;;  %v6267_v13 = vsel %vm5898_vm3, %v6261_v17, 0 }
 0x347   :  { %v5822_v38 = vmul.f32 0.25, %v5772_v30  ;;  %11333 = vtanh.f32 %v5113_v26  ;;  %v6324_v61 = vsel %vm5898_vm3, %v6316_v29, 0 }
 0x348   :  { %v5825_v54 = vmul.f32 0.25, %v5775_v25 }
 0x349   :  { %v15289_v15 = vpack.c.bf16 %v5823_v5, %v5822_v38 }
 0x34b   :  { %v5075_v32 = vpop.f32.mrf.mxu2  ;;  %v5099_v23 = vpop.f32.mrf.mxu0  ;;  %v6368_v24 = vunpack.c.h.b16 %v15289_v15  ;;  %v6367_v25 = vunpack.c.l.b16 %v15289_v15 }
 0x34c   :  { %v11332_v31 = vpop.eup %11331  ;;  %v5244_v20 = vpop.f32.mrf.mxu3  ;;  %v5100_v49 = vadd.f32 %v5099_v23, %v12882_v34  ;;  %v6315_v23 = vpack.c.b16 %v6313_v1, %v6313_v1 }
 0x34d   :  { %v5164_v12 = vpop.f32.mrf.mxu1  ;;  %v5774_v63 = vadd.f32 %v11332_v31, %v14527_v62  ;;  %v6370_v56 = vpack.c.b16 %v6368_v24, %v6368_v24  ;;  %v11334_v18 = vpop.eup %11333  ;;  %v15336_v31 = vld [vmem:[%s16216_s3 + $0x30] sm:$0xff] }
 0x34e   :  { %11335 = vtanh.f32 %v5100_v49  ;;  %10057 = vmatmul.msk.bf16.vlgmr.msra.gmra.mxu0 %vm5894_vm4, %v15254_v39  ;;  %10074 = vmatmul.msk.bf16.vlgmr.msra.gmra.mxu1 %vm5894_vm4, %v15295_v47  ;;  %v15315_v39 = vld [vmem:[%s16216_s3 + $0x48] sm:$0xff]  ;;  %v5777_v44 = vadd.f32 %v11334_v18, %v14350_v59  ;;  %v5165_v38 = vadd.f32 %v5164_v12, %v12882_v34 }
 0x34f   :  { %v5824_v51 = vmul.f32 0.25, %v5774_v63  ;;  %6225 = vmatpush.bf16.msra.mxu0 %v6213_v52  ;;  %v6378_v62 = vsel %vm5898_vm3, %v6370_v56, 0  ;;  %6347 = vmatpush.bf16.msra.mxu1 %v6324_v61  ;;  %11337 = vtanh.f32 %v5139_v35  ;;  %v6369_v63 = vpack.c.b16 %v6367_v25, %v6367_v25 }
 0x350   :  { %10065 = vmatmul.msk.bf16.vlgmr.msra.gmra.mxu2 %vm5894_vm4, %v15192_v58  ;;  %6401 = vmatpush.bf16.msra.mxu3 %v6378_v62  ;;  %v5827_v3 = vmul.f32 0.25, %v5777_v44  ;;  %v6321_v52 = vsel %vm5898_vm3, %v6315_v23, 0 }
 0x351   :  { %6279 = vmatpush.bf16.msra.mxu2 %v6267_v13  ;;  %v15317_v57 = vpack.c.bf16 %v5825_v54, %v5824_v51 }
 0x353   :  { %v5125_v4 = vpop.f32.mrf.mxu2  ;;  %v5101_v36 = vpop.f32.mrf.mxu0  ;;  %10114 = vmatmul.msk.bf16.vlgmr.msra.gmra.mxu3 %vm5894_vm4, %v15315_v39  ;;  %v6422_v42 = vunpack.c.h.b16 %v15317_v57 }
 0x354   :  { %v11336_v30 = vpop.eup %11335  ;;  %v5126_v58 = vadd.f32 %v5125_v4, %v12882_v34  ;;  %v15321_v26 = vpop.f32.mrf.mxu3 }
 0x355   :  { %v5166_v53 = vpop.f32.mrf.mxu1  ;;  %v5776_v5 = vadd.f32 %v11336_v30, %v14567_v10  ;;  %v11338_v37 = vpop.eup %11337  ;;  %v6424_v21 = vpack.c.b16 %v6422_v42, %v6422_v42 }
 0x356   :  { %11339 = vtanh.f32 %v5126_v58  ;;  %v5779_v29 = vadd.f32 %v11338_v37, %v14540_v16  ;;  %v5191_v16 = vadd.f32 %v15239_v11, %v12882_v34  ;;  %v6375_v11 = vsel %vm5898_vm3, %v6369_v63, 0 }
 0x357   :  { %v5826_v59 = vmul.f32 0.25, %v5776_v5  ;;  %11341 = vtanh.f32 %v5165_v38  ;;  %v6432_v61 = vsel %vm5898_vm3, %v6424_v21, 0  ;;  %v6421_v38 = vunpack.c.l.b16 %v15317_v57 }
 0x358   :  { %v5829_v54 = vmul.f32 0.25, %v5779_v29 }
 0x359   :  { %v15330_v32 = vpack.c.bf16 %v5827_v3, %v5826_v59  ;;  %v6423_v25 = vpack.c.b16 %v6421_v38, %v6421_v38 }
 0x35b   :  { %v5127_v24 = vpop.f32.mrf.mxu2  ;;  %v5151_v10 = vpop.f32.mrf.mxu0  ;;  %v6476_v20 = vunpack.c.h.b16 %v15330_v32  ;;  %v6475_v42 = vunpack.c.l.b16 %v15330_v32  ;;  %v6429_v63 = vsel %vm5898_vm3, %v6423_v25, 0 }
 0x35c   :  { %v11340_v49 = vpop.eup %11339  ;;  %v5296_v12 = vpop.f32.mrf.mxu3  ;;  %v5152_v15 = vadd.f32 %v5151_v10, %v12882_v34  ;;  %v15377_v24 = vld [vmem:[%s16216_s3 + $0x40] sm:$0xff] }
 0x35d   :  { %v5216_v17 = vpop.f32.mrf.mxu1  ;;  %v5778_v56 = vadd.f32 %v11340_v49, %v14606_v28  ;;  %v6478_v35 = vpack.c.b16 %v6476_v20, %v6476_v20  ;;  %v11342_v62 = vpop.eup %11341  ;;  %v6477_v12 = vpack.c.b16 %v6475_v42, %v6475_v42 }
 0x35e   :  { %11343 = vtanh.f32 %v5152_v15  ;;  %10073 = vmatmul.msk.bf16.vlgmr.msrb.gmra.mxu0 %vm5894_vm4, %v15295_v47  ;;  %10090 = vmatmul.msk.bf16.vlgmr.msrb.gmra.mxu1 %vm5894_vm4, %v15336_v31  ;;  %v15356_v47 = vld [vmem:[%s16216_s3 + $0x58] sm:$0xff]  ;;  %v5781_v13 = vadd.f32 %v11342_v62, %v14426_v45  ;;  %v5217_v5 = vadd.f32 %v5216_v17, %v12882_v34 }
 0x35f   :  { %v5828_v51 = vmul.f32 0.25, %v5778_v56  ;;  %6333 = vmatpush.bf16.msrb.mxu0 %v6321_v52  ;;  %v6486_v28 = vsel %vm5898_vm3, %v6478_v35, 0  ;;  %6455 = vmatpush.bf16.msrb.mxu1 %v6432_v61  ;;  %11345 = vtanh.f32 %v5191_v16 }
 0x360   :  { %10081 = vmatmul.msk.bf16.vlgmr.msrb.gmra.mxu2 %vm5894_vm4, %v15233_v0  ;;  %6509 = vmatpush.bf16.msrb.mxu3 %v6486_v28  ;;  %v5831_v1 = vmul.f32 0.25, %v5781_v13 }
 0x361   :  { %6387 = vmatpush.bf16.msrb.mxu2 %v6375_v11  ;;  %v15358_v18 = vpack.c.bf16 %v5829_v54, %v5828_v51 }
 0x363   :  { %v5177_v44 = vpop.f32.mrf.mxu2  ;;  %v5153_v4 = vpop.f32.mrf.mxu0  ;;  %10130 = vmatmul.msk.bf16.vlgmr.msrb.gmra.mxu3 %vm5894_vm4, %v15356_v47  ;;  %v6530_v3 = vunpack.c.h.b16 %v15358_v18 }
 0x364   :  { %v11344_v36 = vpop.eup %11343  ;;  %v5178_v0 = vadd.f32 %v5177_v44, %v12882_v34  ;;  %v15362_v30 = vpop.f32.mrf.mxu3 }
 0x365   :  { %v5218_v58 = vpop.f32.mrf.mxu1  ;;  %v5780_v53 = vadd.f32 %v11344_v36, %v14646_v22  ;;  %v11346_v59 = vpop.eup %11345  ;;  %v6532_v57 = vpack.c.b16 %v6530_v3, %v6530_v3  ;;  %v6529_v36 = vunpack.c.l.b16 %v15358_v18 }
 0x366   :  { %11347 = vtanh.f32 %v5178_v0  ;;  %v5783_v23 = vadd.f32 %v11346_v59, %v14619_v41  ;;  %v5243_v41 = vadd.f32 %v15280_v2, %v12882_v34  ;;  %v6483_v2 = vsel %vm5898_vm3, %v6477_v12, 0  ;;  %v15418_v59 = vld [vmem:[%s16216_s3 + $0x50] sm:$0xff] }
 0x367   :  { %v5830_v45 = vmul.f32 0.25, %v5780_v53  ;;  %11349 = vtanh.f32 %v5217_v5  ;;  %v6540_v16 = vsel %vm5898_vm3, %v6532_v57, 0 }
 0x368   :  { %v5833_v56 = vmul.f32 0.25, %v5783_v23 }
 0x369   :  { %v15371_v37 = vpack.c.bf16 %v5831_v1, %v5830_v45  ;;  %v6531_v1 = vpack.c.b16 %v6529_v36, %v6529_v36  ;;  %v15459_v36 = vld [vmem:[%s16216_s3 + $0x60] sm:$0xff] }
 0x36b   :  { %v5179_v29 = vpop.f32.mrf.mxu2  ;;  %v5203_v22 = vpop.f32.mrf.mxu0  ;;  %v6584_v10 = vunpack.c.h.b16 %v15371_v37  ;;  %v6583_v5 = vunpack.c.l.b16 %v15371_v37 }
 0x36c   :  { %v11348_v21 = vpop.eup %11347  ;;  %v5348_v20 = vpop.f32.mrf.mxu3  ;;  %v5204_v32 = vadd.f32 %v5203_v22, %v12882_v34 }
 0x36d   :  { %v5268_v49 = vpop.f32.mrf.mxu1  ;;  %v5782_v15 = vadd.f32 %v11348_v21, %v14682_v55  ;;  %v6586_v17 = vpack.c.b16 %v6584_v10, %v6584_v10  ;;  %v11350_v52 = vpop.eup %11349  ;;  %v6585_v22 = vpack.c.b16 %v6583_v5, %v6583_v5  ;;  %v6537_v21 = vsel %vm5898_vm3, %v6531_v1, 0 }
 0x36e   :  { %11351 = vtanh.f32 %v5204_v32  ;;  %10089 = vmatmul.msk.bf16.vlgmr.msra.gmra.mxu0 %vm5894_vm4, %v15336_v31  ;;  %10106 = vmatmul.msk.bf16.vlgmr.msra.gmra.mxu1 %vm5894_vm4, %v15377_v24  ;;  %v15397_v31 = vld [vmem:[%s16216_s3 + $0x68] sm:$0xff]  ;;  %v5785_v51 = vadd.f32 %v11350_v52, %v14502_v46  ;;  %v5269_v4 = vadd.f32 %v5268_v49, %v12882_v34 }
 0x36f   :  { %v5832_v35 = vmul.f32 0.25, %v5782_v15  ;;  %6441 = vmatpush.bf16.msra.mxu0 %v6429_v63  ;;  %v6594_v55 = vsel %vm5898_vm3, %v6586_v17, 0  ;;  %6563 = vmatpush.bf16.msra.mxu1 %v6540_v16  ;;  %11353 = vtanh.f32 %v5243_v41 }
 0x370   :  { %10097 = vmatmul.msk.bf16.vlgmr.msra.gmra.mxu2 %vm5894_vm4, %v15274_v6  ;;  %6617 = vmatpush.bf16.msra.mxu3 %v6594_v55  ;;  %v5835_v0 = vmul.f32 0.25, %v5785_v51 }
 0x371   :  { %6495 = vmatpush.bf16.msra.mxu2 %v6483_v2  ;;  %v15399_v54 = vpack.c.bf16 %v5833_v56, %v5832_v35 }
 0x373   :  { %v5229_v61 = vpop.f32.mrf.mxu2  ;;  %v5205_v28 = vpop.f32.mrf.mxu0  ;;  %10146 = vmatmul.msk.bf16.vlgmr.msra.gmra.mxu3 %vm5894_vm4, %v15397_v31  ;;  %v6638_v58 = vunpack.c.h.b16 %v15399_v54  ;;  %v6637_v2 = vunpack.c.l.b16 %v15399_v54 }
 0x374   :  { %v11352_v62 = vpop.eup %11351  ;;  %v5230_v6 = vadd.f32 %v5229_v61, %v12882_v34  ;;  %v15403_v11 = vpop.f32.mrf.mxu3 }
 0x375   :  { %v5270_v13 = vpop.f32.mrf.mxu1  ;;  %v5784_v44 = vadd.f32 %v11352_v62, %v14722_v60  ;;  %v11354_v53 = vpop.eup %11353  ;;  %v6640_v18 = vpack.c.b16 %v6638_v58, %v6638_v58 }
 0x376   :  { %11355 = vtanh.f32 %v5230_v6  ;;  %v5787_v45 = vadd.f32 %v11354_v53, %v14695_v9  ;;  %v5295_v9 = vadd.f32 %v15321_v26, %v12882_v34  ;;  %v6591_v26 = vsel %vm5898_vm3, %v6585_v22, 0 }
 0x377   :  { %v5834_v46 = vmul.f32 0.25, %v5784_v44  ;;  %11357 = vtanh.f32 %v5269_v4  ;;  %v6648_v49 = vsel %vm5898_vm3, %v6640_v18, 0  ;;  %v6639_v13 = vpack.c.b16 %v6637_v2, %v6637_v2 }
 0x378   :  { %v5837_v20 = vmul.f32 0.25, %v5787_v45 }
 0x379   :  { %v15412_v38 = vpack.c.bf16 %v5835_v0, %v5834_v46 }
 0x37b   :  { %v5231_v3 = vpop.f32.mrf.mxu2  ;;  %v5255_v60 = vpop.f32.mrf.mxu0  ;;  %v6692_v42 = vunpack.c.h.b16 %v15412_v38  ;;  %v6691_v62 = vunpack.c.l.b16 %v15412_v38 }
 0x37c   :  { %v11356_v25 = vpop.eup %11355  ;;  %v5400_v23 = vpop.f32.mrf.mxu3  ;;  %v5256_v37 = vadd.f32 %v5255_v60, %v12882_v34  ;;  %v6645_v3 = vsel %vm5898_vm3, %v6639_v13, 0 }
 0x37d   :  { %v5320_v29 = vpop.f32.mrf.mxu1  ;;  %v5786_v57 = vadd.f32 %v11356_v25, %v14758_v40  ;;  %v6694_v10 = vpack.c.b16 %v6692_v42, %v6692_v42  ;;  %v11358_v12 = vpop.eup %11357  ;;  %v6693_v5 = vpack.c.b16 %v6691_v62, %v6691_v62 }
 0x37e   :  { %11359 = vtanh.f32 %v5256_v37  ;;  %10105 = vmatmul.msk.bf16.vlgmr.msrb.gmra.mxu0 %vm5894_vm4, %v15377_v24  ;;  %10122 = vmatmul.msk.bf16.vlgmr.msrb.gmra.mxu1 %vm5894_vm4, %v15418_v59  ;;  %v15438_v24 = vld [vmem:[%s16216_s3 + $0x78] sm:$0xff]  ;;  %v5789_v17 = vadd.f32 %v11358_v12, %v14578_v48  ;;  %v5321_v52 = vadd.f32 %v5320_v29, %v12882_v34 }
 0x37f   :  { %v5836_v32 = vmul.f32 0.25, %v5786_v57  ;;  %6549 = vmatpush.bf16.msrb.mxu0 %v6537_v21  ;;  %v6702_v40 = vsel %vm5898_vm3, %v6694_v10, 0  ;;  %6671 = vmatpush.bf16.msrb.mxu1 %v6648_v49  ;;  %11361 = vtanh.f32 %v5295_v9 }
 0x380   :  { %10113 = vmatmul.msk.bf16.vlgmr.msrb.gmra.mxu2 %vm5894_vm4, %v15315_v39  ;;  %6725 = vmatpush.bf16.msrb.mxu3 %v6702_v40  ;;  %v5839_v51 = vmul.f32 0.25, %v5789_v17 }
 0x381   :  { %6603 = vmatpush.bf16.msrb.mxu2 %v6591_v26  ;;  %v15440_v15 = vpack.c.bf16 %v5837_v20, %v5836_v32 }
 0x383   :  { %v5281_v41 = vpop.f32.mrf.mxu2  ;;  %v5257_v63 = vpop.f32.mrf.mxu0  ;;  %10162 = vmatmul.msk.bf16.vlgmr.msrb.gmra.mxu3 %vm5894_vm4, %v15438_v24  ;;  %v6746_v61 = vunpack.c.h.b16 %v15440_v15  ;;  %v6745_v32 = vunpack.c.l.b16 %v15440_v15 }
 0x384   :  { %v11360_v56 = vpop.eup %11359  ;;  %v5282_v39 = vadd.f32 %v5281_v41, %v12882_v34  ;;  %v15444_v35 = vpop.f32.mrf.mxu3 }
 0x385   :  { %v5322_v16 = vpop.f32.mrf.mxu1  ;;  %v5788_v55 = vadd.f32 %v11360_v56, %v14798_v8  ;;  %v11362_v28 = vpop.eup %11361  ;;  %v6748_v54 = vpack.c.b16 %v6746_v61, %v6746_v61  ;;  %v6747_v41 = vpack.c.b16 %v6745_v32, %v6745_v32 }
 0x386   :  { %11363 = vtanh.f32 %v5282_v39  ;;  %v5791_v44 = vadd.f32 %v11362_v28, %v14771_v43  ;;  %v5347_v43 = vadd.f32 %v15362_v30, %v12882_v34  ;;  %v6699_v30 = vsel %vm5898_vm3, %v6693_v5, 0  ;;  %v15500_v39 = vld [vmem:[%s16216_s3 + $0x70] sm:$0xff] }
 0x387   :  { %v5838_v48 = vmul.f32 0.25, %v5788_v55  ;;  %11365 = vtanh.f32 %v5321_v52  ;;  %v6756_v42 = vsel %vm5898_vm3, %v6748_v54, 0  ;;  %v6753_v62 = vsel %vm5898_vm3, %v6747_v41, 0  ;;  %v16265_v54 = vld [vmem:[#allocation6_spill] sm:$0xff] }
 0x388   :  { %v5841_v60 = vmul.f32 0.25, %v5791_v44 }
 0x389   :  { %v15453_v6 = vpack.c.bf16 %v5839_v51, %v5838_v48 }
 0x38b   :  { %v5283_v4 = vpop.f32.mrf.mxu2  ;;  %v5307_v8 = vpop.f32.mrf.mxu0  ;;  %v6800_v0 = vunpack.c.h.b16 %v15453_v6  ;;  %v6799_v26 = vunpack.c.l.b16 %v15453_v6 }
 0x38c   :  { %v11364_v46 = vpop.eup %11363  ;;  %v5308_v58 = vadd.f32 %v5307_v8, %v12882_v34  ;;  %v5452_v38 = vpop.f32.mrf.mxu3  ;;  %v15522_v8 = vld [vmem:[%s16216_s3 + $0x98] sm:$0xff] }
 0x38d   :  { %v5372_v53 = vpop.f32.mrf.mxu1  ;;  %v5790_v1 = vadd.f32 %v11364_v46, %v14841_v50  ;;  %v6802_v45 = vpack.c.b16 %v6800_v0, %v6800_v0  ;;  %v11366_v25 = vpop.eup %11365  ;;  %v6801_v51 = vpack.c.b16 %v6799_v26, %v6799_v26 }
 0x38e   :  { %11367 = vtanh.f32 %v5308_v58  ;;  %10121 = vmatmul.msk.bf16.vlgmr.msra.gmra.mxu0 %vm5894_vm4, %v15418_v59  ;;  %10138 = vmatmul.msk.bf16.vlgmr.msra.gmra.mxu1 %vm5894_vm4, %v15459_v36  ;;  %v15479_v59 = vld [vmem:[%s16216_s3 + $0x88] sm:$0xff]  ;;  %v5793_v37 = vadd.f32 %v11366_v25, %v14657_v27  ;;  %v5373_v20 = vadd.f32 %v5372_v53, %v12882_v34 }
 0x38f   :  { %v5840_v18 = vmul.f32 0.25, %v5790_v1  ;;  %6657 = vmatpush.bf16.msra.mxu0 %v6645_v3  ;;  %v6810_v50 = vsel %vm5898_vm3, %v6802_v45, 0  ;;  %6779 = vmatpush.bf16.msra.mxu1 %v6756_v42  ;;  %11369 = vtanh.f32 %v5347_v43 }
 0x390   :  { %10129 = vmatmul.msk.bf16.vlgmr.msra.gmra.mxu2 %vm5894_vm4, %v15356_v47  ;;  %6833 = vmatpush.bf16.msra.mxu3 %v6810_v50  ;;  %v5843_v49 = vmul.f32 0.25, %v5793_v37  ;;  %v16266_v37 = vld [vmem:[#allocation12_spill] sm:$0xff] }
 0x391   :  { %6711 = vmatpush.bf16.msra.mxu2 %v6699_v30  ;;  %v15481_v23 = vpack.c.bf16 %v5841_v60, %v5840_v18 }
 0x393   :  { %v5333_v29 = vpop.f32.mrf.mxu2  ;;  %v5309_v22 = vpop.f32.mrf.mxu0  ;;  %10178 = vmatmul.msk.bf16.vlgmr.msra.gmra.mxu3 %vm5894_vm4, %v15479_v59  ;;  %v6854_v40 = vunpack.c.h.b16 %v15481_v23  ;;  %v6853_v45 = vunpack.c.l.b16 %v15481_v23  ;;  %v10802_v23 = vld [vmem:[%s16216_s3 + $0x80] sm:$0xff] }
 0x394   :  { %v11368_v57 = vpop.eup %11367  ;;  %v5334_v47 = vadd.f32 %v5333_v29, %v12882_v34  ;;  %v15487_v9 = vpop.f32.mrf.mxu3 }
 0x395   :  { %v5374_v10 = vpop.f32.mrf.mxu1  ;;  %v5792_v21 = vadd.f32 %v11368_v57, %v14880_v19  ;;  %v11370_v12 = vpop.eup %11369  ;;  %v6856_v15 = vpack.c.b16 %v6854_v40, %v6854_v40  ;;  %v6855_v30 = vpack.c.b16 %v6853_v45, %v6853_v45 }
 0x396   :  { %11371 = vtanh.f32 %v5334_v47  ;;  %v5795_v63 = vadd.f32 %v11370_v12, %v14853_v7  ;;  %v5399_v7 = vadd.f32 %v15403_v11, %v12882_v34  ;;  %v6807_v11 = vsel %vm5898_vm3, %v6801_v51, 0 }
 0x397   :  { %v5842_v27 = vmul.f32 0.25, %v5792_v21  ;;  %11373 = vtanh.f32 %v5373_v20 }
 0x398   :  { %v5845_v6 = vmul.f32 0.25, %v5795_v63 }
 0x399   :  { %v15494_v17 = vpack.c.bf16 %v5843_v49, %v5842_v27  ;;  %v5451_v49 = vadd.f32 %v15444_v35, %v12882_v34  ;;  %v16267_v27 = vld [vmem:[#allocation10_spill] sm:$0xff] }
 0x39b   :  { %v5335_v56 = vpop.f32.mrf.mxu2  ;;  %v5359_v19 = vpop.f32.mrf.mxu0  ;;  %v6908_v16 = vunpack.c.h.b16 %v15494_v17  ;;  %v6907_v50 = vunpack.c.l.b16 %v15494_v17  ;;  %v6861_v17 = vsel %vm5898_vm3, %v6855_v30, 0 }
 0x39c   :  { %v11372_v55 = vpop.eup %11371  ;;  %v5360_v52 = vadd.f32 %v5359_v19, %v12882_v34  ;;  %v15505_v28 = vpop.f32.mrf.mxu3 }
 0x39d   :  { %v5424_v2 = vpop.f32.mrf.mxu1  ;;  %v5794_v48 = vadd.f32 %v11372_v55, %v14915_v33  ;;  %v6910_v61 = vpack.c.b16 %v6908_v16, %v6908_v16  ;;  %v6864_v33 = vsel %vm5898_vm3, %v6856_v15, 0  ;;  %v11374_v4 = vpop.eup %11373  ;;  %v6909_v32 = vpack.c.b16 %v6907_v50, %v6907_v50  ;;  %v16268_v55 = vld [vmem:[#allocation9_spill] sm:$0xff] }
 0x39e   :  { %11375 = vtanh.f32 %v5360_v52  ;;  %10137 = vmatmul.msk.bf16.vlgmr.msrb.gmra.mxu0 %vm5894_vm4, %v15459_v36  ;;  %10154 = vmatmul.msk.bf16.vlgmr.msrb.gmra.mxu1 %vm5894_vm4, %v15500_v39  ;;  %v5797_v0 = vadd.f32 %v11374_v4, %v16265_v54  ;;  %v5425_v1 = vadd.f32 %v5424_v2, %v12882_v34 }
 0x39f   :  { %v5844_v13 = vmul.f32 0.25, %v5794_v48  ;;  %6765 = vmatpush.bf16.msrb.mxu0 %v6753_v62  ;;  %v6918_v44 = vsel %vm5898_vm3, %v6910_v61, 0  ;;  %6887 = vmatpush.bf16.msrb.mxu1 %v6864_v33  ;;  %11377 = vtanh.f32 %v5399_v7  ;;  %v16269_v7 = vld [vmem:[#allocation13_spill] sm:$0xff] }
 0x3a0   :  { %10145 = vmatmul.msk.bf16.vlgmr.msrb.gmra.mxu2 %vm5894_vm4, %v15397_v31  ;;  %6941 = vmatpush.bf16.msrb.mxu3 %v6918_v44  ;;  %v5847_v43 = vmul.f32 0.25, %v5797_v0 }
 0x3a1   :  { %6819 = vmatpush.bf16.msrb.mxu2 %v6807_v11  ;;  %v15524_v36 = vpack.c.bf16 %v5845_v6, %v5844_v13 }
 0x3a3   :  { %v5385_v46 = vpop.f32.mrf.mxu2  ;;  %v5361_v58 = vpop.f32.mrf.mxu0  ;;  %10194 = vmatmul.msk.bf16.vlgmr.msrb.gmra.mxu3 %vm5894_vm4, %v15522_v8  ;;  %v6962_v60 = vunpack.c.h.b16 %v15524_v36  ;;  %v6961_v6 = vunpack.c.l.b16 %v15524_v36 }
 0x3a4   :  { %v11376_v53 = vpop.eup %11375  ;;  %v5386_v31 = vadd.f32 %v5385_v46, %v12882_v34  ;;  %v16270_v46 = vld [vmem:[#allocation11_spill] sm:$0xff] }
 0x3a5   :  { %v5426_v5 = vpop.f32.mrf.mxu1  ;;  %v5796_v38 = vadd.f32 %v11376_v53, %v14954_v14  ;;  %v11378_v42 = vpop.eup %11377  ;;  %v6964_v57 = vpack.c.b16 %v6962_v60, %v6962_v60  ;;  %v6963_v58 = vpack.c.b16 %v6961_v6, %v6961_v6 }
 0x3a6   :  { %11379 = vtanh.f32 %v5386_v31  ;;  %v15534_v18 = vpop.f32.mrf.mxu3  ;;  %v5799_v14 = vadd.f32 %v11378_v42, %v16266_v37  ;;  %v10804_v5 = vld [vmem:[%s16216_s3 + $0x90] sm:$0xff] }
 0x3a7   :  { %v5846_v3 = vmul.f32 0.25, %v5796_v38  ;;  %11381 = vtanh.f32 %v5425_v1  ;;  %v6972_v56 = vsel %vm5898_vm3, %v6964_v57, 0  ;;  %v6969_v30 = vsel %vm5898_vm3, %v6963_v58, 0 }
 0x3a8   :  { %v5849_v41 = vmul.f32 0.25, %v5799_v14 }
 0x3a9   :  { %v15537_v25 = vpack.c.bf16 %v5847_v43, %v5846_v3  ;;  %v16271_v3 = vld [vmem:[#allocation14_spill] sm:$0xff] }
 0x3ab   :  { %v5387_v29 = vpop.f32.mrf.mxu2  ;;  %v5411_v22 = vpop.f32.mrf.mxu0  ;;  %v7016_v47 = vunpack.c.h.b16 %v15537_v25  ;;  %v7015_v54 = vunpack.c.l.b16 %v15537_v25 }
 0x3ac   :  { %v11380_v10 = vpop.eup %11379  ;;  %v5412_v21 = vadd.f32 %v5411_v22, %v12882_v34 }
 0x3ad   :  { %v5928_v20 = vpop.f32.mrf.mxu1  ;;  %v5798_v40 = vadd.f32 %v11380_v10, %v16267_v27  ;;  %v7018_v26 = vpack.c.b16 %v7016_v47, %v7016_v47  ;;  %v11382_v15 = vpop.eup %11381  ;;  %v7017_v43 = vpack.c.b16 %v7015_v54, %v7015_v54 }
 0x3ae   :  { %v5976_v12 = vadd.f32 %v15487_v9, %v5928_v20  ;;  %11383 = vtanh.f32 %v5412_v21  ;;  %10153 = vmatmul.msk.bf16.vlgmr.msra.gmra.mxu0 %vm5894_vm4, %v15500_v39  ;;  %10170 = vmatmul.msk.bf16.vlgmr.msra.gmra.mxu1 %vm5894_vm4, %v10802_v23  ;;  %v15555_v19 = vpop.f32.mrf.mxu3  ;;  %v6915_v9 = vsel %vm5898_vm3, %v6909_v32, 0  ;;  %v15563_v39 = vld [vmem:[%s16216_s3 + $0xa8] sm:$0xff]  ;;  %v5801_v52 = vadd.f32 %v11382_v15, %v16268_v55 }
 0x3af   :  { %v5848_v63 = vmul.f32 0.25, %v5798_v40  ;;  %6873 = vmatpush.bf16.msra.mxu0 %v6861_v17  ;;  %v7026_v35 = vsel %vm5898_vm3, %v7018_v26, 0  ;;  %6995 = vmatpush.bf16.msra.mxu1 %v6972_v56  ;;  %11385 = vtanh.f32 %v5451_v49  ;;  %v7023_v47 = vsel %vm5898_vm3, %v7017_v43, 0 }
 0x3b0   :  { %10161 = vmatmul.msk.bf16.vlgmr.msra.gmra.mxu2 %vm5894_vm4, %v15438_v24  ;;  %7049 = vmatpush.bf16.msra.mxu3 %v7026_v35  ;;  %v5851_v33 = vmul.f32 0.25, %v5801_v52 }
 0x3b1   :  { %6927 = vmatpush.bf16.msra.mxu2 %v6915_v9  ;;  %v5876_v16 = vpack.c.bf16 %v5849_v41, %v5848_v63  ;;  %v10806_v41 = vld [vmem:[%s16216_s3 + $0xa0] sm:$0xff] }
 0x3b3   :  { %v5437_v2 = vpop.f32.mrf.mxu2  ;;  %v5413_v51 = vpop.f32.mrf.mxu0  ;;  %10210 = vmatmul.msk.bf16.vlgmr.msra.gmra.mxu3 %vm5894_vm4, %v15563_v39  ;;  %v7070_v4 = vunpack.c.h.b16 %v5876_v16 }
 0x3b4   :  { %v11384_v48 = vpop.eup %11383  ;;  %v5438_v61 = vadd.f32 %v5437_v2, %v12882_v34 }
 0x3b5   :  { %v15567_v24 = vpop.f32.mrf.mxu1  ;;  %v5800_v62 = vadd.f32 %v11384_v48, %v16269_v7  ;;  %v11386_v13 = vpop.eup %11385  ;;  %v7072_v38 = vpack.c.b16 %v7070_v4, %v7070_v4 }
 0x3b6   :  { %11387 = vtanh.f32 %v5438_v61  ;;  %v6187_v11 = vpop.f32.mrf.mxu3  ;;  %v5803_v34 = vadd.f32 %v11386_v13, %v16270_v46 }
 0x3b7   :  { %v5850_v44 = vmul.f32 0.25, %v5800_v62  ;;  %v7080_v29 = vsel %vm5898_vm3, %v7072_v38, 0  ;;  %v7223_v38 = vld [vmem:[%s16215_s4 + $0x8] sm:$0xff]  ;;  %s11463_s4 = smov 106  }
 0x3b8   :  { %v5853_v25 = vmul.f32 0.25, %v5803_v34  ;;  %7231 = vperm.xlu1 %10867, %v7223_v38  }
 0x3b9   :  { %v5877_v0 = vpack.c.bf16 %v5851_v33, %v5850_v44 }
 0x3bb   :  { %v5439_v53 = vpop.f32.mrf.mxu2  ;;  %v5914_v31 = vpop.f32.mrf.mxu0  ;;  %v7124_v1 = vunpack.c.h.b16 %v5877_v0  ;;  %v7123_v27 = vunpack.c.l.b16 %v5877_v0 }
 0x3bc   :  { %v11388_v36 = vpop.eup %11387 }
 0x3bd   :  { %v6025_v45 = vpop.f32.mrf.mxu1  ;;  %v5802_v60 = vadd.f32 %v11388_v36, %v16271_v3  ;;  %v7126_v50 = vpack.c.b16 %v7124_v1, %v7124_v1  ;;  %v7125_v15 = vpack.c.b16 %v7123_v27, %v7123_v27 }
 0x3be   :  { %v6031_v42 = vadd.f32 %v6025_v45, %v5976_v12  ;;  %10169 = vmatmul.msk.bf16.vlgmr.msrb.gmra.mxu0 %vm5894_vm4, %v10802_v23  ;;  %10186 = vmatmul.msk.bf16.vlgmr.msrb.gmra.mxu1 %vm5894_vm4, %v10804_v5  ;;  %v15585_v57 = vpop.f32.mrf.mxu3  ;;  %v15593_v23 = vld [vmem:[%s16216_s3 + $0xb8] sm:$0xff] }
 0x3bf   :  { %v5852_v37 = vmul.f32 0.25, %v5802_v60  ;;  %6981 = vmatpush.bf16.msrb.mxu0 %v6969_v30  ;;  %v7134_v22 = vsel %vm5898_vm3, %v7126_v50, 0  ;;  %7103 = vmatpush.bf16.msrb.mxu1 %v7080_v29  ;;  %v7131_v2 = vsel %vm5898_vm3, %v7125_v15, 0 }
 0x3c0   :  { %v6085_v14 = vadd.f32 %v15534_v18, %v6031_v42  ;;  %10177 = vmatmul.msk.bf16.vlgmr.msrb.gmra.mxu2 %vm5894_vm4, %v15479_v59  ;;  %7157 = vmatpush.bf16.msrb.mxu3 %v7134_v22  ;;  %v7069_v59 = vunpack.c.l.b16 %v5876_v16 }
 0x3c1   :  { %7035 = vmatpush.bf16.msrb.mxu2 %v7023_v47  ;;  %v5878_v18 = vpack.c.bf16 %v5853_v25, %v5852_v37 }
 0x3c2   :  { %v7071_v12 = vpack.c.b16 %v7069_v59, %v7069_v59 }
 0x3c3   :  { %v5961_v10 = vpop.f32.mrf.mxu2  ;;  %v15595_v21 = vpop.f32.mrf.mxu0  ;;  %10226 = vmatmul.msk.bf16.vlgmr.msrb.gmra.mxu3 %vm5894_vm4, %v15593_v23  ;;  %v7178_v49 = vunpack.c.h.b16 %v5878_v18  ;;  %v7177_v6 = vunpack.c.l.b16 %v5878_v18 }
 0x3c4   :  { %v5962_v20 = vadd.f32 %v5961_v10, %v5914_v31  ;;  %v7077_v16 = vsel %vm5898_vm3, %v7071_v12, 0 }
 0x3c5   :  { %v15597_v32 = vpop.f32.mrf.mxu1  ;;  %v7180_v63 = vpack.c.b16 %v7178_v49, %v7178_v49  ;;  %v7179_v13 = vpack.c.b16 %v7177_v6, %v7177_v6 }
 0x3c6   :  { %v6295_v40 = vpop.f32.mrf.mxu3 }
 0x3c7   :  { %v7188_v52 = vsel %vm5898_vm3, %v7180_v63, 0  ;;  %v7185_v46 = vsel %vm5898_vm3, %v7179_v13, 0 }
 0x3cb   :  { %v15601_v26 = vpop.f32.mrf.mxu2  ;;  %v6011_v17 = vpop.f32.mrf.mxu0 }
 0x3cc   :  { %v6030_v56 = vadd.f32 %v6011_v17, %v5962_v20 }
 0x3cd   :  { %v6133_v35 = vpop.f32.mrf.mxu1 }
 0x3ce   :  { %v6139_v9 = vadd.f32 %v6133_v35, %v6085_v14  ;;  %10185 = vmatmul.msk.bf16.vlgmr.msra.gmra.mxu0 %vm5894_vm4, %v10804_v5  ;;  %10202 = vmatmul.msk.bf16.vlgmr.msra.gmra.mxu1 %vm5894_vm4, %v10806_v41  ;;  %v15613_v51 = vpop.f32.mrf.mxu3 }
 0x3cf   :  { %7089 = vmatpush.bf16.msra.mxu0 %v7077_v16  ;;  %7211 = vmatpush.bf16.msra.mxu1 %v7188_v52 }
 0x3d0   :  { %v6193_v55 = vadd.f32 %v6187_v11, %v6139_v9  ;;  %10193 = vmatmul.msk.bf16.vlgmr.msra.gmra.mxu2 %vm5894_vm4, %v15522_v8  ;;  %v10808_v8 = vld [vmem:[%s16216_s3 + $0xb0] sm:$0xff] }
 0x3d1   :  { %7143 = vmatpush.bf16.msra.mxu2 %v7131_v2 }
 0x3d3   :  { %v6065_v48 = vpop.f32.mrf.mxu2  ;;  %v15615_v61 = vpop.f32.mrf.mxu0 }
 0x3d4   :  { %v6084_v7 = vadd.f32 %v6065_v48, %v6030_v56 }
 0x3d5   :  { %v15617_v62 = vpop.f32.mrf.mxu1 }
 0x3d6   :  { %v6403_v54 = vpop.f32.mrf.mxu3 }
 0x3db   :  { %v15619_v33 = vpop.f32.mrf.mxu2  ;;  %v6119_v44 = vpop.f32.mrf.mxu0 }
 0x3dc   :  { %v6138_v4 = vadd.f32 %v6119_v44, %v6084_v7 }
 0x3dd   :  { %v6241_v11 = vpop.f32.mrf.mxu1 }
 0x3de   :  { %v6247_v0 = vadd.f32 %v6241_v11, %v6193_v55  ;;  %10201 = vmatmul.msk.bf16.vlgmr.msrb.gmra.mxu0 %vm5894_vm4, %v10806_v41  ;;  %10218 = vmatmul.msk.bf16.vlgmr.msrb.gmra.mxu1 %vm5894_vm4, %v10808_v8  ;;  %v15636_v1 = vpop.f32.mrf.mxu3 }
 0x3df   :  { %7197 = vmatpush.bf16.msrb.mxu0 %v7185_v46 }
 0x3e0   :  { %v6301_v34 = vadd.f32 %v6295_v40, %v6247_v0  ;;  %10209 = vmatmul.msk.bf16.vlgmr.msrb.gmra.mxu2 %vm5894_vm4, %v15563_v39  ;;  %v10810_v39 = vld [vmem:[%s16216_s3 + $0xc0] sm:$0xff]  ;;  %s11462_s3 = smov 28  }
 0x3e3   :  { %v6173_v58 = vpop.f32.mrf.mxu2  ;;  %v15629_v53 = vpop.f32.mrf.mxu0 }
 0x3e4   :  { %v6192_v31 = vadd.f32 %v6173_v58, %v6138_v4 }
 0x3e5   :  { %v15631_v5 = vpop.f32.mrf.mxu1 }
 0x3e6   :  { %v6511_v50 = vpop.f32.mrf.mxu3 }
 0x3eb   :  { %v15638_v36 = vpop.f32.mrf.mxu2  ;;  %v6227_v45 = vpop.f32.mrf.mxu0 }
 0x3ec   :  { %v6246_v43 = vadd.f32 %v6227_v45, %v6192_v31 }
 0x3ed   :  { %v6349_v3 = vpop.f32.mrf.mxu1 }
 0x3ee   :  { %v6355_v60 = vadd.f32 %v6349_v3, %v6301_v34  ;;  %10217 = vmatmul.msk.bf16.vlgmr.msra.gmra.mxu0 %vm5894_vm4, %v10808_v8  ;;  %10234 = vmatmul.msk.bf16.vlgmr.msra.gmra.mxu1 %vm5894_vm4, %v10810_v39  ;;  %v15651_v29 = vpop.f32.mrf.mxu3 }
 0x3f0   :  { %v6409_v42 = vadd.f32 %v6403_v54, %v6355_v60  ;;  %10225 = vmatmul.msk.bf16.vlgmr.msra.gmra.mxu2 %vm5894_vm4, %v15593_v23 }
 0x3f3   :  { %v6281_v25 = vpop.f32.mrf.mxu2  ;;  %v15647_v30 = vpop.f32.mrf.mxu0 }
 0x3f4   :  { %v6300_v37 = vadd.f32 %v6281_v25, %v6246_v43 }
 0x3f5   :  { %v15649_v14 = vpop.f32.mrf.mxu1 }
 0x3f6   :  { %v6619_v12 = vpop.f32.mrf.mxu3 }
 0x3fb   :  { %v15653_v22 = vpop.f32.mrf.mxu2  ;;  %v6335_v47 = vpop.f32.mrf.mxu0 }
 0x3fc   :  { %v6354_v18 = vadd.f32 %v6335_v47, %v6300_v37 }
 0x3fd   :  { %v6457_v10 = vpop.f32.mrf.mxu1 }
 0x3fe   :  { %v6463_v20 = vadd.f32 %v6457_v10, %v6409_v42  ;;  %10233 = vmatmul.msk.bf16.vlgmr.msrb.gmra.mxu0 %vm5894_vm4, %v10810_v39  ;;  %v15662_v15 = vpop.f32.mrf.mxu3  ;;  %v5978_v42 = vadd.f32 %v15505_v28, %v15567_v24 }
 0x400   :  { %v6517_v59 = vadd.f32 %v6511_v50, %v6463_v20  ;;  %v6033_v47 = vadd.f32 %v15597_v32, %v5978_v42  ;;  %v5964_v42 = vadd.f32 %v15601_v26, %v15595_v21 }
 0x403   :  { %v6389_v49 = vpop.f32.mrf.mxu2  ;;  %v15656_v23 = vpop.f32.mrf.mxu0 }
 0x404   :  { %v6408_v27 = vadd.f32 %v6389_v49, %v6354_v18  ;;  %v6087_v18 = vadd.f32 %v15555_v19, %v6033_v47 }
 0x405   :  { %v15658_v40 = vpop.f32.mrf.mxu1 }
 0x406   :  { %v6727_v2 = vpop.f32.mrf.mxu3  ;;  %v6141_v49 = vadd.f32 %v15617_v62, %v6087_v18 }
 0x40b   :  { %v15660_v17 = vpop.f32.mrf.mxu2  ;;  %v6443_v41 = vpop.f32.mrf.mxu0 }
 0x40c   :  { %v6462_v63 = vadd.f32 %v6443_v41, %v6408_v27  ;;  %v6195_v41 = vadd.f32 %v15585_v57, %v6141_v49 }
 0x40d   :  { %v6565_v56 = vpop.f32.mrf.mxu1 }
 0x40e   :  { %v6571_v35 = vadd.f32 %v6565_v56, %v6517_v59  ;;  %v15672_v44 = vpop.f32.mrf.mxu3 }
 0x410   :  { %v6625_v28 = vadd.f32 %v6619_v12, %v6571_v35  ;;  %v6032_v12 = vadd.f32 %v15615_v61, %v5964_v42 }
 0x413   :  { %v6497_v9 = vpop.f32.mrf.mxu2  ;;  %v15664_v16 = vpop.f32.mrf.mxu0 }
 0x414   :  { %v6516_v55 = vadd.f32 %v6497_v9, %v6462_v63  ;;  %v6249_v63 = vadd.f32 %v15631_v5, %v6195_v41  ;;  %v6086_v5 = vadd.f32 %v15619_v33, %v6032_v12 }
 0x415   :  { %v15666_v52 = vpop.f32.mrf.mxu1 }
 0x416   :  { %v6835_v34 = vpop.f32.mrf.mxu3  ;;  %v6303_v62 = vadd.f32 %v15613_v51, %v6249_v63  ;;  %v6140_v18 = vadd.f32 %v15629_v53, %v6086_v5 }
 0x418   :  { %v6357_v35 = vadd.f32 %v15649_v14, %v6303_v62  ;;  %v7227_v62 = vpop.permute.xlu0 %7226 }
 0x41a   :  { %v6411_v49 = vadd.f32 %v15636_v1, %v6357_v35 }
 0x41b   :  { %v15668_v48 = vpop.f32.mrf.mxu2  ;;  %v6551_v7 = vpop.f32.mrf.mxu0 }
 0x41c   :  { %v15670_v6 = vadd.f32 %v6551_v7, %v6516_v55  ;;  %v6465_v21 = vadd.f32 %v15658_v40, %v6411_v49 }
 0x41d   :  { %v6673_v13 = vpop.f32.mrf.mxu1 }
 0x41e   :  { %v15690_v45 = vpop.f32.mrf.mxu3  ;;  %v6679_v24 = vadd.f32 %v6673_v13, %v6625_v28  ;;  %v6194_v28 = vadd.f32 %v15638_v36, %v6140_v18 }
 0x420   :  { %v6733_v56 = vadd.f32 %v6727_v2, %v6679_v24  ;;  %v6248_v61 = vadd.f32 %v15647_v30, %v6194_v28 }
 0x422   :  { %v6302_v33 = vadd.f32 %v15653_v22, %v6248_v61 }
 0x423   :  { %v15674_v8 = vpop.f32.mrf.mxu2  ;;  %v15676_v4 = vpop.f32.mrf.mxu0 }
 0x424   :  { %v6356_v53 = vadd.f32 %v15656_v23, %v6302_v33 }
 0x425   :  { %v15678_v11 = vpop.f32.mrf.mxu1 }
 0x426   :  { %v6943_v60 = vpop.f32.mrf.mxu3  ;;  %v6410_v40 = vadd.f32 %v15660_v17, %v6356_v53 }
 0x428   :  { %v6464_v30 = vadd.f32 %v15664_v16, %v6410_v40 }
 0x42b   :  { %v15680_v54 = vpop.f32.mrf.mxu2  ;;  %v15682_v0 = vpop.f32.mrf.mxu0 }
 0x42d   :  { %v6781_v46 = vpop.f32.mrf.mxu1 }
 0x42e   :  { %v15706_v10 = vpop.f32.mrf.mxu3  ;;  %v6787_v7 = vadd.f32 %v6781_v46, %v6733_v56  ;;  %v6518_v56 = vadd.f32 %v15668_v48, %v6464_v30 }
 0x430   :  { %v6841_v57 = vadd.f32 %v6835_v34, %v6787_v7  ;;  %v6519_v34 = vadd.f32 %v15651_v29, %v6465_v21  ;;  %v6572_v42 = vadd.f32 %v15676_v4, %v6518_v56 }
 0x432   :  { %v6573_v1 = vadd.f32 %v15666_v52, %v6519_v34 }
 0x433   :  { %v15684_v58 = vpop.f32.mrf.mxu2  ;;  %v15686_v31 = vpop.f32.mrf.mxu0 }
 0x434   :  { %v6627_v22 = vadd.f32 %v15662_v15, %v6573_v1 }
 0x435   :  { %v15688_v38 = vpop.f32.mrf.mxu1 }
 0x436   :  { %v7051_v19 = vpop.f32.mrf.mxu3  ;;  %v6681_v23 = vadd.f32 %v15678_v11, %v6627_v22 }
 0x438   :  { %v6735_v15 = vadd.f32 %v15672_v44, %v6681_v23 }
 0x43b   :  { %v15692_v39 = vpop.f32.mrf.mxu2  ;;  %v15694_v43 = vpop.f32.mrf.mxu0 }
 0x43d   :  { %v6889_v3 = vpop.f32.mrf.mxu1 }
 0x43e   :  { %v6895_v2 = vadd.f32 %v6889_v3, %v6841_v57  ;;  %v15729_v26 = vpop.f32.mrf.mxu3 }
 0x440   :  { %v6949_v51 = vadd.f32 %v6943_v60, %v6895_v2  ;;  %v6624_v60 = vadd.f32 %v15674_v8, %v15670_v6 }
 0x442   :  { %v6678_v29 = vadd.f32 %v15682_v0, %v6624_v60  ;;  %v6626_v0 = vadd.f32 %v15680_v54, %v6572_v42 }
 0x443   :  { %v15698_v50 = vpop.f32.mrf.mxu2  ;;  %v15700_v25 = vpop.f32.mrf.mxu0 }
 0x444   :  { %v6732_v52 = vadd.f32 %v15684_v58, %v6678_v29  ;;  %v6680_v11 = vadd.f32 %v15686_v31, %v6626_v0  ;;  %v6789_v58 = vadd.f32 %v15688_v38, %v6735_v15 }
 0x445   :  { %v15702_v37 = vpop.f32.mrf.mxu1 }
 0x446   :  { %v6786_v6 = vadd.f32 %v15694_v43, %v6732_v52  ;;  %v6734_v4 = vadd.f32 %v15692_v39, %v6680_v11  ;;  %v6843_v5 = vadd.f32 %v15690_v45, %v6789_v58 }
 0x448   :  { %v6840_v48 = vadd.f32 %v15698_v50, %v6786_v6  ;;  %v6788_v44 = vadd.f32 %v15700_v25, %v6734_v4  ;;  %v6897_v50 = vadd.f32 %v15702_v37, %v6843_v5 }
 0x44a   :  { %v6951_v39 = vadd.f32 %v15706_v10, %v6897_v50 }
 0x44b   :  { %v15708_v20 = vpop.f32.mrf.mxu2  ;;  %v15710_v59 = vpop.f32.mrf.mxu0 }
 0x44c   :  { %v6894_v35 = vadd.f32 %v15710_v59, %v6840_v48  ;;  %v6842_v18 = vadd.f32 %v15708_v20, %v6788_v44 }
 0x44d   :  { %v6997_v27 = vpop.f32.mrf.mxu1 }
 0x44e   :  { %v7003_v14 = vadd.f32 %v6997_v27, %v6949_v51  ;;  %v7159_v27 = vpop.f32.mrf.mxu3 }
 0x450   :  { %v7057_v36 = vadd.f32 %v7051_v19, %v7003_v14 }
 0x453   :  { %v6929_v9 = vpop.f32.mrf.mxu2  ;;  %v15715_v32 = vpop.f32.mrf.mxu0 }
 0x454   :  { %v6948_v43 = vadd.f32 %v6929_v9, %v6894_v35  ;;  %v6896_v38 = vadd.f32 %v15715_v32, %v6842_v18 }
 0x455   :  { %v15717_v55 = vpop.f32.mrf.mxu1 }
 0x456   :  { %v7005_v25 = vadd.f32 %v15717_v55, %v6951_v39  ;;  %v7161_v10 = vpop.f32.mrf.mxu3 }
 0x458   :  { %v7059_v51 = vadd.f32 %v15729_v26, %v7005_v25 }
 0x45b   :  { %v6931_v13 = vpop.f32.mrf.mxu2  ;;  %v6983_v47 = vpop.f32.mrf.mxu0 }
 0x45c   :  { %v7002_v2 = vadd.f32 %v6983_v47, %v6948_v43  ;;  %v6950_v9 = vadd.f32 %v6931_v13, %v6896_v38 }
 0x45d   :  { %v7105_v46 = vpop.f32.mrf.mxu1 }
 0x45e   :  { %v7111_v63 = vadd.f32 %v7105_v46, %v7057_v36 }
 0x460   :  { %v7165_v19 = vadd.f32 %v7159_v27, %v7111_v63 }
 0x463   :  { %v7037_v3 = vpop.f32.mrf.mxu2  ;;  %v6985_v24 = vpop.f32.mrf.mxu0 }
 0x464   :  { %v7056_v31 = vadd.f32 %v7037_v3, %v7002_v2  ;;  %v7004_v47 = vadd.f32 %v6985_v24, %v6950_v9  ;;  %v7232_v3 = vpop.permute.xlu1 %7231 }
 0x465   :  { %v7107_v41 = vpop.f32.mrf.mxu1 }
 0x466   :  { %v7113_v32 = vadd.f32 %v7107_v41, %v7059_v51 }
 0x468   :  { %v7167_v24 = vadd.f32 %v7161_v10, %v7113_v32 }
 0x46b   :  { %v7039_v7 = vpop.f32.mrf.mxu2  ;;  %v7091_v17 = vpop.f32.mrf.mxu0 }
 0x46c   :  { %v7110_v59 = vadd.f32 %v7091_v17, %v7056_v31  ;;  %v7058_v37 = vadd.f32 %v7039_v7, %v7004_v47 }
 0x46d   :  { %v7213_v8 = vpop.f32.mrf.mxu1 }
 0x46e   :  { %v7219_v16 = vadd.f32 %v7213_v8, %v7165_v19 }
 0x470   :  { %v7235_v12 = vadd.f32 %v7227_v62, %v7219_v16 }
 0x472   :  { %11389 = vtanh.f32 %v7235_v12 }
 0x473   :  { %v7093_v57 = vpop.f32.mrf.mxu0  ;;  %v7145_v54 = vpop.f32.mrf.mxu2 }
 0x474   :  { %v7164_v45 = vadd.f32 %v7145_v54, %v7110_v59  ;;  %v7112_v61 = vadd.f32 %v7093_v57, %v7058_v37 }
 0x475   :  { %v7215_v34 = vpop.f32.mrf.mxu1 }
 0x476   :  { %v7221_v26 = vadd.f32 %v7215_v34, %v7167_v24 }
 0x478   :  { %v11390_v49 = vpop.eup %11389  ;;  %v7237_v1 = vadd.f32 %v7232_v3, %v7221_v26 }
 0x479   :  { %7256 = vrot.lane.b32.xlu0 %v11390_v49, %s11462_s3 }
 0x47b   :  { %v7199_v46 = vpop.f32.mrf.mxu0  ;;  %v7147_v20 = vpop.f32.mrf.mxu2 }
 0x47c   :  { %v7218_v28 = vadd.f32 %v7199_v46, %v7164_v45  ;;  %v7166_v14 = vadd.f32 %v7147_v20, %v7112_v61 }
 0x47e   :  { %v7234_v21 = vadd.f32 %v7227_v62, %v7218_v28 }
 0x480   :  { %11391 = vtanh.f32 %v7234_v21 }
 0x481   :  { %7269 = vrot.lane.b32.xlu0 %v11390_v49, %s11463_s4 }
 0x483   :  { %v7201_v13 = vpop.f32.mrf.mxu0 }
 0x484   :  { %v7220_v33 = vadd.f32 %v7201_v13, %v7166_v14 }
 0x486   :  { %v11392_v55 = vpop.eup %11391  ;;  %v7236_v53 = vadd.f32 %v7232_v3, %v7220_v33 }
 0x487   :  { %7254 = vrot.lane.b32.xlu2 %v11392_v55, %s11462_s3  ;;  %7244 = vrot.lane.b32.xlu1 %v11392_v55, %s11464_s16 }
 0x488   :  { %11393 = vtanh.f32 %v7236_v53 }
 0x489   :  { %11395 = vtanh.f32 %v7237_v1 }
 0x48e   :  { %v11394_v36 = vpop.eup %11393 }
 0x48f   :  { %7246 = vrot.lane.b32.xlu2 %v11394_v36, %s11464_s16  ;;  %7258 = vrot.lane.b32.xlu1 %v11394_v36, %s11462_s3  ;;  %v11396_v41 = vpop.eup %11395 }
 0x497   :  { %7260 = vrot.lane.b32.xlu2 %v11396_v41, %s11462_s3  ;;  %7271 = vrot.lane.b32.xlu1 %v11396_v41, %s11463_s4 }
 0x4e1   :  { %v7255_v40 = vpop.permute.xlu2 %7254 }
 0x4e9   :  { %v7247_v63 = vpop.permute.xlu2 %7246 }
 0x4ea   :  { %v7251_v19 = vadd.f32 %v11394_v36, %v7247_v63 }
 0x4eb   :  { %v7257_v30 = vpop.permute.xlu0 %7256 }
 0x4ec   :  { %v7263_v27 = vsel %vm7262_vm5, %v7255_v40, %v7257_v30 }
 0x4f1   :  { %v7261_v56 = vpop.permute.xlu2 %7260 }
 0x4f3   :  { %v7270_v7 = vpop.permute.xlu0 %7269 }
 0x4f9   :  { %v7245_v60 = vpop.permute.xlu1 %7244 }
 0x4fa   :  { %v7250_v22 = vadd.f32 %v11392_v55, %v7245_v60 }
 0x4fc   :  { %v7267_v23 = vadd.f32 %v7263_v27, %v7250_v22  ;;  %v10811_v27 = vld [vmem:[%s16218_s5 + $0x4] sm:$0xf] }
 0x4fe   :  { %v7275_v17 = vadd.f32 %v7270_v7, %v7267_v23 }
 0x500   :  { %v15768_v16 = vmul.f32 0.25, %v7275_v17 }
 0x501   :  { %v7259_v29 = vpop.permute.xlu1 %7258 }
 0x502   :  { %v7264_v52 = vsel %vm7262_vm5, %v7259_v29, %v7261_v56  ;;  %v7492_v29 = vld [vmem:[%s16217_s6 + $0x60] sm:$0xff]  ;;  %v10239_v56 = vld [vmem:[%s16218_s5 + $0x10] sm:$0xf0] }
 0x503   :  { %v7268_v42 = vadd.f32 %v7264_v52, %v7251_v19  ;;  %v10242_v52 = vor.u32 %v10811_v27, %v10239_v56 }
 0x509   :  { %v7272_v6 = vpop.permute.xlu1 %7271 }
 0x50a   :  { %v7276_v8 = vadd.f32 %v7272_v6, %v7268_v42 }
 0x50c   :  { %v15770_v62 = vmul.f32 0.25, %v7276_v8 }
 0x50e   :  { %v15774_v15 = vpack.i.bf16 %v15770_v62, %v15768_v16  ;;  %v7455_v0 = vpack.c.bf16 %v15770_v62, %v15768_v16  ;;  %v7480_v16 = vld [vmem:[%s16217_s6] sm:$0xff] }
 0x50f   :  { %v10819_v62 = vld [vmem:[%s16218_s5 + $0x44] sm:$0xf] }
 0x510   :  { %10879 = vrot.lane.b32.xlu1 %v15774_v15, %s11465_s17  ;;  %10874 = vrot.lane.b32.xlu0 %v15774_v15, %s11466_s18 }
 0x511   :  { %10869 = vrot.lane.b32.xlu2 %v15774_v15, %s11467_s19 }
 0x518   :  { %10894 = vrot.lane.b32.xlu1 %v15774_v15, %s11468_s2  ;;  %10889 = vrot.lane.b32.xlu0 %v15774_v15, %s11463_s4 }
 0x519   :  { %10884 = vrot.lane.b32.xlu2 %v15774_v15, %s11469_s20 }
 0x520   :  { %10909 = vrot.lane.b32.xlu1 %v15774_v15, %s11470_s21  ;;  %10904 = vrot.lane.b32.xlu0 %v15774_v15, %s11471_s22 }
 0x521   :  { %10899 = vrot.lane.b32.xlu2 %v15774_v15, %s11472_s23 }
 0x528   :  { %10924 = vrot.lane.b32.xlu1 %v15774_v15, %s11473_s24  ;;  %10919 = vrot.lane.b32.xlu0 %v15774_v15, %s11474_s25 }
 0x529   :  { %10914 = vrot.lane.b32.xlu2 %v15774_v15, %s11475_s26 }
 0x530   :  { %10939 = vrot.lane.b32.xlu1 %v15774_v15, %s11476_s1  ;;  %10934 = vrot.lane.b32.xlu0 %v15774_v15, %s11477_s27 }
 0x531   :  { %10929 = vrot.lane.b32.xlu2 %v15774_v15, %s11478_s28 }
 0x56b   :  { %v10870_v48 = vpop.permute.xlu2 %10869 }
 0x56c   :  { %v10872_v12 = vunpack.i.h.bf16 %v10870_v48  ;;  %v10871_v11 = vunpack.i.l.bf16 %v10870_v48  ;;  %v7491_v48 = vld [vmem:[%s16217_s6 + $0x58] sm:$0xff] }
 0x56e   :  { %v7470_v58 = vpack.c.bf16 %v10872_v12, %v10871_v11 }
 0x570   :  { %7789 = vmatpush.bf16.msra.mxu3 %v7470_v58  ;;  %v7486_v58 = vld [vmem:[%s16217_s6 + $0x30] sm:$0xff] }
 0x573   :  { %v10885_v35 = vpop.permute.xlu2 %10884 }
 0x574   :  { %v10887_v38 = vunpack.i.h.bf16 %v10885_v35  ;;  %v10886_v59 = vunpack.i.l.bf16 %v10885_v35  ;;  %v10815_v35 = vld [vmem:[%s16218_s5 + $0x24] sm:$0xf] }
 0x576   :  { %v7467_v28 = vpack.c.bf16 %v10887_v38, %v10886_v59 }
 0x57b   :  { %v10900_v4 = vpop.permute.xlu2 %10899 }
 0x57c   :  { %v10902_v34 = vunpack.i.h.bf16 %v10900_v4  ;;  %v10901_v3 = vunpack.i.l.bf16 %v10900_v4  ;;  %v10255_v4 = vld [vmem:[%s16218_s5 + $0x30] sm:$0xf0] }
 0x57e   :  { %v7464_v53 = vpack.c.bf16 %v10902_v34, %v10901_v3  ;;  %v10285_v34 = vld [vmem:[%s16218_s5 + $0x60] sm:$0xf]  ;;  %v10825_v3 = vld [vmem:[%s16218_s5 + $0x6c] sm:$0xf0] }
 0x582   :  { %v10880_v43 = vpop.permute.xlu1 %10879  ;;  %v10875_v57 = vpop.permute.xlu0 %10874 }
 0x583   :  { %v10877_v5 = vunpack.i.h.bf16 %v10875_v57  ;;  %v10876_v44 = vunpack.i.l.bf16 %v10875_v57  ;;  %v10915_v2 = vpop.permute.xlu2 %10914  ;;  %v10882_v18 = vunpack.i.h.bf16 %v10880_v43  ;;  %v10881_v31 = vunpack.i.l.bf16 %v10880_v43  ;;  %v10237_v57 = vld [vmem:[%s16218_s5] sm:$0xf] }
 0x584   :  { %v10917_v54 = vunpack.i.h.bf16 %v10915_v2  ;;  %v10916_v50 = vunpack.i.l.bf16 %v10915_v2  ;;  %10949 = vrot.lane.b32.xlu0 %v10915_v2, %s11479_s29 }
 0x585   :  { %v7469_v49 = vpack.c.bf16 %v10877_v5, %v10876_v44  ;;  %v7468_v39 = vpack.c.bf16 %v10882_v18, %v10881_v31  ;;  %v10813_v5 = vld [vmem:[%s16218_s5 + $0xc] sm:$0xf0]  ;;  %v10258_v44 = vor.u32 %v10815_v35, %v10255_v4  ;;  %v7488_v18 = vld [vmem:[%s16217_s6 + $0x40] sm:$0xff] }
 0x586   :  { %v7461_v24 = vpack.c.bf16 %v10917_v54, %v10916_v50  ;;  %v10238_v2 = vor.u32 %v10813_v5, %v10237_v57  ;;  %v7493_v54 = vld [vmem:[%s16217_s6 + $0x68] sm:$0xff]  ;;  %v10253_v31 = vld [vmem:[%s16218_s5 + $0x20] sm:$0xf]  ;;  %v10837_v5 = vld [vmem:[%s16218_s5 + $0xcc] sm:$0xf0] }
 0x587   :  { %7790 = vmatpush.bf16.msra.mxu3 %v7469_v49  ;;  %v7485_v50 = vld [vmem:[%s16217_s6 + $0x28] sm:$0xff]  ;;  %v10817_v49 = vld [vmem:[%s16218_s5 + $0x2c] sm:$0xf0]  ;;  %v10333_v57 = vld [vmem:[%s16218_s5 + $0xc0] sm:$0xf] }
 0x588   :  { %v10254_v59 = vor.u32 %v10817_v49, %v10253_v31 }
 0x58a   :  { %v10895_v9 = vpop.permute.xlu1 %10894  ;;  %v10890_v45 = vpop.permute.xlu0 %10889 }
 0x58b   :  { %v10930_v46 = vpop.permute.xlu2 %10929  ;;  %7791 = vmatpush.bf16.msra.mxu3 %v7468_v39  ;;  %v10892_v37 = vunpack.i.h.bf16 %v10890_v45  ;;  %v10891_v21 = vunpack.i.l.bf16 %v10890_v45  ;;  %v10897_v51 = vunpack.i.h.bf16 %v10895_v9  ;;  %v10896_v61 = vunpack.i.l.bf16 %v10895_v9  ;;  %v7487_v39 = vld [vmem:[%s16217_s6 + $0x38] sm:$0xff]  ;;  %v7975_v9 = vld [vmem:[%s16219_s8 + $0x40] sm:$0xff]  ;;  %v7482_v45 = vld [vmem:[%s16217_s6 + $0x10] sm:$0xff] }
 0x58c   :  { %v10932_v25 = vunpack.i.h.bf16 %v10930_v46  ;;  %v10931_v47 = vunpack.i.l.bf16 %v10930_v46  ;;  %10964 = vrot.lane.b32.xlu0 %v10930_v46, %s11479_s29  ;;  %v7974_v46 = vld [vmem:[%s16219_s8 + $0x38] sm:$0xff] }
 0x58d   :  { %v7466_v20 = vpack.c.bf16 %v10892_v37, %v10891_v21  ;;  %v7465_v55 = vpack.c.bf16 %v10897_v51, %v10896_v61  ;;  %v10821_v37 = vld [vmem:[%s16218_s5 + $0x4c] sm:$0xf0]  ;;  %v7481_v51 = vld [vmem:[%s16217_s6 + $0x8] sm:$0xff] }
 0x58e   :  { %v7458_v12 = vpack.c.bf16 %v10932_v25, %v10931_v47  ;;  %v10823_v25 = vld [vmem:[%s16218_s5 + $0x64] sm:$0xf]  ;;  %v10287_v47 = vld [vmem:[%s16218_s5 + $0x70] sm:$0xf0] }
 0x58f   :  { %7792 = vmatpush.bf16.msra.mxu3 %v7467_v28  ;;  %v10269_v28 = vld [vmem:[%s16218_s5 + $0x40] sm:$0xf]  ;;  %v10290_v21 = vor.u32 %v10823_v25, %v10287_v47  ;;  %v7969_v61 = vld [vmem:[%s16219_s8 + $0x10] sm:$0xff] }
 0x592   :  { %v10910_v32 = vpop.permute.xlu1 %10909  ;;  %v10905_v14 = vpop.permute.xlu0 %10904 }
 0x593   :  { %v10912_v10 = vunpack.i.h.bf16 %v10910_v32  ;;  %v10911_v13 = vunpack.i.l.bf16 %v10910_v32  ;;  %7793 = vmatpush.bf16.msra.mxu3 %v7466_v20  ;;  %10944 = vrot.lane.b32.xlu2 %v10910_v32, %s11479_s29  ;;  %v10907_v26 = vunpack.i.h.bf16 %v10905_v14  ;;  %v10906_v1 = vunpack.i.l.bf16 %v10905_v14  ;;  %v7976_v32 = vld [vmem:[%s16219_s8 + $0x48] sm:$0xff] }
 0x594   :  { %10979 = vrot.lane.b32.xlu0 %v15774_v15, %s11479_s29  ;;  %v10270_v20 = vor.u32 %v10821_v37, %v10269_v28 }
 0x595   :  { %v7462_v33 = vpack.c.bf16 %v10912_v10, %v10911_v13  ;;  %v7463_v23 = vpack.c.bf16 %v10907_v26, %v10906_v1  ;;  %v10827_v10 = vld [vmem:[%s16218_s5 + $0x84] sm:$0xf]  ;;  %v10303_v13 = vld [vmem:[%s16218_s5 + $0x90] sm:$0xf0]  ;;  %v7970_v1 = vld [vmem:[%s16219_s8 + $0x18] sm:$0xff] }
 0x596   :  { %v7490_v26 = vld [vmem:[%s16217_s6 + $0x50] sm:$0xff] }
 0x597   :  { %7741 = vmatpush.bf16.msrb.mxu2 %v7462_v33  ;;  %7794 = vmatpush.bf16.msra.mxu3 %v7465_v55  ;;  %v7494_v33 = vld [vmem:[%s16217_s6 + $0x70] sm:$0xff]  ;;  %v10306_v55 = vor.u32 %v10827_v10, %v10303_v13 }
 0x59a   :  { %v10925_v36 = vpop.permute.xlu1 %10924  ;;  %v10920_v41 = vpop.permute.xlu0 %10919 }
 0x59b   :  { %v10927_v40 = vunpack.i.h.bf16 %v10925_v36  ;;  %v10926_v60 = vunpack.i.l.bf16 %v10925_v36  ;;  %v10922_v63 = vunpack.i.h.bf16 %v10920_v41  ;;  %v10921_v30 = vunpack.i.l.bf16 %v10920_v41  ;;  %7742 = vmatpush.bf16.msrb.mxu2 %v7461_v24  ;;  %7795 = vmatpush.bf16.msra.mxu3 %v7464_v53  ;;  %v7971_v53 = vld [vmem:[%s16219_s8 + $0x20] sm:$0xff] }
 0x59c   :  { %10954 = vrot.lane.b32.xlu1 %v10920_v41, %s11479_s29  ;;  %10959 = vrot.lane.b32.xlu2 %v10925_v36, %s11479_s29  ;;  %v10286_v24 = vor.u32 %v10825_v3, %v10285_v34  ;;  %v10831_v36 = vld [vmem:[%s16218_s5 + $0xa4] sm:$0xf]  ;;  %v10319_v41 = vld [vmem:[%s16218_s5 + $0xb0] sm:$0xf0] }
 0x59d   :  { %v7460_v22 = vpack.c.bf16 %v10922_v63, %v10921_v30  ;;  %7557 = vperm.xlu0 %10866, %v7492_v29   ;;  %v7459_v19 = vpack.c.bf16 %v10927_v40, %v10926_v60  ;;  %v7489_v40 = vld [vmem:[%s16217_s6 + $0x48] sm:$0xff]  ;;  %v10301_v60 = vld [vmem:[%s16218_s5 + $0x80] sm:$0xf]  ;;  %v10829_v63 = vld [vmem:[%s16218_s5 + $0x8c] sm:$0xf0]  ;;  %v10322_v30 = vor.u32 %v10831_v36, %v10319_v41 }
 0x59e   :  { %v10302_v56 = vor.u32 %v10829_v63, %v10301_v60  ;;  %v7453_v63 = vld [vmem:[%s16218_s5 + $0xe0] sm:$0xff] }
 0x59f   :  { %7743 = vmatpush.bf16.msrb.mxu2 %v7460_v22  ;;  %7796 = vmatpush.bf16.msra.mxu3 %v7463_v23 }
 0x5a2   :  { %v10940_v7 = vpop.permute.xlu1 %10939  ;;  %v10935_v17 = vpop.permute.xlu0 %10934  ;;  %7797 = vmatmul.bf16.vlgmr.msra.gmra.mxu3 %v10242_v52  ;;  %v8140_v52 = vld [vmem:[%s16220_s10] sm:$0xff] }
 0x5a3   :  { %v10942_v42 = vunpack.i.h.bf16 %v10940_v7  ;;  %v10941_v6 = vunpack.i.l.bf16 %v10940_v7  ;;  %v10937_v8 = vunpack.i.h.bf16 %v10935_v17  ;;  %v10936_v15 = vunpack.i.l.bf16 %v10935_v17  ;;  %7744 = vmatpush.bf16.msrb.mxu2 %v7459_v19  ;;  %v7484_v19 = vld [vmem:[%s16217_s6 + $0x20] sm:$0xff] }
 0x5a4   :  { %10969 = vrot.lane.b32.xlu1 %v10935_v17, %s11479_s29  ;;  %10974 = vrot.lane.b32.xlu2 %v10940_v7, %s11479_s29 }
 0x5a5   :  { %7552 = vperm.xlu0 %10866, %v7491_v48   ;;  %v7457_v11 = vpack.c.bf16 %v10937_v8, %v10936_v15  ;;  %v7456_v43 = vpack.c.bf16 %v10942_v42, %v10941_v6  ;;  %v10835_v8 = vld [vmem:[%s16218_s5 + $0xc4] sm:$0xf]  ;;  %v10335_v15 = vld [vmem:[%s16218_s5 + $0xd0] sm:$0xf0]  ;;  %v7483_v48 = vld [vmem:[%s16217_s6 + $0x18] sm:$0xff] }
 0x5a7   :  { %7745 = vmatpush.bf16.msrb.mxu2 %v7458_v12  ;;  %v10317_v12 = vld [vmem:[%s16218_s5 + $0xa0] sm:$0xf] }
 0x5ab   :  { %7746 = vmatpush.bf16.msrb.mxu2 %v7457_v11  ;;  %v10833_v11 = vld [vmem:[%s16218_s5 + $0xac] sm:$0xf0] }
 0x5ac   :  { %10984 = vrot.lane.b32.xlu1 %v10905_v14, %s11479_s29  ;;  %v7968_v14 = vld [vmem:[%s16219_s8 + $0x8] sm:$0xff]  ;;  %7567 = vperm.xlu2 %10988, %v7494_v33   ;;  %v10318_v4 = vor.u32 %v10833_v11, %v10317_v12 }
 0x5ad   :  { %7527 = vperm.xlu0 %10866, %v7486_v58   ;;  %v10338_v58 = vor.u32 %v10835_v8, %v10335_v15 }
 0x5af   :  { %7747 = vmatpush.bf16.msrb.mxu2 %v7456_v43 }
 0x5b2   :  { %7802 = vmatmul.bf16.gmra.mxu3 %v10258_v44 }
 0x5b3   :  { %7748 = vmatpush.bf16.msrb.mxu2 %v7455_v0  ;;  %v10271_v0 = vld [vmem:[%s16218_s5 + $0x50] sm:$0xf0] }
 0x5b4   :  { %7562 = vperm.xlu1 %10867, %v7493_v54   ;;  %v10274_v38 = vor.u32 %v10819_v62, %v10271_v0  ;;  %7547 = vperm.xlu2 %10988, %v7490_v26  }
 0x5b5   :  { %7522 = vperm.xlu0 %10866, %v7485_v50  }
 0x5b6   :  { %7749 = vmatmul.bf16.vlgmr.msrb.gmra.mxu2 %v10238_v2 }
 0x5bc   :  { %7537 = vperm.xlu1 %10867, %v7488_v18   ;;  %7542 = vperm.xlu2 %10988, %v7489_v40  }
 0x5bd   :  { %7497 = vperm.xlu0 %10866, %v7480_v16   ;;  %v10334_v16 = vor.u32 %v10837_v5, %v10333_v57  ;;  %v10279_v5 = vld [vmem:[%s16218_s5 + $0x58] sm:$0xf0] }
 0x5c2   :  { %7807 = vmatmul.bf16.gmra.mxu3 %v10274_v38 }
 0x5c4   :  { %7532 = vperm.xlu1 %10867, %v7487_v39   ;;  %7517 = vperm.xlu2 %10988, %v7484_v19  }
 0x5c5   :  { %8020 = vperm.xlu0 %10866, %v7975_v9  }
 0x5c6   :  { %7754 = vmatmul.bf16.gmra.mxu2 %v10254_v59 }
 0x5cc   :  { %7507 = vperm.xlu1 %10867, %v7482_v45   ;;  %7512 = vperm.xlu2 %10988, %v7483_v48  }
 0x5cd   :  { %8015 = vperm.xlu0 %10866, %v7974_v46  }
 0x5d2   :  { %7812 = vmatmul.bf16.gmra.mxu3 %v10290_v21 }
 0x5d4   :  { %7502 = vperm.xlu1 %10867, %v7481_v51  }
 0x5d5   :  { %7990 = vperm.xlu0 %10866, %v7969_v61  }
 0x5d6   :  { %7759 = vmatmul.bf16.gmra.mxu2 %v10270_v20 }
 0x5dc   :  { %8025 = vperm.xlu1 %10867, %v7976_v32   ;;  %v10812_v32 = vld [vmem:[%s16218_s5 + $0xc] sm:$0xf] }
 0x5dd   :  { %7985 = vperm.xlu0 %10866, %v7968_v14   ;;  %v10247_v14 = vld [vmem:[%s16218_s5 + $0x18] sm:$0xf0] }
 0x5de   :  { %v10250_v3 = vor.u32 %v10812_v32, %v10247_v14 }
 0x5e2   :  { %7817 = vmatmul.bf16.gmra.mxu3 %v10306_v55 }
 0x5e4   :  { %8000 = vperm.xlu1 %10867, %v7971_v53   ;;  %v10814_v53 = vld [vmem:[%s16218_s5 + $0x14] sm:$0xf0] }
 0x5e6   :  { %7764 = vmatmul.bf16.gmra.mxu2 %v10286_v24  ;;  %v10245_v24 = vld [vmem:[%s16218_s5 + $0x8] sm:$0xf] }
 0x5e7   :  { %v10246_v41 = vor.u32 %v10814_v53, %v10245_v24 }
 0x5ec   :  { %7995 = vperm.xlu1 %10867, %v7970_v1  }
 0x5ed   :  { %v10945_v22 = vpop.permute.xlu2 %10944 }
 0x5ee   :  { %v10947_v29 = vunpack.i.h.bf16 %v10945_v22  ;;  %v10946_v27 = vunpack.i.l.bf16 %v10945_v22  ;;  %v7657_v22 = vunpack.c.h.b16 %v7453_v63 }
 0x5f0   :  { %v7478_v23 = vpack.c.bf16 %v10947_v29, %v10946_v27  ;;  %v10816_v29 = vld [vmem:[%s16218_s5 + $0x2c] sm:$0xf]  ;;  %v10263_v27 = vld [vmem:[%s16218_s5 + $0x38] sm:$0xf0] }
 0x5f1   :  { %v10266_v19 = vor.u32 %v10816_v29, %v10263_v27 }
 0x5f2   :  { %7822 = vmatmul.bf16.gmra.mxu3 %v10322_v30  ;;  %7837 = vmatpush.bf16.msra.mxu0 %v7478_v23  ;;  %v7689_v23 = vpack.c.b16 %v7657_v22, %v7657_v22 }
 0x5f4   :  { %8144 = vperm.xlu1 %10867, %v8140_v52  }
 0x5f6   :  { %7769 = vmatmul.bf16.gmra.mxu2 %v10302_v56  ;;  %v10950_v7 = vpop.permute.xlu0 %10949  ;;  %v10960_v44 = vpop.permute.xlu2 %10959  ;;  %v7656_v56 = vunpack.c.l.b16 %v7453_v63  ;;  %v10343_v63 = vld [vmem:[%s16218_s5 + $0xd8] sm:$0xf0] }
 0x5f7   :  { %v10952_v17 = vunpack.i.h.bf16 %v10950_v7  ;;  %v10951_v42 = vunpack.i.l.bf16 %v10950_v7  ;;  %v10962_v62 = vunpack.i.h.bf16 %v10960_v44  ;;  %v10961_v0 = vunpack.i.l.bf16 %v10960_v44  ;;  %v10261_v7 = vld [vmem:[%s16218_s5 + $0x28] sm:$0xf]  ;;  %v10828_v44 = vld [vmem:[%s16218_s5 + $0x8c] sm:$0xf] }
 0x5f8   :  { %v7688_v52 = vpack.c.b16 %v7656_v56, %v7656_v56  ;;  %v10309_v56 = vld [vmem:[%s16218_s5 + $0x88] sm:$0xf] }
 0x5f9   :  { %v7477_v6 = vpack.c.bf16 %v10952_v17, %v10951_v42  ;;  %v7475_v49 = vpack.c.bf16 %v10962_v62, %v10961_v0  ;;  %v10818_v17 = vld [vmem:[%s16218_s5 + $0x34] sm:$0xf0]  ;;  %v10277_v62 = vld [vmem:[%s16218_s5 + $0x48] sm:$0xf] }
 0x5fa   :  { %v10262_v8 = vor.u32 %v10818_v17, %v10261_v7  ;;  %v10822_v0 = vld [vmem:[%s16218_s5 + $0x54] sm:$0xf0] }
 0x5fb   :  { %7838 = vmatpush.bf16.msra.mxu0 %v7477_v6 }
 0x5fe   :  { %v10965_v35 = vpop.permute.xlu0 %10964  ;;  %v10975_v47 = vpop.permute.xlu2 %10974 }
 0x5ff   :  { %v10967_v38 = vunpack.i.h.bf16 %v10965_v35  ;;  %v10966_v59 = vunpack.i.l.bf16 %v10965_v35  ;;  %v10977_v28 = vunpack.i.h.bf16 %v10975_v47  ;;  %v10976_v37 = vunpack.i.l.bf16 %v10975_v47 }
 0x601   :  { %v7474_v9 = vpack.c.bf16 %v10967_v38, %v10966_v59  ;;  %v7472_v10 = vpack.c.bf16 %v10977_v28, %v10976_v37  ;;  %v10278_v38 = vor.u32 %v10822_v0, %v10277_v62  ;;  %v10824_v28 = vld [vmem:[%s16218_s5 + $0x6c] sm:$0xf]  ;;  %v7973_v0 = vld [vmem:[%s16219_s8 + $0x30] sm:$0xff] }
 0x602   :  { %7827 = vmatmul.bf16.gmra.mxu3 %v10338_v58 }
 0x606   :  { %7774 = vmatmul.bf16.gmra.mxu2 %v10318_v4  ;;  %v10980_v43 = vpop.permute.xlu0 %10979  ;;  %v16003_v11 = vpop.permute.xlu2 %7567 }
 0x607   :  { %v10982_v13 = vunpack.i.h.bf16 %v10980_v43  ;;  %v10981_v33 = vunpack.i.l.bf16 %v10980_v43  ;;  %v10820_v43 = vld [vmem:[%s16218_s5 + $0x4c] sm:$0xf] }
 0x609   :  { %v7471_v1 = vpack.c.bf16 %v10982_v13, %v10981_v33  ;;  %v10293_v13 = vld [vmem:[%s16218_s5 + $0x68] sm:$0xf]  ;;  %v10826_v33 = vld [vmem:[%s16218_s5 + $0x74] sm:$0xf0] }
 0x60e   :  { %v10955_v2 = vpop.permute.xlu1 %10954 }
 0x60f   :  { %v10957_v54 = vunpack.i.h.bf16 %v10955_v2  ;;  %v10956_v50 = vunpack.i.l.bf16 %v10955_v2  ;;  %v15960_v18 = vpop.permute.xlu0 %7557  ;;  %v10311_v2 = vld [vmem:[%s16218_s5 + $0x98] sm:$0xf0] }
 0x611   :  { %v7476_v31 = vpack.c.bf16 %v10957_v54, %v10956_v50  ;;  %v10314_v54 = vor.u32 %v10828_v44, %v10311_v2  ;;  %v16019_v50 = vpop.permute.xlu2 %7547  ;;  %v10834_v44 = vld [vmem:[%s16218_s5 + $0xb4] sm:$0xf0] }
 0x612   :  { %7832 = vmatmul.bf16.gmra.mxu3 %v7689_v23  ;;  %v10830_v23 = vld [vmem:[%s16218_s5 + $0x94] sm:$0xf0] }
 0x613   :  { %7839 = vmatpush.bf16.msra.mxu0 %v7476_v31 }
 0x616   :  { %7779 = vmatmul.bf16.gmra.mxu2 %v10334_v16  ;;  %v10970_v39 = vpop.permute.xlu1 %10969  ;;  %v10282_v16 = vor.u32 %v10820_v43, %v10279_v5  ;;  %v10325_v5 = vld [vmem:[%s16218_s5 + $0xa8] sm:$0xf] }
 0x617   :  { %7840 = vmatpush.bf16.msra.mxu0 %v7475_v49  ;;  %v10972_v45 = vunpack.i.h.bf16 %v10970_v39  ;;  %v10971_v46 = vunpack.i.l.bf16 %v10970_v39  ;;  %v15962_v25 = vpop.permute.xlu0 %7552  ;;  %v10326_v2 = vor.u32 %v10834_v44, %v10325_v5 }
 0x619   :  { %v7473_v21 = vpack.c.bf16 %v10972_v45, %v10971_v46  ;;  %v7543_v45 = vpop.permute.xlu2 %7542 }
 0x61b   :  { %7841 = vmatpush.bf16.msra.mxu0 %v7474_v9 }
 0x61e   :  { %v10985_v20 = vpop.permute.xlu1 %10984 }
 0x61f   :  { %v10987_v51 = vunpack.i.h.bf16 %v10985_v20  ;;  %v10986_v61 = vunpack.i.l.bf16 %v10985_v20  ;;  %7842 = vmatpush.bf16.msra.mxu0 %v7473_v21  ;;  %v15970_v55 = vpop.permute.xlu0 %7527  ;;  %v10295_v21 = vld [vmem:[%s16218_s5 + $0x78] sm:$0xf0] }
 0x621   :  { %v7479_v34 = vpack.c.bf16 %v10987_v51, %v10986_v61  ;;  %v10832_v51 = vld [vmem:[%s16218_s5 + $0xac] sm:$0xf]  ;;  %v10327_v61 = vld [vmem:[%s16218_s5 + $0xb8] sm:$0xf0]  ;;  %v7518_v14 = vpop.permute.xlu2 %7517 }
 0x622   :  { %v10330_v32 = vor.u32 %v10832_v51, %v10327_v61  ;;  %v7967_v51 = vld [vmem:[%s16219_s8] sm:$0xff] }
 0x623   :  { %7843 = vmatpush.bf16.msra.mxu0 %v7472_v10  ;;  %7892 = vmatpush.bf16.msrb.mxu1 %v7479_v34  ;;  %v10298_v10 = vor.u32 %v10824_v28, %v10295_v21 }
 0x624   :  { %10845 = vmatpush.bf16.msrb.mxu3 %v7479_v34  ;;  %v10294_v34 = vor.u32 %v10826_v33, %v10293_v13  ;;  %v8141_v13 = vld [vmem:[%s16220_s10 + $0x8] sm:$0x3] }
 0x625   :  { %v7798_v26 = vpop.f32.mrf.mxu3 }
 0x626   :  { %v15978_v36 = vpop.permute.xlu1 %7562  ;;  %10347 = vmatmul.msk.bf16.vlgmr.msrb.gmra.mxu1 %vm7716_vm6, %v10250_v3  ;;  %7784 = vmatmul.bf16.gmra.mxu2 %v7688_v52 }
 0x627   :  { %7844 = vmatpush.bf16.msra.mxu0 %v7471_v1  ;;  %v15981_v60 = vpop.permute.xlu0 %7522  ;;  %10351 = vmatmul.msk.bf16.vlgmr.msrb.gmra.mxu3 %vm7716_vm6, %v10314_v54 }
 0x629   :  { %v7513_v24 = vpop.permute.xlu2 %7512 }
 0x62a   :  { %7845 = vmatmul.bf16.vlgmr.msra.gmra.mxu0 %v10246_v41 }
 0x62d   :  { %v7800_v40 = vpop.f32.mrf.mxu3 }
 0x62e   :  { %v15986_v30 = vpop.permute.xlu1 %7537 }
 0x62f   :  { %v7498_v15 = vpop.permute.xlu0 %7497 }
 0x635   :  { %v7803_v42 = vpop.f32.mrf.mxu3 }
 0x636   :  { %v16000_v6 = vpop.permute.xlu1 %7532  ;;  %10348 = vmatmul.msk.bf16.gmra.mxu1 %vm7716_vm6, %v10266_v19  ;;  %v10310_v19 = vor.u32 %v10830_v23, %v10309_v56 }
 0x637   :  { %10352 = vmatmul.msk.bf16.gmra.mxu3 %vm7716_vm6, %v10330_v32 }
 0x639   :  { %v7750_v48 = vpop.f32.mrf.mxu2 }
 0x63a   :  { %v7751_v12 = vadd.f32 %v7750_v48, %v7498_v15  ;;  %7850 = vmatmul.bf16.gmra.mxu0 %v10262_v8  ;;  %v7454_v15 = vld [vmem:[%s16218_s5 + $0xe8] sm:$0xff] }
 0x63b   :  { %v7659_v48 = vunpack.c.h.b16 %v7454_v15 }
 0x63c   :  { %v16005_v58 = vadd.f32 %v7798_v26, %v7751_v12 }
 0x63d   :  { %v7805_v35 = vpop.f32.mrf.mxu3  ;;  %v7691_v43 = vpack.c.b16 %v7659_v48, %v7659_v48 }
 0x63e   :  { %v7508_v4 = vpop.permute.xlu1 %7507 }
 0x641   :  { %v7752_v57 = vpop.f32.mrf.mxu2 }
 0x645   :  { %v7808_v31 = vpop.f32.mrf.mxu3 }
 0x646   :  { %v7503_v49 = vpop.permute.xlu1 %7502  ;;  %10349 = vmatmul.msk.bf16.gmra.mxu1 %vm7716_vm6, %v10282_v16 }
 0x647   :  { %v7753_v59 = vadd.f32 %v7752_v57, %v7503_v49 }
 0x649   :  { %v7755_v39 = vpop.f32.mrf.mxu2  ;;  %v16029_v46 = vadd.f32 %v7800_v40, %v7753_v59  ;;  %v10836_v40 = vld [vmem:[%s16218_s5 + $0xcc] sm:$0xf] }
 0x64a   :  { %v7756_v9 = vadd.f32 %v7755_v39, %v7508_v4  ;;  %7855 = vmatmul.bf16.gmra.mxu0 %v10278_v38  ;;  %v10346_v29 = vor.u32 %v10836_v40, %v10343_v63  ;;  %v7972_v39 = vld [vmem:[%s16219_s8 + $0x28] sm:$0xff] }
 0x64c   :  { %v16031_v47 = vadd.f32 %v7803_v42, %v7756_v9  ;;  %10353 = vmatmul.msk.bf16.gmra.mxu3 %vm7716_vm6, %v10346_v29  ;;  %v10838_v9 = vld [vmem:[%s16218_s5 + $0xd4] sm:$0xf0] }
 0x64d   :  { %v7810_v20 = vpop.f32.mrf.mxu3 }
 0x651   :  { %v7757_v37 = vpop.f32.mrf.mxu2 }
 0x652   :  { %v7758_v26 = vadd.f32 %v7757_v37, %v7513_v24 }
 0x654   :  { %v16053_v1 = vadd.f32 %v7805_v35, %v7758_v26 }
 0x655   :  { %v7813_v53 = vpop.f32.mrf.mxu3 }
 0x656   :  { %10350 = vmatmul.msk.bf16.gmra.mxu1 %vm7716_vm6, %v10298_v10  ;;  %v7658_v10 = vunpack.c.l.b16 %v7454_v15 }
 0x658   :  { %v7690_v33 = vpack.c.b16 %v7658_v10, %v7658_v10 }
 0x659   :  { %v7760_v3 = vpop.f32.mrf.mxu2 }
 0x65a   :  { %7860 = vmatmul.bf16.gmra.mxu0 %v10294_v34 }
 0x65c   :  { %10354 = vmatmul.msk.bf16.gmra.mxu3 %vm7716_vm6, %v7691_v43 }
 0x65d   :  { %v7815_v52 = vpop.f32.mrf.mxu3 }
 0x661   :  { %v7762_v41 = vpop.f32.mrf.mxu2 }
 0x662   :  { %v7763_v22 = vadd.f32 %v7762_v41, %v15981_v60  ;;  %v7761_v60 = vadd.f32 %v7760_v3, %v7518_v14 }
 0x664   :  { %v16062_v27 = vadd.f32 %v7810_v20, %v7763_v22  ;;  %v16077_v12 = vadd.f32 %v7808_v31, %v7761_v60 }
 0x665   :  { %v7818_v8 = vpop.f32.mrf.mxu3 }
 0x669   :  { %v7765_v7 = vpop.f32.mrf.mxu2 }
 0x66a   :  { %v7766_v17 = vadd.f32 %v7765_v7, %v15970_v55  ;;  %7865 = vmatmul.bf16.gmra.mxu0 %v10310_v19  ;;  %v7977_v55 = vld [vmem:[%s16219_s8 + $0x50] sm:$0xf] }
 0x66b   :  { %8030 = vperm.xlu2 %10988, %v7977_v55  }
 0x66c   :  { %v16072_v42 = vadd.f32 %v7813_v53, %v7766_v17 }
 0x66d   :  { %v7820_v54 = vpop.f32.mrf.mxu3 }
 0x671   :  { %v7767_v35 = vpop.f32.mrf.mxu2 }
 0x672   :  { %v7768_v4 = vadd.f32 %v7767_v35, %v16000_v6 }
 0x673   :  { %8010 = vperm.xlu2 %10988, %v7973_v0  }
 0x674   :  { %v16080_v57 = vadd.f32 %v7815_v52, %v7768_v4 }
 0x675   :  { %v7823_v38 = vpop.f32.mrf.mxu3 }
 0x679   :  { %v7770_v6 = vpop.f32.mrf.mxu2 }
 0x67a   :  { %v7771_v16 = vadd.f32 %v7770_v6, %v15986_v30  ;;  %7870 = vmatmul.bf16.gmra.mxu0 %v10326_v2  ;;  %v10341_v30 = vld [vmem:[%s16218_s5 + $0xc8] sm:$0xf] }
 0x67b   :  { %8005 = vperm.xlu2 %10988, %v7972_v39   ;;  %v10342_v28 = vor.u32 %v10838_v9, %v10341_v30 }
 0x67c   :  { %v16093_v62 = vadd.f32 %v7818_v8, %v7771_v16 }
 0x67d   :  { %v7825_v20 = vpop.f32.mrf.mxu3 }
 0x681   :  { %v7772_v31 = vpop.f32.mrf.mxu2 }
 0x682   :  { %v7773_v49 = vadd.f32 %v7772_v31, %v7543_v45 }
 0x683   :  { %7980 = vperm.xlu2 %10988, %v7967_v51  }
 0x684   :  { %v16098_v59 = vadd.f32 %v7820_v54, %v7773_v49 }
 0x689   :  { %v7775_v37 = vpop.f32.mrf.mxu2 }
 0x68a   :  { %v7776_v45 = vadd.f32 %v7775_v37, %v16019_v50  ;;  %7875 = vmatmul.bf16.gmra.mxu0 %v10342_v28  ;;  %v7828_v50 = vpop.f32.mrf.mxu3 }
 0x68b   :  { %8149 = vperm.xlu2 %10988, %v8141_v13  }
 0x68c   :  { %v16110_v21 = vadd.f32 %v7823_v38, %v7776_v45 }
 0x691   :  { %v7777_v61 = vpop.f32.mrf.mxu2 }
 0x692   :  { %v7778_v32 = vadd.f32 %v7777_v61, %v15962_v25  ;;  %v7830_v26 = vpop.f32.mrf.mxu3 }
 0x694   :  { %v16116_v14 = vadd.f32 %v7825_v20, %v7778_v32 }
 0x699   :  { %v7780_v34 = vpop.f32.mrf.mxu2 }
 0x69a   :  { %v7781_v3 = vadd.f32 %v7780_v34, %v15960_v18  ;;  %7880 = vmatmul.bf16.gmra.mxu0 %v7690_v33  ;;  %v7833_v7 = vpop.f32.mrf.mxu3 }
 0x69c   :  { %v16122_v24 = vadd.f32 %v7828_v50, %v7781_v3 }
 0x6a1   :  { %v7782_v53 = vpop.f32.mrf.mxu2 }
 0x6a2   :  { %v7783_v25 = vadd.f32 %v7782_v53, %v15978_v36 }
 0x6a3   :  { %v7894_v40 = vpop.f32.mrf.mxu1 }
 0x6a4   :  { %v16125_v41 = vadd.f32 %v7830_v26, %v7783_v25 }
 0x6a7   :  { %v7846_v63 = vpop.f32.mrf.mxu0 }
 0x6a8   :  { %v7847_v22 = vadd.f32 %v7846_v63, %v16005_v58 }
 0x6a9   :  { %v7785_v17 = vpop.f32.mrf.mxu2 }
 0x6aa   :  { %v7895_v29 = vadd.f32 %v7894_v40, %v7847_v22  ;;  %v7786_v58 = vadd.f32 %v7785_v17, %v16003_v11 }
 0x6ab   :  { %v7896_v56 = vpop.f32.mrf.mxu1 }
 0x6ac   :  { %11397 = vtanh.f32 %v7895_v29  ;;  %v16137_v43 = vadd.f32 %v7833_v7, %v7786_v58 }
 0x6af   :  { %v7848_v23 = vpop.f32.mrf.mxu0 }
 0x6b0   :  { %v7849_v52 = vadd.f32 %v7848_v23, %v16029_v46  ;;  %v7835_v46 = vpop.f32.mrf.mxu3 }
 0x6b1   :  { %v7787_v4 = vpop.f32.mrf.mxu2 }
 0x6b2   :  { %v7897_v19 = vadd.f32 %v7896_v56, %v7849_v52  ;;  %v16130_v8 = vpop.eup %11397 }
 0x6b3   :  { %v7899_v18 = vpop.f32.mrf.mxu1 }
 0x6b4   :  { %11399 = vtanh.f32 %v7897_v19 }
 0x6b7   :  { %v7851_v60 = vpop.f32.mrf.mxu0 }
 0x6b8   :  { %v7852_v36 = vadd.f32 %v7851_v60, %v16031_v47  ;;  %v7914_v6 = vpop.f32.mrf.mxu3 }
 0x6ba   :  { %v16132_v15 = vpop.eup %11399  ;;  %v7900_v55 = vadd.f32 %v7899_v18, %v7852_v36 }
 0x6bb   :  { %v7901_v48 = vpop.f32.mrf.mxu1  ;;  %v7959_v35 = vpack.c.bf16 %v16132_v15, %v16130_v8  ;;  %v10843_v8 = vld [vmem:[%s16221_s7 + $0x20] sm:$0xff]  ;;  %v7958_v15 = vld [vmem:[%s16221_s7 + $0x28] sm:$0x3] }
 0x6bc   :  { %11401 = vtanh.f32 %v7900_v55 }
 0x6bf   :  { %v7853_v5 = vpop.f32.mrf.mxu0 }
 0x6c0   :  { %v7854_v44 = vadd.f32 %v7853_v5, %v16053_v1  ;;  %v7916_v38 = vpop.f32.mrf.mxu3 }
 0x6c2   :  { %v7902_v2 = vadd.f32 %v7901_v48, %v7854_v44  ;;  %v16141_v16 = vpop.eup %11401 }
 0x6c3   :  { %v7904_v47 = vpop.f32.mrf.mxu1 }
 0x6c4   :  { %11403 = vtanh.f32 %v7902_v2 }
 0x6c7   :  { %v7856_v54 = vpop.f32.mrf.mxu0 }
 0x6c8   :  { %v7857_v11 = vadd.f32 %v7856_v54, %v16077_v12  ;;  %v7919_v37 = vpop.f32.mrf.mxu3 }
 0x6ca   :  { %v16143_v0 = vpop.eup %11403  ;;  %v7905_v39 = vadd.f32 %v7904_v47, %v7857_v11 }
 0x6cb   :  { %v7906_v31 = vpop.f32.mrf.mxu1  ;;  %v7960_v49 = vpack.c.bf16 %v16143_v0, %v16141_v16  ;;  %v10841_v16 = vld [vmem:[%s16221_s7 + $0x10] sm:$0xff]  ;;  %v10842_v0 = vld [vmem:[%s16221_s7 + $0x18] sm:$0xff] }
 0x6cc   :  { %11405 = vtanh.f32 %v7905_v39 }
 0x6cf   :  { %v7858_v30 = vpop.f32.mrf.mxu0 }
 0x6d0   :  { %v7859_v1 = vadd.f32 %v7858_v30, %v16062_v27  ;;  %v7921_v32 = vpop.f32.mrf.mxu3 }
 0x6d2   :  { %v7907_v9 = vadd.f32 %v7906_v31, %v7859_v1  ;;  %v16149_v20 = vpop.eup %11405  ;;  %v8031_v1 = vpop.permute.xlu2 %8030 }
 0x6d3   :  { %v7909_v28 = vpop.f32.mrf.mxu1 }
 0x6d4   :  { %11407 = vtanh.f32 %v7907_v9  ;;  %v8021_v9 = vpop.permute.xlu0 %8020 }
 0x6d7   :  { %v7861_v45 = vpop.f32.mrf.mxu0 }
 0x6d8   :  { %v7862_v12 = vadd.f32 %v7861_v45, %v16072_v42  ;;  %v7924_v34 = vpop.f32.mrf.mxu3 }
 0x6da   :  { %v16151_v51 = vpop.eup %11407  ;;  %v7910_v10 = vadd.f32 %v7909_v28, %v7862_v12  ;;  %v8011_v28 = vpop.permute.xlu2 %8010 }
 0x6db   :  { %v7961_v61 = vpack.c.bf16 %v16151_v51, %v16149_v20  ;;  %v7911_v50 = vpop.f32.mrf.mxu1  ;;  %v8026_v51 = vpop.permute.xlu1 %8025 }
 0x6dc   :  { %11409 = vtanh.f32 %v7910_v10 }
 0x6df   :  { %v7863_v13 = vpop.f32.mrf.mxu0 }
 0x6e0   :  { %v7864_v27 = vadd.f32 %v7863_v13, %v16080_v57  ;;  %v7926_v63 = vpop.f32.mrf.mxu3 }
 0x6e2   :  { %v7912_v33 = vadd.f32 %v7911_v50, %v7864_v27  ;;  %v11410_v53 = vpop.eup %11409  ;;  %v8006_v45 = vpop.permute.xlu2 %8005 }
 0x6e3   :  { %v8001_v27 = vpop.permute.xlu1 %8000 }
 0x6e4   :  { %11411 = vtanh.f32 %v7912_v33 }
 0x6e7   :  { %v7866_v3 = vpop.f32.mrf.mxu0 }
 0x6e8   :  { %v7867_v42 = vadd.f32 %v7866_v3, %v16093_v62  ;;  %v7929_v23 = vpop.f32.mrf.mxu3 }
 0x6ea   :  { %v11412_v26 = vpop.eup %11411  ;;  %v7915_v25 = vadd.f32 %v7914_v6, %v7867_v42 }
 0x6eb   :  { %v7962_v40 = vpack.c.bf16 %v11412_v26, %v11410_v53  ;;  %v7996_v26 = vpop.permute.xlu1 %7995 }
 0x6ec   :  { %11413 = vtanh.f32 %v7915_v25 }
 0x6ef   :  { %v7868_v22 = vpop.f32.mrf.mxu0 }
 0x6f0   :  { %v7869_v29 = vadd.f32 %v7868_v22, %v16098_v59  ;;  %v7931_v62 = vpop.f32.mrf.mxu3 }
 0x6f2   :  { %v7917_v56 = vadd.f32 %v7916_v38, %v7869_v29  ;;  %v11414_v19 = vpop.eup %11413 }
 0x6f4   :  { %11415 = vtanh.f32 %v7917_v56 }
 0x6f7   :  { %v7871_v57 = vpop.f32.mrf.mxu0 }
 0x6f8   :  { %v7872_v52 = vadd.f32 %v7871_v57, %v16110_v21 }
 0x6fa   :  { %v11416_v18 = vpop.eup %11415  ;;  %v7920_v7 = vadd.f32 %v7919_v37, %v7872_v52  ;;  %v8016_v37 = vpop.permute.xlu0 %8015 }
 0x6fb   :  { %v7963_v17 = vpack.c.bf16 %v11416_v18, %v11414_v19 }
 0x6fc   :  { %11417 = vtanh.f32 %v7920_v7 }
 0x6ff   :  { %v7873_v60 = vpop.f32.mrf.mxu0 }
 0x700   :  { %v7874_v36 = vadd.f32 %v7873_v60, %v16116_v14 }
 0x702   :  { %v7922_v58 = vadd.f32 %v7921_v32, %v7874_v36  ;;  %v11418_v59 = vpop.eup %11417  ;;  %v7991_v12 = vpop.permute.xlu0 %7990 }
 0x704   :  { %11419 = vtanh.f32 %v7922_v58 }
 0x707   :  { %v7876_v48 = vpop.f32.mrf.mxu0 }
 0x708   :  { %v7877_v4 = vadd.f32 %v7876_v48, %v16122_v24 }
 0x70a   :  { %v11420_v46 = vpop.eup %11419  ;;  %v7925_v5 = vadd.f32 %v7924_v34, %v7877_v4  ;;  %v7986_v10 = vpop.permute.xlu0 %7985 }
 0x70b   :  { %v7964_v55 = vpack.c.bf16 %v11420_v46, %v11418_v59 }
 0x70c   :  { %11421 = vtanh.f32 %v7925_v5 }
 0x70f   :  { %v7878_v44 = vpop.f32.mrf.mxu0 }
 0x710   :  { %v7879_v21 = vadd.f32 %v7878_v44, %v16125_v41  ;;  %v10839_v41 = vld [vmem:[%s16221_s7] sm:$0xff] }
 0x712   :  { %v7927_v2 = vadd.f32 %v7926_v63, %v7879_v21  ;;  %v11422_v14 = vpop.eup %11421 }
 0x714   :  { %11423 = vtanh.f32 %v7927_v2 }
 0x717   :  { %v7881_v47 = vpop.f32.mrf.mxu0 }
 0x718   :  { %v7882_v6 = vadd.f32 %v7881_v47, %v16137_v43  ;;  %v10840_v43 = vld [vmem:[%s16221_s7 + $0x8] sm:$0xff] }
 0x71a   :  { %v11424_v54 = vpop.eup %11423  ;;  %v7930_v11 = vadd.f32 %v7929_v23, %v7882_v6 }
 0x71b   :  { %v7965_v31 = vpack.c.bf16 %v11424_v54, %v11422_v14 }
 0x71c   :  { %11425 = vtanh.f32 %v7930_v11 }
 0x71f   :  { %v7883_v38 = vpop.f32.mrf.mxu0 }
 0x720   :  { %v10383_v38 = vld [vmem:[%s16222_s9] sm:$0xf] }
 0x722   :  { %v11426_v39 = vpop.eup %11425 }
 0x723   :  { %v7966_v30 = vpack.c.bf16 %v11426_v39, %v11426_v39  ;;  %v10844_v39 = vld [vmem:[%s16222_s9] sm:$0x10] }
 0x725   :  { %v8081_v24 = vsel %vm2250_vm0, %v7966_v30, 0  ;;  %v10384_v30 = vor.u32 %v10844_v39, %v10383_v38  ;;  %vm8231_vm0 = vcmask 11264  }
 0x726   :  { %8083 = vmatpush.bf16.msra.mxu1 %v8081_v24  ;;  %v8145_v24 = vpop.permute.xlu1 %8144 }
 0x72a   :  { %8084 = vmatpush.bf16.msra.mxu1 %v7965_v31 }
 0x72e   :  { %8085 = vmatpush.bf16.msra.mxu1 %v7964_v55 }
 0x732   :  { %8086 = vmatpush.bf16.msra.mxu1 %v7963_v17 }
 0x736   :  { %8087 = vmatpush.bf16.msra.mxu1 %v7962_v40 }
 0x73a   :  { %8088 = vmatpush.bf16.msra.mxu1 %v7961_v61  ;;  %v7981_v61 = vpop.permute.xlu2 %7980 }
 0x73e   :  { %8089 = vmatpush.bf16.msra.mxu1 %v7960_v49 }
 0x742   :  { %8090 = vmatpush.bf16.msra.mxu1 %v7959_v35  ;;  %v8054_v35 = vunpack.c.l.b16 %v7958_v15 }
 0x744   :  { %v8060_v49 = vpack.c.b16 %v8054_v35, %v8054_v35 }
 0x745   :  { %10375 = vmatmul.msk.bf16.vlgmr.msra.gmra.mxu1 %vm8061_vm7, %v10839_v41 }
 0x755   :  { %10376 = vmatmul.msk.bf16.gmra.mxu1 %vm8061_vm7, %v10840_v43 }
 0x765   :  { %10377 = vmatmul.msk.bf16.gmra.mxu1 %vm8061_vm7, %v10841_v16  ;;  %v8150_v16 = vpop.permute.xlu2 %8149 }
 0x775   :  { %10378 = vmatmul.msk.bf16.gmra.mxu1 %vm8061_vm7, %v10842_v0 }
 0x785   :  { %10379 = vmatmul.msk.bf16.gmra.mxu1 %vm8061_vm7, %v10843_v8 }
 0x795   :  { %10380 = vmatmul.msk.bf16.gmra.mxu1 %vm8061_vm7, %v8060_v49 }
 0x7c2   :  { %v8092_v20 = vpop.f32.mrf.mxu1 }
 0x7c3   :  { %v8093_v32 = vadd.f32 %v8092_v20, %v7981_v61 }
 0x7c5   :  { %11427 = vtanh.f32 %v8093_v32 }
 0x7ca   :  { %v8094_v13 = vpop.f32.mrf.mxu1 }
 0x7cb   :  { %v8095_v50 = vadd.f32 %v8094_v13, %v7986_v10  ;;  %v11428_v33 = vpop.eup %11427 }
 0x7cd   :  { %11429 = vtanh.f32 %v8095_v50 }
 0x7d2   :  { %v8097_v34 = vpop.f32.mrf.mxu1 }
 0x7d3   :  { %v11430_v3 = vpop.eup %11429  ;;  %v8098_v53 = vadd.f32 %v8097_v34, %v7991_v12 }
 0x7d4   :  { %v8134_v42 = vpack.c.bf16 %v11430_v3, %v11428_v33 }
 0x7d5   :  { %11431 = vtanh.f32 %v8098_v53 }
 0x7da   :  { %v8099_v25 = vpop.f32.mrf.mxu1 }
 0x7db   :  { %v8100_v40 = vadd.f32 %v8099_v25, %v7996_v26  ;;  %v11432_v63 = vpop.eup %11431 }
 0x7dd   :  { %11433 = vtanh.f32 %v8100_v40 }
 0x7e2   :  { %v8102_v22 = vpop.f32.mrf.mxu1 }
 0x7e3   :  { %v11434_v29 = vpop.eup %11433  ;;  %v8103_v5 = vadd.f32 %v8102_v22, %v8001_v27 }
 0x7e4   :  { %v8135_v56 = vpack.c.bf16 %v11434_v29, %v11432_v63 }
 0x7ea   :  { %v8104_v23 = vpop.f32.mrf.mxu1 }
 0x7eb   :  { %v8105_v46 = vadd.f32 %v8104_v23, %v8006_v45 }
 0x7f2   :  { %v8107_v57 = vpop.f32.mrf.mxu1 }
 0x7f3   :  { %v8108_v58 = vadd.f32 %v8107_v57, %v8011_v28 }
 0x7fa   :  { %v8109_v52 = vpop.f32.mrf.mxu1 }
 0x7fb   :  { %v8110_v36 = vadd.f32 %v8109_v52, %v8016_v37 }
 0x802   :  { %v8112_v19 = vpop.f32.mrf.mxu1 }
 0x803   :  { %v8113_v60 = vadd.f32 %v8112_v19, %v8021_v9 }
 0x80a   :  { %v8114_v18 = vpop.f32.mrf.mxu1 }
 0x80b   :  { %v8115_v62 = vadd.f32 %v8114_v18, %v8026_v51 }
 0x812   :  { %v8117_v7 = vpop.f32.mrf.mxu1 }
 0x813   :  { %v8118_v17 = vadd.f32 %v8117_v7, %v8031_v1 }
 0x815   :  { %11435 = vtanh.f32 %v8118_v17 }
 0x816   :  { %11437 = vtanh.f32 %v8115_v62 }
 0x817   :  { %11439 = vtanh.f32 %v8113_v60 }
 0x818   :  { %11441 = vtanh.f32 %v8110_v36 }
 0x819   :  { %11443 = vtanh.f32 %v8108_v58 }
 0x81a   :  { %v8119_v48 = vpop.f32.mrf.mxu1  ;;  %11445 = vtanh.f32 %v8105_v46 }
 0x81b   :  { %v11436_v59 = vpop.eup %11435  ;;  %11447 = vtanh.f32 %v8103_v5 }
 0x81c   :  { %v8139_v4 = vpack.c.bf16 %v11436_v59, %v11436_v59  ;;  %v11438_v55 = vpop.eup %11437 }
 0x81d   :  { %v11440_v21 = vpop.eup %11439 }
 0x81e   :  { %v8163_v44 = vsel %vm8161_vm8, %v8139_v4, 0  ;;  %v8138_v2 = vpack.c.bf16 %v11438_v55, %v11440_v21  ;;  %v11442_v47 = vpop.eup %11441 }
 0x81f   :  { %8167 = vmatpush.bf16.msra.mxu2 %v8163_v44  ;;  %v11444_v6 = vpop.eup %11443 }
 0x820   :  { %v8137_v14 = vpack.c.bf16 %v11442_v47, %v11444_v6  ;;  %v11446_v54 = vpop.eup %11445 }
 0x821   :  { %v11448_v11 = vpop.eup %11447 }
 0x822   :  { %v8136_v31 = vpack.c.bf16 %v11446_v54, %v11448_v11 }
 0x823   :  { %8168 = vmatpush.bf16.msra.mxu2 %v8138_v2 }
 0x827   :  { %8169 = vmatpush.bf16.msra.mxu2 %v8137_v14 }
 0x82b   :  { %8170 = vmatpush.bf16.msra.mxu2 %v8136_v31 }
 0x82f   :  { %8171 = vmatpush.bf16.msra.mxu2 %v8135_v56 }
 0x833   :  { %8172 = vmatpush.bf16.msra.mxu2 %v8134_v42 }
 0x836   :  { %10385 = vmatmul.msk.bf16.vlgmr.msra.gmra.mxu2 %vm8157_vm9, %v10384_v30 }
 0x8b9   :  { %v8174_v41 = vpop.f32.mrf.mxu2 }
 0x8ba   :  { %v8175_v43 = vadd.f32 %v8174_v41, %v8145_v24 }
 0x8bc   :  { %8229 = vst.msk [vmem:[%s16223_s11] sm:$0xff] %vm8179_vm10, %v8175_v43  ;;  %v8180_v15 = vsel %vm8179_vm10, %v8175_v43, -inf }
 0x8c1   :  { %v8176_v0 = vpop.f32.mrf.mxu2 }
 0x8c2   :  { %v8177_v8 = vadd.f32 %v8176_v0, %v8150_v16 }
 0x8c4   :  { %v8182_v35 = vsel %vm8181_vm11, %v8177_v8, -inf }
 0x8c5   :  { %v8183_v49 = vmax.f32 %v8180_v15, %v8182_v35 }
 0x8c7   :  { %v8184_v1 = vrot.slane %v8183_v49, 4 }
 0x8c9   :  { %v8185_v9 = vmax.f32 %v8183_v49, %v8184_v1 }
 0x8cb   :  { %v8186_v28 = vrot.slane %v8185_v9, 2 }
 0x8cd   :  { %v8187_v37 = vmax.f32 %v8185_v9, %v8186_v28 }
 0x8cf   :  { %v8188_v45 = vrot.slane %v8187_v37, 1 }
 0x8d1   :  { %v8189_v12 = vmax.f32 %v8187_v37, %v8188_v45 }
 0x8d3   :  { %v8190_v20 = vsub.f32 %v8175_v43, %v8189_v12  ;;  %v8191_v51 = vsub.f32 %v8177_v8, %v8189_v12 }
 0x8d5   :  { %v8192_v61 = vmul.f32 1.442695, %v8190_v20  ;;  %v8194_v32 = vmul.f32 1.442695, %v8191_v51 }
 0x8d7   :  { %11449 = vpow2.f32 %v8192_v61 }
 0x8d8   :  { %11451 = vpow2.f32 %v8194_v32 }
 0x8dd   :  { %v11450_v10 = vpop.eup %11449 }
 0x8de   :  { %v11452_v13 = vpop.eup %11451  ;;  %v8196_v50 = vsel %vm8179_vm10, %v11450_v10, 0.0 }
 0x8df   :  { %v8197_v27 = vsel %vm8181_vm11, %v11452_v13, 0.0 }
 0x8e0   :  { %v8198_v33 = vadd.f32 %v8197_v27, %v8196_v50 }
 0x8e2   :  { %v8199_v34 = vrot.slane %v8198_v33, 4 }
 0x8e4   :  { %v8200_v3 = vadd.f32 %v8199_v34, %v8198_v33 }
 0x8e6   :  { %v8201_v42 = vrot.slane %v8200_v3, 2 }
 0x8e8   :  { %v8202_v53 = vadd.f32 %v8201_v42, %v8200_v3 }
 0x8ea   :  { %v8203_v26 = vrot.slane %v8202_v53, 1 }
 0x8ec   :  { %v8204_v25 = vadd.f32 %v8203_v26, %v8202_v53 }
 0x8ee   :  { %11453 = vrcp.f32 %v8204_v25  ;;  %v8216_v29 = vand.u32 2147483648, %v8204_v25  ;;  %v8214_v23 = vand.u32 2147483647, %v8204_v25  ;;  %vm8210_vm13 = vweird.f32 %v8204_v25 }
 0x8f0   :  { %v8217_v52 = vor.u32 1.1754944e-38, %v8216_v29  ;;  %vm8215_vm15 = vcmp.eq.f32.partialorder %v8214_v23, 8.507059e+37 }
 0x8f4   :  { %v11454_v40 = vpop.eup %11453 }
 0x8f5   :  { %v8206_v63 = vmul.f32 %v11454_v40, %v8204_v25  ;;  %vm8211_vm12 = vweird.f32 %v11454_v40 }
 0x8f6   :  { %vm8212_vm14 = vmor %vm8210_vm13, %vm8211_vm12 }
 0x8f7   :  { %v8207_v22 = vsub.f32 1.0, %v8206_v63 }
 0x8f9   :  { %v8208_v56 = vmul.f32 %v11454_v40, %v8207_v22 }
 0x8fb   :  { %v8209_v57 = vadd.f32 %v11454_v40, %v8208_v56 }
 0x8fd   :  { %v8213_v19 = vsel %vm8212_vm14, %v11454_v40, %v8209_v57 }
 0x8fe   :  { %v8218_v18 = vsel %vm8215_vm15, %v8217_v52, %v8213_v19 }
 0x8ff   :  { %v8219_v7 = vmul.f32 %v11450_v10, %v8218_v18  ;;  %v8220_v17 = vmul.f32 %v11452_v13, %v8218_v18 }
 0x901   :  { %v8223_v62 = vrot.slane %v8219_v7, 6  ;;  %v8224_v60 = vrot.slane %v8220_v17, 6 }
 0x903   :  { %v8225_v36 = vsel %vm8161_vm8, %v8223_v62, %v8224_v60  ;;  %v8228_v58 = vsel %vm8161_vm8, %v8177_v8, %v8223_v62 }
 0x904   :  { %8230 = vst.msk [vmem:[%s16223_s11 + $0x8] sm:$0xff] %vm8179_vm10, %v8228_v58 }
 0x905   :  { %8232 = vst.msk [vmem:[%s16223_s11 + $0x10] sm:$0xf] %vm8231_vm0, %v8225_v36 }

</bundles_post_ra>
